<compile_context>
chip_gen: v7x
topology: tpu7x:2x2x1
jax: 0.10.0
libtpu: 0.0.40
codegen_flags: <defaults>
</compile_context>

<pallas_src>
import functools
import math

import numpy as np
import jax
import jax.numpy as jnp
from jax.experimental import pallas as pl
from jax.experimental.pallas import tpu as pltpu

_VMEM_LIMIT = 64 * 1024 * 1024   # scoped-VMEM cap hint (safe on v5e/v6e/v7x)


# --------------------------- small shared helpers ----------------------------
def _pick_row_tile(M, row_tile):
    """Choose a row-tile size and padded row count for an (M, ...) operand."""
    if M <= row_tile:
        return M, M                               # single full-extent block (always legal)
    assert row_tile % 8 == 0, "row_tile must be a multiple of 8 when tiling"
    return row_tile, ((M + row_tile - 1) // row_tile) * row_tile


def _dropout_inside(x, seed_ref, tile_id):
    """Inverted dropout (p=0.5) with the on-chip PRNG; mask depends on (seed, tile_id)."""
    pltpu.prng_seed(seed_ref[0] + tile_id)
    bits = pltpu.prng_random_bits(x.shape)
    keep = (bits & 1) == 0
    return jnp.where(keep, x * 2, 0.0)


# -------------------- gates_x kernel: x @ W_ih + bias (+ dropout) ------------
def _matmul_bias_kernel(*refs, apply_dropout):
    if apply_dropout:
        seed_ref, x_ref, w_ref, b_ref, o_ref = refs
    else:
        x_ref, w_ref, b_ref, o_ref = refs
    x = x_ref[...]
    if apply_dropout:
        x = _dropout_inside(x, seed_ref, pl.program_id(0))
    z = jnp.dot(x.astype(jnp.bfloat16), w_ref[...],
                preferred_element_type=jnp.float32) + b_ref[0][None, :]
    o_ref[...] = z.astype(o_ref.dtype)


def matmul_bias(x, w, b, *, seed=None, row_tile=256, out_dtype=jnp.float32):
    """out = dropout?(x) @ w + b.   x: (M, K) f32, w: (K, N) (bf16 ok), b: (1, N) f32."""
    M0, K = x.shape
    N = w.shape[1]
    tm, M = _pick_row_tile(M0, row_tile)
    if M != M0:
        x = jnp.pad(x, ((0, M - M0), (0, 0)))
    apply_dropout = seed is not None

    in_specs = [
        pl.BlockSpec((tm, K), lambda i: (i, 0)),
        pl.BlockSpec((K, N), lambda i: (0, 0), pipeline_mode=pl.Buffered(1)),
        pl.BlockSpec((1, N), lambda i: (0, 0), pipeline_mode=pl.Buffered(1)),
    ]
    args = [x, w, b]
    if apply_dropout:
        in_specs = [pl.BlockSpec(memory_space=pltpu.MemorySpace.SMEM)] + in_specs
        args = [seed] + args

    out = pl.pallas_call(
        functools.partial(_matmul_bias_kernel, apply_dropout=apply_dropout),
        out_shape=jax.ShapeDtypeStruct((M, N), out_dtype),
        grid_spec=pltpu.PrefetchScalarGridSpec(
            num_scalar_prefetch=0,
            grid=(M // tm,),
            in_specs=in_specs,
            out_specs=pl.BlockSpec((tm, N), lambda i: (i, 0)),
        ),
        compiler_params=pltpu.CompilerParams(
            dimension_semantics=("parallel",),
            vmem_limit_bytes=_VMEM_LIMIT),
        cost_estimate=pl.CostEstimate(
            flops=2 * M * K * N,
            transcendentals=0,
            bytes_accessed=M * K * 4 + K * N * w.dtype.itemsize + N * 4 + M * N * 4),
    )(*args)
    return out if M == M0 else out[:M0]


# ----------------------------- LSTM recurrence kernel ------------------------
def _lstm_kernel(gx_ref, whh_ref, out_ref, h_ref, c_ref):
    # gx_ref:  (block_t, B, 4H) f32  precomputed x@W_ih + bias for this time block
    # whh_ref: (H, 4H)          bf16 hidden->hidden weights (single-buffered, constant)
    # out_ref: (B, block_t, H)  bf16 hidden states, written batch-first
    # h_ref, c_ref: (B, H)      f32 carries persisted across the sequential grid
    H = h_ref.shape[-1]

    @pl.when(pl.program_id(0) == 0)
    def _():
        h_ref[...] = jnp.zeros_like(h_ref)
        c_ref[...] = jnp.zeros_like(c_ref)

    h = h_ref[...]
    c = c_ref[...]
    w_hh = whh_ref[...]                                # loaded once per time block

    for tt in range(gx_ref.shape[0]):                  # static unroll over the time block
        gates = gx_ref[tt] + jnp.dot(h.astype(w_hh.dtype), w_hh,
                                     preferred_element_type=jnp.float32)
        # PyTorch gate order: i, f, g, o.  Elementwise math stays in f32 (v5e-safe).
        i_g = jax.nn.sigmoid(gates[:, 0 * H:1 * H])
        f_g = jax.nn.sigmoid(gates[:, 1 * H:2 * H])
        g_g = jnp.tanh(gates[:, 2 * H:3 * H])
        o_g = jax.nn.sigmoid(gates[:, 3 * H:4 * H])
        c = f_g * c + i_g * g_g
        h = o_g * jnp.tanh(c)
        out_ref[:, tt, :] = h.astype(out_ref.dtype)    # batch-first write, no transpose

    h_ref[...] = h
    c_ref[...] = c


def lstm_forward(gates_x, w_hh_T, *, block_t=None, out_dtype=jnp.bfloat16):
    """gates_x: (T, B, 4H) f32 (= x@W_ih + b_ih + b_hh);  returns rnn_out (B, T, H)."""
    T, B, G = gates_x.shape
    H = G // 4

    if block_t is None:
        block_t = next((c for c in (32, 16, 8) if T % c == 0), T if T <= 32 else 8)
    block_t = min(block_t, T)
    T_pad = ((T + block_t - 1) // block_t) * block_t
    assert block_t == T_pad or block_t % 8 == 0, \
        "block_t must be a multiple of 8 (or cover the whole padded sequence)"
    if T_pad != T:
        gates_x = jnp.pad(gates_x, ((0, T_pad - T), (0, 0), (0, 0)))

    out = pl.pallas_call(
        _lstm_kernel,
        out_shape=jax.ShapeDtypeStruct((B, T_pad, H), out_dtype),
        grid_spec=pltpu.PrefetchScalarGridSpec(
            num_scalar_prefetch=0,
            grid=(T_pad // block_t,),
            in_specs=[
                pl.BlockSpec((block_t, B, G), lambda t: (t, 0, 0)),
                pl.BlockSpec((H, G), lambda t: (0, 0), pipeline_mode=pl.Buffered(1)),
            ],
            out_specs=pl.BlockSpec((B, block_t, H), lambda t: (0, t, 0)),
            scratch_shapes=[
                pltpu.VMEM((B, H), jnp.float32),       # h carry
                pltpu.VMEM((B, H), jnp.float32),       # c carry
            ],
        ),
        compiler_params=pltpu.CompilerParams(
            dimension_semantics=("arbitrary",),        # recurrence is sequential
            vmem_limit_bytes=_VMEM_LIMIT),
        cost_estimate=pl.CostEstimate(
            flops=T_pad * B * (2 * H * G + 10 * H),
            transcendentals=T_pad * B * 5 * H,
            bytes_accessed=(T_pad * B * G * 4 + H * G * w_hh_T.dtype.itemsize
                            + B * T_pad * H * np.dtype(out_dtype).itemsize)),
    )(gates_x, w_hh_T)
    return out if T_pad == T else out[:, :T]


# --------------------- output projection + log-softmax kernels ---------------
def _proj_logsoftmax_kernel(*refs, apply_dropout):
    """Single-V-block path: logits + numerically stable log-softmax in one shot."""
    if apply_dropout:
        seed_ref, x_ref, w_ref, b_ref, o_ref = refs
    else:
        x_ref, w_ref, b_ref, o_ref = refs
    x = x_ref[...]
    if apply_dropout:
        x = _dropout_inside(x, seed_ref, pl.program_id(0))
    z = jnp.dot(x.astype(jnp.bfloat16), w_ref[...],
                preferred_element_type=jnp.float32) + b_ref[0][None, :]
    z = z - jnp.max(z, axis=-1, keepdims=True)
    lse = jnp.log(jnp.sum(jnp.exp(z), axis=-1, keepdims=True))
    o_ref[...] = (z - lse).astype(o_ref.dtype)


def _proj_logsoftmax_kernel_vtiled(*refs, tv, apply_dropout):
    """V-tiled path (large vocab / v7x 64 MiB VMEM): the (tm, V) output block stays
    resident in VMEM across the vocab sweep; raw logits are staged into it tile by tile
    (128-lane-aligned offsets) and the whole row block is normalised on the last tile.
    Single matmul pass, single HBM writeback."""
    if apply_dropout:
        seed_ref, x_ref, w_ref, b_ref, o_ref = refs
    else:
        x_ref, w_ref, b_ref, o_ref = refs
    j = pl.program_id(1)

    x = x_ref[...]
    if apply_dropout:
        # Seed depends only on the row tile so every vocab tile sees the same mask.
        x = _dropout_inside(x, seed_ref, pl.program_id(0))
    z = jnp.dot(x.astype(jnp.bfloat16), w_ref[...],
                preferred_element_type=jnp.float32) + b_ref[0][None, :]

    col = pl.multiple_of(j * tv, 128)
    o_ref[:, pl.ds(col, tv)] = z.astype(o_ref.dtype)

    @pl.when(j == pl.num_programs(1) - 1)
    def _():
        zall = o_ref[...].astype(jnp.float32)
        zall = zall - jnp.max(zall, axis=-1, keepdims=True)
        lse = jnp.log(jnp.sum(jnp.exp(zall), axis=-1, keepdims=True))
        o_ref[...] = (zall - lse).astype(o_ref.dtype)


def linear_logsoftmax(x, w, b, *, seed=None, row_tile=256, vocab_tile=2048):
    """log_softmax(dropout?(x) @ w + b, axis=-1).  x: (M, H), w: (H, V) bf16, b: (1, V)."""
    M0, H = x.shape
    V0 = w.shape[1]
    tm, M = _pick_row_tile(M0, row_tile)
    if M != M0:
        x = jnp.pad(x, ((0, M - M0), (0, 0)))
    apply_dropout = seed is not None
    seed_args = [seed] if apply_dropout else []
    seed_specs = ([pl.BlockSpec(memory_space=pltpu.MemorySpace.SMEM)]
                  if apply_dropout else [])

    if V0 <= vocab_tile:
        V = V0
        kernel = functools.partial(_proj_logsoftmax_kernel, apply_dropout=apply_dropout)
        grid = (M // tm,)
        dims = ("parallel",)
        in_specs = seed_specs + [
            pl.BlockSpec((tm, H), lambda i: (i, 0)),
            pl.BlockSpec((H, V), lambda i: (0, 0), pipeline_mode=pl.Buffered(1)),
            pl.BlockSpec((1, V), lambda i: (0, 0), pipeline_mode=pl.Buffered(1)),
        ]
        out_spec = pl.BlockSpec((tm, V), lambda i: (i, 0))
    else:
        tv = vocab_tile
        n_vt = (V0 + tv - 1) // tv
        V = n_vt * tv
        if V != V0:
            w = jnp.pad(w, ((0, 0), (0, V - V0)))
            b = jnp.pad(b, ((0, 0), (0, V - V0)), constant_values=-1e30)
        kernel = functools.partial(_proj_logsoftmax_kernel_vtiled, tv=tv,
                                   apply_dropout=apply_dropout)
        grid = (M // tm, n_vt)
        dims = ("parallel", "arbitrary")       # vocab sweep carries the resident out block
        in_specs = seed_specs + [
            pl.BlockSpec((tm, H), lambda i, j: (i, 0)),
            pl.BlockSpec((H, tv), lambda i, j: (0, j)),
            pl.BlockSpec((1, tv), lambda i, j: (0, j)),
        ]
        out_spec = pl.BlockSpec((tm, V), lambda i, j: (i, 0))

    out = pl.pallas_call(
        kernel,
        out_shape=jax.ShapeDtypeStruct((M, V), jnp.float32),
        grid_spec=pltpu.PrefetchScalarGridSpec(
            num_scalar_prefetch=0,
            grid=grid,
            in_specs=in_specs,
            out_specs=out_spec,
        ),
        compiler_params=pltpu.CompilerParams(
            dimension_semantics=dims,
            vmem_limit_bytes=_VMEM_LIMIT),
        cost_estimate=pl.CostEstimate(
            flops=2 * M * H * V,
            transcendentals=M * V,
            bytes_accessed=(M * H * x.dtype.itemsize + H * V * w.dtype.itemsize
                            + V * 4 + M * V * 4)),
    )(*(seed_args + [x, w, b]))
    return out if (M == M0 and V == V0) else out[:M0, :V0]


# --------------------------------- full forward ------------------------------
def lm_forward(params, sent, *, training=True, dropout_rng=None,
               block_t=None, row_tile=256, vocab_tile=2048):
    """Mirrors LM.forward(sent, training).  sent: (B, S) int32 -> (B, S-1, V) log-probs."""
    B, S = sent.shape
    T = S - 1
    H = params["w_hh_T"].shape[0]
    D = params["embedding"].shape[1]

    seed_emb = seed_rnn = None
    if training:
        if dropout_rng is None:
            dropout_rng = jax.random.PRNGKey(0)
        seeds = jax.random.randint(dropout_rng, (2,), 0, 2 ** 31 - 1, dtype=jnp.int32)
        seed_emb, seed_rnn = seeds[0:1], seeds[1:2]

    # Embedding gather done time-major, so no full-tensor transpose is ever needed.
    # TODO(synk): the gather itself stays in XLA (data-dependent indices).
    tokens = sent[:, :-1].T                                      # (T, B) int32 (tiny)
    emb = jnp.take(params["embedding"], tokens, axis=0)          # (T, B, D) f32

    # Input->hidden half of the LSTM hoisted out of the recurrence (+ fused dropout #1,
    # + folded bias): one big MXU matmul over all T*B rows.
    gates_x = matmul_bias(emb.reshape(T * B, D), params["w_ih_T"], params["lstm_bias"],
                          seed=seed_emb, row_tile=row_tile)       # (T*B, 4H) f32
    gates_x = gates_x.reshape(T, B, 4 * H)

    # Recurrent half; hidden states written batch-first (bf16) directly by the kernel.
    rnn_out = lstm_forward(gates_x, params["w_hh_T"], block_t=block_t)   # (B, T, H)

    # Output projection + log-softmax (+ fused dropout #2).
    flat = rnn_out.reshape(B * T, H)                              # free reshape
    preds = linear_logsoftmax(flat, params["w_out_T"], params["b_out"],
                              seed=seed_rnn, row_tile=row_tile, vocab_tile=vocab_tile)
    return preds.reshape(B, T, -1)                                # (B, T, V) log-probs


# ---------------------------------- param init --------------------------------
def init_params(key, vocab_size, word_dim, h_dim):
    ks = jax.random.split(key, 7)
    inv = 1.0 / math.sqrt(h_dim)
    emb = jax.random.normal(ks[0], (vocab_size, word_dim), jnp.float32)
    w_ih = jax.random.uniform(ks[1], (4 * h_dim, word_dim), jnp.float32, -inv, inv)
    w_hh = jax.random.uniform(ks[2], (4 * h_dim, h_dim), jnp.float32, -inv, inv)
    b_ih = jax.random.uniform(ks[3], (4 * h_dim,), jnp.float32, -inv, inv)
    b_hh = jax.random.uniform(ks[4], (4 * h_dim,), jnp.float32, -inv, inv)
    w_out = jax.random.uniform(ks[5], (vocab_size, h_dim), jnp.float32, -inv, inv)
    b_out = jax.random.uniform(ks[6], (vocab_size,), jnp.float32, -inv, inv)
    return {
        "embedding": emb,                                 # (Vocab, D) f32
        "w_ih_T": w_ih.T.astype(jnp.bfloat16),            # (D, 4H)  MXU operand
        "w_hh_T": w_hh.T.astype(jnp.bfloat16),            # (H, 4H)  MXU operand
        "lstm_bias": (b_ih + b_hh)[None, :],              # (1, 4H)  f32 (folded into gates_x)
        "w_out_T": w_out.T.astype(jnp.bfloat16),          # (H, Vocab) MXU operand
        "b_out": b_out[None, :],                          # (1, Vocab) f32
    }


# ------------------------ pure-JAX reference (validation) ---------------------
def reference_forward(params, sent):
    emb = jnp.take(params["embedding"], sent[:, :-1], axis=0)        # (B, T, D)
    w_ih = params["w_ih_T"].astype(jnp.float32)
    w_hh = params["w_hh_T"].astype(jnp.float32)
    bias = params["lstm_bias"][0]
    B, T, _ = emb.shape
    H = w_hh.shape[0]

    def step(carry, x_t):
        h, c = carry
        g = x_t @ w_ih + h @ w_hh + bias
        i = jax.nn.sigmoid(g[:, :H])
        f = jax.nn.sigmoid(g[:, H:2 * H])
        gg = jnp.tanh(g[:, 2 * H:3 * H])
        o = jax.nn.sigmoid(g[:, 3 * H:])
        c = f * c + i * gg
        h = o * jnp.tanh(c)
        return (h, c), h

    zeros = jnp.zeros((B, H), jnp.float32)
    _, hs = jax.lax.scan(step, (zeros, zeros), jnp.transpose(emb, (1, 0, 2)))
    rnn = jnp.transpose(hs, (1, 0, 2))                                # (B, T, H)
    logits = rnn @ params["w_out_T"].astype(jnp.float32) + params["b_out"][0]
    return jax.nn.log_softmax(logits, axis=-1)


if __name__ == "__main__":
    # Small shapes consistent with the module (num_layers=1), scaled down from its
    # defaults (vocab 10000, word_dim 512, h_dim 1024).
    VOCAB, WORD_DIM, H_DIM = 512, 128, 128
    B, S = 8, 33                                     # T = 32

    root = jax.random.PRNGKey(0)
    k_param, k_sent = jax.random.split(root)
    params = init_params(k_param, VOCAB, WORD_DIM, H_DIM)
    sent = jax.random.randint(k_sent, (B, S), 0, VOCAB, dtype=jnp.int32)

    # block_t=16 -> 2 sequential LSTM grid steps (exercises the h/c carry);
    # row_tile=128 -> 2 parallel row tiles in the gates / projection kernels.
    fwd = jax.jit(functools.partial(lm_forward, training=False,
                                    block_t=16, row_tile=128))
    preds = fwd(params, sent)
    jax.block_until_ready(preds)

    assert preds.shape == (B, S - 1, VOCAB)
    assert bool(jnp.all(jnp.isfinite(preds)))
    # log-softmax rows should exponentiate-sum to 1
    row_sums = jnp.exp(preds).sum(-1)
    assert bool(jnp.allclose(row_sums, 1.0, atol=1e-3))
    # match a pure-JAX reference (tolerance covers bf16 MXU operands / bf16 rnn_out)
    ref = reference_forward(params, sent)
    assert float(jnp.max(jnp.abs(preds - ref))) < 5e-2
    print("KERNEL_OK")
</pallas_src>

<mosaic_0001>
module attributes {stable_mosaic.version = 11 : i64} {
  func.func @_matmul_bias_kernel(%arg0: i32, %arg1: memref<128x128xf32, #tpu.memory_space<vmem>>, %arg2: memref<128x512xbf16, #tpu.memory_space<vmem>>, %arg3: memref<1x512xf32, #tpu.memory_space<vmem>>, %arg4: memref<128x512xf32, #tpu.memory_space<vmem>>) attributes {dimension_semantics = [#tpu.dimension_semantics<parallel>], iteration_bounds = array<i64: 2>, scalar_prefetch = 0 : i64, scratch_operands = 0 : i64, tpu.core_type = #tpu.core_type<tc>, window_params = [{transform_indices = @transform_0, window_bounds = array<i64: 128, 128>}, {pipeline_mode = #tpu.pipeline_mode<synchronous>, transform_indices = @transform_1, window_bounds = array<i64: 128, 512>}, {pipeline_mode = #tpu.pipeline_mode<synchronous>, transform_indices = @transform_2, window_bounds = array<i64: 1, 512>}, {transform_indices = @transform_3, window_bounds = array<i64: 128, 512>}]} {
    %c0 = arith.constant 0 : index
    %c0_0 = arith.constant 0 : index
    %0 = vector.load %arg1[%c0, %c0_0] : memref<128x128xf32, #tpu.memory_space<vmem>>, vector<128x128xf32>
    %1 = arith.truncf %0 : vector<128x128xf32> to vector<128x128xbf16>
    %c0_1 = arith.constant 0 : index
    %c0_2 = arith.constant 0 : index
    %2 = vector.load %arg2[%c0_1, %c0_2] : memref<128x512xbf16, #tpu.memory_space<vmem>>, vector<128x512xbf16>
    %cst = arith.constant dense<0.000000e+00> : vector<128x512xf32>
    %3 = tpu.matmul %1, %2, %cst {dimension_numbers = #tpu.dot_dimension_numbers<[1], [0], [0], [1], [0, 0, 1, 1], [], []>} : vector<128x128xbf16>, vector<128x512xbf16>, vector<128x512xf32> -> vector<128x512xf32>
    %c0_3 = arith.constant 0 : index
    %c0_4 = arith.constant 0 : index
    %4 = vector.load %arg3[%c0_3, %c0_4] : memref<1x512xf32, #tpu.memory_space<vmem>>, vector<1x512xf32>
    %5 = vector.shape_cast %4 : vector<1x512xf32> to vector<512xf32>
    %6 = vector.shape_cast %5 : vector<512xf32> to vector<1x512xf32>
    %7 = vector.broadcast %6 : vector<1x512xf32> to vector<128x512xf32>
    %8 = arith.addf %3, %7 : vector<128x512xf32>
    %c0_5 = arith.constant 0 : index
    %c0_6 = arith.constant 0 : index
    %9 = vector.load %arg4[%c0_5, %c0_6] : memref<128x512xf32, #tpu.memory_space<vmem>>, vector<128x512xf32>
    tpu.vector_store %arg4[%c0_5, %c0_6], %8 {strides = array<i32>} : memref<128x512xf32, #tpu.memory_space<vmem>>, vector<128x512xf32>,
    return
  }
  func.func @transform_0(%arg0: i32) -> (i32, i32) {
    %c0_i32 = arith.constant 0 : i32
    %c0_i32_0 = arith.constant 0 : i32
    return %arg0, %c0_i32 : i32, i32
  }
  func.func @transform_1(%arg0: i32) -> (i32, i32) {
    %c0_i32 = arith.constant 0 : i32
    %c0_i32_0 = arith.constant 0 : i32
    %c0_i32_1 = arith.constant 0 : i32
    return %c0_i32, %c0_i32_0 : i32, i32
  }
  func.func @transform_2(%arg0: i32) -> (i32, i32) {
    %c0_i32 = arith.constant 0 : i32
    %c0_i32_0 = arith.constant 0 : i32
    %c0_i32_1 = arith.constant 0 : i32
    return %c0_i32, %c0_i32_0 : i32, i32
  }
  func.func @transform_3(%arg0: i32) -> (i32, i32) {
    %c0_i32 = arith.constant 0 : i32
    %c0_i32_0 = arith.constant 0 : i32
    return %arg0, %c0_i32 : i32, i32
  }
}

module attributes {stable_mosaic.version = 11 : i64} {
  func.func @_lstm_kernel(%arg0: i32, %arg1: memref<16x8x512xf32, #tpu.memory_space<vmem>>, %arg2: memref<128x512xbf16, #tpu.memory_space<vmem>>, %arg3: memref<8x16x128xbf16, #tpu.memory_space<vmem>>, %arg4: memref<8x128xf32, #tpu.memory_space<vmem>>, %arg5: memref<8x128xf32, #tpu.memory_space<vmem>>) attributes {dimension_semantics = [#tpu.dimension_semantics<arbitrary>], iteration_bounds = array<i64: 2>, scalar_prefetch = 0 : i64, scratch_operands = 2 : i64, tpu.core_type = #tpu.core_type<tc>, window_params = [{transform_indices = @transform_0, window_bounds = array<i64: 16, 8, 512>}, {pipeline_mode = #tpu.pipeline_mode<synchronous>, transform_indices = @transform_1, window_bounds = array<i64: 128, 512>}, {transform_indices = @transform_2, window_bounds = array<i64: 8, 16, 128>}]} {
    %c0_i32 = arith.constant 0 : i32
    %0 = arith.cmpi eq, %arg0, %c0_i32 : i32
    %1 = arith.extui %0 : i1 to i32
    %c0_i32_0 = arith.constant 0 : i32
    %2 = arith.cmpi ne, %1, %c0_i32_0 : i32
    scf.if %2 {
      %cst_154 = arith.constant 0.000000e+00 : f32
      %552 = vector.broadcast %cst_154 : f32 to vector<8x128xf32>
      %c0_155 = arith.constant 0 : index
      %c0_156 = arith.constant 0 : index
      %553 = vector.load %arg4[%c0_155, %c0_156] : memref<8x128xf32, #tpu.memory_space<vmem>>, vector<8x128xf32>
      tpu.vector_store %arg4[%c0_155, %c0_156], %552 {strides = array<i32>} : memref<8x128xf32, #tpu.memory_space<vmem>>, vector<8x128xf32>,
      %cst_157 = arith.constant 0.000000e+00 : f32
      %554 = vector.broadcast %cst_157 : f32 to vector<8x128xf32>
      %c0_158 = arith.constant 0 : index
      %c0_159 = arith.constant 0 : index
      %555 = vector.load %arg5[%c0_158, %c0_159] : memref<8x128xf32, #tpu.memory_space<vmem>>, vector<8x128xf32>
      tpu.vector_store %arg5[%c0_158, %c0_159], %554 {strides = array<i32>} : memref<8x128xf32, #tpu.memory_space<vmem>>, vector<8x128xf32>,
    } else {
    }
    %c0 = arith.constant 0 : index
    %c0_1 = arith.constant 0 : index
    %3 = vector.load %arg4[%c0, %c0_1] : memref<8x128xf32, #tpu.memory_space<vmem>>, vector<8x128xf32>
    %c0_2 = arith.constant 0 : index
    %c0_3 = arith.constant 0 : index
    %4 = vector.load %arg5[%c0_2, %c0_3] : memref<8x128xf32, #tpu.memory_space<vmem>>, vector<8x128xf32>
    %c0_4 = arith.constant 0 : index
    %c0_5 = arith.constant 0 : index
    %5 = vector.load %arg2[%c0_4, %c0_5] : memref<128x512xbf16, #tpu.memory_space<vmem>>, vector<128x512xbf16>
    %c0_6 = arith.constant 0 : index
    %c0_7 = arith.constant 0 : index
    %c0_8 = arith.constant 0 : index
    %6 = vector.load %arg1[%c0_6, %c0_7, %c0_8] : memref<16x8x512xf32, #tpu.memory_space<vmem>>, vector<1x8x512xf32>
    %7 = vector.shape_cast %6 : vector<1x8x512xf32> to vector<8x512xf32>
    %8 = arith.truncf %3 : vector<8x128xf32> to vector<8x128xbf16>
    %cst = arith.constant dense<0.000000e+00> : vector<8x512xf32>
    %9 = tpu.matmul %8, %5, %cst {dimension_numbers = #tpu.dot_dimension_numbers<[1], [0], [0], [1], [0, 0, 1, 1], [], []>} : vector<8x128xbf16>, vector<128x512xbf16>, vector<8x512xf32> -> vector<8x512xf32>
    %10 = arith.addf %7, %9 : vector<8x512xf32>
    %11 = vector.extract_strided_slice %10 {offsets = [0, 0], sizes = [8, 128], strides = [1, 1]} : vector<8x512xf32> to vector<8x128xf32>
    %12 = arith.negf %11 : vector<8x128xf32>
    %13 = math.exp %12 : vector<8x128xf32>
    %cst_9 = arith.constant 1.000000e+00 : f32
    %14 = vector.broadcast %cst_9 : f32 to vector<8x128xf32>
    %15 = arith.addf %14, %13 : vector<8x128xf32>
    %16 = arith.divf %14, %15 : vector<8x128xf32>
    %17 = vector.extract_strided_slice %10 {offsets = [0, 128], sizes = [8, 128], strides = [1, 1]} : vector<8x512xf32> to vector<8x128xf32>
    %18 = arith.negf %17 : vector<8x128xf32>
    %19 = math.exp %18 : vector<8x128xf32>
    %cst_10 = arith.constant 1.000000e+00 : f32
    %20 = vector.broadcast %cst_10 : f32 to vector<8x128xf32>
    %21 = arith.addf %20, %19 : vector<8x128xf32>
    %22 = arith.divf %20, %21 : vector<8x128xf32>
    %23 = vector.extract_strided_slice %10 {offsets = [0, 256], sizes = [8, 128], strides = [1, 1]} : vector<8x512xf32> to vector<8x128xf32>
    %24 = math.tanh %23 : vector<8x128xf32>
    %25 = vector.extract_strided_slice %10 {offsets = [0, 384], sizes = [8, 128], strides = [1, 1]} : vector<8x512xf32> to vector<8x128xf32>
    %26 = arith.negf %25 : vector<8x128xf32>
    %27 = math.exp %26 : vector<8x128xf32>
    %cst_11 = arith.constant 1.000000e+00 : f32
    %28 = vector.broadcast %cst_11 : f32 to vector<8x128xf32>
    %29 = arith.addf %28, %27 : vector<8x128xf32>
    %30 = arith.divf %28, %29 : vector<8x128xf32>
    %31 = arith.mulf %22, %4 : vector<8x128xf32>
    %32 = arith.mulf %16, %24 : vector<8x128xf32>
    %33 = arith.addf %31, %32 : vector<8x128xf32>
    %34 = math.tanh %33 : vector<8x128xf32>
    %35 = arith.mulf %30, %34 : vector<8x128xf32>
    %36 = arith.truncf %35 : vector<8x128xf32> to vector<8x128xbf16>
    %c0_12 = arith.constant 0 : index
    %c0_13 = arith.constant 0 : index
    %c0_14 = arith.constant 0 : index
    %37 = vector.load %arg3[%c0_12, %c0_13, %c0_14] : memref<8x16x128xbf16, #tpu.memory_space<vmem>>, vector<8x1x128xbf16>
    %38 = vector.shape_cast %37 : vector<8x1x128xbf16> to vector<8x128xbf16>
    %39 = vector.shape_cast %36 : vector<8x128xbf16> to vector<8x1x128xbf16>
    tpu.vector_store %arg3[%c0_12, %c0_13, %c0_14], %39 {strides = array<i32>} : memref<8x16x128xbf16, #tpu.memory_space<vmem>>, vector<8x1x128xbf16>,
    %c1 = arith.constant 1 : index
    %c0_15 = arith.constant 0 : index
    %c0_16 = arith.constant 0 : index
    %40 = vector.load %arg1[%c1, %c0_15, %c0_16] : memref<16x8x512xf32, #tpu.memory_space<vmem>>, vector<1x8x512xf32>
    %41 = vector.shape_cast %40 : vector<1x8x512xf32> to vector<8x512xf32>
    %42 = arith.truncf %35 : vector<8x128xf32> to vector<8x128xbf16>
    %cst_17 = arith.constant dense<0.000000e+00> : vector<8x512xf32>
    %43 = tpu.matmul %42, %5, %cst_17 {dimension_numbers = #tpu.dot_dimension_numbers<[1], [0], [0], [1], [0, 0, 1, 1], [], []>} : vector<8x128xbf16>, vector<128x512xbf16>, vector<8x512xf32> -> vector<8x512xf32>
    %44 = arith.addf %41, %43 : vector<8x512xf32>
    %45 = vector.extract_strided_slice %44 {offsets = [0, 0], sizes = [8, 128], strides = [1, 1]} : vector<8x512xf32> to vector<8x128xf32>
    %46 = arith.negf %45 : vector<8x128xf32>
    %47 = math.exp %46 : vector<8x128xf32>
    %cst_18 = arith.constant 1.000000e+00 : f32
    %48 = vector.broadcast %cst_18 : f32 to vector<8x128xf32>
    %49 = arith.addf %48, %47 : vector<8x128xf32>
    %50 = arith.divf %48, %49 : vector<8x128xf32>
    %51 = vector.extract_strided_slice %44 {offsets = [0, 128], sizes = [8, 128], strides = [1, 1]} : vector<8x512xf32> to vector<8x128xf32>
    %52 = arith.negf %51 : vector<8x128xf32>
    %53 = math.exp %52 : vector<8x128xf32>
    %cst_19 = arith.constant 1.000000e+00 : f32
    %54 = vector.broadcast %cst_19 : f32 to vector<8x128xf32>
    %55 = arith.addf %54, %53 : vector<8x128xf32>
    %56 = arith.divf %54, %55 : vector<8x128xf32>
    %57 = vector.extract_strided_slice %44 {offsets = [0, 256], sizes = [8, 128], strides = [1, 1]} : vector<8x512xf32> to vector<8x128xf32>
    %58 = math.tanh %57 : vector<8x128xf32>
    %59 = vector.extract_strided_slice %44 {offsets = [0, 384], sizes = [8, 128], strides = [1, 1]} : vector<8x512xf32> to vector<8x128xf32>
    %60 = arith.negf %59 : vector<8x128xf32>
    %61 = math.exp %60 : vector<8x128xf32>
    %cst_20 = arith.constant 1.000000e+00 : f32
    %62 = vector.broadcast %cst_20 : f32 to vector<8x128xf32>
    %63 = arith.addf %62, %61 : vector<8x128xf32>
    %64 = arith.divf %62, %63 : vector<8x128xf32>
    %65 = arith.mulf %56, %33 : vector<8x128xf32>
    %66 = arith.mulf %50, %58 : vector<8x128xf32>
    %67 = arith.addf %65, %66 : vector<8x128xf32>
    %68 = math.tanh %67 : vector<8x128xf32>
    %69 = arith.mulf %64, %68 : vector<8x128xf32>
    %70 = arith.truncf %69 : vector<8x128xf32> to vector<8x128xbf16>
    %c0_21 = arith.constant 0 : index
    %c1_22 = arith.constant 1 : index
    %c0_23 = arith.constant 0 : index
    %71 = vector.load %arg3[%c0_21, %c1_22, %c0_23] : memref<8x16x128xbf16, #tpu.memory_space<vmem>>, vector<8x1x128xbf16>
    %72 = vector.shape_cast %71 : vector<8x1x128xbf16> to vector<8x128xbf16>
    %73 = vector.shape_cast %70 : vector<8x128xbf16> to vector<8x1x128xbf16>
    tpu.vector_store %arg3[%c0_21, %c1_22, %c0_23], %73 {strides = array<i32>} : memref<8x16x128xbf16, #tpu.memory_space<vmem>>, vector<8x1x128xbf16>,
    %c2 = arith.constant 2 : index
    %c0_24 = arith.constant 0 : index
    %c0_25 = arith.constant 0 : index
    %74 = vector.load %arg1[%c2, %c0_24, %c0_25] : memref<16x8x512xf32, #tpu.memory_space<vmem>>, vector<1x8x512xf32>
    %75 = vector.shape_cast %74 : vector<1x8x512xf32> to vector<8x512xf32>
    %76 = arith.truncf %69 : vector<8x128xf32> to vector<8x128xbf16>
    %cst_26 = arith.constant dense<0.000000e+00> : vector<8x512xf32>
    %77 = tpu.matmul %76, %5, %cst_26 {dimension_numbers = #tpu.dot_dimension_numbers<[1], [0], [0], [1], [0, 0, 1, 1], [], []>} : vector<8x128xbf16>, vector<128x512xbf16>, vector<8x512xf32> -> vector<8x512xf32>
    %78 = arith.addf %75, %77 : vector<8x512xf32>
    %79 = vector.extract_strided_slice %78 {offsets = [0, 0], sizes = [8, 128], strides = [1, 1]} : vector<8x512xf32> to vector<8x128xf32>
    %80 = arith.negf %79 : vector<8x128xf32>
    %81 = math.exp %80 : vector<8x128xf32>
    %cst_27 = arith.constant 1.000000e+00 : f32
    %82 = vector.broadcast %cst_27 : f32 to vector<8x128xf32>
    %83 = arith.addf %82, %81 : vector<8x128xf32>
    %84 = arith.divf %82, %83 : vector<8x128xf32>
    %85 = vector.extract_strided_slice %78 {offsets = [0, 128], sizes = [8, 128], strides = [1, 1]} : vector<8x512xf32> to vector<8x128xf32>
    %86 = arith.negf %85 : vector<8x128xf32>
    %87 = math.exp %86 : vector<8x128xf32>
    %cst_28 = arith.constant 1.000000e+00 : f32
    %88 = vector.broadcast %cst_28 : f32 to vector<8x128xf32>
    %89 = arith.addf %88, %87 : vector<8x128xf32>
    %90 = arith.divf %88, %89 : vector<8x128xf32>
    %91 = vector.extract_strided_slice %78 {offsets = [0, 256], sizes = [8, 128], strides = [1, 1]} : vector<8x512xf32> to vector<8x128xf32>
    %92 = math.tanh %91 : vector<8x128xf32>
    %93 = vector.extract_strided_slice %78 {offsets = [0, 384], sizes = [8, 128], strides = [1, 1]} : vector<8x512xf32> to vector<8x128xf32>
    %94 = arith.negf %93 : vector<8x128xf32>
    %95 = math.exp %94 : vector<8x128xf32>
    %cst_29 = arith.constant 1.000000e+00 : f32
    %96 = vector.broadcast %cst_29 : f32 to vector<8x128xf32>
    %97 = arith.addf %96, %95 : vector<8x128xf32>
    %98 = arith.divf %96, %97 : vector<8x128xf32>
    %99 = arith.mulf %90, %67 : vector<8x128xf32>
    %100 = arith.mulf %84, %92 : vector<8x128xf32>
    %101 = arith.addf %99, %100 : vector<8x128xf32>
    %102 = math.tanh %101 : vector<8x128xf32>
    %103 = arith.mulf %98, %102 : vector<8x128xf32>
    %104 = arith.truncf %103 : vector<8x128xf32> to vector<8x128xbf16>
    %c0_30 = arith.constant 0 : index
    %c2_31 = arith.constant 2 : index
    %c0_32 = arith.constant 0 : index
    %105 = vector.load %arg3[%c0_30, %c2_31, %c0_32] : memref<8x16x128xbf16, #tpu.memory_space<vmem>>, vector<8x1x128xbf16>
    %106 = vector.shape_cast %105 : vector<8x1x128xbf16> to vector<8x128xbf16>
    %107 = vector.shape_cast %104 : vector<8x128xbf16> to vector<8x1x128xbf16>
    tpu.vector_store %arg3[%c0_30, %c2_31, %c0_32], %107 {strides = array<i32>} : memref<8x16x128xbf16, #tpu.memory_space<vmem>>, vector<8x1x128xbf16>,
    %c3 = arith.constant 3 : index
    %c0_33 = arith.constant 0 : index
    %c0_34 = arith.constant 0 : index
    %108 = vector.load %arg1[%c3, %c0_33, %c0_34] : memref<16x8x512xf32, #tpu.memory_space<vmem>>, vector<1x8x512xf32>
    %109 = vector.shape_cast %108 : vector<1x8x512xf32> to vector<8x512xf32>
    %110 = arith.truncf %103 : vector<8x128xf32> to vector<8x128xbf16>
    %cst_35 = arith.constant dense<0.000000e+00> : vector<8x512xf32>
    %111 = tpu.matmul %110, %5, %cst_35 {dimension_numbers = #tpu.dot_dimension_numbers<[1], [0], [0], [1], [0, 0, 1, 1], [], []>} : vector<8x128xbf16>, vector<128x512xbf16>, vector<8x512xf32> -> vector<8x512xf32>
    %112 = arith.addf %109, %111 : vector<8x512xf32>
    %113 = vector.extract_strided_slice %112 {offsets = [0, 0], sizes = [8, 128], strides = [1, 1]} : vector<8x512xf32> to vector<8x128xf32>
    %114 = arith.negf %113 : vector<8x128xf32>
    %115 = math.exp %114 : vector<8x128xf32>
    %cst_36 = arith.constant 1.000000e+00 : f32
    %116 = vector.broadcast %cst_36 : f32 to vector<8x128xf32>
    %117 = arith.addf %116, %115 : vector<8x128xf32>
    %118 = arith.divf %116, %117 : vector<8x128xf32>
    %119 = vector.extract_strided_slice %112 {offsets = [0, 128], sizes = [8, 128], strides = [1, 1]} : vector<8x512xf32> to vector<8x128xf32>
    %120 = arith.negf %119 : vector<8x128xf32>
    %121 = math.exp %120 : vector<8x128xf32>
    %cst_37 = arith.constant 1.000000e+00 : f32
    %122 = vector.broadcast %cst_37 : f32 to vector<8x128xf32>
    %123 = arith.addf %122, %121 : vector<8x128xf32>
    %124 = arith.divf %122, %123 : vector<8x128xf32>
    %125 = vector.extract_strided_slice %112 {offsets = [0, 256], sizes = [8, 128], strides = [1, 1]} : vector<8x512xf32> to vector<8x128xf32>
    %126 = math.tanh %125 : vector<8x128xf32>
    %127 = vector.extract_strided_slice %112 {offsets = [0, 384], sizes = [8, 128], strides = [1, 1]} : vector<8x512xf32> to vector<8x128xf32>
    %128 = arith.negf %127 : vector<8x128xf32>
    %129 = math.exp %128 : vector<8x128xf32>
    %cst_38 = arith.constant 1.000000e+00 : f32
    %130 = vector.broadcast %cst_38 : f32 to vector<8x128xf32>
    %131 = arith.addf %130, %129 : vector<8x128xf32>
    %132 = arith.divf %130, %131 : vector<8x128xf32>
    %133 = arith.mulf %124, %101 : vector<8x128xf32>
    %134 = arith.mulf %118, %126 : vector<8x128xf32>
    %135 = arith.addf %133, %134 : vector<8x128xf32>
    %136 = math.tanh %135 : vector<8x128xf32>
    %137 = arith.mulf %132, %136 : vector<8x128xf32>
    %138 = arith.truncf %137 : vector<8x128xf32> to vector<8x128xbf16>
    %c0_39 = arith.constant 0 : index
    %c3_40 = arith.constant 3 : index
    %c0_41 = arith.constant 0 : index
    %139 = vector.load %arg3[%c0_39, %c3_40, %c0_41] : memref<8x16x128xbf16, #tpu.memory_space<vmem>>, vector<8x1x128xbf16>
    %140 = vector.shape_cast %139 : vector<8x1x128xbf16> to vector<8x128xbf16>
    %141 = vector.shape_cast %138 : vector<8x128xbf16> to vector<8x1x128xbf16>
    tpu.vector_store %arg3[%c0_39, %c3_40, %c0_41], %141 {strides = array<i32>} : memref<8x16x128xbf16, #tpu.memory_space<vmem>>, vector<8x1x128xbf16>,
    %c4 = arith.constant 4 : index
    %c0_42 = arith.constant 0 : index
    %c0_43 = arith.constant 0 : index
    %142 = vector.load %arg1[%c4, %c0_42, %c0_43] : memref<16x8x512xf32, #tpu.memory_space<vmem>>, vector<1x8x512xf32>
    %143 = vector.shape_cast %142 : vector<1x8x512xf32> to vector<8x512xf32>
    %144 = arith.truncf %137 : vector<8x128xf32> to vector<8x128xbf16>
    %cst_44 = arith.constant dense<0.000000e+00> : vector<8x512xf32>
    %145 = tpu.matmul %144, %5, %cst_44 {dimension_numbers = #tpu.dot_dimension_numbers<[1], [0], [0], [1], [0, 0, 1, 1], [], []>} : vector<8x128xbf16>, vector<128x512xbf16>, vector<8x512xf32> -> vector<8x512xf32>
    %146 = arith.addf %143, %145 : vector<8x512xf32>
    %147 = vector.extract_strided_slice %146 {offsets = [0, 0], sizes = [8, 128], strides = [1, 1]} : vector<8x512xf32> to vector<8x128xf32>
    %148 = arith.negf %147 : vector<8x128xf32>
    %149 = math.exp %148 : vector<8x128xf32>
    %cst_45 = arith.constant 1.000000e+00 : f32
    %150 = vector.broadcast %cst_45 : f32 to vector<8x128xf32>
    %151 = arith.addf %150, %149 : vector<8x128xf32>
    %152 = arith.divf %150, %151 : vector<8x128xf32>
    %153 = vector.extract_strided_slice %146 {offsets = [0, 128], sizes = [8, 128], strides = [1, 1]} : vector<8x512xf32> to vector<8x128xf32>
    %154 = arith.negf %153 : vector<8x128xf32>
    %155 = math.exp %154 : vector<8x128xf32>
    %cst_46 = arith.constant 1.000000e+00 : f32
    %156 = vector.broadcast %cst_46 : f32 to vector<8x128xf32>
    %157 = arith.addf %156, %155 : vector<8x128xf32>
    %158 = arith.divf %156, %157 : vector<8x128xf32>
    %159 = vector.extract_strided_slice %146 {offsets = [0, 256], sizes = [8, 128], strides = [1, 1]} : vector<8x512xf32> to vector<8x128xf32>
    %160 = math.tanh %159 : vector<8x128xf32>
    %161 = vector.extract_strided_slice %146 {offsets = [0, 384], sizes = [8, 128], strides = [1, 1]} : vector<8x512xf32> to vector<8x128xf32>
    %162 = arith.negf %161 : vector<8x128xf32>
    %163 = math.exp %162 : vector<8x128xf32>
    %cst_47 = arith.constant 1.000000e+00 : f32
    %164 = vector.broadcast %cst_47 : f32 to vector<8x128xf32>
    %165 = arith.addf %164, %163 : vector<8x128xf32>
    %166 = arith.divf %164, %165 : vector<8x128xf32>
    %167 = arith.mulf %158, %135 : vector<8x128xf32>
    %168 = arith.mulf %152, %160 : vector<8x128xf32>
    %169 = arith.addf %167, %168 : vector<8x128xf32>
    %170 = math.tanh %169 : vector<8x128xf32>
    %171 = arith.mulf %166, %170 : vector<8x128xf32>
    %172 = arith.truncf %171 : vector<8x128xf32> to vector<8x128xbf16>
    %c0_48 = arith.constant 0 : index
    %c4_49 = arith.constant 4 : index
    %c0_50 = arith.constant 0 : index
    %173 = vector.load %arg3[%c0_48, %c4_49, %c0_50] : memref<8x16x128xbf16, #tpu.memory_space<vmem>>, vector<8x1x128xbf16>
    %174 = vector.shape_cast %173 : vector<8x1x128xbf16> to vector<8x128xbf16>
    %175 = vector.shape_cast %172 : vector<8x128xbf16> to vector<8x1x128xbf16>
    tpu.vector_store %arg3[%c0_48, %c4_49, %c0_50], %175 {strides = array<i32>} : memref<8x16x128xbf16, #tpu.memory_space<vmem>>, vector<8x1x128xbf16>,
    %c5 = arith.constant 5 : index
    %c0_51 = arith.constant 0 : index
    %c0_52 = arith.constant 0 : index
    %176 = vector.load %arg1[%c5, %c0_51, %c0_52] : memref<16x8x512xf32, #tpu.memory_space<vmem>>, vector<1x8x512xf32>
    %177 = vector.shape_cast %176 : vector<1x8x512xf32> to vector<8x512xf32>
    %178 = arith.truncf %171 : vector<8x128xf32> to vector<8x128xbf16>
    %cst_53 = arith.constant dense<0.000000e+00> : vector<8x512xf32>
    %179 = tpu.matmul %178, %5, %cst_53 {dimension_numbers = #tpu.dot_dimension_numbers<[1], [0], [0], [1], [0, 0, 1, 1], [], []>} : vector<8x128xbf16>, vector<128x512xbf16>, vector<8x512xf32> -> vector<8x512xf32>
    %180 = arith.addf %177, %179 : vector<8x512xf32>
    %181 = vector.extract_strided_slice %180 {offsets = [0, 0], sizes = [8, 128], strides = [1, 1]} : vector<8x512xf32> to vector<8x128xf32>
    %182 = arith.negf %181 : vector<8x128xf32>
    %183 = math.exp %182 : vector<8x128xf32>
    %cst_54 = arith.constant 1.000000e+00 : f32
    %184 = vector.broadcast %cst_54 : f32 to vector<8x128xf32>
    %185 = arith.addf %184, %183 : vector<8x128xf32>
    %186 = arith.divf %184, %185 : vector<8x128xf32>
    %187 = vector.extract_strided_slice %180 {offsets = [0, 128], sizes = [8, 128], strides = [1, 1]} : vector<8x512xf32> to vector<8x128xf32>
    %188 = arith.negf %187 : vector<8x128xf32>
    %189 = math.exp %188 : vector<8x128xf32>
    %cst_55 = arith.constant 1.000000e+00 : f32
    %190 = vector.broadcast %cst_55 : f32 to vector<8x128xf32>
    %191 = arith.addf %190, %189 : vector<8x128xf32>
    %192 = arith.divf %190, %191 : vector<8x128xf32>
    %193 = vector.extract_strided_slice %180 {offsets = [0, 256], sizes = [8, 128], strides = [1, 1]} : vector<8x512xf32> to vector<8x128xf32>
    %194 = math.tanh %193 : vector<8x128xf32>
    %195 = vector.extract_strided_slice %180 {offsets = [0, 384], sizes = [8, 128], strides = [1, 1]} : vector<8x512xf32> to vector<8x128xf32>
    %196 = arith.negf %195 : vector<8x128xf32>
    %197 = math.exp %196 : vector<8x128xf32>
    %cst_56 = arith.constant 1.000000e+00 : f32
    %198 = vector.broadcast %cst_56 : f32 to vector<8x128xf32>
    %199 = arith.addf %198, %197 : vector<8x128xf32>
    %200 = arith.divf %198, %199 : vector<8x128xf32>
    %201 = arith.mulf %192, %169 : vector<8x128xf32>
    %202 = arith.mulf %186, %194 : vector<8x128xf32>
    %203 = arith.addf %201, %202 : vector<8x128xf32>
    %204 = math.tanh %203 : vector<8x128xf32>
    %205 = arith.mulf %200, %204 : vector<8x128xf32>
    %206 = arith.truncf %205 : vector<8x128xf32> to vector<8x128xbf16>
    %c0_57 = arith.constant 0 : index
    %c5_58 = arith.constant 5 : index
    %c0_59 = arith.constant 0 : index
    %207 = vector.load %arg3[%c0_57, %c5_58, %c0_59] : memref<8x16x128xbf16, #tpu.memory_space<vmem>>, vector<8x1x128xbf16>
    %208 = vector.shape_cast %207 : vector<8x1x128xbf16> to vector<8x128xbf16>
    %209 = vector.shape_cast %206 : vector<8x128xbf16> to vector<8x1x128xbf16>
    tpu.vector_store %arg3[%c0_57, %c5_58, %c0_59], %209 {strides = array<i32>} : memref<8x16x128xbf16, #tpu.memory_space<vmem>>, vector<8x1x128xbf16>,
    %c6 = arith.constant 6 : index
    %c0_60 = arith.constant 0 : index
    %c0_61 = arith.constant 0 : index
    %210 = vector.load %arg1[%c6, %c0_60, %c0_61] : memref<16x8x512xf32, #tpu.memory_space<vmem>>, vector<1x8x512xf32>
    %211 = vector.shape_cast %210 : vector<1x8x512xf32> to vector<8x512xf32>
    %212 = arith.truncf %205 : vector<8x128xf32> to vector<8x128xbf16>
    %cst_62 = arith.constant dense<0.000000e+00> : vector<8x512xf32>
    %213 = tpu.matmul %212, %5, %cst_62 {dimension_numbers = #tpu.dot_dimension_numbers<[1], [0], [0], [1], [0, 0, 1, 1], [], []>} : vector<8x128xbf16>, vector<128x512xbf16>, vector<8x512xf32> -> vector<8x512xf32>
    %214 = arith.addf %211, %213 : vector<8x512xf32>
    %215 = vector.extract_strided_slice %214 {offsets = [0, 0], sizes = [8, 128], strides = [1, 1]} : vector<8x512xf32> to vector<8x128xf32>
    %216 = arith.negf %215 : vector<8x128xf32>
    %217 = math.exp %216 : vector<8x128xf32>
    %cst_63 = arith.constant 1.000000e+00 : f32
    %218 = vector.broadcast %cst_63 : f32 to vector<8x128xf32>
    %219 = arith.addf %218, %217 : vector<8x128xf32>
    %220 = arith.divf %218, %219 : vector<8x128xf32>
    %221 = vector.extract_strided_slice %214 {offsets = [0, 128], sizes = [8, 128], strides = [1, 1]} : vector<8x512xf32> to vector<8x128xf32>
    %222 = arith.negf %221 : vector<8x128xf32>
    %223 = math.exp %222 : vector<8x128xf32>
    %cst_64 = arith.constant 1.000000e+00 : f32
    %224 = vector.broadcast %cst_64 : f32 to vector<8x128xf32>
    %225 = arith.addf %224, %223 : vector<8x128xf32>
    %226 = arith.divf %224, %225 : vector<8x128xf32>
    %227 = vector.extract_strided_slice %214 {offsets = [0, 256], sizes = [8, 128], strides = [1, 1]} : vector<8x512xf32> to vector<8x128xf32>
    %228 = math.tanh %227 : vector<8x128xf32>
    %229 = vector.extract_strided_slice %214 {offsets = [0, 384], sizes = [8, 128], strides = [1, 1]} : vector<8x512xf32> to vector<8x128xf32>
    %230 = arith.negf %229 : vector<8x128xf32>
    %231 = math.exp %230 : vector<8x128xf32>
    %cst_65 = arith.constant 1.000000e+00 : f32
    %232 = vector.broadcast %cst_65 : f32 to vector<8x128xf32>
    %233 = arith.addf %232, %231 : vector<8x128xf32>
    %234 = arith.divf %232, %233 : vector<8x128xf32>
    %235 = arith.mulf %226, %203 : vector<8x128xf32>
    %236 = arith.mulf %220, %228 : vector<8x128xf32>
    %237 = arith.addf %235, %236 : vector<8x128xf32>
    %238 = math.tanh %237 : vector<8x128xf32>
    %239 = arith.mulf %234, %238 : vector<8x128xf32>
    %240 = arith.truncf %239 : vector<8x128xf32> to vector<8x128xbf16>
    %c0_66 = arith.constant 0 : index
    %c6_67 = arith.constant 6 : index
    %c0_68 = arith.constant 0 : index
    %241 = vector.load %arg3[%c0_66, %c6_67, %c0_68] : memref<8x16x128xbf16, #tpu.memory_space<vmem>>, vector<8x1x128xbf16>
    %242 = vector.shape_cast %241 : vector<8x1x128xbf16> to vector<8x128xbf16>
    %243 = vector.shape_cast %240 : vector<8x128xbf16> to vector<8x1x128xbf16>
    tpu.vector_store %arg3[%c0_66, %c6_67, %c0_68], %243 {strides = array<i32>} : memref<8x16x128xbf16, #tpu.memory_space<vmem>>, vector<8x1x128xbf16>,
    %c7 = arith.constant 7 : index
    %c0_69 = arith.constant 0 : index
    %c0_70 = arith.constant 0 : index
    %244 = vector.load %arg1[%c7, %c0_69, %c0_70] : memref<16x8x512xf32, #tpu.memory_space<vmem>>, vector<1x8x512xf32>
    %245 = vector.shape_cast %244 : vector<1x8x512xf32> to vector<8x512xf32>
    %246 = arith.truncf %239 : vector<8x128xf32> to vector<8x128xbf16>
    %cst_71 = arith.constant dense<0.000000e+00> : vector<8x512xf32>
    %247 = tpu.matmul %246, %5, %cst_71 {dimension_numbers = #tpu.dot_dimension_numbers<[1], [0], [0], [1], [0, 0, 1, 1], [], []>} : vector<8x128xbf16>, vector<128x512xbf16>, vector<8x512xf32> -> vector<8x512xf32>
    %248 = arith.addf %245, %247 : vector<8x512xf32>
    %249 = vector.extract_strided_slice %248 {offsets = [0, 0], sizes = [8, 128], strides = [1, 1]} : vector<8x512xf32> to vector<8x128xf32>
    %250 = arith.negf %249 : vector<8x128xf32>
    %251 = math.exp %250 : vector<8x128xf32>
    %cst_72 = arith.constant 1.000000e+00 : f32
    %252 = vector.broadcast %cst_72 : f32 to vector<8x128xf32>
    %253 = arith.addf %252, %251 : vector<8x128xf32>
    %254 = arith.divf %252, %253 : vector<8x128xf32>
    %255 = vector.extract_strided_slice %248 {offsets = [0, 128], sizes = [8, 128], strides = [1, 1]} : vector<8x512xf32> to vector<8x128xf32>
    %256 = arith.negf %255 : vector<8x128xf32>
    %257 = math.exp %256 : vector<8x128xf32>
    %cst_73 = arith.constant 1.000000e+00 : f32
    %258 = vector.broadcast %cst_73 : f32 to vector<8x128xf32>
    %259 = arith.addf %258, %257 : vector<8x128xf32>
    %260 = arith.divf %258, %259 : vector<8x128xf32>
    %261 = vector.extract_strided_slice %248 {offsets = [0, 256], sizes = [8, 128], strides = [1, 1]} : vector<8x512xf32> to vector<8x128xf32>
    %262 = math.tanh %261 : vector<8x128xf32>
    %263 = vector.extract_strided_slice %248 {offsets = [0, 384], sizes = [8, 128], strides = [1, 1]} : vector<8x512xf32> to vector<8x128xf32>
    %264 = arith.negf %263 : vector<8x128xf32>
    %265 = math.exp %264 : vector<8x128xf32>
    %cst_74 = arith.constant 1.000000e+00 : f32
    %266 = vector.broadcast %cst_74 : f32 to vector<8x128xf32>
    %267 = arith.addf %266, %265 : vector<8x128xf32>
    %268 = arith.divf %266, %267 : vector<8x128xf32>
    %269 = arith.mulf %260, %237 : vector<8x128xf32>
    %270 = arith.mulf %254, %262 : vector<8x128xf32>
    %271 = arith.addf %269, %270 : vector<8x128xf32>
    %272 = math.tanh %271 : vector<8x128xf32>
    %273 = arith.mulf %268, %272 : vector<8x128xf32>
    %274 = arith.truncf %273 : vector<8x128xf32> to vector<8x128xbf16>
    %c0_75 = arith.constant 0 : index
    %c7_76 = arith.constant 7 : index
    %c0_77 = arith.constant 0 : index
    %275 = vector.load %arg3[%c0_75, %c7_76, %c0_77] : memref<8x16x128xbf16, #tpu.memory_space<vmem>>, vector<8x1x128xbf16>
    %276 = vector.shape_cast %275 : vector<8x1x128xbf16> to vector<8x128xbf16>
    %277 = vector.shape_cast %274 : vector<8x128xbf16> to vector<8x1x128xbf16>
    tpu.vector_store %arg3[%c0_75, %c7_76, %c0_77], %277 {strides = array<i32>} : memref<8x16x128xbf16, #tpu.memory_space<vmem>>, vector<8x1x128xbf16>,
    %c8 = arith.constant 8 : index
    %c0_78 = arith.constant 0 : index
    %c0_79 = arith.constant 0 : index
    %278 = vector.load %arg1[%c8, %c0_78, %c0_79] : memref<16x8x512xf32, #tpu.memory_space<vmem>>, vector<1x8x512xf32>
    %279 = vector.shape_cast %278 : vector<1x8x512xf32> to vector<8x512xf32>
    %280 = arith.truncf %273 : vector<8x128xf32> to vector<8x128xbf16>
    %cst_80 = arith.constant dense<0.000000e+00> : vector<8x512xf32>
    %281 = tpu.matmul %280, %5, %cst_80 {dimension_numbers = #tpu.dot_dimension_numbers<[1], [0], [0], [1], [0, 0, 1, 1], [], []>} : vector<8x128xbf16>, vector<128x512xbf16>, vector<8x512xf32> -> vector<8x512xf32>
    %282 = arith.addf %279, %281 : vector<8x512xf32>
    %283 = vector.extract_strided_slice %282 {offsets = [0, 0], sizes = [8, 128], strides = [1, 1]} : vector<8x512xf32> to vector<8x128xf32>
    %284 = arith.negf %283 : vector<8x128xf32>
    %285 = math.exp %284 : vector<8x128xf32>
    %cst_81 = arith.constant 1.000000e+00 : f32
    %286 = vector.broadcast %cst_81 : f32 to vector<8x128xf32>
    %287 = arith.addf %286, %285 : vector<8x128xf32>
    %288 = arith.divf %286, %287 : vector<8x128xf32>
    %289 = vector.extract_strided_slice %282 {offsets = [0, 128], sizes = [8, 128], strides = [1, 1]} : vector<8x512xf32> to vector<8x128xf32>
    %290 = arith.negf %289 : vector<8x128xf32>
    %291 = math.exp %290 : vector<8x128xf32>
    %cst_82 = arith.constant 1.000000e+00 : f32
    %292 = vector.broadcast %cst_82 : f32 to vector<8x128xf32>
    %293 = arith.addf %292, %291 : vector<8x128xf32>
    %294 = arith.divf %292, %293 : vector<8x128xf32>
    %295 = vector.extract_strided_slice %282 {offsets = [0, 256], sizes = [8, 128], strides = [1, 1]} : vector<8x512xf32> to vector<8x128xf32>
    %296 = math.tanh %295 : vector<8x128xf32>
    %297 = vector.extract_strided_slice %282 {offsets = [0, 384], sizes = [8, 128], strides = [1, 1]} : vector<8x512xf32> to vector<8x128xf32>
    %298 = arith.negf %297 : vector<8x128xf32>
    %299 = math.exp %298 : vector<8x128xf32>
    %cst_83 = arith.constant 1.000000e+00 : f32
    %300 = vector.broadcast %cst_83 : f32 to vector<8x128xf32>
    %301 = arith.addf %300, %299 : vector<8x128xf32>
    %302 = arith.divf %300, %301 : vector<8x128xf32>
    %303 = arith.mulf %294, %271 : vector<8x128xf32>
    %304 = arith.mulf %288, %296 : vector<8x128xf32>
    %305 = arith.addf %303, %304 : vector<8x128xf32>
    %306 = math.tanh %305 : vector<8x128xf32>
    %307 = arith.mulf %302, %306 : vector<8x128xf32>
    %308 = arith.truncf %307 : vector<8x128xf32> to vector<8x128xbf16>
    %c0_84 = arith.constant 0 : index
    %c8_85 = arith.constant 8 : index
    %c0_86 = arith.constant 0 : index
    %309 = vector.load %arg3[%c0_84, %c8_85, %c0_86] : memref<8x16x128xbf16, #tpu.memory_space<vmem>>, vector<8x1x128xbf16>
    %310 = vector.shape_cast %309 : vector<8x1x128xbf16> to vector<8x128xbf16>
    %311 = vector.shape_cast %308 : vector<8x128xbf16> to vector<8x1x128xbf16>
    tpu.vector_store %arg3[%c0_84, %c8_85, %c0_86], %311 {strides = array<i32>} : memref<8x16x128xbf16, #tpu.memory_space<vmem>>, vector<8x1x128xbf16>,
    %c9 = arith.constant 9 : index
    %c0_87 = arith.constant 0 : index
    %c0_88 = arith.constant 0 : index
    %312 = vector.load %arg1[%c9, %c0_87, %c0_88] : memref<16x8x512xf32, #tpu.memory_space<vmem>>, vector<1x8x512xf32>
    %313 = vector.shape_cast %312 : vector<1x8x512xf32> to vector<8x512xf32>
    %314 = arith.truncf %307 : vector<8x128xf32> to vector<8x128xbf16>
    %cst_89 = arith.constant dense<0.000000e+00> : vector<8x512xf32>
    %315 = tpu.matmul %314, %5, %cst_89 {dimension_numbers = #tpu.dot_dimension_numbers<[1], [0], [0], [1], [0, 0, 1, 1], [], []>} : vector<8x128xbf16>, vector<128x512xbf16>, vector<8x512xf32> -> vector<8x512xf32>
    %316 = arith.addf %313, %315 : vector<8x512xf32>
    %317 = vector.extract_strided_slice %316 {offsets = [0, 0], sizes = [8, 128], strides = [1, 1]} : vector<8x512xf32> to vector<8x128xf32>
    %318 = arith.negf %317 : vector<8x128xf32>
    %319 = math.exp %318 : vector<8x128xf32>
    %cst_90 = arith.constant 1.000000e+00 : f32
    %320 = vector.broadcast %cst_90 : f32 to vector<8x128xf32>
    %321 = arith.addf %320, %319 : vector<8x128xf32>
    %322 = arith.divf %320, %321 : vector<8x128xf32>
    %323 = vector.extract_strided_slice %316 {offsets = [0, 128], sizes = [8, 128], strides = [1, 1]} : vector<8x512xf32> to vector<8x128xf32>
    %324 = arith.negf %323 : vector<8x128xf32>
    %325 = math.exp %324 : vector<8x128xf32>
    %cst_91 = arith.constant 1.000000e+00 : f32
    %326 = vector.broadcast %cst_91 : f32 to vector<8x128xf32>
    %327 = arith.addf %326, %325 : vector<8x128xf32>
    %328 = arith.divf %326, %327 : vector<8x128xf32>
    %329 = vector.extract_strided_slice %316 {offsets = [0, 256], sizes = [8, 128], strides = [1, 1]} : vector<8x512xf32> to vector<8x128xf32>
    %330 = math.tanh %329 : vector<8x128xf32>
    %331 = vector.extract_strided_slice %316 {offsets = [0, 384], sizes = [8, 128], strides = [1, 1]} : vector<8x512xf32> to vector<8x128xf32>
    %332 = arith.negf %331 : vector<8x128xf32>
    %333 = math.exp %332 : vector<8x128xf32>
    %cst_92 = arith.constant 1.000000e+00 : f32
    %334 = vector.broadcast %cst_92 : f32 to vector<8x128xf32>
    %335 = arith.addf %334, %333 : vector<8x128xf32>
    %336 = arith.divf %334, %335 : vector<8x128xf32>
    %337 = arith.mulf %328, %305 : vector<8x128xf32>
    %338 = arith.mulf %322, %330 : vector<8x128xf32>
    %339 = arith.addf %337, %338 : vector<8x128xf32>
    %340 = math.tanh %339 : vector<8x128xf32>
    %341 = arith.mulf %336, %340 : vector<8x128xf32>
    %342 = arith.truncf %341 : vector<8x128xf32> to vector<8x128xbf16>
    %c0_93 = arith.constant 0 : index
    %c9_94 = arith.constant 9 : index
    %c0_95 = arith.constant 0 : index
    %343 = vector.load %arg3[%c0_93, %c9_94, %c0_95] : memref<8x16x128xbf16, #tpu.memory_space<vmem>>, vector<8x1x128xbf16>
    %344 = vector.shape_cast %343 : vector<8x1x128xbf16> to vector<8x128xbf16>
    %345 = vector.shape_cast %342 : vector<8x128xbf16> to vector<8x1x128xbf16>
    tpu.vector_store %arg3[%c0_93, %c9_94, %c0_95], %345 {strides = array<i32>} : memref<8x16x128xbf16, #tpu.memory_space<vmem>>, vector<8x1x128xbf16>,
    %c10 = arith.constant 10 : index
    %c0_96 = arith.constant 0 : index
    %c0_97 = arith.constant 0 : index
    %346 = vector.load %arg1[%c10, %c0_96, %c0_97] : memref<16x8x512xf32, #tpu.memory_space<vmem>>, vector<1x8x512xf32>
    %347 = vector.shape_cast %346 : vector<1x8x512xf32> to vector<8x512xf32>
    %348 = arith.truncf %341 : vector<8x128xf32> to vector<8x128xbf16>
    %cst_98 = arith.constant dense<0.000000e+00> : vector<8x512xf32>
    %349 = tpu.matmul %348, %5, %cst_98 {dimension_numbers = #tpu.dot_dimension_numbers<[1], [0], [0], [1], [0, 0, 1, 1], [], []>} : vector<8x128xbf16>, vector<128x512xbf16>, vector<8x512xf32> -> vector<8x512xf32>
    %350 = arith.addf %347, %349 : vector<8x512xf32>
    %351 = vector.extract_strided_slice %350 {offsets = [0, 0], sizes = [8, 128], strides = [1, 1]} : vector<8x512xf32> to vector<8x128xf32>
    %352 = arith.negf %351 : vector<8x128xf32>
    %353 = math.exp %352 : vector<8x128xf32>
    %cst_99 = arith.constant 1.000000e+00 : f32
    %354 = vector.broadcast %cst_99 : f32 to vector<8x128xf32>
    %355 = arith.addf %354, %353 : vector<8x128xf32>
    %356 = arith.divf %354, %355 : vector<8x128xf32>
    %357 = vector.extract_strided_slice %350 {offsets = [0, 128], sizes = [8, 128], strides = [1, 1]} : vector<8x512xf32> to vector<8x128xf32>
    %358 = arith.negf %357 : vector<8x128xf32>
    %359 = math.exp %358 : vector<8x128xf32>
    %cst_100 = arith.constant 1.000000e+00 : f32
    %360 = vector.broadcast %cst_100 : f32 to vector<8x128xf32>
    %361 = arith.addf %360, %359 : vector<8x128xf32>
    %362 = arith.divf %360, %361 : vector<8x128xf32>
    %363 = vector.extract_strided_slice %350 {offsets = [0, 256], sizes = [8, 128], strides = [1, 1]} : vector<8x512xf32> to vector<8x128xf32>
    %364 = math.tanh %363 : vector<8x128xf32>
    %365 = vector.extract_strided_slice %350 {offsets = [0, 384], sizes = [8, 128], strides = [1, 1]} : vector<8x512xf32> to vector<8x128xf32>
    %366 = arith.negf %365 : vector<8x128xf32>
    %367 = math.exp %366 : vector<8x128xf32>
    %cst_101 = arith.constant 1.000000e+00 : f32
    %368 = vector.broadcast %cst_101 : f32 to vector<8x128xf32>
    %369 = arith.addf %368, %367 : vector<8x128xf32>
    %370 = arith.divf %368, %369 : vector<8x128xf32>
    %371 = arith.mulf %362, %339 : vector<8x128xf32>
    %372 = arith.mulf %356, %364 : vector<8x128xf32>
    %373 = arith.addf %371, %372 : vector<8x128xf32>
    %374 = math.tanh %373 : vector<8x128xf32>
    %375 = arith.mulf %370, %374 : vector<8x128xf32>
    %376 = arith.truncf %375 : vector<8x128xf32> to vector<8x128xbf16>
    %c0_102 = arith.constant 0 : index
    %c10_103 = arith.constant 10 : index
    %c0_104 = arith.constant 0 : index
    %377 = vector.load %arg3[%c0_102, %c10_103, %c0_104] : memref<8x16x128xbf16, #tpu.memory_space<vmem>>, vector<8x1x128xbf16>
    %378 = vector.shape_cast %377 : vector<8x1x128xbf16> to vector<8x128xbf16>
    %379 = vector.shape_cast %376 : vector<8x128xbf16> to vector<8x1x128xbf16>
    tpu.vector_store %arg3[%c0_102, %c10_103, %c0_104], %379 {strides = array<i32>} : memref<8x16x128xbf16, #tpu.memory_space<vmem>>, vector<8x1x128xbf16>,
    %c11 = arith.constant 11 : index
    %c0_105 = arith.constant 0 : index
    %c0_106 = arith.constant 0 : index
    %380 = vector.load %arg1[%c11, %c0_105, %c0_106] : memref<16x8x512xf32, #tpu.memory_space<vmem>>, vector<1x8x512xf32>
    %381 = vector.shape_cast %380 : vector<1x8x512xf32> to vector<8x512xf32>
    %382 = arith.truncf %375 : vector<8x128xf32> to vector<8x128xbf16>
    %cst_107 = arith.constant dense<0.000000e+00> : vector<8x512xf32>
    %383 = tpu.matmul %382, %5, %cst_107 {dimension_numbers = #tpu.dot_dimension_numbers<[1], [0], [0], [1], [0, 0, 1, 1], [], []>} : vector<8x128xbf16>, vector<128x512xbf16>, vector<8x512xf32> -> vector<8x512xf32>
    %384 = arith.addf %381, %383 : vector<8x512xf32>
    %385 = vector.extract_strided_slice %384 {offsets = [0, 0], sizes = [8, 128], strides = [1, 1]} : vector<8x512xf32> to vector<8x128xf32>
    %386 = arith.negf %385 : vector<8x128xf32>
    %387 = math.exp %386 : vector<8x128xf32>
    %cst_108 = arith.constant 1.000000e+00 : f32
    %388 = vector.broadcast %cst_108 : f32 to vector<8x128xf32>
    %389 = arith.addf %388, %387 : vector<8x128xf32>
    %390 = arith.divf %388, %389 : vector<8x128xf32>
    %391 = vector.extract_strided_slice %384 {offsets = [0, 128], sizes = [8, 128], strides = [1, 1]} : vector<8x512xf32> to vector<8x128xf32>
    %392 = arith.negf %391 : vector<8x128xf32>
    %393 = math.exp %392 : vector<8x128xf32>
    %cst_109 = arith.constant 1.000000e+00 : f32
    %394 = vector.broadcast %cst_109 : f32 to vector<8x128xf32>
    %395 = arith.addf %394, %393 : vector<8x128xf32>
    %396 = arith.divf %394, %395 : vector<8x128xf32>
    %397 = vector.extract_strided_slice %384 {offsets = [0, 256], sizes = [8, 128], strides = [1, 1]} : vector<8x512xf32> to vector<8x128xf32>
    %398 = math.tanh %397 : vector<8x128xf32>
    %399 = vector.extract_strided_slice %384 {offsets = [0, 384], sizes = [8, 128], strides = [1, 1]} : vector<8x512xf32> to vector<8x128xf32>
    %400 = arith.negf %399 : vector<8x128xf32>
    %401 = math.exp %400 : vector<8x128xf32>
    %cst_110 = arith.constant 1.000000e+00 : f32
    %402 = vector.broadcast %cst_110 : f32 to vector<8x128xf32>
    %403 = arith.addf %402, %401 : vector<8x128xf32>
    %404 = arith.divf %402, %403 : vector<8x128xf32>
    %405 = arith.mulf %396, %373 : vector<8x128xf32>
    %406 = arith.mulf %390, %398 : vector<8x128xf32>
    %407 = arith.addf %405, %406 : vector<8x128xf32>
    %408 = math.tanh %407 : vector<8x128xf32>
    %409 = arith.mulf %404, %408 : vector<8x128xf32>
    %410 = arith.truncf %409 : vector<8x128xf32> to vector<8x128xbf16>
    %c0_111 = arith.constant 0 : index
    %c11_112 = arith.constant 11 : index
    %c0_113 = arith.constant 0 : index
    %411 = vector.load %arg3[%c0_111, %c11_112, %c0_113] : memref<8x16x128xbf16, #tpu.memory_space<vmem>>, vector<8x1x128xbf16>
    %412 = vector.shape_cast %411 : vector<8x1x128xbf16> to vector<8x128xbf16>
    %413 = vector.shape_cast %410 : vector<8x128xbf16> to vector<8x1x128xbf16>
    tpu.vector_store %arg3[%c0_111, %c11_112, %c0_113], %413 {strides = array<i32>} : memref<8x16x128xbf16, #tpu.memory_space<vmem>>, vector<8x1x128xbf16>,
    %c12 = arith.constant 12 : index
    %c0_114 = arith.constant 0 : index
    %c0_115 = arith.constant 0 : index
    %414 = vector.load %arg1[%c12, %c0_114, %c0_115] : memref<16x8x512xf32, #tpu.memory_space<vmem>>, vector<1x8x512xf32>
    %415 = vector.shape_cast %414 : vector<1x8x512xf32> to vector<8x512xf32>
    %416 = arith.truncf %409 : vector<8x128xf32> to vector<8x128xbf16>
    %cst_116 = arith.constant dense<0.000000e+00> : vector<8x512xf32>
    %417 = tpu.matmul %416, %5, %cst_116 {dimension_numbers = #tpu.dot_dimension_numbers<[1], [0], [0], [1], [0, 0, 1, 1], [], []>} : vector<8x128xbf16>, vector<128x512xbf16>, vector<8x512xf32> -> vector<8x512xf32>
    %418 = arith.addf %415, %417 : vector<8x512xf32>
    %419 = vector.extract_strided_slice %418 {offsets = [0, 0], sizes = [8, 128], strides = [1, 1]} : vector<8x512xf32> to vector<8x128xf32>
    %420 = arith.negf %419 : vector<8x128xf32>
    %421 = math.exp %420 : vector<8x128xf32>
    %cst_117 = arith.constant 1.000000e+00 : f32
    %422 = vector.broadcast %cst_117 : f32 to vector<8x128xf32>
    %423 = arith.addf %422, %421 : vector<8x128xf32>
    %424 = arith.divf %422, %423 : vector<8x128xf32>
    %425 = vector.extract_strided_slice %418 {offsets = [0, 128], sizes = [8, 128], strides = [1, 1]} : vector<8x512xf32> to vector<8x128xf32>
    %426 = arith.negf %425 : vector<8x128xf32>
    %427 = math.exp %426 : vector<8x128xf32>
    %cst_118 = arith.constant 1.000000e+00 : f32
    %428 = vector.broadcast %cst_118 : f32 to vector<8x128xf32>
    %429 = arith.addf %428, %427 : vector<8x128xf32>
    %430 = arith.divf %428, %429 : vector<8x128xf32>
    %431 = vector.extract_strided_slice %418 {offsets = [0, 256], sizes = [8, 128], strides = [1, 1]} : vector<8x512xf32> to vector<8x128xf32>
    %432 = math.tanh %431 : vector<8x128xf32>
    %433 = vector.extract_strided_slice %418 {offsets = [0, 384], sizes = [8, 128], strides = [1, 1]} : vector<8x512xf32> to vector<8x128xf32>
    %434 = arith.negf %433 : vector<8x128xf32>
    %435 = math.exp %434 : vector<8x128xf32>
    %cst_119 = arith.constant 1.000000e+00 : f32
    %436 = vector.broadcast %cst_119 : f32 to vector<8x128xf32>
    %437 = arith.addf %436, %435 : vector<8x128xf32>
    %438 = arith.divf %436, %437 : vector<8x128xf32>
    %439 = arith.mulf %430, %407 : vector<8x128xf32>
    %440 = arith.mulf %424, %432 : vector<8x128xf32>
    %441 = arith.addf %439, %440 : vector<8x128xf32>
    %442 = math.tanh %441 : vector<8x128xf32>
    %443 = arith.mulf %438, %442 : vector<8x128xf32>
    %444 = arith.truncf %443 : vector<8x128xf32> to vector<8x128xbf16>
    %c0_120 = arith.constant 0 : index
    %c12_121 = arith.constant 12 : index
    %c0_122 = arith.constant 0 : index
    %445 = vector.load %arg3[%c0_120, %c12_121, %c0_122] : memref<8x16x128xbf16, #tpu.memory_space<vmem>>, vector<8x1x128xbf16>
    %446 = vector.shape_cast %445 : vector<8x1x128xbf16> to vector<8x128xbf16>
    %447 = vector.shape_cast %444 : vector<8x128xbf16> to vector<8x1x128xbf16>
    tpu.vector_store %arg3[%c0_120, %c12_121, %c0_122], %447 {strides = array<i32>} : memref<8x16x128xbf16, #tpu.memory_space<vmem>>, vector<8x1x128xbf16>,
    %c13 = arith.constant 13 : index
    %c0_123 = arith.constant 0 : index
    %c0_124 = arith.constant 0 : index
    %448 = vector.load %arg1[%c13, %c0_123, %c0_124] : memref<16x8x512xf32, #tpu.memory_space<vmem>>, vector<1x8x512xf32>
    %449 = vector.shape_cast %448 : vector<1x8x512xf32> to vector<8x512xf32>
    %450 = arith.truncf %443 : vector<8x128xf32> to vector<8x128xbf16>
    %cst_125 = arith.constant dense<0.000000e+00> : vector<8x512xf32>
    %451 = tpu.matmul %450, %5, %cst_125 {dimension_numbers = #tpu.dot_dimension_numbers<[1], [0], [0], [1], [0, 0, 1, 1], [], []>} : vector<8x128xbf16>, vector<128x512xbf16>, vector<8x512xf32> -> vector<8x512xf32>
    %452 = arith.addf %449, %451 : vector<8x512xf32>
    %453 = vector.extract_strided_slice %452 {offsets = [0, 0], sizes = [8, 128], strides = [1, 1]} : vector<8x512xf32> to vector<8x128xf32>
    %454 = arith.negf %453 : vector<8x128xf32>
    %455 = math.exp %454 : vector<8x128xf32>
    %cst_126 = arith.constant 1.000000e+00 : f32
    %456 = vector.broadcast %cst_126 : f32 to vector<8x128xf32>
    %457 = arith.addf %456, %455 : vector<8x128xf32>
    %458 = arith.divf %456, %457 : vector<8x128xf32>
    %459 = vector.extract_strided_slice %452 {offsets = [0, 128], sizes = [8, 128], strides = [1, 1]} : vector<8x512xf32> to vector<8x128xf32>
    %460 = arith.negf %459 : vector<8x128xf32>
    %461 = math.exp %460 : vector<8x128xf32>
    %cst_127 = arith.constant 1.000000e+00 : f32
    %462 = vector.broadcast %cst_127 : f32 to vector<8x128xf32>
    %463 = arith.addf %462, %461 : vector<8x128xf32>
    %464 = arith.divf %462, %463 : vector<8x128xf32>
    %465 = vector.extract_strided_slice %452 {offsets = [0, 256], sizes = [8, 128], strides = [1, 1]} : vector<8x512xf32> to vector<8x128xf32>
    %466 = math.tanh %465 : vector<8x128xf32>
    %467 = vector.extract_strided_slice %452 {offsets = [0, 384], sizes = [8, 128], strides = [1, 1]} : vector<8x512xf32> to vector<8x128xf32>
    %468 = arith.negf %467 : vector<8x128xf32>
    %469 = math.exp %468 : vector<8x128xf32>
    %cst_128 = arith.constant 1.000000e+00 : f32
    %470 = vector.broadcast %cst_128 : f32 to vector<8x128xf32>
    %471 = arith.addf %470, %469 : vector<8x128xf32>
    %472 = arith.divf %470, %471 : vector<8x128xf32>
    %473 = arith.mulf %464, %441 : vector<8x128xf32>
    %474 = arith.mulf %458, %466 : vector<8x128xf32>
    %475 = arith.addf %473, %474 : vector<8x128xf32>
    %476 = math.tanh %475 : vector<8x128xf32>
    %477 = arith.mulf %472, %476 : vector<8x128xf32>
    %478 = arith.truncf %477 : vector<8x128xf32> to vector<8x128xbf16>
    %c0_129 = arith.constant 0 : index
    %c13_130 = arith.constant 13 : index
    %c0_131 = arith.constant 0 : index
    %479 = vector.load %arg3[%c0_129, %c13_130, %c0_131] : memref<8x16x128xbf16, #tpu.memory_space<vmem>>, vector<8x1x128xbf16>
    %480 = vector.shape_cast %479 : vector<8x1x128xbf16> to vector<8x128xbf16>
    %481 = vector.shape_cast %478 : vector<8x128xbf16> to vector<8x1x128xbf16>
    tpu.vector_store %arg3[%c0_129, %c13_130, %c0_131], %481 {strides = array<i32>} : memref<8x16x128xbf16, #tpu.memory_space<vmem>>, vector<8x1x128xbf16>,
    %c14 = arith.constant 14 : index
    %c0_132 = arith.constant 0 : index
    %c0_133 = arith.constant 0 : index
    %482 = vector.load %arg1[%c14, %c0_132, %c0_133] : memref<16x8x512xf32, #tpu.memory_space<vmem>>, vector<1x8x512xf32>
    %483 = vector.shape_cast %482 : vector<1x8x512xf32> to vector<8x512xf32>
    %484 = arith.truncf %477 : vector<8x128xf32> to vector<8x128xbf16>
    %cst_134 = arith.constant dense<0.000000e+00> : vector<8x512xf32>
    %485 = tpu.matmul %484, %5, %cst_134 {dimension_numbers = #tpu.dot_dimension_numbers<[1], [0], [0], [1], [0, 0, 1, 1], [], []>} : vector<8x128xbf16>, vector<128x512xbf16>, vector<8x512xf32> -> vector<8x512xf32>
    %486 = arith.addf %483, %485 : vector<8x512xf32>
    %487 = vector.extract_strided_slice %486 {offsets = [0, 0], sizes = [8, 128], strides = [1, 1]} : vector<8x512xf32> to vector<8x128xf32>
    %488 = arith.negf %487 : vector<8x128xf32>
    %489 = math.exp %488 : vector<8x128xf32>
    %cst_135 = arith.constant 1.000000e+00 : f32
    %490 = vector.broadcast %cst_135 : f32 to vector<8x128xf32>
    %491 = arith.addf %490, %489 : vector<8x128xf32>
    %492 = arith.divf %490, %491 : vector<8x128xf32>
    %493 = vector.extract_strided_slice %486 {offsets = [0, 128], sizes = [8, 128], strides = [1, 1]} : vector<8x512xf32> to vector<8x128xf32>
    %494 = arith.negf %493 : vector<8x128xf32>
    %495 = math.exp %494 : vector<8x128xf32>
    %cst_136 = arith.constant 1.000000e+00 : f32
    %496 = vector.broadcast %cst_136 : f32 to vector<8x128xf32>
    %497 = arith.addf %496, %495 : vector<8x128xf32>
    %498 = arith.divf %496, %497 : vector<8x128xf32>
    %499 = vector.extract_strided_slice %486 {offsets = [0, 256], sizes = [8, 128], strides = [1, 1]} : vector<8x512xf32> to vector<8x128xf32>
    %500 = math.tanh %499 : vector<8x128xf32>
    %501 = vector.extract_strided_slice %486 {offsets = [0, 384], sizes = [8, 128], strides = [1, 1]} : vector<8x512xf32> to vector<8x128xf32>
    %502 = arith.negf %501 : vector<8x128xf32>
    %503 = math.exp %502 : vector<8x128xf32>
    %cst_137 = arith.constant 1.000000e+00 : f32
    %504 = vector.broadcast %cst_137 : f32 to vector<8x128xf32>
    %505 = arith.addf %504, %503 : vector<8x128xf32>
    %506 = arith.divf %504, %505 : vector<8x128xf32>
    %507 = arith.mulf %498, %475 : vector<8x128xf32>
    %508 = arith.mulf %492, %500 : vector<8x128xf32>
    %509 = arith.addf %507, %508 : vector<8x128xf32>
    %510 = math.tanh %509 : vector<8x128xf32>
    %511 = arith.mulf %506, %510 : vector<8x128xf32>
    %512 = arith.truncf %511 : vector<8x128xf32> to vector<8x128xbf16>
    %c0_138 = arith.constant 0 : index
    %c14_139 = arith.constant 14 : index
    %c0_140 = arith.constant 0 : index
    %513 = vector.load %arg3[%c0_138, %c14_139, %c0_140] : memref<8x16x128xbf16, #tpu.memory_space<vmem>>, vector<8x1x128xbf16>
    %514 = vector.shape_cast %513 : vector<8x1x128xbf16> to vector<8x128xbf16>
    %515 = vector.shape_cast %512 : vector<8x128xbf16> to vector<8x1x128xbf16>
    tpu.vector_store %arg3[%c0_138, %c14_139, %c0_140], %515 {strides = array<i32>} : memref<8x16x128xbf16, #tpu.memory_space<vmem>>, vector<8x1x128xbf16>,
    %c15 = arith.constant 15 : index
    %c0_141 = arith.constant 0 : index
    %c0_142 = arith.constant 0 : index
    %516 = vector.load %arg1[%c15, %c0_141, %c0_142] : memref<16x8x512xf32, #tpu.memory_space<vmem>>, vector<1x8x512xf32>
    %517 = vector.shape_cast %516 : vector<1x8x512xf32> to vector<8x512xf32>
    %518 = arith.truncf %511 : vector<8x128xf32> to vector<8x128xbf16>
    %cst_143 = arith.constant dense<0.000000e+00> : vector<8x512xf32>
    %519 = tpu.matmul %518, %5, %cst_143 {dimension_numbers = #tpu.dot_dimension_numbers<[1], [0], [0], [1], [0, 0, 1, 1], [], []>} : vector<8x128xbf16>, vector<128x512xbf16>, vector<8x512xf32> -> vector<8x512xf32>
    %520 = arith.addf %517, %519 : vector<8x512xf32>
    %521 = vector.extract_strided_slice %520 {offsets = [0, 0], sizes = [8, 128], strides = [1, 1]} : vector<8x512xf32> to vector<8x128xf32>
    %522 = arith.negf %521 : vector<8x128xf32>
    %523 = math.exp %522 : vector<8x128xf32>
    %cst_144 = arith.constant 1.000000e+00 : f32
    %524 = vector.broadcast %cst_144 : f32 to vector<8x128xf32>
    %525 = arith.addf %524, %523 : vector<8x128xf32>
    %526 = arith.divf %524, %525 : vector<8x128xf32>
    %527 = vector.extract_strided_slice %520 {offsets = [0, 128], sizes = [8, 128], strides = [1, 1]} : vector<8x512xf32> to vector<8x128xf32>
    %528 = arith.negf %527 : vector<8x128xf32>
    %529 = math.exp %528 : vector<8x128xf32>
    %cst_145 = arith.constant 1.000000e+00 : f32
    %530 = vector.broadcast %cst_145 : f32 to vector<8x128xf32>
    %531 = arith.addf %530, %529 : vector<8x128xf32>
    %532 = arith.divf %530, %531 : vector<8x128xf32>
    %533 = vector.extract_strided_slice %520 {offsets = [0, 256], sizes = [8, 128], strides = [1, 1]} : vector<8x512xf32> to vector<8x128xf32>
    %534 = math.tanh %533 : vector<8x128xf32>
    %535 = vector.extract_strided_slice %520 {offsets = [0, 384], sizes = [8, 128], strides = [1, 1]} : vector<8x512xf32> to vector<8x128xf32>
    %536 = arith.negf %535 : vector<8x128xf32>
    %537 = math.exp %536 : vector<8x128xf32>
    %cst_146 = arith.constant 1.000000e+00 : f32
    %538 = vector.broadcast %cst_146 : f32 to vector<8x128xf32>
    %539 = arith.addf %538, %537 : vector<8x128xf32>
    %540 = arith.divf %538, %539 : vector<8x128xf32>
    %541 = arith.mulf %532, %509 : vector<8x128xf32>
    %542 = arith.mulf %526, %534 : vector<8x128xf32>
    %543 = arith.addf %541, %542 : vector<8x128xf32>
    %544 = math.tanh %543 : vector<8x128xf32>
    %545 = arith.mulf %540, %544 : vector<8x128xf32>
    %546 = arith.truncf %545 : vector<8x128xf32> to vector<8x128xbf16>
    %c0_147 = arith.constant 0 : index
    %c15_148 = arith.constant 15 : index
    %c0_149 = arith.constant 0 : index
    %547 = vector.load %arg3[%c0_147, %c15_148, %c0_149] : memref<8x16x128xbf16, #tpu.memory_space<vmem>>, vector<8x1x128xbf16>
    %548 = vector.shape_cast %547 : vector<8x1x128xbf16> to vector<8x128xbf16>
    %549 = vector.shape_cast %546 : vector<8x128xbf16> to vector<8x1x128xbf16>
    tpu.vector_store %arg3[%c0_147, %c15_148, %c0_149], %549 {strides = array<i32>} : memref<8x16x128xbf16, #tpu.memory_space<vmem>>, vector<8x1x128xbf16>,
    %c0_150 = arith.constant 0 : index
    %c0_151 = arith.constant 0 : index
    %550 = vector.load %arg4[%c0_150, %c0_151] : memref<8x128xf32, #tpu.memory_space<vmem>>, vector<8x128xf32>
    tpu.vector_store %arg4[%c0_150, %c0_151], %545 {strides = array<i32>} : memref<8x128xf32, #tpu.memory_space<vmem>>, vector<8x128xf32>,
    %c0_152 = arith.constant 0 : index
    %c0_153 = arith.constant 0 : index
    %551 = vector.load %arg5[%c0_152, %c0_153] : memref<8x128xf32, #tpu.memory_space<vmem>>, vector<8x128xf32>
    tpu.vector_store %arg5[%c0_152, %c0_153], %543 {strides = array<i32>} : memref<8x128xf32, #tpu.memory_space<vmem>>, vector<8x128xf32>,
    return
  }
  func.func @transform_0(%arg0: i32) -> (i32, i32, i32) {
    %c0_i32 = arith.constant 0 : i32
    %c0_i32_0 = arith.constant 0 : i32
    %c0_i32_1 = arith.constant 0 : i32
    return %arg0, %c0_i32, %c0_i32_0 : i32, i32, i32
  }
  func.func @transform_1(%arg0: i32) -> (i32, i32) {
    %c0_i32 = arith.constant 0 : i32
    %c0_i32_0 = arith.constant 0 : i32
    %c0_i32_1 = arith.constant 0 : i32
    return %c0_i32, %c0_i32_0 : i32, i32
  }
  func.func @transform_2(%arg0: i32) -> (i32, i32, i32) {
    %c0_i32 = arith.constant 0 : i32
    %c0_i32_0 = arith.constant 0 : i32
    %c0_i32_1 = arith.constant 0 : i32
    return %c0_i32, %arg0, %c0_i32_0 : i32, i32, i32
  }
}

module attributes {stable_mosaic.version = 11 : i64} {
  func.func @_proj_logsoftmax_kernel(%arg0: i32, %arg1: memref<128x128xbf16, #tpu.memory_space<vmem>>, %arg2: memref<128x512xbf16, #tpu.memory_space<vmem>>, %arg3: memref<1x512xf32, #tpu.memory_space<vmem>>, %arg4: memref<128x512xf32, #tpu.memory_space<vmem>>) attributes {dimension_semantics = [#tpu.dimension_semantics<parallel>], iteration_bounds = array<i64: 2>, scalar_prefetch = 0 : i64, scratch_operands = 0 : i64, tpu.core_type = #tpu.core_type<tc>, window_params = [{transform_indices = @transform_0, window_bounds = array<i64: 128, 128>}, {pipeline_mode = #tpu.pipeline_mode<synchronous>, transform_indices = @transform_1, window_bounds = array<i64: 128, 512>}, {pipeline_mode = #tpu.pipeline_mode<synchronous>, transform_indices = @transform_2, window_bounds = array<i64: 1, 512>}, {transform_indices = @transform_3, window_bounds = array<i64: 128, 512>}]} {
    %c0 = arith.constant 0 : index
    %c0_0 = arith.constant 0 : index
    %0 = vector.load %arg1[%c0, %c0_0] : memref<128x128xbf16, #tpu.memory_space<vmem>>, vector<128x128xbf16>
    %c0_1 = arith.constant 0 : index
    %c0_2 = arith.constant 0 : index
    %1 = vector.load %arg2[%c0_1, %c0_2] : memref<128x512xbf16, #tpu.memory_space<vmem>>, vector<128x512xbf16>
    %cst = arith.constant dense<0.000000e+00> : vector<128x512xf32>
    %2 = tpu.matmul %0, %1, %cst {dimension_numbers = #tpu.dot_dimension_numbers<[1], [0], [0], [1], [0, 0, 1, 1], [], []>} : vector<128x128xbf16>, vector<128x512xbf16>, vector<128x512xf32> -> vector<128x512xf32>
    %c0_3 = arith.constant 0 : index
    %c0_4 = arith.constant 0 : index
    %3 = vector.load %arg3[%c0_3, %c0_4] : memref<1x512xf32, #tpu.memory_space<vmem>>, vector<1x512xf32>
    %4 = vector.shape_cast %3 : vector<1x512xf32> to vector<512xf32>
    %5 = vector.shape_cast %4 : vector<512xf32> to vector<1x512xf32>
    %6 = vector.broadcast %5 : vector<1x512xf32> to vector<128x512xf32>
    %7 = arith.addf %2, %6 : vector<128x512xf32>
    %cst_5 = arith.constant dense<0xFF800000> : vector<128xf32>
    %8 = vector.multi_reduction <maximumf>, %7, %cst_5 [1] : vector<128x512xf32> to vector<128xf32>
    %9 = vector.shape_cast %8 : vector<128xf32> to vector<128x1xf32>
    %10 = vector.broadcast %9 : vector<128x1xf32> to vector<128x512xf32>
    %11 = arith.subf %7, %10 : vector<128x512xf32>
    %12 = math.exp %11 : vector<128x512xf32>
    %cst_6 = arith.constant dense<0.000000e+00> : vector<128xf32>
    %13 = vector.multi_reduction <add>, %12, %cst_6 [1] : vector<128x512xf32> to vector<128xf32>
    %14 = vector.shape_cast %13 : vector<128xf32> to vector<128x1xf32>
    %15 = math.log %14 : vector<128x1xf32>
    %16 = vector.broadcast %15 : vector<128x1xf32> to vector<128x512xf32>
    %17 = arith.subf %11, %16 : vector<128x512xf32>
    %c0_7 = arith.constant 0 : index
    %c0_8 = arith.constant 0 : index
    %18 = vector.load %arg4[%c0_7, %c0_8] : memref<128x512xf32, #tpu.memory_space<vmem>>, vector<128x512xf32>
    tpu.vector_store %arg4[%c0_7, %c0_8], %17 {strides = array<i32>} : memref<128x512xf32, #tpu.memory_space<vmem>>, vector<128x512xf32>,
    return
  }
  func.func @transform_0(%arg0: i32) -> (i32, i32) {
    %c0_i32 = arith.constant 0 : i32
    %c0_i32_0 = arith.constant 0 : i32
    return %arg0, %c0_i32 : i32, i32
  }
  func.func @transform_1(%arg0: i32) -> (i32, i32) {
    %c0_i32 = arith.constant 0 : i32
    %c0_i32_0 = arith.constant 0 : i32
    %c0_i32_1 = arith.constant 0 : i32
    return %c0_i32, %c0_i32_0 : i32, i32
  }
  func.func @transform_2(%arg0: i32) -> (i32, i32) {
    %c0_i32 = arith.constant 0 : i32
    %c0_i32_0 = arith.constant 0 : i32
    %c0_i32_1 = arith.constant 0 : i32
    return %c0_i32, %c0_i32_0 : i32, i32
  }
  func.func @transform_3(%arg0: i32) -> (i32, i32) {
    %c0_i32 = arith.constant 0 : i32
    %c0_i32_0 = arith.constant 0 : i32
    return %arg0, %c0_i32 : i32, i32
  }
}

</mosaic_0001>

<bundles_post_ra>
// kernel: lm_forward.3
= control target key start
LH: loop header
LB: loop body
LE: loop exit
PB: predicated region body
PF: predicated region fallthrough
CT: control target
= control target key end

     0   :  { %8 = vsyncpa [#allocation3], 0  ;;  %s1627_s0 = inlined_call_operand.hbm [shape: f32[256,128], index: 0, kind: input, shape index: {}]   ;;  %s1628_s1 = inlined_call_operand.hbm [shape: bf16[128,512], index: 1, kind: input, shape index: {}]   ;;  %s1629_s2 = inlined_call_operand.hbm [shape: f32[1,512], index: 2, kind: input, shape index: {}]   ;;  %s1630_s3 = inlined_call_operand.hbm [shape: f32[256,512], index: 3, kind: output, shape index: {}]  }
   0x1   :  { %10 = vsyncpa [#allocation3 + $0x1], 0 }
   0x2   :  { %11 = vsyncpa [#allocation6], 0 }
   0x3   :  { %12 = vsyncpa [#allocation4], 0 }
   0x4   :  { %14 = vsyncpa [#allocation4 + $0x1], 0  ;;  %s1219_s12 = smov 0   ;;  %s1221_s13 = smov 0  }
   0x5   :  { %s1223_s14 = smov 0   ;;  %s1225_s15 = smov 0  }
   0x6 LB: > { %s1240_s16 = sadd.s32 4294967295, %s1186_s15   ;;  %s854_s17 = sadd.s32 4294967294, %s1186_s15   ;;  %s1186_s15 = sphi %s1225_s15, %s1650_s15   ;;  %s1182_s14 = sphi %s1223_s14, %s1649_s14   ;;  %s1178_s13 = sphi %s1221_s13, %s1648_s13   ;;  %s1174_s12 = sphi %s1219_s12, %s1647_s12  }
   0x7   : > { %p40_p0 = scmp.ne.s32.totalorder %s1178_s13, %s1174_s12  ;;  %p1631_p1 = scmp.eq.s32.totalorder %s1240_s16, 0 }
   0x8   : > { %p112_p3 = scmp.eq.s32.totalorder %s854_s17, 1  ;;  %p855_p5 = scmp.ge.s32.totalorder %s1186_s15, 1 }
   0x9   : > { %p1249_p4 = por %p1631_p1, %p40_p0  ;;  %p119_p7 = scmp.lt.s32.totalorder %s1186_s15, 3 }
   0xa   : > { %p1254_p6 = por %p112_p3, %p40_p0  ;;  %s1188_s21 = smov [#allocation5]  }
   0xb   : > { %s1634_s18 = scalar_select %p1249_p4, 1, 0 }
   0xc   : > { %s1635_s19 = scalar_select %p1254_p6, 1, 0 }
   0xd   : > { %p1259_p8 = pnand %p855_p5, %p119_p7  ;;  %s131_s22 = sshll.u32 %s1188_s21, 4  ;;  %s1263_s22 = int_to_ptr.vmem [resolvable:$true] %s131_s22 }
   0xe   : > { %s1189_s24 = smov [#allocation7]   ;;  %s1030_s28 = scalar_lea.hbm %s1628_s1, 4096 }
   0xf   : > { %p920_p9 = pneg %p1259_p8  ;;  %s145_s25 = sshll.u32 %s1189_s24, 4  ;;  %s1274_s25 = int_to_ptr.vmem [resolvable:$true] %s145_s25 }
  0x10   : > { %p1031_p12 = scmp.ne.s32.totalorder %s1628_s1, %s1030_s28  ;;  %p1037_p5 = scmp.lt.u32.totalorder %s1030_s28, %s1628_s1 }
  0x11   : > { %p1270_p11 = pnand %p920_p9, %p1631_p1 }
  0x13   : > { %p1032_p13 = pneg %p1270_p11 }
  0x15   : > { %p1033_p0 = pnand %p1032_p13, %p1031_p12 }
  0x17   : > { %p1034_p3 = pneg %p1033_p0 }
  0x19   : > { %p1039_p7 = pnand %p1037_p5, %p1034_p3 }
  0x1b   : > { %1042 = shalt.err (!%p1039_p7)
}
  0x1c   : > { %s1043_s6 = scalar_lea.vmem %s1263_s22, 4096  ;;  %p1051_p2 = scmp.lt.s32.totalorder %s1263_s22, %s1263_s22 }
  0x1d   : > { %p1044_p9 = scmp.ne.s32.totalorder %s1263_s22, %s1043_s6  ;;  %p1052_p12 = scmp.lt.s32.totalorder %s1043_s6, %s1043_s6 }
  0x1f   : > { %p1046_p10 = pnand %p1044_p9, %p1032_p13  ;;  %p1053_p0 = por %p1052_p12, %p1051_p2 }
  0x21   : > { %p1047_p1 = pneg %p1046_p10 }
  0x23   : > { %p1054_p6 = pnand %p1053_p0, %p1047_p1 }
  0x25   : > { %1057 = shalt.err (!%p1054_p6)
}
  0x26   : > { %s1190_s7 = smov 256   ;;  %s1191_s8 = smov 16  }
  0x27   : > { %923 = dma.hbm_to_vmem [thread:$0]  (!%p1270_p11), %s1628_s1, 4096, %s1263_s22, [#allocation6], %s1190_s7, %s1190_s7, %s1191_s8  }
  0x28   : > { %s1058_s21 = scalar_lea.hbm %s1629_s2, 64 }
  0x29   : > { %p1059_p2 = scmp.ne.s32.totalorder %s1629_s2, %s1058_s21  ;;  %p1065_p10 = scmp.lt.u32.totalorder %s1058_s21, %s1629_s2 }
  0x2b   : > { %p1061_p1 = pnand %p1059_p2, %p1032_p13 }
  0x2d   : > { %p1062_p6 = pneg %p1061_p1 }
  0x2f   : > { %p1067_p3 = pnand %p1065_p10, %p1062_p6 }
  0x31   : > { %1070 = shalt.err (!%p1067_p3)
}
  0x32   : > { %s1071_s22 = scalar_lea.vmem %s1274_s25, 64  ;;  %p1079_p12 = scmp.lt.s32.totalorder %s1274_s25, %s1274_s25 }
  0x33   : > { %p1072_p5 = scmp.ne.s32.totalorder %s1274_s25, %s1071_s22  ;;  %p1080_p0 = scmp.lt.s32.totalorder %s1071_s22, %s1071_s22 }
  0x35   : > { %p1074_p7 = pnand %p1072_p5, %p1032_p13  ;;  %p1081_p2 = por %p1080_p0, %p1079_p12 }
  0x37   : > { %p1075_p9 = pneg %p1074_p7 }
  0x39   : > { %p1082_p1 = pnand %p1081_p2, %p1075_p9 }
  0x3b   : > { %1085 = shalt.err (!%p1082_p1)
}
  0x3c   : > { %926 = dma.hbm_to_vmem [thread:$0]  (!%p1270_p11), %s1629_s2, 64, %s1274_s25, [#allocation6]  }
  0x3d   : > { %s1329_s4 = sadd.s32 1, %s1186_s15   ;;  %s27_s23 = sadd.s32 1, %s1182_s14 }
  0x3e   : > { %s24_s5 = ssub.s32 %s1186_s15, %s1329_s4  ;;  %p34_p13 = scmp.ne.s32.totalorder %s1182_s14, %s1178_s13 }
  0x3f   : > { %p25_p6 = scmp.eq.s32.totalorder %s24_s5, 0  ;;  %p35_p10 = scmp.eq.s32.totalorder %s1186_s15, 0 }
  0x40   : > { %p1638_p3 = scmp.eq.s32.totalorder %s1240_s16, 1  ;;  %p937_p7 = scmp.lt.s32.totalorder %s1186_s15, 2 }
  0x41   : > { %s1345_s7 = scalar_select %p25_p6, %s1182_s14, %s27_s23  }
  0x42   : > { %p1339_p5 = por %p1638_p3, %p34_p13  ;;  %p36_p9 = por %p35_p10, %p34_p13 }
  0x43   : > { %s156_s8 = sand.u32 1, %s1182_s14   ;;  %s905_s25 = sshll.u32 %s1186_s15, 11 }
  0x44   : > { %s1639_s6 = scalar_select %p1339_p5, 1, 0 }
  0x45   : > { %s859_s9 = sshll.u32 %s156_s8, 7  ;;  %s1352_s17 = scalar_lea.hbm %s1627_s0, %s905_s25 }
  0x46   : > { %s160_s21 = scalar_lea.vmem [#allocation2], %s859_s9  ;;  %p1356_p11 = pnand %p937_p7, %p36_p9 }
  0x47   : > { %s167_s24 = sshll.u32 %s160_s21, 4  ;;  %s1360_s27 = scalar_lea.sflag [#allocation3], %s156_s8  ;;  %s1354_s24 = int_to_ptr.vmem [resolvable:$true] %s167_s24 }
  0x48   : > { %s1086_s28 = scalar_lea.hbm %s1352_s17, 2048  ;;  %p1088_p0 = pneg %p1356_p11 }
  0x49   : > { %p1087_p12 = scmp.ne.s32.totalorder %s1352_s17, %s1086_s28  ;;  %s1091_s30 = scalar_lea.hbm %s1627_s0, 4096 }
  0x4a   : > { %p1092_p13 = scmp.lt.u32.totalorder %s1352_s17, %s1627_s0  ;;  %p1093_p6 = scmp.lt.u32.totalorder %s1091_s30, %s1086_s28 }
  0x4b   : > { %p1089_p2 = pnand %p1088_p0, %p1087_p12  ;;  %p1095_p3 = scmp.lt.u32.totalorder %s1086_s28, %s1352_s17 }
  0x4c   : > { %p1094_p10 = por %p1093_p6, %p1092_p13 }
  0x4d   : > { %p1090_p1 = pneg %p1089_p2 }
  0x4e   : > { %p1096_p7 = por %p1095_p3, %p1094_p10 }
  0x50   : > { %p1097_p9 = pnand %p1096_p7, %p1090_p1 }
  0x52   : > { %1100 = shalt.err (!%p1097_p9)
}
  0x53   : > { %s1101_s8 = scalar_lea.vmem %s1354_s24, 2048  ;;  %s1192_s9 = smov [#allocation2]  }
  0x54   : > { %p1102_p12 = scmp.ne.s32.totalorder %s1354_s24, %s1101_s8  ;;  %s1106_s25 = sshll.u32 %s1192_s9, 4  ;;  %s1107_s25 = int_to_ptr.vmem [resolvable:$false] %s1106_s25 }
  0x55   : > { %s1108_s10 = scalar_lea.vmem %s1107_s25, 4096  ;;  %p1109_p4 = scmp.lt.s32.totalorder %s1354_s24, %s1107_s25 }
  0x56   : > { %p1104_p2 = pnand %p1102_p12, %p1088_p0  ;;  %p1110_p13 = scmp.lt.s32.totalorder %s1108_s10, %s1101_s8 }
  0x58   : > { %p1105_p5 = pneg %p1104_p2  ;;  %p1111_p6 = por %p1110_p13, %p1109_p4 }
  0x5a   : > { %p1112_p10 = pnand %p1111_p6, %p1105_p5 }
  0x5c   : > { %1115 = shalt.err (!%p1112_p10)
}
  0x5d   : > { %s1193_s11 = smov 128   ;;  %s1194_s21 = smov 8  }
  0x5e   : > { %930 = dma.hbm_to_vmem [thread:$0]  (!%p1356_p11), %s1352_s17, 2048, %s1354_s24, %s1360_s27, %s1193_s11, %s1193_s11, %s1194_s21  }
  0x5f   : > { %179 = sbr.rel (%p1259_p8) target bundleno = 428 (0x1ac), region = 32  ;;  %s1391_s28 = sand.u32 (!%p1259_p8), 1, %s1178_s13  }
  0x60   : > { %s863_s22 = sshll.u32 (!%p1259_p8), %s1391_s28, 7  ;;  %s182_s29 = scalar_lea.sflag (!%p1259_p8), [#allocation3], %s1391_s28 }
  0x61   : > { %s1395_s30 = scalar_lea.vmem (!%p1259_p8), [#allocation2], %s863_s22  ;;  %p1641_p4 = scmp.ne.s32.totalorder (!%p1259_p8), %s1634_s18, 0 }
  0x66   : > { %1161 = dma.done.wait (%p1641_p4), %s182_s29, 2048  }
  0x67   : > { %1163 = vsyncadd (%p1641_p4), %s182_s29, 4294965248  ;;  %p1642_p5 = scmp.eq.s32.totalorder %s1240_s16, 0 }
  0x69   : > { %1165 = dma.done.wait (%p1642_p5), [#allocation6], 4160   ;;  %p1643_p8 = pmov %p1642_p5 }
  0x6a   : > { %v1195_v0 = vmov 0   ;;  %v982_v1 = vld [vmem:[#allocation5 + $0x4] ss:$16 sps:$4 sm:$0xff]   ;;  %v984_v2 = vld [vmem:[#allocation5 + $0xc] ss:$16 sps:$4 sm:$0xff]   ;;  %v277_v57 = vlaneseq  ;;  %s866_s18 = sshll.u32 %s1391_s28, 9 }
  0x6b   : > { %1167 = vsyncadd (%p1643_p8), [#allocation6], 4294963136  ;;  %489 = vmatprep.mubr.bf16.mxu0 %v1195_v0  ;;  %602 = vmatprep.mubr.bf16.mxu1 %v1195_v0  ;;  %v986_v3 = vld [vmem:[#allocation5] ss:$16 sps:$4 sm:$0xff]   ;;  %v987_v4 = vld [vmem:[#allocation5 + $0x8] ss:$16 sps:$4 sm:$0xff]  }
  0x6c   : > { %457 = vmatprep.subr.bf16.mxu0 %v982_v1  ;;  %570 = vmatprep.subr.bf16.mxu1 %v984_v2  ;;  %v988_v5 = vld [vmem:[#allocation5 + $0x24] ss:$16 sps:$4 sm:$0xff]   ;;  %v990_v6 = vld [vmem:[#allocation5 + $0x2c] ss:$16 sps:$4 sm:$0xff]   ;;  %v992_v7 = vld [vmem:[#allocation5 + $0x20] ss:$16 sps:$4 sm:$0xff]  }
  0x6d   : > { %458 = vmatpush1.bf16.msra.mxu0 %v986_v3  ;;  %571 = vmatpush1.bf16.msra.mxu1 %v987_v4  ;;  %v993_v8 = vld [vmem:[#allocation5 + $0x28] ss:$16 sps:$4 sm:$0xff]   ;;  %v994_v9 = vld [vmem:[#allocation5 + $0x44] ss:$16 sps:$4 sm:$0xff]   ;;  %v996_v10 = vld [vmem:[#allocation5 + $0x4c] ss:$16 sps:$4 sm:$0xff]  }
  0x6e   : > { %459 = vmatprep.subr.bf16.mxu0 %v988_v5  ;;  %572 = vmatprep.subr.bf16.mxu1 %v990_v6  ;;  %v998_v11 = vld [vmem:[#allocation5 + $0x40] ss:$16 sps:$4 sm:$0xff]   ;;  %v999_v12 = vld [vmem:[#allocation5 + $0x48] ss:$16 sps:$4 sm:$0xff]   ;;  %v1000_v13 = vld [vmem:[#allocation5 + $0x64] ss:$16 sps:$4 sm:$0xff]  }
  0x6f   : > { %v1002_v14 = vld [vmem:[#allocation5 + $0x6c] ss:$16 sps:$4 sm:$0xff]   ;;  %v1004_v15 = vld [vmem:[#allocation5 + $0x60] ss:$16 sps:$4 sm:$0xff]   ;;  %v1005_v16 = vld [vmem:[#allocation5 + $0x68] ss:$16 sps:$4 sm:$0xff]  }
  0x70   : > { %v1006_v17 = vld [vmem:[#allocation5 + $0x84] ss:$16 sps:$4 sm:$0xff]   ;;  %v1008_v18 = vld [vmem:[#allocation5 + $0x8c] ss:$16 sps:$4 sm:$0xff]   ;;  %v1010_v19 = vld [vmem:[#allocation5 + $0x80] ss:$16 sps:$4 sm:$0xff]  }
  0x71   : > { %460 = vmatpush1.bf16.msra.mxu0 %v992_v7  ;;  %573 = vmatpush1.bf16.msra.mxu1 %v993_v8  ;;  %v1011_v20 = vld [vmem:[#allocation5 + $0x88] ss:$16 sps:$4 sm:$0xff]   ;;  %v1012_v21 = vld [vmem:[#allocation5 + $0xa4] ss:$16 sps:$4 sm:$0xff]   ;;  %v1014_v22 = vld [vmem:[#allocation5 + $0xac] ss:$16 sps:$4 sm:$0xff]  }
  0x72   : > { %461 = vmatprep.subr.bf16.mxu0 %v994_v9  ;;  %574 = vmatprep.subr.bf16.mxu1 %v996_v10  ;;  %v1016_v23 = vld [vmem:[#allocation5 + $0xa0] ss:$16 sps:$4 sm:$0xff]   ;;  %v1017_v24 = vld [vmem:[#allocation5 + $0xa8] ss:$16 sps:$4 sm:$0xff]   ;;  %v1018_v25 = vld [vmem:[#allocation5 + $0xc4] ss:$16 sps:$4 sm:$0xff]  }
  0x73   : > { %v1020_v26 = vld [vmem:[#allocation5 + $0xcc] ss:$16 sps:$4 sm:$0xff]   ;;  %v1022_v27 = vld [vmem:[#allocation5 + $0xc0] ss:$16 sps:$4 sm:$0xff]   ;;  %v1023_v28 = vld [vmem:[#allocation5 + $0xc8] ss:$16 sps:$4 sm:$0xff]  }
  0x74   : > { %v1024_v29 = vld [vmem:[#allocation5 + $0xe4] ss:$16 sps:$4 sm:$0xff]   ;;  %v1026_v30 = vld [vmem:[#allocation5 + $0xec] ss:$16 sps:$4 sm:$0xff]   ;;  %v1028_v31 = vld [vmem:[#allocation5 + $0xe0] ss:$16 sps:$4 sm:$0xff]  }
  0x75   : > { %462 = vmatpush1.bf16.msra.mxu0 %v998_v11  ;;  %575 = vmatpush1.bf16.msra.mxu1 %v999_v12  ;;  %v1029_v32 = vld [vmem:[#allocation5 + $0xe8] ss:$16 sps:$4 sm:$0xff]   ;;  %v219_v33 = vld [vmem:[%s1395_s30] sm:$0xff]  ;;  %v221_v36 = vld [vmem:[%s1395_s30 + $0x10] sm:$0xff]  ;;  %v278_v58 = vshrl.u32 %v277_v57, 7  ;;  %s1450_s20 = scalar_lea.vmem [#allocation8], %s866_s18 }
  0x76   : > { %463 = vmatprep.subr.bf16.mxu0 %v1000_v13  ;;  %576 = vmatprep.subr.bf16.mxu1 %v1002_v14  ;;  %v220_v34 = vld [vmem:[%s1395_s30 + $0x8] sm:$0xff]  ;;  %v222_v37 = vld [vmem:[%s1395_s30 + $0x18] sm:$0xff]  ;;  %v223_v39 = vld [vmem:[%s1395_s30 + $0x20] sm:$0xff]  ;;  %s907_s17 = sshll.u32 %s1240_s16, 13  ;;  %s762_s24 = sshll.u32 %s1450_s20, 4  ;;  %s1575_s24 = int_to_ptr.vmem [resolvable:$true] %s762_s24 }
  0x77   : > { %v235_v35 = vpack.c.bf16 %v220_v34, %v219_v33  ;;  %v236_v38 = vpack.c.bf16 %v222_v37, %v221_v36  ;;  %v224_v40 = vld [vmem:[%s1395_s30 + $0x28] sm:$0xff]  ;;  %v225_v42 = vld [vmem:[%s1395_s30 + $0x30] sm:$0xff]  ;;  %v226_v43 = vld [vmem:[%s1395_s30 + $0x38] sm:$0xff]  ;;  %v279_v59 = vsub.s32 0, %v278_v58  ;;  %v287_v60 = vsub.s32 2, %v278_v58  ;;  %s1573_s27 = scalar_lea.hbm %s1630_s3, %s907_s17  ;;  %s748_s23 = scalar_lea.sflag [#allocation4], %s1391_s28 }
  0x78   : > { %v237_v41 = vpack.c.bf16 %v224_v40, %v223_v39  ;;  %v238_v44 = vpack.c.bf16 %v226_v43, %v225_v42  ;;  %v227_v45 = vld [vmem:[%s1395_s30 + $0x40] sm:$0xff]  ;;  %v228_v46 = vld [vmem:[%s1395_s30 + $0x48] sm:$0xff]  ;;  %v229_v48 = vld [vmem:[%s1395_s30 + $0x50] sm:$0xff]  ;;  %v283_v62 = vsub.s32 1, %v278_v58  ;;  %v291_v63 = vsub.s32 3, %v278_v58  ;;  %s1116_s5 = scalar_lea.vmem %s1575_s24, 8192 }
  0x79   : > { %464 = vmatpush1.bf16.msra.mxu0 %v1004_v15  ;;  %577 = vmatpush1.bf16.msra.mxu1 %v1005_v16  ;;  %v239_v47 = vpack.c.bf16 %v228_v46, %v227_v45  ;;  %v230_v49 = vld [vmem:[%s1395_s30 + $0x58] sm:$0xff]  ;;  %v231_v51 = vld [vmem:[%s1395_s30 + $0x60] sm:$0xff]  ;;  %v232_v52 = vld [vmem:[%s1395_s30 + $0x68] sm:$0xff]  ;;  %p1117_p11 = scmp.ne.s32.totalorder %s1575_s24, %s1116_s5  ;;  %p1644_p0 = scmp.ne.s32.totalorder %s1639_s6, 0 }
  0x7a   : > { %465 = vmatprep.subr.bf16.mxu0 %v1006_v17  ;;  %578 = vmatprep.subr.bf16.mxu1 %v1008_v18  ;;  %v240_v50 = vpack.c.bf16 %v230_v49, %v229_v48  ;;  %v241_v53 = vpack.c.bf16 %v232_v52, %v231_v51  ;;  %v233_v54 = vld [vmem:[%s1395_s30 + $0x70] sm:$0xff]  ;;  %v234_v55 = vld [vmem:[%s1395_s30 + $0x78] sm:$0xff]  ;;  %v275_v61 = vld [vmem:[#allocation7] sm:$0xf]  ;;  %s1196_s8 = smov [#allocation8]  }
  0x7b   : > { %v242_v56 = vpack.c.bf16 %v234_v55, %v233_v54  ;;  %v1438_v1 = vrot.slane %v275_v61, %v279_v59  ;;  %v1440_v2 = vrot.slane %v275_v61, %v287_v60  ;;  %v1442_v3 = vrot.slane %v275_v61, %v283_v62  ;;  %p1118_p1 = pnand %p1117_p11, %p1644_p0  ;;  %s1120_s9 = sshll.u32 %s1196_s8, 4  ;;  %s1121_s9 = int_to_ptr.vmem [resolvable:$false] %s1120_s9 }
  0x7c   : > { %s1122_s25 = scalar_lea.vmem %s1121_s9, 16384  ;;  %p1123_p7 = scmp.lt.s32.totalorder %s1575_s24, %s1121_s9 }
  0x7d   : > { %466 = vmatpush1.bf16.msra.mxu0 %v1010_v19  ;;  %579 = vmatpush1.bf16.msra.mxu1 %v1011_v20  ;;  %p1119_p3 = pneg %p1118_p1  ;;  %p1124_p9 = scmp.lt.s32.totalorder %s1122_s25, %s1116_s5 }
  0x7e   : > { %467 = vmatprep.subr.bf16.mxu0 %v1012_v21  ;;  %580 = vmatprep.subr.bf16.mxu1 %v1014_v22 }
  0x7f   : > { %p1125_p12 = por %p1124_p9, %p1123_p7 }
  0x81   : > { %468 = vmatpush1.bf16.msra.mxu0 %v1016_v23  ;;  %581 = vmatpush1.bf16.msra.mxu1 %v1017_v24  ;;  %p1126_p2 = pnand %p1125_p12, %p1119_p3 }
  0x82   : > { %469 = vmatprep.subr.bf16.mxu0 %v1018_v25  ;;  %582 = vmatprep.subr.bf16.mxu1 %v1020_v26 }
  0x85   : > { %470 = vmatpush1.bf16.msra.mxu0 %v1022_v27  ;;  %583 = vmatpush1.bf16.msra.mxu1 %v1023_v28 }
  0x86   : > { %471 = vmatprep.subr.bf16.mxu0 %v1024_v29  ;;  %584 = vmatprep.subr.bf16.mxu1 %v1026_v30 }
  0x89   : > { %472 = vmatpush1.bf16.msra.mxu0 %v1028_v31  ;;  %585 = vmatpush1.bf16.msra.mxu1 %v1029_v32 }
  0x8c   : > { %490 = vmatmul.mubr.bf16.vlgmr.msra.gmra.mrb[0].mxu0 %v235_v35  ;;  %603 = vmatmul.mubr.bf16.vlgmr.msra.gmra.mrb[0].mxu1 %v235_v35 }
  0x8d   : > { %499 = vmatprep.mubr.bf16.mxu0 %v1195_v0  ;;  %612 = vmatprep.mubr.bf16.mxu1 %v1195_v0 }
  0x94   : > { %500 = vmatmul.mubr.bf16.gmra.mrb[4].mxu0 %v236_v38  ;;  %613 = vmatmul.mubr.bf16.gmra.mrb[4].mxu1 %v236_v38 }
  0x95   : > { %509 = vmatprep.mubr.bf16.mxu0 %v1195_v0  ;;  %622 = vmatprep.mubr.bf16.mxu1 %v1195_v0 }
  0x9c   : > { %510 = vmatmul.mubr.bf16.gmra.mrb[8].mxu0 %v237_v41  ;;  %623 = vmatmul.mubr.bf16.gmra.mrb[8].mxu1 %v237_v41 }
  0x9d   : > { %519 = vmatprep.mubr.bf16.mxu0 %v1195_v0  ;;  %632 = vmatprep.mubr.bf16.mxu1 %v1195_v0 }
  0xa4   : > { %520 = vmatmul.mubr.bf16.gmra.mrb[12].mxu0 %v238_v44  ;;  %633 = vmatmul.mubr.bf16.gmra.mrb[12].mxu1 %v238_v44 }
  0xa5   : > { %529 = vmatprep.mubr.bf16.mxu0 %v1195_v0  ;;  %642 = vmatprep.mubr.bf16.mxu1 %v1195_v0 }
  0xac   : > { %530 = vmatmul.mubr.bf16.gmra.mrb[16].mxu0 %v239_v47  ;;  %643 = vmatmul.mubr.bf16.gmra.mrb[16].mxu1 %v239_v47 }
  0xad   : > { %539 = vmatprep.mubr.bf16.mxu0 %v1195_v0  ;;  %652 = vmatprep.mubr.bf16.mxu1 %v1195_v0 }
  0xb4   : > { %540 = vmatmul.mubr.bf16.gmra.mrb[20].mxu0 %v240_v50  ;;  %653 = vmatmul.mubr.bf16.gmra.mrb[20].mxu1 %v240_v50 }
  0xb5   : > { %549 = vmatprep.mubr.bf16.mxu0 %v1195_v0  ;;  %662 = vmatprep.mubr.bf16.mxu1 %v1195_v0 }
  0xbc   : > { %550 = vmatmul.mubr.bf16.gmra.mrb[24].mxu0 %v241_v53  ;;  %663 = vmatmul.mubr.bf16.gmra.mrb[24].mxu1 %v241_v53 }
  0xbd   : > { %559 = vmatprep.mubr.bf16.mxu0 %v1195_v0  ;;  %672 = vmatprep.mubr.bf16.mxu1 %v1195_v0  ;;  %v1444_v0 = vrot.slane %v275_v61, %v291_v63 }
  0xc4   : > { %560 = vmatmul.mubr.bf16.gmra.mrb[28].mxu0 %v242_v56  ;;  %673 = vmatmul.mubr.bf16.gmra.mrb[28].mxu1 %v242_v56 }
 0x15f   : > { %v491_v4 = vpop.f32.mrb[0].mxu0  ;;  %v604_v5 = vpop.f32.mrb[0].mxu1 }
 0x160   : > { %v492_v6 = vadd.f32 %v491_v4, %v1438_v1  ;;  %v605_v7 = vadd.f32 %v604_v5, %v1440_v2  ;;  %v493_v8 = vpop.f32.mrb[1].mxu0  ;;  %v606_v9 = vpop.f32.mrb[1].mxu1 }
 0x161   : > { %v494_v10 = vadd.f32 %v493_v8, %v1442_v3  ;;  %v607_v11 = vadd.f32 %v606_v9, %v1444_v0  ;;  %v495_v12 = vpop.f32.mrb[2].mxu0  ;;  %v608_v13 = vpop.f32.mrb[2].mxu1 }
 0x162   : > { %683 = vst [vmem:[%s1450_s20] sm:$0xff] %v492_v6  ;;  %685 = vst [vmem:[%s1450_s20 + $0x10] sm:$0xff] %v605_v7  ;;  %v496_v14 = vadd.f32 %v495_v12, %v1438_v1  ;;  %v609_v15 = vadd.f32 %v608_v13, %v1440_v2  ;;  %v497_v16 = vpop.f32.mrb[3].mxu0  ;;  %v610_v17 = vpop.f32.mrb[3].mxu1 }
 0x163   : > { %684 = vst [vmem:[%s1450_s20 + $0x8] sm:$0xff] %v494_v10  ;;  %686 = vst [vmem:[%s1450_s20 + $0x18] sm:$0xff] %v607_v11  ;;  %v498_v18 = vadd.f32 %v497_v16, %v1442_v3  ;;  %v611_v19 = vadd.f32 %v610_v17, %v1444_v0 }
 0x164   : > { %687 = vst [vmem:[%s1450_s20 + $0x20] sm:$0xff] %v496_v14  ;;  %689 = vst [vmem:[%s1450_s20 + $0x30] sm:$0xff] %v609_v15 }
 0x165   : > { %688 = vst [vmem:[%s1450_s20 + $0x28] sm:$0xff] %v498_v18  ;;  %690 = vst [vmem:[%s1450_s20 + $0x38] sm:$0xff] %v611_v19 }
 0x167   : > { %v501_v20 = vpop.f32.mrb[4].mxu0  ;;  %v614_v21 = vpop.f32.mrb[4].mxu1 }
 0x168   : > { %v502_v22 = vadd.f32 %v501_v20, %v1438_v1  ;;  %v615_v23 = vadd.f32 %v614_v21, %v1440_v2  ;;  %v503_v24 = vpop.f32.mrb[5].mxu0  ;;  %v616_v25 = vpop.f32.mrb[5].mxu1 }
 0x169   : > { %v504_v26 = vadd.f32 %v503_v24, %v1442_v3  ;;  %v617_v27 = vadd.f32 %v616_v25, %v1444_v0  ;;  %v505_v28 = vpop.f32.mrb[6].mxu0  ;;  %v618_v29 = vpop.f32.mrb[6].mxu1 }
 0x16a   : > { %691 = vst [vmem:[%s1450_s20 + $0x40] sm:$0xff] %v502_v22  ;;  %693 = vst [vmem:[%s1450_s20 + $0x50] sm:$0xff] %v615_v23  ;;  %v506_v30 = vadd.f32 %v505_v28, %v1438_v1  ;;  %v619_v31 = vadd.f32 %v618_v29, %v1440_v2  ;;  %v507_v32 = vpop.f32.mrb[7].mxu0  ;;  %v620_v33 = vpop.f32.mrb[7].mxu1 }
 0x16b   : > { %692 = vst [vmem:[%s1450_s20 + $0x48] sm:$0xff] %v504_v26  ;;  %694 = vst [vmem:[%s1450_s20 + $0x58] sm:$0xff] %v617_v27  ;;  %v508_v34 = vadd.f32 %v507_v32, %v1442_v3  ;;  %v621_v35 = vadd.f32 %v620_v33, %v1444_v0 }
 0x16c   : > { %695 = vst [vmem:[%s1450_s20 + $0x60] sm:$0xff] %v506_v30  ;;  %697 = vst [vmem:[%s1450_s20 + $0x70] sm:$0xff] %v619_v31 }
 0x16d   : > { %696 = vst [vmem:[%s1450_s20 + $0x68] sm:$0xff] %v508_v34  ;;  %698 = vst [vmem:[%s1450_s20 + $0x78] sm:$0xff] %v621_v35 }
 0x16f   : > { %v511_v36 = vpop.f32.mrb[8].mxu0  ;;  %v624_v37 = vpop.f32.mrb[8].mxu1 }
 0x170   : > { %v512_v38 = vadd.f32 %v511_v36, %v1438_v1  ;;  %v625_v39 = vadd.f32 %v624_v37, %v1440_v2  ;;  %v513_v40 = vpop.f32.mrb[9].mxu0  ;;  %v626_v41 = vpop.f32.mrb[9].mxu1 }
 0x171   : > { %v514_v42 = vadd.f32 %v513_v40, %v1442_v3  ;;  %v627_v43 = vadd.f32 %v626_v41, %v1444_v0  ;;  %v515_v44 = vpop.f32.mrb[10].mxu0  ;;  %v628_v45 = vpop.f32.mrb[10].mxu1 }
 0x172   : > { %699 = vst [vmem:[%s1450_s20 + $0x80] sm:$0xff] %v512_v38  ;;  %701 = vst [vmem:[%s1450_s20 + $0x90] sm:$0xff] %v625_v39  ;;  %v516_v46 = vadd.f32 %v515_v44, %v1438_v1  ;;  %v629_v47 = vadd.f32 %v628_v45, %v1440_v2  ;;  %v517_v48 = vpop.f32.mrb[11].mxu0  ;;  %v630_v49 = vpop.f32.mrb[11].mxu1 }
 0x173   : > { %700 = vst [vmem:[%s1450_s20 + $0x88] sm:$0xff] %v514_v42  ;;  %702 = vst [vmem:[%s1450_s20 + $0x98] sm:$0xff] %v627_v43  ;;  %v518_v50 = vadd.f32 %v517_v48, %v1442_v3  ;;  %v631_v51 = vadd.f32 %v630_v49, %v1444_v0 }
 0x174   : > { %703 = vst [vmem:[%s1450_s20 + $0xa0] sm:$0xff] %v516_v46  ;;  %705 = vst [vmem:[%s1450_s20 + $0xb0] sm:$0xff] %v629_v47 }
 0x175   : > { %704 = vst [vmem:[%s1450_s20 + $0xa8] sm:$0xff] %v518_v50  ;;  %706 = vst [vmem:[%s1450_s20 + $0xb8] sm:$0xff] %v631_v51 }
 0x177   : > { %v521_v52 = vpop.f32.mrb[12].mxu0  ;;  %v634_v53 = vpop.f32.mrb[12].mxu1 }
 0x178   : > { %v522_v54 = vadd.f32 %v521_v52, %v1438_v1  ;;  %v635_v55 = vadd.f32 %v634_v53, %v1440_v2  ;;  %v523_v56 = vpop.f32.mrb[13].mxu0  ;;  %v636_v57 = vpop.f32.mrb[13].mxu1 }
 0x179   : > { %v524_v58 = vadd.f32 %v523_v56, %v1442_v3  ;;  %v637_v59 = vadd.f32 %v636_v57, %v1444_v0  ;;  %v525_v60 = vpop.f32.mrb[14].mxu0  ;;  %v638_v61 = vpop.f32.mrb[14].mxu1 }
 0x17a   : > { %707 = vst [vmem:[%s1450_s20 + $0xc0] sm:$0xff] %v522_v54  ;;  %709 = vst [vmem:[%s1450_s20 + $0xd0] sm:$0xff] %v635_v55  ;;  %v526_v62 = vadd.f32 %v525_v60, %v1438_v1  ;;  %v639_v63 = vadd.f32 %v638_v61, %v1440_v2  ;;  %v527_v4 = vpop.f32.mrb[15].mxu0  ;;  %v640_v5 = vpop.f32.mrb[15].mxu1 }
 0x17b   : > { %708 = vst [vmem:[%s1450_s20 + $0xc8] sm:$0xff] %v524_v58  ;;  %710 = vst [vmem:[%s1450_s20 + $0xd8] sm:$0xff] %v637_v59  ;;  %v528_v6 = vadd.f32 %v527_v4, %v1442_v3  ;;  %v641_v7 = vadd.f32 %v640_v5, %v1444_v0 }
 0x17c   : > { %711 = vst [vmem:[%s1450_s20 + $0xe0] sm:$0xff] %v526_v62  ;;  %713 = vst [vmem:[%s1450_s20 + $0xf0] sm:$0xff] %v639_v63 }
 0x17d   : > { %712 = vst [vmem:[%s1450_s20 + $0xe8] sm:$0xff] %v528_v6  ;;  %714 = vst [vmem:[%s1450_s20 + $0xf8] sm:$0xff] %v641_v7 }
 0x17f   : > { %v531_v8 = vpop.f32.mrb[16].mxu0  ;;  %v644_v9 = vpop.f32.mrb[16].mxu1 }
 0x180   : > { %v532_v10 = vadd.f32 %v531_v8, %v1438_v1  ;;  %v645_v11 = vadd.f32 %v644_v9, %v1440_v2  ;;  %v533_v12 = vpop.f32.mrb[17].mxu0  ;;  %v646_v13 = vpop.f32.mrb[17].mxu1 }
 0x181   : > { %v534_v14 = vadd.f32 %v533_v12, %v1442_v3  ;;  %v647_v15 = vadd.f32 %v646_v13, %v1444_v0  ;;  %v535_v16 = vpop.f32.mrb[18].mxu0  ;;  %v648_v17 = vpop.f32.mrb[18].mxu1 }
 0x182   : > { %715 = vst [vmem:[%s1450_s20 + $0x100] sm:$0xff] %v532_v10  ;;  %717 = vst [vmem:[%s1450_s20 + $0x110] sm:$0xff] %v645_v11  ;;  %v536_v18 = vadd.f32 %v535_v16, %v1438_v1  ;;  %v649_v19 = vadd.f32 %v648_v17, %v1440_v2  ;;  %v537_v20 = vpop.f32.mrb[19].mxu0  ;;  %v650_v21 = vpop.f32.mrb[19].mxu1 }
 0x183   : > { %716 = vst [vmem:[%s1450_s20 + $0x108] sm:$0xff] %v534_v14  ;;  %718 = vst [vmem:[%s1450_s20 + $0x118] sm:$0xff] %v647_v15  ;;  %v538_v22 = vadd.f32 %v537_v20, %v1442_v3  ;;  %v651_v23 = vadd.f32 %v650_v21, %v1444_v0 }
 0x184   : > { %719 = vst [vmem:[%s1450_s20 + $0x120] sm:$0xff] %v536_v18  ;;  %721 = vst [vmem:[%s1450_s20 + $0x130] sm:$0xff] %v649_v19 }
 0x185   : > { %720 = vst [vmem:[%s1450_s20 + $0x128] sm:$0xff] %v538_v22  ;;  %722 = vst [vmem:[%s1450_s20 + $0x138] sm:$0xff] %v651_v23 }
 0x187   : > { %v541_v24 = vpop.f32.mrb[20].mxu0  ;;  %v654_v25 = vpop.f32.mrb[20].mxu1 }
 0x188   : > { %v542_v26 = vadd.f32 %v541_v24, %v1438_v1  ;;  %v655_v27 = vadd.f32 %v654_v25, %v1440_v2  ;;  %v543_v28 = vpop.f32.mrb[21].mxu0  ;;  %v656_v29 = vpop.f32.mrb[21].mxu1 }
 0x189   : > { %v544_v30 = vadd.f32 %v543_v28, %v1442_v3  ;;  %v657_v31 = vadd.f32 %v656_v29, %v1444_v0  ;;  %v545_v32 = vpop.f32.mrb[22].mxu0  ;;  %v658_v33 = vpop.f32.mrb[22].mxu1 }
 0x18a   : > { %723 = vst [vmem:[%s1450_s20 + $0x140] sm:$0xff] %v542_v26  ;;  %725 = vst [vmem:[%s1450_s20 + $0x150] sm:$0xff] %v655_v27  ;;  %v546_v34 = vadd.f32 %v545_v32, %v1438_v1  ;;  %v659_v35 = vadd.f32 %v658_v33, %v1440_v2  ;;  %v547_v36 = vpop.f32.mrb[23].mxu0  ;;  %v660_v37 = vpop.f32.mrb[23].mxu1 }
 0x18b   : > { %724 = vst [vmem:[%s1450_s20 + $0x148] sm:$0xff] %v544_v30  ;;  %726 = vst [vmem:[%s1450_s20 + $0x158] sm:$0xff] %v657_v31  ;;  %v548_v38 = vadd.f32 %v547_v36, %v1442_v3  ;;  %v661_v39 = vadd.f32 %v660_v37, %v1444_v0 }
 0x18c   : > { %727 = vst [vmem:[%s1450_s20 + $0x160] sm:$0xff] %v546_v34  ;;  %729 = vst [vmem:[%s1450_s20 + $0x170] sm:$0xff] %v659_v35 }
 0x18d   : > { %728 = vst [vmem:[%s1450_s20 + $0x168] sm:$0xff] %v548_v38  ;;  %730 = vst [vmem:[%s1450_s20 + $0x178] sm:$0xff] %v661_v39 }
 0x18f   : > { %v551_v40 = vpop.f32.mrb[24].mxu0  ;;  %v664_v41 = vpop.f32.mrb[24].mxu1 }
 0x190   : > { %v552_v42 = vadd.f32 %v551_v40, %v1438_v1  ;;  %v665_v43 = vadd.f32 %v664_v41, %v1440_v2  ;;  %v553_v44 = vpop.f32.mrb[25].mxu0  ;;  %v666_v45 = vpop.f32.mrb[25].mxu1 }
 0x191   : > { %v554_v46 = vadd.f32 %v553_v44, %v1442_v3  ;;  %v667_v47 = vadd.f32 %v666_v45, %v1444_v0  ;;  %v555_v48 = vpop.f32.mrb[26].mxu0  ;;  %v668_v49 = vpop.f32.mrb[26].mxu1 }
 0x192   : > { %731 = vst [vmem:[%s1450_s20 + $0x180] sm:$0xff] %v552_v42  ;;  %733 = vst [vmem:[%s1450_s20 + $0x190] sm:$0xff] %v665_v43  ;;  %v556_v50 = vadd.f32 %v555_v48, %v1438_v1  ;;  %v669_v51 = vadd.f32 %v668_v49, %v1440_v2  ;;  %v557_v52 = vpop.f32.mrb[27].mxu0  ;;  %v670_v53 = vpop.f32.mrb[27].mxu1 }
 0x193   : > { %732 = vst [vmem:[%s1450_s20 + $0x188] sm:$0xff] %v554_v46  ;;  %734 = vst [vmem:[%s1450_s20 + $0x198] sm:$0xff] %v667_v47  ;;  %v558_v54 = vadd.f32 %v557_v52, %v1442_v3  ;;  %v671_v55 = vadd.f32 %v670_v53, %v1444_v0 }
 0x194   : > { %735 = vst [vmem:[%s1450_s20 + $0x1a0] sm:$0xff] %v556_v50  ;;  %737 = vst [vmem:[%s1450_s20 + $0x1b0] sm:$0xff] %v669_v51 }
 0x195   : > { %736 = vst [vmem:[%s1450_s20 + $0x1a8] sm:$0xff] %v558_v54  ;;  %738 = vst [vmem:[%s1450_s20 + $0x1b8] sm:$0xff] %v671_v55 }
 0x197   : > { %v561_v56 = vpop.f32.mrb[28].mxu0  ;;  %v674_v57 = vpop.f32.mrb[28].mxu1 }
 0x198   : > { %v562_v58 = vadd.f32 %v561_v56, %v1438_v1  ;;  %v675_v59 = vadd.f32 %v674_v57, %v1440_v2  ;;  %v563_v60 = vpop.f32.mrb[29].mxu0  ;;  %v676_v61 = vpop.f32.mrb[29].mxu1 }
 0x199   : > { %v564_v62 = vadd.f32 %v563_v60, %v1442_v3  ;;  %v677_v63 = vadd.f32 %v676_v61, %v1444_v0  ;;  %v565_v4 = vpop.f32.mrb[30].mxu0  ;;  %v678_v5 = vpop.f32.mrb[30].mxu1 }
 0x19a   : > { %739 = vst [vmem:[%s1450_s20 + $0x1c0] sm:$0xff] %v562_v58  ;;  %741 = vst [vmem:[%s1450_s20 + $0x1d0] sm:$0xff] %v675_v59  ;;  %v566_v6 = vadd.f32 %v565_v4, %v1438_v1  ;;  %v679_v7 = vadd.f32 %v678_v5, %v1440_v2  ;;  %v567_v8 = vpop.f32.mrb[31].mxu0  ;;  %v680_v9 = vpop.f32.mrb[31].mxu1 }
 0x19b   : > { %740 = vst [vmem:[%s1450_s20 + $0x1c8] sm:$0xff] %v564_v62  ;;  %742 = vst [vmem:[%s1450_s20 + $0x1d8] sm:$0xff] %v677_v63  ;;  %v568_v10 = vadd.f32 %v567_v8, %v1442_v3  ;;  %v681_v1 = vadd.f32 %v680_v9, %v1444_v0 }
 0x19c   : > { %743 = vst [vmem:[%s1450_s20 + $0x1e0] sm:$0xff] %v566_v6  ;;  %745 = vst [vmem:[%s1450_s20 + $0x1f0] sm:$0xff] %v679_v7 }
 0x19d   : > { %744 = vst [vmem:[%s1450_s20 + $0x1e8] sm:$0xff] %v568_v10  ;;  %746 = vst [vmem:[%s1450_s20 + $0x1f8] sm:$0xff] %v681_v1 }
 0x19e   : > { %1129 = shalt.err (!%p1126_p2)
}
 0x19f   : > { %s1130_s10 = scalar_lea.hbm %s1573_s27, 8192  ;;  %s1134_s22 = scalar_lea.hbm %s1630_s3, 16384 }
 0x1a0   : > { %p1131_p13 = scmp.ne.s32.totalorder %s1573_s27, %s1130_s10  ;;  %p1135_p4 = scmp.lt.u32.totalorder %s1573_s27, %s1630_s3 }
 0x1a1   : > { %p1136_p5 = scmp.lt.u32.totalorder %s1134_s22, %s1130_s10  ;;  %p1138_p11 = scmp.lt.u32.totalorder %s1130_s10, %s1573_s27 }
 0x1a2   : > { %p1132_p6 = pnand %p1131_p13, %p1644_p0 }
 0x1a3   : > { %p1137_p8 = por %p1136_p5, %p1135_p4 }
 0x1a4   : > { %p1133_p10 = pneg %p1132_p6 }
 0x1a5   : > { %p1139_p1 = por %p1138_p11, %p1137_p8 }
 0x1a7   : > { %p1140_p3 = pnand %p1139_p1, %p1133_p10 }
 0x1a9   : > { %1143 = shalt.err (!%p1140_p3)
}
 0x1aa   : > { %s1197_s18 = smov 512   ;;  %s1198_s20 = smov 32  }
 0x1ab   : > { %918 = dma.vmem_to_hbm [thread:$0]  (%p1644_p0), %s1575_s24, 8192, %s1573_s27, %s748_s23, %s1197_s18, %s1197_s18, %s1198_s20  }
 0x1ac PF: > { %s777_s17 = sand.u32 1, %s1174_s12   ;;  %p1645_p7 = scmp.ne.s32.totalorder %s1635_s19, 0 }
 0x1ad   : > { %p1646_p9 = scmp.ge.s32.totalorder %s1186_s15, 2  ;;  %s778_s16 = scalar_lea.sflag [#allocation4], %s777_s17 }
 0x1af   : > { %p932_p12 = pnand %p1646_p9, %p1645_p7 }
 0x1b1   : > { %1169 = dma.done.wait (!%p932_p12), %s778_s16, 8192  }
 0x1b2   : > { %1171 = vsyncadd (!%p932_p12), %s778_s16, 4294959104  ;;  %p17_p2 = scmp.ge.s32.totalorder %s1329_s4, 4   ;;  %s1647_s12 = smov %s1178_s13 }
 0x1b3   : > { %s1648_s13 = smov %s1182_s14  ;;  %s1649_s14 = smov %s1345_s7 }
 0x1b4   : > { %s1650_s15 = smov %s1329_s4  ;;  %19 = sbr.rel (!%p17_p2) target bundleno = 6 (0x6), region = 85 }
 0x1bb   :  { %783 = vsyncpa [#allocation3], 1 }
 0x1bc   :  { %785 = vsyncpa [#allocation3 + $0x1], 1 }
 0x1bd   :  { %786 = vsyncpa [#allocation6], 1 }
 0x1be   :  { %787 = vsyncpa [#allocation4], 1 }
 0x1bf   :  { %789 = vsyncpa [#allocation4 + $0x1], 1 }

// kernel: lm_forward.5
= control target key start
LH: loop header
LB: loop body
LE: loop exit
PB: predicated region body
PF: predicated region fallthrough
CT: control target
= control target key end

     0   :  { %8 = vsyncpa [#allocation3], 0  ;;  %s2795_s0 = inlined_call_operand.hbm [shape: bf16[256,128], index: 0, kind: input, shape index: {}]   ;;  %s2796_s1 = inlined_call_operand.hbm [shape: bf16[128,512], index: 1, kind: input, shape index: {}]   ;;  %s2797_s2 = inlined_call_operand.hbm [shape: f32[1,512], index: 2, kind: input, shape index: {}]   ;;  %s2798_s3 = inlined_call_operand.hbm [shape: f32[256,512], index: 3, kind: output, shape index: {}]  }
   0x1   :  { %10 = vsyncpa [#allocation3 + $0x1], 0 }
   0x2   :  { %11 = vsyncpa [#allocation6], 0 }
   0x3   :  { %12 = vsyncpa [#allocation4], 0 }
   0x4   :  { %14 = vsyncpa [#allocation4 + $0x1], 0  ;;  %s1883_s12 = smov 0   ;;  %s1885_s13 = smov 0  }
   0x5   :  { %s1887_s14 = smov 0   ;;  %s1889_s15 = smov 0  }
   0x6 LB: > { %s1904_s16 = sadd.s32 4294967295, %s1850_s15   ;;  %s1342_s17 = sadd.s32 4294967294, %s1850_s15   ;;  %s1850_s15 = sphi %s1889_s15, %s2923_s15   ;;  %s1846_s14 = sphi %s1887_s14, %s2922_s14   ;;  %s1842_s13 = sphi %s1885_s13, %s2921_s13   ;;  %s1838_s12 = sphi %s1883_s12, %s2920_s12  }
   0x7   : > { %p40_p0 = scmp.ne.s32.totalorder %s1842_s13, %s1838_s12  ;;  %p2799_p1 = scmp.eq.s32.totalorder %s1904_s16, 0 }
   0x8   : > { %p112_p3 = scmp.eq.s32.totalorder %s1342_s17, 1  ;;  %p1343_p5 = scmp.ge.s32.totalorder %s1850_s15, 1 }
   0x9   : > { %p1913_p4 = por %p2799_p1, %p40_p0  ;;  %p119_p7 = scmp.lt.s32.totalorder %s1850_s15, 3 }
   0xa   : > { %p1918_p6 = por %p112_p3, %p40_p0  ;;  %s1852_s21 = smov [#allocation5]  }
   0xb   : > { %s2837_s18 = scalar_select %p1913_p4, 1, 0 }
   0xc   : > { %s2838_s19 = scalar_select %p1918_p6, 1, 0 }
   0xd   : > { %p1923_p8 = pnand %p1343_p5, %p119_p7  ;;  %s131_s22 = sshll.u32 %s1852_s21, 4  ;;  %s1927_s22 = int_to_ptr.vmem [resolvable:$true] %s131_s22 }
   0xe   : > { %s1853_s24 = smov [#allocation7]   ;;  %s1694_s28 = scalar_lea.hbm %s2796_s1, 4096 }
   0xf   : > { %p1416_p9 = pneg %p1923_p8  ;;  %s145_s25 = sshll.u32 %s1853_s24, 4  ;;  %s1938_s25 = int_to_ptr.vmem [resolvable:$true] %s145_s25 }
  0x10   : > { %p1695_p12 = scmp.ne.s32.totalorder %s2796_s1, %s1694_s28  ;;  %p1701_p5 = scmp.lt.u32.totalorder %s1694_s28, %s2796_s1 }
  0x11   : > { %p1934_p11 = pnand %p1416_p9, %p2799_p1 }
  0x13   : > { %p1696_p13 = pneg %p1934_p11 }
  0x15   : > { %p1697_p0 = pnand %p1696_p13, %p1695_p12 }
  0x17   : > { %p1698_p3 = pneg %p1697_p0 }
  0x19   : > { %p1703_p7 = pnand %p1701_p5, %p1698_p3 }
  0x1b   : > { %1706 = shalt.err (!%p1703_p7)
}
  0x1c   : > { %s1707_s6 = scalar_lea.vmem %s1927_s22, 4096  ;;  %p1715_p2 = scmp.lt.s32.totalorder %s1927_s22, %s1927_s22 }
  0x1d   : > { %p1708_p9 = scmp.ne.s32.totalorder %s1927_s22, %s1707_s6  ;;  %p1716_p12 = scmp.lt.s32.totalorder %s1707_s6, %s1707_s6 }
  0x1f   : > { %p1710_p10 = pnand %p1708_p9, %p1696_p13  ;;  %p1717_p0 = por %p1716_p12, %p1715_p2 }
  0x21   : > { %p1711_p1 = pneg %p1710_p10 }
  0x23   : > { %p1718_p6 = pnand %p1717_p0, %p1711_p1 }
  0x25   : > { %1721 = shalt.err (!%p1718_p6)
}
  0x26   : > { %s1854_s7 = smov 256   ;;  %s1855_s8 = smov 16  }
  0x27   : > { %1419 = dma.hbm_to_vmem [thread:$0]  (!%p1934_p11), %s2796_s1, 4096, %s1927_s22, [#allocation6], %s1854_s7, %s1854_s7, %s1855_s8  }
  0x28   : > { %s1722_s21 = scalar_lea.hbm %s2797_s2, 64 }
  0x29   : > { %p1723_p2 = scmp.ne.s32.totalorder %s2797_s2, %s1722_s21  ;;  %p1729_p10 = scmp.lt.u32.totalorder %s1722_s21, %s2797_s2 }
  0x2b   : > { %p1725_p1 = pnand %p1723_p2, %p1696_p13 }
  0x2d   : > { %p1726_p6 = pneg %p1725_p1 }
  0x2f   : > { %p1731_p3 = pnand %p1729_p10, %p1726_p6 }
  0x31   : > { %1734 = shalt.err (!%p1731_p3)
}
  0x32   : > { %s1735_s22 = scalar_lea.vmem %s1938_s25, 64  ;;  %p1743_p12 = scmp.lt.s32.totalorder %s1938_s25, %s1938_s25 }
  0x33   : > { %p1736_p5 = scmp.ne.s32.totalorder %s1938_s25, %s1735_s22  ;;  %p1744_p0 = scmp.lt.s32.totalorder %s1735_s22, %s1735_s22 }
  0x35   : > { %p1738_p7 = pnand %p1736_p5, %p1696_p13  ;;  %p1745_p2 = por %p1744_p0, %p1743_p12 }
  0x37   : > { %p1739_p9 = pneg %p1738_p7 }
  0x39   : > { %p1746_p1 = pnand %p1745_p2, %p1739_p9 }
  0x3b   : > { %1749 = shalt.err (!%p1746_p1)
}
  0x3c   : > { %1422 = dma.hbm_to_vmem [thread:$0]  (!%p1934_p11), %s2797_s2, 64, %s1938_s25, [#allocation6]  }
  0x3d   : > { %s1993_s4 = sadd.s32 1, %s1850_s15   ;;  %s27_s23 = sadd.s32 1, %s1846_s14 }
  0x3e   : > { %s24_s5 = ssub.s32 %s1850_s15, %s1993_s4  ;;  %p34_p13 = scmp.ne.s32.totalorder %s1846_s14, %s1842_s13 }
  0x3f   : > { %p25_p6 = scmp.eq.s32.totalorder %s24_s5, 0  ;;  %p35_p10 = scmp.eq.s32.totalorder %s1850_s15, 0 }
  0x40   : > { %p2841_p3 = scmp.eq.s32.totalorder %s1904_s16, 1  ;;  %p1433_p7 = scmp.lt.s32.totalorder %s1850_s15, 2 }
  0x41   : > { %s2009_s7 = scalar_select %p25_p6, %s1846_s14, %s27_s23  }
  0x42   : > { %p2003_p5 = por %p2841_p3, %p34_p13  ;;  %p36_p9 = por %p35_p10, %p34_p13 }
  0x43   : > { %s156_s8 = sand.u32 1, %s1846_s14   ;;  %s1401_s25 = sshll.u32 %s1850_s15, 10 }
  0x44   : > { %s2842_s6 = scalar_select %p2003_p5, 1, 0 }
  0x45   : > { %s1347_s9 = sshll.u32 %s156_s8, 6  ;;  %s2016_s17 = scalar_lea.hbm %s2795_s0, %s1401_s25 }
  0x46   : > { %s160_s21 = scalar_lea.vmem [#allocation2], %s1347_s9  ;;  %p2020_p11 = pnand %p1433_p7, %p36_p9 }
  0x47   : > { %s167_s24 = sshll.u32 %s160_s21, 4  ;;  %s2024_s27 = scalar_lea.sflag [#allocation3], %s156_s8  ;;  %s2018_s24 = int_to_ptr.vmem [resolvable:$true] %s167_s24 }
  0x48   : > { %s1750_s28 = scalar_lea.hbm %s2016_s17, 1024  ;;  %p1752_p0 = pneg %p2020_p11 }
  0x49   : > { %p1751_p12 = scmp.ne.s32.totalorder %s2016_s17, %s1750_s28  ;;  %s1755_s30 = scalar_lea.hbm %s2795_s0, 2048 }
  0x4a   : > { %p1756_p13 = scmp.lt.u32.totalorder %s2016_s17, %s2795_s0  ;;  %p1757_p6 = scmp.lt.u32.totalorder %s1755_s30, %s1750_s28 }
  0x4b   : > { %p1753_p2 = pnand %p1752_p0, %p1751_p12  ;;  %p1759_p3 = scmp.lt.u32.totalorder %s1750_s28, %s2016_s17 }
  0x4c   : > { %p1758_p10 = por %p1757_p6, %p1756_p13 }
  0x4d   : > { %p1754_p1 = pneg %p1753_p2 }
  0x4e   : > { %p1760_p7 = por %p1759_p3, %p1758_p10 }
  0x50   : > { %p1761_p9 = pnand %p1760_p7, %p1754_p1 }
  0x52   : > { %1764 = shalt.err (!%p1761_p9)
}
  0x53   : > { %s1765_s8 = scalar_lea.vmem %s2018_s24, 1024  ;;  %s1856_s9 = smov [#allocation2]  }
  0x54   : > { %p1766_p12 = scmp.ne.s32.totalorder %s2018_s24, %s1765_s8  ;;  %s1770_s25 = sshll.u32 %s1856_s9, 4  ;;  %s1771_s25 = int_to_ptr.vmem [resolvable:$false] %s1770_s25 }
  0x55   : > { %s1772_s10 = scalar_lea.vmem %s1771_s25, 2048  ;;  %p1773_p4 = scmp.lt.s32.totalorder %s2018_s24, %s1771_s25 }
  0x56   : > { %p1768_p2 = pnand %p1766_p12, %p1752_p0  ;;  %p1774_p13 = scmp.lt.s32.totalorder %s1772_s10, %s1765_s8 }
  0x58   : > { %p1769_p5 = pneg %p1768_p2  ;;  %p1775_p6 = por %p1774_p13, %p1773_p4 }
  0x5a   : > { %p1776_p10 = pnand %p1775_p6, %p1769_p5 }
  0x5c   : > { %1779 = shalt.err (!%p1776_p10)
}
  0x5d   : > { %s1857_s11 = smov 64   ;;  %s1858_s21 = smov 4  }
  0x5e   : > { %1426 = dma.hbm_to_vmem [thread:$0]  (!%p2020_p11), %s2016_s17, 1024, %s2018_s24, %s2024_s27, %s1857_s11, %s1857_s11, %s1858_s21  }
  0x5f   : > { %179 = sbr.rel (%p1923_p8) target bundleno = 761 (0x2f9), region = 32 }
  0x66   : > { %s2055_s28 = sand.u32 1, %s1842_s13   ;;  %p2844_p4 = scmp.ne.s32.totalorder %s2837_s18, 0 }
  0x67   : > { %s1351_s22 = sshll.u32 %s2055_s28, 6  ;;  %s182_s29 = scalar_lea.sflag [#allocation3], %s2055_s28 }
  0x68   : > { %s2059_s30 = scalar_lea.vmem [#allocation2], %s1351_s22 }
  0x69   : > { %1825 = dma.done.wait (%p2844_p4), %s182_s29, 1024  }
  0x6a   : > { %1827 = vsyncadd (%p2844_p4), %s182_s29, 4294966272  ;;  %p2845_p5 = scmp.eq.s32.totalorder %s1904_s16, 0 }
  0x6c   : > { %1829 = dma.done.wait (%p2845_p5), [#allocation6], 4160   ;;  %p2846_p8 = pmov %p2845_p5 }
  0x6d   : > { %v1859_v0 = vmov 0   ;;  %v1478_v1 = vld [vmem:[#allocation5 + $0x4] ss:$16 sps:$4 sm:$0xff]   ;;  %v1480_v2 = vld [vmem:[#allocation5 + $0xc] ss:$16 sps:$4 sm:$0xff]   ;;  %v269_v41 = vlaneseq  ;;  %s1354_s18 = sshll.u32 %s2055_s28, 9 }
  0x6e   : > { %1831 = vsyncadd (%p2846_p8), [#allocation6], 4294963136  ;;  %529 = vmatprep.mubr.bf16.mxu0 %v1859_v0  ;;  %642 = vmatprep.mubr.bf16.mxu1 %v1859_v0  ;;  %v1482_v3 = vld [vmem:[#allocation5] ss:$16 sps:$4 sm:$0xff]   ;;  %v1483_v4 = vld [vmem:[#allocation5 + $0x8] ss:$16 sps:$4 sm:$0xff]  }
  0x6f   : > { %497 = vmatprep.subr.bf16.mxu0 %v1478_v1  ;;  %610 = vmatprep.subr.bf16.mxu1 %v1480_v2  ;;  %v1484_v5 = vld [vmem:[#allocation5 + $0x24] ss:$16 sps:$4 sm:$0xff]   ;;  %v1486_v6 = vld [vmem:[#allocation5 + $0x2c] ss:$16 sps:$4 sm:$0xff]   ;;  %v1488_v7 = vld [vmem:[#allocation5 + $0x20] ss:$16 sps:$4 sm:$0xff]  }
  0x70   : > { %498 = vmatpush1.bf16.msra.mxu0 %v1482_v3  ;;  %611 = vmatpush1.bf16.msra.mxu1 %v1483_v4  ;;  %v1489_v8 = vld [vmem:[#allocation5 + $0x28] ss:$16 sps:$4 sm:$0xff]   ;;  %v1490_v9 = vld [vmem:[#allocation5 + $0x44] ss:$16 sps:$4 sm:$0xff]   ;;  %v1492_v10 = vld [vmem:[#allocation5 + $0x4c] ss:$16 sps:$4 sm:$0xff]  }
  0x71   : > { %499 = vmatprep.subr.bf16.mxu0 %v1484_v5  ;;  %612 = vmatprep.subr.bf16.mxu1 %v1486_v6  ;;  %v1494_v11 = vld [vmem:[#allocation5 + $0x40] ss:$16 sps:$4 sm:$0xff]   ;;  %v1495_v12 = vld [vmem:[#allocation5 + $0x48] ss:$16 sps:$4 sm:$0xff]   ;;  %v1496_v13 = vld [vmem:[#allocation5 + $0x64] ss:$16 sps:$4 sm:$0xff]  }
  0x72   : > { %v1498_v14 = vld [vmem:[#allocation5 + $0x6c] ss:$16 sps:$4 sm:$0xff]   ;;  %v1500_v15 = vld [vmem:[#allocation5 + $0x60] ss:$16 sps:$4 sm:$0xff]   ;;  %v1501_v16 = vld [vmem:[#allocation5 + $0x68] ss:$16 sps:$4 sm:$0xff]  }
  0x73   : > { %v1502_v17 = vld [vmem:[#allocation5 + $0x84] ss:$16 sps:$4 sm:$0xff]   ;;  %v1504_v18 = vld [vmem:[#allocation5 + $0x8c] ss:$16 sps:$4 sm:$0xff]   ;;  %v1506_v19 = vld [vmem:[#allocation5 + $0x80] ss:$16 sps:$4 sm:$0xff]  }
  0x74   : > { %500 = vmatpush1.bf16.msra.mxu0 %v1488_v7  ;;  %613 = vmatpush1.bf16.msra.mxu1 %v1489_v8  ;;  %v1507_v20 = vld [vmem:[#allocation5 + $0x88] ss:$16 sps:$4 sm:$0xff]   ;;  %v1508_v21 = vld [vmem:[#allocation5 + $0xa4] ss:$16 sps:$4 sm:$0xff]   ;;  %v1510_v22 = vld [vmem:[#allocation5 + $0xac] ss:$16 sps:$4 sm:$0xff]  }
  0x75   : > { %501 = vmatprep.subr.bf16.mxu0 %v1490_v9  ;;  %614 = vmatprep.subr.bf16.mxu1 %v1492_v10  ;;  %v1512_v23 = vld [vmem:[#allocation5 + $0xa0] ss:$16 sps:$4 sm:$0xff]   ;;  %v1513_v24 = vld [vmem:[#allocation5 + $0xa8] ss:$16 sps:$4 sm:$0xff]   ;;  %v1514_v25 = vld [vmem:[#allocation5 + $0xc4] ss:$16 sps:$4 sm:$0xff]  }
  0x76   : > { %v1516_v26 = vld [vmem:[#allocation5 + $0xcc] ss:$16 sps:$4 sm:$0xff]   ;;  %v1518_v27 = vld [vmem:[#allocation5 + $0xc0] ss:$16 sps:$4 sm:$0xff]   ;;  %v1519_v28 = vld [vmem:[#allocation5 + $0xc8] ss:$16 sps:$4 sm:$0xff]  }
  0x77   : > { %v1520_v29 = vld [vmem:[#allocation5 + $0xe4] ss:$16 sps:$4 sm:$0xff]   ;;  %v1522_v30 = vld [vmem:[#allocation5 + $0xec] ss:$16 sps:$4 sm:$0xff]   ;;  %v1524_v31 = vld [vmem:[#allocation5 + $0xe0] ss:$16 sps:$4 sm:$0xff]  }
  0x78   : > { %502 = vmatpush1.bf16.msra.mxu0 %v1494_v11  ;;  %615 = vmatpush1.bf16.msra.mxu1 %v1495_v12  ;;  %v1525_v32 = vld [vmem:[#allocation5 + $0xe8] ss:$16 sps:$4 sm:$0xff]   ;;  %v1526_v33 = vld [vmem:[%s2059_s30] sm:$0xff]   ;;  %v1528_v35 = vld [vmem:[%s2059_s30 + $0x10] sm:$0xff]   ;;  %v270_v42 = vshrl.u32 %v269_v41, 7  ;;  %s2618_s20 = scalar_lea.vmem [#allocation8], %s1354_s18 }
  0x79   : > { %503 = vmatprep.subr.bf16.mxu0 %v1496_v13  ;;  %616 = vmatprep.subr.bf16.mxu1 %v1498_v14  ;;  %v1527_v34 = vld [vmem:[%s2059_s30 + $0x8] sm:$0xff]   ;;  %v1529_v36 = vld [vmem:[%s2059_s30 + $0x18] sm:$0xff]   ;;  %v1530_v37 = vld [vmem:[%s2059_s30 + $0x20] sm:$0xff]   ;;  %s1403_s17 = sshll.u32 %s1904_s16, 13  ;;  %s1250_s24 = sshll.u32 %s2618_s20, 4  ;;  %s2743_s24 = int_to_ptr.vmem [resolvable:$true] %s1250_s24 }
  0x7a   : > { %v1531_v38 = vld [vmem:[%s2059_s30 + $0x28] sm:$0xff]   ;;  %v1532_v39 = vld [vmem:[%s2059_s30 + $0x30] sm:$0xff]   ;;  %v1533_v40 = vld [vmem:[%s2059_s30 + $0x38] sm:$0xff]   ;;  %v271_v43 = vsub.s32 0, %v270_v42  ;;  %v279_v45 = vsub.s32 2, %v270_v42  ;;  %v275_v46 = vsub.s32 1, %v270_v42  ;;  %s2741_s23 = scalar_lea.hbm %s2798_s3, %s1403_s17 }
  0x7b   : > { %v267_v44 = vld [vmem:[#allocation7] sm:$0xf]  ;;  %v283_v50 = vsub.s32 3, %v270_v42  ;;  %s1236_s16 = scalar_lea.sflag [#allocation4], %s2055_s28  ;;  %s1780_s5 = scalar_lea.vmem %s2743_s24, 8192 }
  0x7c   : > { %504 = vmatpush1.bf16.msra.mxu0 %v1500_v15  ;;  %617 = vmatpush1.bf16.msra.mxu1 %v1501_v16  ;;  %v2093_v47 = vrot.slane %v267_v44, %v271_v43  ;;  %v2095_v48 = vrot.slane %v267_v44, %v279_v45  ;;  %v2097_v49 = vrot.slane %v267_v44, %v275_v46  ;;  %p1781_p11 = scmp.ne.s32.totalorder %s2743_s24, %s1780_s5  ;;  %p2917_p0 = scmp.ne.s32.totalorder %s2842_s6, 0 }
  0x7d   : > { %505 = vmatprep.subr.bf16.mxu0 %v1502_v17  ;;  %618 = vmatprep.subr.bf16.mxu1 %v1504_v18  ;;  %v2108_v58 = vrot.slane %v267_v44, %v283_v50  ;;  %s1860_s8 = smov [#allocation8]  }
  0x7e   : > { %p1782_p1 = pnand %p1781_p11, %p2917_p0  ;;  %s1784_s9 = sshll.u32 %s1860_s8, 4  ;;  %s1785_s9 = int_to_ptr.vmem [resolvable:$false] %s1784_s9 }
  0x7f   : > { %s1786_s25 = scalar_lea.vmem %s1785_s9, 16384  ;;  %p1787_p7 = scmp.lt.s32.totalorder %s2743_s24, %s1785_s9 }
  0x80   : > { %506 = vmatpush1.bf16.msra.mxu0 %v1506_v19  ;;  %619 = vmatpush1.bf16.msra.mxu1 %v1507_v20  ;;  %p1783_p3 = pneg %p1782_p1  ;;  %p1788_p9 = scmp.lt.s32.totalorder %s1786_s25, %s1780_s5 }
  0x81   : > { %507 = vmatprep.subr.bf16.mxu0 %v1508_v21  ;;  %620 = vmatprep.subr.bf16.mxu1 %v1510_v22 }
  0x82   : > { %p1789_p12 = por %p1788_p9, %p1787_p7 }
  0x84   : > { %508 = vmatpush1.bf16.msra.mxu0 %v1512_v23  ;;  %621 = vmatpush1.bf16.msra.mxu1 %v1513_v24  ;;  %p1790_p2 = pnand %p1789_p12, %p1783_p3 }
  0x85   : > { %509 = vmatprep.subr.bf16.mxu0 %v1514_v25  ;;  %622 = vmatprep.subr.bf16.mxu1 %v1516_v26 }
  0x88   : > { %510 = vmatpush1.bf16.msra.mxu0 %v1518_v27  ;;  %623 = vmatpush1.bf16.msra.mxu1 %v1519_v28 }
  0x89   : > { %511 = vmatprep.subr.bf16.mxu0 %v1520_v29  ;;  %624 = vmatprep.subr.bf16.mxu1 %v1522_v30 }
  0x8c   : > { %512 = vmatpush1.bf16.msra.mxu0 %v1524_v31  ;;  %625 = vmatpush1.bf16.msra.mxu1 %v1525_v32 }
  0x8f   : > { %530 = vmatmul.mubr.bf16.vlgmr.msra.gmra.mrb[0].mxu0 %v1526_v33  ;;  %643 = vmatmul.mubr.bf16.vlgmr.msra.gmra.mrb[0].mxu1 %v1526_v33 }
  0x90   : > { %539 = vmatprep.mubr.bf16.mxu0 %v1859_v0  ;;  %652 = vmatprep.mubr.bf16.mxu1 %v1859_v0 }
  0x97   : > { %540 = vmatmul.mubr.bf16.gmra.mrb[4].mxu0 %v1527_v34  ;;  %653 = vmatmul.mubr.bf16.gmra.mrb[4].mxu1 %v1527_v34 }
  0x98   : > { %549 = vmatprep.mubr.bf16.mxu0 %v1859_v0  ;;  %662 = vmatprep.mubr.bf16.mxu1 %v1859_v0 }
  0x9f   : > { %550 = vmatmul.mubr.bf16.gmra.mrb[8].mxu0 %v1528_v35  ;;  %663 = vmatmul.mubr.bf16.gmra.mrb[8].mxu1 %v1528_v35 }
  0xa0   : > { %559 = vmatprep.mubr.bf16.mxu0 %v1859_v0  ;;  %672 = vmatprep.mubr.bf16.mxu1 %v1859_v0 }
  0xa7   : > { %560 = vmatmul.mubr.bf16.gmra.mrb[12].mxu0 %v1529_v36  ;;  %673 = vmatmul.mubr.bf16.gmra.mrb[12].mxu1 %v1529_v36 }
  0xa8   : > { %569 = vmatprep.mubr.bf16.mxu0 %v1859_v0  ;;  %682 = vmatprep.mubr.bf16.mxu1 %v1859_v0 }
  0xaf   : > { %570 = vmatmul.mubr.bf16.gmra.mrb[16].mxu0 %v1530_v37  ;;  %683 = vmatmul.mubr.bf16.gmra.mrb[16].mxu1 %v1530_v37 }
  0xb0   : > { %579 = vmatprep.mubr.bf16.mxu0 %v1859_v0  ;;  %692 = vmatprep.mubr.bf16.mxu1 %v1859_v0 }
  0xb7   : > { %580 = vmatmul.mubr.bf16.gmra.mrb[20].mxu0 %v1531_v38  ;;  %693 = vmatmul.mubr.bf16.gmra.mrb[20].mxu1 %v1531_v38 }
  0xb8   : > { %589 = vmatprep.mubr.bf16.mxu0 %v1859_v0  ;;  %702 = vmatprep.mubr.bf16.mxu1 %v1859_v0 }
  0xbf   : > { %590 = vmatmul.mubr.bf16.gmra.mrb[24].mxu0 %v1532_v39  ;;  %703 = vmatmul.mubr.bf16.gmra.mrb[24].mxu1 %v1532_v39 }
  0xc0   : > { %599 = vmatprep.mubr.bf16.mxu0 %v1859_v0  ;;  %712 = vmatprep.mubr.bf16.mxu1 %v1859_v0 }
  0xc7   : > { %600 = vmatmul.mubr.bf16.gmra.mrb[28].mxu0 %v1533_v40  ;;  %713 = vmatmul.mubr.bf16.gmra.mrb[28].mxu1 %v1533_v40 }
 0x162   : > { %v531_v51 = vpop.f32.mrb[0].mxu0  ;;  %v644_v52 = vpop.f32.mrb[0].mxu1 }
 0x163   : > { %v2100_v53 = vadd.f32 %v531_v51, %v2093_v47  ;;  %v533_v54 = vpop.f32.mrb[1].mxu0  ;;  %v646_v55 = vpop.f32.mrb[1].mxu1  ;;  %v2103_v56 = vadd.f32 %v644_v52, %v2095_v48 }
 0x164   : > { %v2106_v57 = vadd.f32 %v533_v54, %v2097_v49  ;;  %v535_v59 = vpop.f32.mrb[2].mxu0  ;;  %v648_v60 = vpop.f32.mrb[2].mxu1  ;;  %v2119_v2 = vadd.f32 %v646_v55, %v2108_v58 }
 0x165   : > { %v2111_v61 = vadd.f32 %v535_v59, %v2093_v47  ;;  %v537_v62 = vpop.f32.mrb[3].mxu0  ;;  %v650_v63 = vpop.f32.mrb[3].mxu1  ;;  %v2122_v3 = vadd.f32 %v648_v60, %v2095_v48 }
 0x166   : > { %v723_v0 = vmax.f32 %v2100_v53, %v2106_v57  ;;  %v2116_v1 = vadd.f32 %v537_v62, %v2097_v49  ;;  %v2133_v13 = vadd.f32 %v650_v63, %v2108_v58 }
 0x168   : > { %v728_v4 = vmax.f32 %v2111_v61, %v2116_v1  ;;  %v724_v5 = vmax.f32 %v723_v0, %v2103_v56 }
 0x16a   : > { %v541_v6 = vpop.f32.mrb[4].mxu0  ;;  %v654_v7 = vpop.f32.mrb[4].mxu1  ;;  %v725_v8 = vmax.f32 %v724_v5, %v2119_v2  ;;  %v729_v9 = vmax.f32 %v728_v4, %v2122_v3 }
 0x16b   : > { %v2130_v10 = vadd.f32 %v541_v6, %v2093_v47  ;;  %v543_v11 = vpop.f32.mrb[5].mxu0  ;;  %v656_v12 = vpop.f32.mrb[5].mxu1  ;;  %v2136_v14 = vadd.f32 %v654_v7, %v2095_v48 }
 0x16c   : > { %v2139_v15 = vadd.f32 %v543_v11, %v2097_v49  ;;  %v545_v16 = vpop.f32.mrb[6].mxu0  ;;  %v658_v17 = vpop.f32.mrb[6].mxu1  ;;  %726 = vmax.xlane.f32.xlu0 %v725_v8  ;;  %v730_v23 = vmax.f32 %v729_v9, %v2133_v13  ;;  %v2151_v24 = vadd.f32 %v656_v12, %v2108_v58 }
 0x16d   : > { %v2142_v18 = vadd.f32 %v545_v16, %v2093_v47  ;;  %v547_v19 = vpop.f32.mrb[7].mxu0  ;;  %v660_v20 = vpop.f32.mrb[7].mxu1  ;;  %v2154_v25 = vadd.f32 %v658_v17, %v2095_v48 }
 0x16e   : > { %v733_v21 = vmax.f32 %v2130_v10, %v2139_v15  ;;  %v2147_v22 = vadd.f32 %v547_v19, %v2097_v49  ;;  %v2165_v35 = vadd.f32 %v660_v20, %v2108_v58 }
 0x170   : > { %v738_v26 = vmax.f32 %v2142_v18, %v2147_v22  ;;  %731 = vmax.xlane.f32.xlu0 %v730_v23  ;;  %v734_v27 = vmax.f32 %v733_v21, %v2136_v14 }
 0x172   : > { %v551_v28 = vpop.f32.mrb[8].mxu0  ;;  %v664_v29 = vpop.f32.mrb[8].mxu1  ;;  %v735_v30 = vmax.f32 %v734_v27, %v2151_v24  ;;  %v739_v31 = vmax.f32 %v738_v26, %v2154_v25 }
 0x173   : > { %v2162_v32 = vadd.f32 %v551_v28, %v2093_v47  ;;  %v553_v33 = vpop.f32.mrb[9].mxu0  ;;  %v666_v34 = vpop.f32.mrb[9].mxu1  ;;  %v2168_v36 = vadd.f32 %v664_v29, %v2095_v48 }
 0x174   : > { %v2171_v37 = vadd.f32 %v553_v33, %v2097_v49  ;;  %v555_v38 = vpop.f32.mrb[10].mxu0  ;;  %v668_v39 = vpop.f32.mrb[10].mxu1  ;;  %736 = vmax.xlane.f32.xlu1 %v735_v30  ;;  %v740_v45 = vmax.f32 %v739_v31, %v2165_v35  ;;  %v2183_v46 = vadd.f32 %v666_v34, %v2108_v58 }
 0x175   : > { %v2174_v40 = vadd.f32 %v555_v38, %v2093_v47  ;;  %v557_v41 = vpop.f32.mrb[11].mxu0  ;;  %v670_v42 = vpop.f32.mrb[11].mxu1  ;;  %v2186_v50 = vadd.f32 %v668_v39, %v2095_v48 }
 0x176   : > { %v743_v43 = vmax.f32 %v2162_v32, %v2171_v37  ;;  %v2179_v44 = vadd.f32 %v557_v41, %v2097_v49  ;;  %v2192_v54 = vadd.f32 %v670_v42, %v2108_v58 }
 0x178   : > { %v748_v51 = vmax.f32 %v2174_v40, %v2179_v44  ;;  %741 = vmax.xlane.f32.xlu1 %v740_v45  ;;  %v744_v52 = vmax.f32 %v743_v43, %v2168_v36 }
 0x17a   : > { %v561_v55 = vpop.f32.mrb[12].mxu0  ;;  %v674_v59 = vpop.f32.mrb[12].mxu1  ;;  %v745_v60 = vmax.f32 %v744_v52, %v2183_v46  ;;  %v749_v62 = vmax.f32 %v748_v51, %v2186_v50 }
 0x17b   : > { %v2197_v63 = vadd.f32 %v561_v55, %v2093_v47  ;;  %v563_v0 = vpop.f32.mrb[13].mxu0  ;;  %v676_v4 = vpop.f32.mrb[13].mxu1  ;;  %v2200_v5 = vadd.f32 %v674_v59, %v2095_v48 }
 0x17c   : > { %v2203_v6 = vadd.f32 %v563_v0, %v2097_v49  ;;  %v565_v7 = vpop.f32.mrb[14].mxu0  ;;  %v678_v8 = vpop.f32.mrb[14].mxu1  ;;  %746 = vmax.xlane.f32.xlu0 %v745_v60  ;;  %v750_v9 = vmax.f32 %v749_v62, %v2192_v54  ;;  %v2215_v20 = vadd.f32 %v676_v4, %v2108_v58 }
 0x17d   : > { %v2207_v11 = vadd.f32 %v565_v7, %v2093_v47  ;;  %v567_v12 = vpop.f32.mrb[15].mxu0  ;;  %v680_v16 = vpop.f32.mrb[15].mxu1  ;;  %v2218_v21 = vadd.f32 %v678_v8, %v2095_v48 }
 0x17e   : > { %v753_v17 = vmax.f32 %v2197_v63, %v2203_v6  ;;  %v2212_v19 = vadd.f32 %v567_v12, %v2097_v49  ;;  %751 = vmax.xlane.f32.xlu1 %v750_v9  ;;  %v2224_v27 = vadd.f32 %v680_v16, %v2108_v58 }
 0x180   : > { %v758_v23 = vmax.f32 %v2207_v11, %v2212_v19  ;;  %v754_v26 = vmax.f32 %v753_v17, %v2200_v5 }
 0x182   : > { %v571_v28 = vpop.f32.mrb[16].mxu0  ;;  %v684_v29 = vpop.f32.mrb[16].mxu1  ;;  %v755_v30 = vmax.f32 %v754_v26, %v2215_v20  ;;  %v759_v31 = vmax.f32 %v758_v23, %v2218_v21 }
 0x183   : > { %v2229_v33 = vadd.f32 %v571_v28, %v2093_v47  ;;  %v573_v34 = vpop.f32.mrb[17].mxu0  ;;  %v686_v38 = vpop.f32.mrb[17].mxu1  ;;  %v2232_v39 = vadd.f32 %v684_v29, %v2095_v48 }
 0x184   : > { %v2235_v41 = vadd.f32 %v573_v34, %v2097_v49  ;;  %v575_v42 = vpop.f32.mrb[18].mxu0  ;;  %v688_v43 = vpop.f32.mrb[18].mxu1  ;;  %756 = vmax.xlane.f32.xlu0 %v755_v30  ;;  %v760_v45 = vmax.f32 %v759_v31, %v2224_v27  ;;  %v2247_v62 = vadd.f32 %v686_v38, %v2108_v58 }
 0x185   : > { %v2239_v51 = vadd.f32 %v575_v42, %v2093_v47  ;;  %v577_v52 = vpop.f32.mrb[19].mxu0  ;;  %v690_v55 = vpop.f32.mrb[19].mxu1  ;;  %v2250_v0 = vadd.f32 %v688_v43, %v2095_v48 }
 0x186   : > { %v763_v59 = vmax.f32 %v2229_v33, %v2235_v41  ;;  %v2244_v60 = vadd.f32 %v577_v52, %v2097_v49  ;;  %761 = vmax.xlane.f32.xlu1 %v760_v45  ;;  %v2256_v8 = vadd.f32 %v690_v55, %v2108_v58 }
 0x188   : > { %v768_v4 = vmax.f32 %v2239_v51, %v2244_v60  ;;  %v764_v7 = vmax.f32 %v763_v59, %v2232_v39 }
 0x18a   : > { %v581_v9 = vpop.f32.mrb[20].mxu0  ;;  %v694_v12 = vpop.f32.mrb[20].mxu1  ;;  %v765_v16 = vmax.f32 %v764_v7, %v2247_v62  ;;  %v769_v17 = vmax.f32 %v768_v4, %v2250_v0 }
 0x18b   : > { %v2261_v23 = vadd.f32 %v581_v9, %v2093_v47  ;;  %v583_v26 = vpop.f32.mrb[21].mxu0  ;;  %v696_v28 = vpop.f32.mrb[21].mxu1  ;;  %v2264_v29 = vadd.f32 %v694_v12, %v2095_v48 }
 0x18c   : > { %v2267_v30 = vadd.f32 %v583_v26, %v2097_v49  ;;  %v585_v31 = vpop.f32.mrb[22].mxu0  ;;  %v698_v34 = vpop.f32.mrb[22].mxu1  ;;  %766 = vmax.xlane.f32.xlu0 %v765_v16  ;;  %v770_v38 = vmax.f32 %v769_v17, %v2256_v8  ;;  %v2279_v59 = vadd.f32 %v696_v28, %v2108_v58 }
 0x18d   : > { %2847 = vst [vmem:[#allocation12_spill] sm:$0xff] %v2264_v29  ;;  %v2271_v42 = vadd.f32 %v585_v31, %v2093_v47  ;;  %v587_v43 = vpop.f32.mrb[23].mxu0  ;;  %v700_v45 = vpop.f32.mrb[23].mxu1  ;;  %v2282_v4 = vadd.f32 %v698_v34, %v2095_v48 }
 0x18e   : > { %v773_v52 = vmax.f32 %v2261_v23, %v2267_v30  ;;  %v2276_v55 = vadd.f32 %v587_v43, %v2097_v49  ;;  %771 = vmax.xlane.f32.xlu1 %v770_v38  ;;  %2850 = vst [vmem:[#allocation15_spill] sm:$0xff] %v2279_v59  ;;  %v2288_v12 = vadd.f32 %v700_v45, %v2108_v58 }
 0x18f   : > { %2848 = vst [vmem:[#allocation13_spill] sm:$0xff] %v2271_v42  ;;  %2851 = vst [vmem:[#allocation16_spill] sm:$0xff] %v2282_v4 }
 0x190   : > { %2849 = vst [vmem:[#allocation14_spill] sm:$0xff] %v2276_v55  ;;  %v778_v7 = vmax.f32 %v2271_v42, %v2276_v55  ;;  %v774_v9 = vmax.f32 %v773_v52, %v2264_v29  ;;  %2852 = vst [vmem:[#allocation17_spill] sm:$0xff] %v2288_v12 }
 0x192   : > { %v591_v16 = vpop.f32.mrb[24].mxu0  ;;  %v704_v17 = vpop.f32.mrb[24].mxu1  ;;  %v775_v26 = vmax.f32 %v774_v9, %v2279_v59  ;;  %v779_v31 = vmax.f32 %v778_v7, %v2282_v4 }
 0x193   : > { %v2293_v28 = vadd.f32 %v591_v16, %v2093_v47  ;;  %v593_v38 = vpop.f32.mrb[25].mxu0  ;;  %v706_v34 = vpop.f32.mrb[25].mxu1  ;;  %v2296_v43 = vadd.f32 %v704_v17, %v2095_v48 }
 0x194   : > { %v2299_v55 = vadd.f32 %v593_v38, %v2097_v49  ;;  %v595_v52 = vpop.f32.mrb[26].mxu0  ;;  %v708_v45 = vpop.f32.mrb[26].mxu1  ;;  %776 = vmax.xlane.f32.xlu0 %v775_v26  ;;  %v780_v42 = vmax.f32 %v779_v31, %v2288_v12  ;;  %v2311_v17 = vadd.f32 %v706_v34, %v2108_v58 }
 0x195   : > { %2853 = vst [vmem:[#allocation18_spill] sm:$0xff] %v2293_v28  ;;  %v2303_v9 = vadd.f32 %v595_v52, %v2093_v47  ;;  %v597_v7 = vpop.f32.mrb[27].mxu0  ;;  %v710_v4 = vpop.f32.mrb[27].mxu1  ;;  %v2314_v38 = vadd.f32 %v708_v45, %v2095_v48 }
 0x196   : > { %2854 = vst [vmem:[#allocation19_spill] sm:$0xff] %v2299_v55  ;;  %v783_v16 = vmax.f32 %v2293_v28, %v2299_v55  ;;  %v2308_v59 = vadd.f32 %v597_v7, %v2097_v49  ;;  %781 = vmax.xlane.f32.xlu1 %v780_v42  ;;  %2857 = vst [vmem:[#allocation22_spill] sm:$0xff] %v2311_v17  ;;  %v2320_v52 = vadd.f32 %v710_v4, %v2108_v58 }
 0x197   : > { %2855 = vst [vmem:[#allocation20_spill] sm:$0xff] %v2303_v9  ;;  %2858 = vst [vmem:[#allocation23_spill] sm:$0xff] %v2314_v38 }
 0x198   : > { %2856 = vst [vmem:[#allocation21_spill] sm:$0xff] %v2308_v59  ;;  %v788_v26 = vmax.f32 %v2303_v9, %v2308_v59  ;;  %v784_v31 = vmax.f32 %v783_v16, %v2296_v43 }
 0x19a   : > { %v601_v12 = vpop.f32.mrb[28].mxu0  ;;  %v714_v55 = vpop.f32.mrb[28].mxu1  ;;  %v785_v7 = vmax.f32 %v784_v31, %v2311_v17  ;;  %v789_v42 = vmax.f32 %v788_v26, %v2314_v38 }
 0x19b   : > { %v2325_v34 = vadd.f32 %v601_v12, %v2093_v47  ;;  %v603_v28 = vpop.f32.mrb[29].mxu0  ;;  %v716_v45 = vpop.f32.mrb[29].mxu1  ;;  %v2328_v29 = vadd.f32 %v714_v55, %v2095_v48 }
 0x19c   : > { %v2331_v59 = vadd.f32 %v603_v28, %v2097_v49  ;;  %v605_v16 = vpop.f32.mrb[30].mxu0  ;;  %v718_v4 = vpop.f32.mrb[30].mxu1  ;;  %786 = vmax.xlane.f32.xlu0 %v785_v7  ;;  %v790_v9 = vmax.f32 %v789_v42, %v2320_v52  ;;  %v2343_v55 = vadd.f32 %v716_v45, %v2108_v58 }
 0x19d   : > { %v2335_v31 = vadd.f32 %v605_v16, %v2093_v47  ;;  %v607_v26 = vpop.f32.mrb[31].mxu0  ;;  %v720_v38 = vpop.f32.mrb[31].mxu1  ;;  %v2346_v28 = vadd.f32 %v718_v4, %v2095_v48 }
 0x19e   : > { %v793_v12 = vmax.f32 %v2325_v34, %v2331_v59  ;;  %v2340_v17 = vadd.f32 %v607_v26, %v2097_v49  ;;  %791 = vmax.xlane.f32.xlu1 %v790_v9  ;;  %v2352_v42 = vadd.f32 %v720_v38, %v2108_v58 }
 0x1a0   : > { %v798_v7 = vmax.f32 %v2335_v31, %v2340_v17  ;;  %v794_v47 = vmax.f32 %v793_v12, %v2328_v29 }
 0x1a2   : > { %v795_v16 = vmax.f32 %v794_v47, %v2343_v55  ;;  %v799_v49 = vmax.f32 %v798_v7, %v2346_v28 }
 0x1a4   : > { %796 = vmax.xlane.f32.xlu0 %v795_v16  ;;  %v800_v9 = vmax.f32 %v799_v49, %v2352_v42 }
 0x1a6   : > { %801 = vmax.xlane.f32.xlu1 %v800_v9 }
 0x1f9   : > { %v727_v45 = vpop.xlane.xlu0 %726 }
 0x1fa   : > { %v2358_v48 = vsub.f32 %v2100_v53, %v727_v45  ;;  %v2361_v4 = vsub.f32 %v2106_v57, %v727_v45  ;;  %v2364_v26 = vsub.f32 %v2103_v56, %v727_v45  ;;  %v2367_v58 = vsub.f32 %v2119_v2, %v727_v45 }
 0x1fc   : > { %v867_v38 = vmul.f32 1.442695, %v2358_v48  ;;  %v869_v12 = vmul.f32 1.442695, %v2361_v4  ;;  %v871_v7 = vmul.f32 1.442695, %v2364_v26 }
 0x1fd   : > { %v873_v47 = vmul.f32 1.442695, %v2367_v58  ;;  %v732_v16 = vpop.xlane.xlu0 %731 }
 0x1fe   : > { %1534 = vpow2.f32 %v867_v38  ;;  %v2374_v53 = vsub.f32 %v2111_v61, %v732_v16  ;;  %v2377_v57 = vsub.f32 %v2116_v1, %v732_v16  ;;  %v2380_v56 = vsub.f32 %v2122_v3, %v732_v16 }
 0x1ff   : > { %1536 = vpow2.f32 %v869_v12  ;;  %v2383_v2 = vsub.f32 %v2133_v13, %v732_v16 }
 0x200   : > { %1538 = vpow2.f32 %v871_v7  ;;  %v875_v49 = vmul.f32 1.442695, %v2374_v53  ;;  %v877_v9 = vmul.f32 1.442695, %v2377_v57  ;;  %v879_v45 = vmul.f32 1.442695, %v2380_v56 }
 0x201   : > { %1540 = vpow2.f32 %v873_v47  ;;  %v881_v61 = vmul.f32 1.442695, %v2383_v2  ;;  %v737_v38 = vpop.xlane.xlu1 %736 }
 0x202   : > { %1542 = vpow2.f32 %v875_v49  ;;  %v2390_v1 = vsub.f32 %v2130_v10, %v737_v38  ;;  %v2393_v3 = vsub.f32 %v2139_v15, %v737_v38  ;;  %v2396_v13 = vsub.f32 %v2136_v14, %v737_v38 }
 0x203   : > { %1544 = vpow2.f32 %v877_v9  ;;  %v2399_v12 = vsub.f32 %v2151_v24, %v737_v38 }
 0x204   : > { %2859 = vst [vmem:[#allocation24_spill] sm:$0xff] %v2396_v13  ;;  %1546 = vpow2.f32 %v879_v45  ;;  %v883_v7 = vmul.f32 1.442695, %v2390_v1  ;;  %v885_v47 = vmul.f32 1.442695, %v2393_v3 }
 0x205   : > { %2860 = vst [vmem:[#allocation25_spill] sm:$0xff] %v2399_v12  ;;  %v887_v16 = vmul.f32 1.442695, %v2396_v13  ;;  %1548 = vpow2.f32 %v881_v61  ;;  %v889_v10 = vmul.f32 1.442695, %v2399_v12  ;;  %v742_v49 = vpop.xlane.xlu1 %741 }
 0x206   : > { %1550 = vpow2.f32 %v883_v7  ;;  %v2406_v15 = vsub.f32 %v2142_v18, %v742_v49  ;;  %v2409_v14 = vsub.f32 %v2147_v22, %v742_v49  ;;  %v2412_v24 = vsub.f32 %v2154_v25, %v742_v49 }
 0x207   : > { %1552 = vpow2.f32 %v885_v47  ;;  %v2415_v9 = vsub.f32 %v2165_v35, %v742_v49 }
 0x208   : > { %2861 = vst [vmem:[#allocation26_spill] sm:$0xff] %v2406_v15  ;;  %2862 = vst [vmem:[#allocation27_spill] sm:$0xff] %v2409_v14  ;;  %v1535_v45 = vpop.eup %1534  ;;  %1554 = vpow2.f32 %v887_v16  ;;  %v891_v61 = vmul.f32 1.442695, %v2406_v15  ;;  %v893_v38 = vmul.f32 1.442695, %v2409_v14 }
 0x209   : > { %2863 = vst [vmem:[#allocation28_spill] sm:$0xff] %v2412_v24  ;;  %2864 = vst [vmem:[#allocation29_spill] sm:$0xff] %v2415_v9  ;;  %v895_v7 = vmul.f32 1.442695, %v2412_v24  ;;  %v1537_v18 = vpop.eup %1536  ;;  %1556 = vpow2.f32 %v889_v10  ;;  %v897_v22 = vmul.f32 1.442695, %v2415_v9  ;;  %v747_v12 = vpop.xlane.xlu0 %746 }
 0x20a   : > { %v1539_v13 = vpop.eup %1538  ;;  %1558 = vpow2.f32 %v891_v61  ;;  %v2422_v25 = vsub.f32 %v2162_v32, %v747_v12  ;;  %v2425_v35 = vsub.f32 %v2171_v37, %v747_v12  ;;  %v2428_v47 = vsub.f32 %v2168_v36, %v747_v12 }
 0x20b   : > { %v1541_v16 = vpop.eup %1540  ;;  %1560 = vpow2.f32 %v893_v38  ;;  %v2431_v49 = vsub.f32 %v2183_v46, %v747_v12  ;;  %v752_v10 = vpop.xlane.xlu1 %751  ;;  %v995_v24 = vadd.f32 %v1537_v18, %v1535_v45 }
 0x20c   : > { %2865 = vst [vmem:[#allocation30_spill] sm:$0xff] %v2422_v25  ;;  %2866 = vst [vmem:[#allocation31_spill] sm:$0xff] %v2425_v35  ;;  %v1543_v9 = vpop.eup %1542  ;;  %1562 = vpow2.f32 %v895_v7  ;;  %v899_v61 = vmul.f32 1.442695, %v2422_v25  ;;  %v901_v32 = vmul.f32 1.442695, %v2425_v35  ;;  %v2438_v15 = vsub.f32 %v2174_v40, %v752_v10 }
 0x20d   : > { %2867 = vst [vmem:[#allocation32_spill] sm:$0xff] %v2428_v47  ;;  %2868 = vst [vmem:[#allocation33_spill] sm:$0xff] %v2431_v49  ;;  %v903_v14 = vmul.f32 1.442695, %v2428_v47  ;;  %v1545_v37 = vpop.eup %1544  ;;  %1564 = vpow2.f32 %v897_v22  ;;  %v905_v36 = vmul.f32 1.442695, %v2431_v49  ;;  %v2441_v46 = vsub.f32 %v2179_v44, %v752_v10 }
 0x20e   : > { %v1547_v12 = vpop.eup %1546  ;;  %1566 = vpow2.f32 %v899_v61  ;;  %v2444_v45 = vsub.f32 %v2186_v50, %v752_v10  ;;  %v2447_v38 = vsub.f32 %v2192_v54, %v752_v10  ;;  %v996_v7 = vadd.f32 %v1539_v13, %v995_v24 }
 0x20f   : > { %v1549_v18 = vpop.eup %1548  ;;  %1568 = vpow2.f32 %v901_v32  ;;  %v907_v22 = vmul.f32 1.442695, %v2438_v15  ;;  %v909_v49 = vmul.f32 1.442695, %v2441_v46  ;;  %v1000_v40 = vadd.f32 %v1545_v37, %v1543_v9 }
 0x210   : > { %v1551_v47 = vpop.eup %1550  ;;  %1570 = vpow2.f32 %v903_v14  ;;  %v911_v44 = vmul.f32 1.442695, %v2444_v45  ;;  %v997_v35 = vadd.f32 %v1541_v16, %v996_v7  ;;  %v913_v50 = vmul.f32 1.442695, %v2447_v38 }
 0x211   : > { %v1553_v61 = vpop.eup %1552  ;;  %1572 = vpow2.f32 %v905_v36  ;;  %v757_v25 = vpop.xlane.xlu0 %756  ;;  %v1001_v54 = vadd.f32 %v1547_v12, %v1000_v40 }
 0x212   : > { %v1555_v10 = vpop.eup %1554  ;;  %1574 = vpow2.f32 %v907_v22  ;;  %998 = vadd.xlane.f32.xlu0 %v997_v35  ;;  %v2454_v13 = vsub.f32 %v2197_v63, %v757_v25  ;;  %v2457_v24 = vsub.f32 %v2203_v6, %v757_v25  ;;  %v2460_v14 = vsub.f32 %v2200_v5, %v757_v25 }
 0x213   : > { %v1557_v9 = vpop.eup %1556  ;;  %1576 = vpow2.f32 %v909_v49  ;;  %v2463_v16 = vsub.f32 %v2215_v20, %v757_v25  ;;  %v762_v32 = vpop.xlane.xlu1 %761  ;;  %v1002_v37 = vadd.f32 %v1549_v18, %v1001_v54  ;;  %v1005_v36 = vadd.f32 %v1553_v61, %v1551_v47 }
 0x214   : > { %v1559_v12 = vpop.eup %1558  ;;  %1578 = vpow2.f32 %v911_v44  ;;  %v915_v35 = vmul.f32 1.442695, %v2454_v13  ;;  %v917_v63 = vmul.f32 1.442695, %v2457_v24  ;;  %v919_v6 = vmul.f32 1.442695, %v2460_v14 }
 0x215   : > { %v1561_v7 = vpop.eup %1560  ;;  %1580 = vpow2.f32 %v913_v50  ;;  %v921_v5 = vmul.f32 1.442695, %v2463_v16  ;;  %v2470_v49 = vsub.f32 %v2207_v11, %v762_v32  ;;  %v2473_v20 = vsub.f32 %v2212_v19, %v762_v32  ;;  %1003 = vadd.xlane.f32.xlu1 %v1002_v37 }
 0x216   : > { %v1563_v25 = vpop.eup %1562  ;;  %1582 = vpow2.f32 %v915_v35  ;;  %v2476_v47 = vsub.f32 %v2218_v21, %v762_v32  ;;  %v2479_v18 = vsub.f32 %v2224_v27, %v762_v32  ;;  %v1006_v22 = vadd.f32 %v1555_v10, %v1005_v36 }
 0x217   : > { %v1565_v40 = vpop.eup %1564  ;;  %1584 = vpow2.f32 %v917_v63  ;;  %v923_v44 = vmul.f32 1.442695, %v2470_v49  ;;  %v925_v11 = vmul.f32 1.442695, %v2473_v20  ;;  %v1010_v61 = vadd.f32 %v1561_v7, %v1559_v12 }
 0x218   : > { %v1567_v50 = vpop.eup %1566  ;;  %1586 = vpow2.f32 %v919_v6  ;;  %v927_v19 = vmul.f32 1.442695, %v2476_v47  ;;  %v1007_v54 = vadd.f32 %v1557_v9, %v1006_v22  ;;  %v929_v21 = vmul.f32 1.442695, %v2479_v18 }
 0x219   : > { %v1569_v37 = vpop.eup %1568  ;;  %1588 = vpow2.f32 %v921_v5  ;;  %v767_v35 = vpop.xlane.xlu0 %766  ;;  %v1011_v27 = vadd.f32 %v1563_v25, %v1010_v61 }
 0x21a   : > { %v1571_v32 = vpop.eup %1570  ;;  %1590 = vpow2.f32 %v923_v44  ;;  %1008 = vadd.xlane.f32.xlu0 %v1007_v54  ;;  %v2486_v10 = vsub.f32 %v2229_v33, %v767_v35  ;;  %v2489_v36 = vsub.f32 %v2235_v41, %v767_v35  ;;  %v2492_v12 = vsub.f32 %v2232_v39, %v767_v35 }
 0x21b   : > { %v1573_v63 = vpop.eup %1572  ;;  %1592 = vpow2.f32 %v925_v11  ;;  %v2495_v9 = vsub.f32 %v2247_v62, %v767_v35  ;;  %v772_v6 = vpop.xlane.xlu1 %771  ;;  %v1012_v7 = vadd.f32 %v1565_v40, %v1011_v27  ;;  %v1015_v5 = vadd.f32 %v1569_v37, %v1567_v50 }
 0x21c   : > { %v1575_v25 = vpop.eup %1574  ;;  %1594 = vpow2.f32 %v927_v19  ;;  %v931_v22 = vmul.f32 1.442695, %v2486_v10  ;;  %v933_v33 = vmul.f32 1.442695, %v2489_v36  ;;  %v935_v41 = vmul.f32 1.442695, %v2492_v12 }
 0x21d   : > { %v1577_v44 = vpop.eup %1576  ;;  %1596 = vpow2.f32 %v929_v21  ;;  %v937_v39 = vmul.f32 1.442695, %v2495_v9  ;;  %v2502_v11 = vsub.f32 %v2239_v51, %v772_v6  ;;  %v2505_v62 = vsub.f32 %v2244_v60, %v772_v6  ;;  %1013 = vadd.xlane.f32.xlu1 %v1012_v7 }
 0x21e   : > { %v1579_v40 = vpop.eup %1578  ;;  %1598 = vpow2.f32 %v931_v22  ;;  %v2508_v61 = vsub.f32 %v2250_v0, %v772_v6  ;;  %v2511_v50 = vsub.f32 %v2256_v8, %v772_v6  ;;  %v1016_v19 = vadd.f32 %v1571_v32, %v1015_v5 }
 0x21f   : > { %v1581_v54 = vpop.eup %1580  ;;  %1600 = vpow2.f32 %v933_v33  ;;  %v939_v37 = vmul.f32 1.442695, %v2502_v11  ;;  %v941_v51 = vmul.f32 1.442695, %v2505_v62  ;;  %v1020_v21 = vadd.f32 %v1577_v44, %v1575_v25  ;;  %v2873_v25 = vld [vmem:[#allocation12_spill] sm:$0xff]  ;;  %v2875_v44 = vld [vmem:[#allocation15_spill] sm:$0xff] }
 0x220   : > { %2869 = vst [vmem:[#allocation34_spill] sm:$0xff] %v2508_v61  ;;  %2870 = vst [vmem:[#allocation35_spill] sm:$0xff] %v2511_v50  ;;  %v1583_v35 = vpop.eup %1582  ;;  %1602 = vpow2.f32 %v935_v41  ;;  %v943_v60 = vmul.f32 1.442695, %v2508_v61  ;;  %v1017_v27 = vadd.f32 %v1573_v63, %v1016_v19  ;;  %v945_v0 = vmul.f32 1.442695, %v2511_v50 }
 0x221   : > { %v1585_v7 = vpop.eup %1584  ;;  %1604 = vpow2.f32 %v937_v39  ;;  %v1021_v22 = vadd.f32 %v1579_v40, %v1020_v21  ;;  %v777_v8 = vpop.xlane.xlu0 %776 }
 0x222   : > { %v1587_v6 = vpop.eup %1586  ;;  %1606 = vpow2.f32 %v939_v37  ;;  %1018 = vadd.xlane.f32.xlu0 %v1017_v27  ;;  %v2518_v32 = vsub.f32 %v2261_v23, %v777_v8  ;;  %v2521_v5 = vsub.f32 %v2267_v30, %v777_v8  ;;  %v2524_v33 = vsub.f32 %v2873_v25, %v777_v8 }
 0x223   : > { %v1589_v41 = vpop.eup %1588  ;;  %1608 = vpow2.f32 %v941_v51  ;;  %v1022_v63 = vadd.f32 %v1581_v54, %v1021_v22  ;;  %v2527_v39 = vsub.f32 %v2875_v44, %v777_v8  ;;  %v782_v40 = vpop.xlane.xlu1 %781  ;;  %v1025_v19 = vadd.f32 %v1585_v7, %v1583_v35  ;;  %v2877_v51 = vld [vmem:[#allocation13_spill] sm:$0xff]  ;;  %v2878_v22 = vld [vmem:[#allocation14_spill] sm:$0xff] }
 0x224   : > { %2871 = vst [vmem:[#allocation36_spill] sm:$0xff] %v2518_v32  ;;  %2872 = vst [vmem:[#allocation37_spill] sm:$0xff] %v2521_v5  ;;  %v1591_v21 = vpop.eup %1590  ;;  %1610 = vpow2.f32 %v943_v60  ;;  %v947_v37 = vmul.f32 1.442695, %v2518_v32  ;;  %v949_v23 = vmul.f32 1.442695, %v2521_v5  ;;  %v2534_v54 = vsub.f32 %v2877_v51, %v782_v40 }
 0x225   : > { %2874 = vst [vmem:[#allocation12_spill] sm:$0xff] %v2524_v33  ;;  %2876 = vst [vmem:[#allocation15_spill] sm:$0xff] %v2527_v39  ;;  %v951_v30 = vmul.f32 1.442695, %v2524_v33  ;;  %v1593_v27 = vpop.eup %1592  ;;  %1612 = vpow2.f32 %v945_v0  ;;  %1023 = vadd.xlane.f32.xlu1 %v1022_v63  ;;  %v953_v25 = vmul.f32 1.442695, %v2527_v39  ;;  %v2537_v8 = vsub.f32 %v2878_v22, %v782_v40 }
 0x226   : > { %v1595_v35 = vpop.eup %1594  ;;  %1614 = vpow2.f32 %v947_v37  ;;  %v2880_v60 = vld [vmem:[#allocation16_spill] sm:$0xff]  ;;  %v2881_v44 = vld [vmem:[#allocation17_spill] sm:$0xff]  ;;  %v1026_v33 = vadd.f32 %v1587_v6, %v1025_v19  ;;  %v955_v0 = vmul.f32 1.442695, %v2534_v54  ;;  %v1030_v51 = vadd.f32 %v1593_v27, %v1591_v21  ;;  %v2883_v6 = vld [vmem:[#allocation18_spill] sm:$0xff] }
 0x227   : > { %2879 = vst [vmem:[#allocation13_spill] sm:$0xff] %v2537_v8  ;;  %v2540_v7 = vsub.f32 %v2880_v60, %v782_v40  ;;  %v2543_v5 = vsub.f32 %v2881_v44, %v782_v40  ;;  %v1597_v32 = vpop.eup %1596  ;;  %1616 = vpow2.f32 %v949_v23  ;;  %v957_v63 = vmul.f32 1.442695, %v2537_v8  ;;  %v2885_v23 = vld [vmem:[#allocation19_spill] sm:$0xff] }
 0x228   : > { %v1599_v39 = vpop.eup %1598  ;;  %1618 = vpow2.f32 %v951_v30  ;;  %v1027_v50 = vadd.f32 %v1589_v41, %v1026_v33  ;;  %v1031_v61 = vadd.f32 %v1595_v35, %v1030_v51  ;;  %v2888_v41 = vld [vmem:[#allocation22_spill] sm:$0xff] }
 0x229   : > { %2882 = vst [vmem:[#allocation14_spill] sm:$0xff] %v2543_v5  ;;  %v959_v22 = vmul.f32 1.442695, %v2540_v7  ;;  %v1601_v37 = vpop.eup %1600  ;;  %1620 = vpow2.f32 %v953_v25  ;;  %v961_v60 = vmul.f32 1.442695, %v2543_v5  ;;  %v787_v40 = vpop.xlane.xlu0 %786 }
 0x22a   : > { %v1603_v44 = vpop.eup %1602  ;;  %1622 = vpow2.f32 %v955_v0  ;;  %1028 = vadd.xlane.f32.xlu0 %v1027_v50  ;;  %v2550_v19 = vsub.f32 %v2883_v6, %v787_v40  ;;  %v2553_v8 = vsub.f32 %v2885_v23, %v787_v40  ;;  %v2556_v21 = vsub.f32 %v2296_v43, %v787_v40 }
 0x22b   : > { %v1605_v30 = vpop.eup %1604  ;;  %1624 = vpow2.f32 %v957_v63  ;;  %v1032_v33 = vadd.f32 %v1597_v32, %v1031_v61  ;;  %v2559_v27 = vsub.f32 %v2888_v41, %v787_v40  ;;  %v792_v25 = vpop.xlane.xlu1 %791  ;;  %v1035_v35 = vadd.f32 %v1601_v37, %v1599_v39  ;;  %v2890_v63 = vld [vmem:[#allocation20_spill] sm:$0xff]  ;;  %v2891_v32 = vld [vmem:[#allocation21_spill] sm:$0xff] }
 0x22c   : > { %2884 = vst [vmem:[#allocation16_spill] sm:$0xff] %v2550_v19  ;;  %2886 = vst [vmem:[#allocation17_spill] sm:$0xff] %v2553_v8  ;;  %v1607_v51 = vpop.eup %1606  ;;  %1626 = vpow2.f32 %v959_v22  ;;  %v963_v50 = vmul.f32 1.442695, %v2550_v19  ;;  %v965_v0 = vmul.f32 1.442695, %v2553_v8  ;;  %v2566_v61 = vsub.f32 %v2890_v63, %v792_v25 }
 0x22d   : > { %2887 = vst [vmem:[#allocation18_spill] sm:$0xff] %v2556_v21  ;;  %2889 = vst [vmem:[#allocation19_spill] sm:$0xff] %v2559_v27  ;;  %v967_v6 = vmul.f32 1.442695, %v2556_v21  ;;  %v1609_v23 = vpop.eup %1608  ;;  %1628 = vpow2.f32 %v961_v60  ;;  %1033 = vadd.xlane.f32.xlu1 %v1032_v33  ;;  %v969_v43 = vmul.f32 1.442695, %v2559_v27  ;;  %v2569_v40 = vsub.f32 %v2891_v32, %v792_v25 }
 0x22e   : > { %v1611_v39 = vpop.eup %1610  ;;  %1630 = vpow2.f32 %v963_v50  ;;  %v2892_v22 = vld [vmem:[#allocation23_spill] sm:$0xff]  ;;  %v2575_v41 = vsub.f32 %v2320_v52, %v792_v25  ;;  %v1036_v21 = vadd.f32 %v1603_v44, %v1035_v35  ;;  %v971_v60 = vmul.f32 1.442695, %v2566_v61 }
 0x22f   : > { %v2572_v37 = vsub.f32 %v2892_v22, %v792_v25  ;;  %v1613_v8 = vpop.eup %1612  ;;  %1632 = vpow2.f32 %v965_v0  ;;  %v973_v33 = vmul.f32 1.442695, %v2569_v40  ;;  %v1040_v63 = vadd.f32 %v1609_v23, %v1607_v51 }
 0x230   : > { %v1615_v27 = vpop.eup %1614  ;;  %1634 = vpow2.f32 %v967_v6  ;;  %v1037_v19 = vadd.f32 %v1605_v30, %v1036_v21  ;;  %v977_v22 = vmul.f32 1.442695, %v2575_v41 }
 0x231   : > { %v975_v32 = vmul.f32 1.442695, %v2572_v37  ;;  %v1617_v50 = vpop.eup %1616  ;;  %1636 = vpow2.f32 %v969_v43  ;;  %v1041_v5 = vadd.f32 %v1611_v39, %v1040_v63  ;;  %v797_v52 = vpop.xlane.xlu0 %796 }
 0x232   : > { %v1619_v25 = vpop.eup %1618  ;;  %1638 = vpow2.f32 %v971_v60  ;;  %1038 = vadd.xlane.f32.xlu0 %v1037_v19  ;;  %v2582_v44 = vsub.f32 %v2325_v34, %v797_v52  ;;  %v2585_v35 = vsub.f32 %v2331_v59, %v797_v52  ;;  %v2588_v51 = vsub.f32 %v2328_v29, %v797_v52 }
 0x233   : > { %v1621_v0 = vpop.eup %1620  ;;  %1640 = vpow2.f32 %v973_v33  ;;  %v1042_v21 = vadd.f32 %v1613_v8, %v1041_v5  ;;  %v2591_v30 = vsub.f32 %v2343_v55, %v797_v52  ;;  %v802_v6 = vpop.xlane.xlu1 %801  ;;  %v1045_v23 = vadd.f32 %v1617_v50, %v1615_v27 }
 0x234   : > { %v1623_v43 = vpop.eup %1622  ;;  %1642 = vpow2.f32 %v975_v32  ;;  %v979_v19 = vmul.f32 1.442695, %v2582_v44  ;;  %v981_v34 = vmul.f32 1.442695, %v2585_v35  ;;  %v983_v59 = vmul.f32 1.442695, %v2588_v51 }
 0x235   : > { %v1625_v39 = vpop.eup %1624  ;;  %1644 = vpow2.f32 %v977_v22  ;;  %1043 = vadd.xlane.f32.xlu1 %v1042_v21  ;;  %v985_v29 = vmul.f32 1.442695, %v2591_v30  ;;  %v2598_v5 = vsub.f32 %v2335_v31, %v802_v6  ;;  %v2601_v55 = vsub.f32 %v2340_v17, %v802_v6 }
 0x236   : > { %v1627_v8 = vpop.eup %1626  ;;  %1646 = vpow2.f32 %v979_v19  ;;  %v2604_v27 = vsub.f32 %v2346_v28, %v802_v6  ;;  %v2607_v60 = vsub.f32 %v2352_v42, %v802_v6  ;;  %v1046_v33 = vadd.f32 %v1619_v25, %v1045_v23 }
 0x237   : > { %2893 = vst [vmem:[#allocation22_spill] sm:$0xff] %v2601_v55  ;;  %v1629_v63 = vpop.eup %1628  ;;  %1648 = vpow2.f32 %v981_v34  ;;  %v987_v32 = vmul.f32 1.442695, %v2598_v5  ;;  %v989_v50 = vmul.f32 1.442695, %v2601_v55  ;;  %v1050_v31 = vadd.f32 %v1625_v39, %v1623_v43 }
 0x238   : > { %v1631_v22 = vpop.eup %1630  ;;  %1650 = vpow2.f32 %v983_v59  ;;  %v1047_v17 = vadd.f32 %v1621_v0, %v1046_v33  ;;  %v991_v21 = vmul.f32 1.442695, %v2604_v27  ;;  %v993_v6 = vmul.f32 1.442695, %v2607_v60 }
 0x239   : > { %v1633_v52 = vpop.eup %1632  ;;  %1652 = vpow2.f32 %v985_v29  ;;  %v1051_v28 = vadd.f32 %v1627_v8, %v1050_v31 }
 0x23a   : > { %v1635_v19 = vpop.eup %1634  ;;  %1654 = vpow2.f32 %v987_v32  ;;  %1048 = vadd.xlane.f32.xlu0 %v1047_v17  ;;  %v1055_v42 = vadd.f32 %v1633_v52, %v1631_v22 }
 0x23b   : > { %v1637_v25 = vpop.eup %1636  ;;  %1656 = vpow2.f32 %v989_v50  ;;  %v1052_v23 = vadd.f32 %v1629_v63, %v1051_v28 }
 0x23c   : > { %v1639_v34 = vpop.eup %1638  ;;  %v1056_v55 = vadd.f32 %v1635_v19, %v1055_v42  ;;  %1658 = vpow2.f32 %v991_v21 }
 0x23d   : > { %v1641_v43 = vpop.eup %1640  ;;  %1053 = vadd.xlane.f32.xlu1 %v1052_v23  ;;  %1660 = vpow2.f32 %v993_v6 }
 0x23e   : > { %v1643_v0 = vpop.eup %1642  ;;  %v1057_v59 = vadd.f32 %v1637_v25, %v1056_v55  ;;  %v1060_v39 = vadd.f32 %v1641_v43, %v1639_v34 }
 0x23f   : > { %v1645_v29 = vpop.eup %1644 }
 0x240   : > { %v1647_v8 = vpop.eup %1646  ;;  %1058 = vadd.xlane.f32.xlu0 %v1057_v59  ;;  %v1061_v33 = vadd.f32 %v1643_v0, %v1060_v39 }
 0x241   : > { %v1649_v32 = vpop.eup %1648 }
 0x242   : > { %v1651_v31 = vpop.eup %1650  ;;  %v1062_v22 = vadd.f32 %v1645_v29, %v1061_v33  ;;  %v1065_v50 = vadd.f32 %v1649_v32, %v1647_v8 }
 0x243   : > { %v1653_v17 = vpop.eup %1652 }
 0x244   : > { %v1655_v52 = vpop.eup %1654  ;;  %1063 = vadd.xlane.f32.xlu1 %v1062_v22  ;;  %v1066_v63 = vadd.f32 %v1651_v31, %v1065_v50 }
 0x245   : > { %v1657_v28 = vpop.eup %1656 }
 0x246   : > { %v1067_v21 = vadd.f32 %v1653_v17, %v1066_v63  ;;  %v1070_v19 = vadd.f32 %v1657_v28, %v1655_v52  ;;  %v1659_v42 = vpop.eup %1658 }
 0x247   : > { %v1661_v25 = vpop.eup %1660 }
 0x248   : > { %1068 = vadd.xlane.f32.xlu0 %v1067_v21  ;;  %v1071_v55 = vadd.f32 %v1659_v42, %v1070_v19  ;;  %v2895_v21 = vld [vmem:[#allocation25_spill] sm:$0xff] }
 0x24a   : > { %v1072_v6 = vadd.f32 %v1661_v25, %v1071_v55  ;;  %v2896_v25 = vld [vmem:[#allocation26_spill] sm:$0xff] }
 0x24c   : > { %1073 = vadd.xlane.f32.xlu1 %v1072_v6 }
 0x29f   : > { %v999_v23 = vpop.xlane.xlu0 %998 }
 0x2a0   : > { %1662 = vlog2.f32 %v999_v23  ;;  %v2897_v23 = vld [vmem:[#allocation27_spill] sm:$0xff] }
 0x2a2   : > { %v1004_v34 = vpop.xlane.xlu1 %1003 }
 0x2a3   : > { %1664 = vlog2.f32 %v1004_v34 }
 0x2a7   : > { %v1009_v43 = vpop.xlane.xlu0 %1008 }
 0x2a8   : > { %1666 = vlog2.f32 %v1009_v43 }
 0x2aa   : > { %v1663_v0 = vpop.eup %1662  ;;  %v1014_v59 = vpop.xlane.xlu1 %1013 }
 0x2ab   : > { %v1076_v39 = vmul.f32 0.6931472, %v1663_v0  ;;  %1668 = vlog2.f32 %v1014_v59  ;;  %v2899_v0 = vld [vmem:[#allocation29_spill] sm:$0xff] }
 0x2ad   : > { %v1665_v29 = vpop.eup %1664  ;;  %v1107_v8 = vsub.f32 %v2358_v48, %v1076_v39  ;;  %v1108_v33 = vsub.f32 %v2361_v4, %v1076_v39  ;;  %v1109_v32 = vsub.f32 %v2364_v26, %v1076_v39  ;;  %v1110_v31 = vsub.f32 %v2367_v58, %v1076_v39 }
 0x2ae   : > { %v1078_v22 = vmul.f32 0.6931472, %v1665_v29 }
 0x2af   : > { %1171 = vst [vmem:[%s2618_s20] sm:$0xff] %v1107_v8  ;;  %1172 = vst [vmem:[%s2618_s20 + $0x8] sm:$0xff] %v1108_v33  ;;  %v1019_v48 = vpop.xlane.xlu0 %1018  ;;  %v2900_v33 = vld [vmem:[#allocation30_spill] sm:$0xff] }
 0x2b0   : > { %1173 = vst [vmem:[%s2618_s20 + $0x10] sm:$0xff] %v1109_v32  ;;  %1174 = vst [vmem:[%s2618_s20 + $0x18] sm:$0xff] %v1110_v31  ;;  %v1111_v4 = vsub.f32 %v2374_v53, %v1078_v22  ;;  %v1112_v26 = vsub.f32 %v2377_v57, %v1078_v22  ;;  %v1113_v58 = vsub.f32 %v2380_v56, %v1078_v22  ;;  %1670 = vlog2.f32 %v1019_v48  ;;  %v2901_v31 = vld [vmem:[#allocation31_spill] sm:$0xff]  ;;  %v2902_v48 = vld [vmem:[#allocation32_spill] sm:$0xff] }
 0x2b1   : > { %v1114_v50 = vsub.f32 %v2383_v2, %v1078_v22  ;;  %v2894_v2 = vld [vmem:[#allocation24_spill] sm:$0xff] }
 0x2b2   : > { %v1667_v17 = vpop.eup %1666  ;;  %1175 = vst [vmem:[%s2618_s20 + $0x20] sm:$0xff] %v1111_v4  ;;  %1176 = vst [vmem:[%s2618_s20 + $0x28] sm:$0xff] %v1112_v26  ;;  %v1024_v52 = vpop.xlane.xlu1 %1023  ;;  %v2903_v26 = vld [vmem:[#allocation33_spill] sm:$0xff] }
 0x2b3   : > { %1177 = vst [vmem:[%s2618_s20 + $0x30] sm:$0xff] %v1113_v58  ;;  %1178 = vst [vmem:[%s2618_s20 + $0x38] sm:$0xff] %v1114_v50  ;;  %v1080_v63 = vmul.f32 0.6931472, %v1667_v17  ;;  %1672 = vlog2.f32 %v1024_v52 }
 0x2b5   : > { %v1669_v53 = vpop.eup %1668  ;;  %v1115_v57 = vsub.f32 %v2390_v1, %v1080_v63  ;;  %v1116_v56 = vsub.f32 %v2393_v3, %v1080_v63  ;;  %v1117_v28 = vsub.f32 %v2894_v2, %v1080_v63  ;;  %v1118_v19 = vsub.f32 %v2895_v21, %v1080_v63  ;;  %v2898_v1 = vld [vmem:[#allocation28_spill] sm:$0xff] }
 0x2b6   : > { %v1082_v42 = vmul.f32 0.6931472, %v1669_v53 }
 0x2b7   : > { %1179 = vst [vmem:[%s2618_s20 + $0x40] sm:$0xff] %v1115_v57  ;;  %1180 = vst [vmem:[%s2618_s20 + $0x48] sm:$0xff] %v1116_v56  ;;  %v1029_v55 = vpop.xlane.xlu0 %1028 }
 0x2b8   : > { %1181 = vst [vmem:[%s2618_s20 + $0x50] sm:$0xff] %v1117_v28  ;;  %1182 = vst [vmem:[%s2618_s20 + $0x58] sm:$0xff] %v1118_v19  ;;  %v1119_v6 = vsub.f32 %v2896_v25, %v1082_v42  ;;  %v1120_v34 = vsub.f32 %v2897_v23, %v1082_v42  ;;  %v1121_v43 = vsub.f32 %v2898_v1, %v1082_v42  ;;  %1674 = vlog2.f32 %v1029_v55 }
 0x2b9   : > { %v1122_v3 = vsub.f32 %v2899_v0, %v1082_v42 }
 0x2ba   : > { %1183 = vst [vmem:[%s2618_s20 + $0x60] sm:$0xff] %v1119_v6  ;;  %1184 = vst [vmem:[%s2618_s20 + $0x68] sm:$0xff] %v1120_v34  ;;  %v1034_v59 = vpop.xlane.xlu1 %1033  ;;  %v1671_v39 = vpop.eup %1670 }
 0x2bb   : > { %1185 = vst [vmem:[%s2618_s20 + $0x70] sm:$0xff] %v1121_v43  ;;  %1186 = vst [vmem:[%s2618_s20 + $0x78] sm:$0xff] %v1122_v3  ;;  %1676 = vlog2.f32 %v1034_v59  ;;  %v1084_v29 = vmul.f32 0.6931472, %v1671_v39  ;;  %v2905_v3 = vld [vmem:[#allocation35_spill] sm:$0xff] }
 0x2bd   : > { %v1673_v8 = vpop.eup %1672  ;;  %v1123_v32 = vsub.f32 %v2900_v33, %v1084_v29  ;;  %v1124_v22 = vsub.f32 %v2901_v31, %v1084_v29  ;;  %v1125_v4 = vsub.f32 %v2902_v48, %v1084_v29  ;;  %v1126_v58 = vsub.f32 %v2903_v26, %v1084_v29 }
 0x2be   : > { %v1086_v50 = vmul.f32 0.6931472, %v1673_v8 }
 0x2bf   : > { %v1039_v17 = vpop.xlane.xlu0 %1038  ;;  %1187 = vst [vmem:[%s2618_s20 + $0x80] sm:$0xff] %v1123_v32  ;;  %1188 = vst [vmem:[%s2618_s20 + $0x88] sm:$0xff] %v1124_v22  ;;  %v2908_v32 = vld [vmem:[#allocation12_spill] sm:$0xff]  ;;  %v2909_v22 = vld [vmem:[#allocation15_spill] sm:$0xff] }
 0x2c0   : > { %1189 = vst [vmem:[%s2618_s20 + $0x90] sm:$0xff] %v1125_v4  ;;  %1190 = vst [vmem:[%s2618_s20 + $0x98] sm:$0xff] %v1126_v58  ;;  %1678 = vlog2.f32 %v1039_v17  ;;  %v1127_v52 = vsub.f32 %v2438_v15, %v1086_v50  ;;  %v1128_v63 = vsub.f32 %v2441_v46, %v1086_v50  ;;  %v1129_v53 = vsub.f32 %v2444_v45, %v1086_v50  ;;  %v2910_v17 = vld [vmem:[#allocation13_spill] sm:$0xff] }
 0x2c1   : > { %v1130_v57 = vsub.f32 %v2447_v38, %v1086_v50 }
 0x2c2   : > { %v1044_v56 = vpop.xlane.xlu1 %1043  ;;  %v1675_v2 = vpop.eup %1674  ;;  %1191 = vst [vmem:[%s2618_s20 + $0xa0] sm:$0xff] %v1127_v52  ;;  %1192 = vst [vmem:[%s2618_s20 + $0xa8] sm:$0xff] %v1128_v63 }
 0x2c3   : > { %1193 = vst [vmem:[%s2618_s20 + $0xb0] sm:$0xff] %v1129_v53  ;;  %1194 = vst [vmem:[%s2618_s20 + $0xb8] sm:$0xff] %v1130_v57  ;;  %1680 = vlog2.f32 %v1044_v56  ;;  %v1088_v28 = vmul.f32 0.6931472, %v1675_v2  ;;  %v2911_v53 = vld [vmem:[#allocation14_spill] sm:$0xff] }
 0x2c5   : > { %v1677_v21 = vpop.eup %1676  ;;  %v1131_v15 = vsub.f32 %v2454_v13, %v1088_v28  ;;  %v1132_v46 = vsub.f32 %v2457_v24, %v1088_v28  ;;  %v1133_v45 = vsub.f32 %v2460_v14, %v1088_v28  ;;  %v1134_v38 = vsub.f32 %v2463_v16, %v1088_v28  ;;  %v2912_v28 = vld [vmem:[#allocation16_spill] sm:$0xff] }
 0x2c6   : > { %v1090_v19 = vmul.f32 0.6931472, %v1677_v21  ;;  %v2913_v21 = vld [vmem:[#allocation17_spill] sm:$0xff] }
 0x2c7   : > { %v1049_v42 = vpop.xlane.xlu0 %1048  ;;  %1195 = vst [vmem:[%s2618_s20 + $0xc0] sm:$0xff] %v1131_v15  ;;  %1196 = vst [vmem:[%s2618_s20 + $0xc8] sm:$0xff] %v1132_v46  ;;  %v2914_v46 = vld [vmem:[#allocation18_spill] sm:$0xff] }
 0x2c8   : > { %1197 = vst [vmem:[%s2618_s20 + $0xd0] sm:$0xff] %v1133_v45  ;;  %1198 = vst [vmem:[%s2618_s20 + $0xd8] sm:$0xff] %v1134_v38  ;;  %1682 = vlog2.f32 %v1049_v42  ;;  %v1135_v55 = vsub.f32 %v2470_v49, %v1090_v19  ;;  %v1136_v13 = vsub.f32 %v2473_v20, %v1090_v19  ;;  %v1137_v24 = vsub.f32 %v2476_v47, %v1090_v19  ;;  %v2915_v45 = vld [vmem:[#allocation19_spill] sm:$0xff] }
 0x2c9   : > { %v1138_v14 = vsub.f32 %v2479_v18, %v1090_v19 }
 0x2ca   : > { %v1679_v25 = vpop.eup %1678  ;;  %v1054_v16 = vpop.xlane.xlu1 %1053  ;;  %1199 = vst [vmem:[%s2618_s20 + $0xe0] sm:$0xff] %v1135_v55  ;;  %1200 = vst [vmem:[%s2618_s20 + $0xe8] sm:$0xff] %v1136_v13 }
 0x2cb   : > { %1201 = vst [vmem:[%s2618_s20 + $0xf0] sm:$0xff] %v1137_v24  ;;  %1202 = vst [vmem:[%s2618_s20 + $0xf8] sm:$0xff] %v1138_v14  ;;  %v1092_v6 = vmul.f32 0.6931472, %v1679_v25  ;;  %1684 = vlog2.f32 %v1054_v16 }
 0x2cd   : > { %v1681_v23 = vpop.eup %1680  ;;  %v1139_v49 = vsub.f32 %v2486_v10, %v1092_v6  ;;  %v1140_v20 = vsub.f32 %v2489_v36, %v1092_v6  ;;  %v1141_v47 = vsub.f32 %v2492_v12, %v1092_v6  ;;  %v1142_v18 = vsub.f32 %v2495_v9, %v1092_v6  ;;  %v1059_v34 = vpop.xlane.xlu0 %1058  ;;  %v2904_v36 = vld [vmem:[#allocation34_spill] sm:$0xff] }
 0x2ce   : > { %v1094_v1 = vmul.f32 0.6931472, %v1681_v23  ;;  %1686 = vlog2.f32 %v1059_v34 }
 0x2cf   : > { %1203 = vst [vmem:[%s2618_s20 + $0x100] sm:$0xff] %v1139_v49  ;;  %1204 = vst [vmem:[%s2618_s20 + $0x108] sm:$0xff] %v1140_v20 }
 0x2d0   : > { %1205 = vst [vmem:[%s2618_s20 + $0x110] sm:$0xff] %v1141_v47  ;;  %1206 = vst [vmem:[%s2618_s20 + $0x118] sm:$0xff] %v1142_v18  ;;  %v1143_v43 = vsub.f32 %v2502_v11, %v1094_v1  ;;  %v1144_v10 = vsub.f32 %v2505_v62, %v1094_v1  ;;  %v1145_v0 = vsub.f32 %v2904_v36, %v1094_v1  ;;  %v2906_v11 = vld [vmem:[#allocation36_spill] sm:$0xff]  ;;  %v2907_v62 = vld [vmem:[#allocation37_spill] sm:$0xff] }
 0x2d1   : > { %v1146_v12 = vsub.f32 %v2905_v3, %v1094_v1  ;;  %v1064_v59 = vpop.xlane.xlu1 %1063 }
 0x2d2   : > { %v1683_v9 = vpop.eup %1682  ;;  %1207 = vst [vmem:[%s2618_s20 + $0x120] sm:$0xff] %v1143_v43  ;;  %1208 = vst [vmem:[%s2618_s20 + $0x128] sm:$0xff] %v1144_v10  ;;  %1688 = vlog2.f32 %v1064_v59 }
 0x2d3   : > { %1209 = vst [vmem:[%s2618_s20 + $0x130] sm:$0xff] %v1145_v0  ;;  %1210 = vst [vmem:[%s2618_s20 + $0x138] sm:$0xff] %v1146_v12  ;;  %v1096_v39 = vmul.f32 0.6931472, %v1683_v9 }
 0x2d5   : > { %v1685_v29 = vpop.eup %1684  ;;  %v1147_v8 = vsub.f32 %v2906_v11, %v1096_v39  ;;  %v1148_v33 = vsub.f32 %v2907_v62, %v1096_v39  ;;  %v1149_v31 = vsub.f32 %v2908_v32, %v1096_v39  ;;  %v1150_v48 = vsub.f32 %v2909_v22, %v1096_v39  ;;  %v1069_v4 = vpop.xlane.xlu0 %1068 }
 0x2d6   : > { %v1098_v26 = vmul.f32 0.6931472, %v1685_v29  ;;  %1690 = vlog2.f32 %v1069_v4 }
 0x2d7   : > { %1211 = vst [vmem:[%s2618_s20 + $0x140] sm:$0xff] %v1147_v8  ;;  %1212 = vst [vmem:[%s2618_s20 + $0x148] sm:$0xff] %v1148_v33 }
 0x2d8   : > { %1213 = vst [vmem:[%s2618_s20 + $0x150] sm:$0xff] %v1149_v31  ;;  %1214 = vst [vmem:[%s2618_s20 + $0x158] sm:$0xff] %v1150_v48  ;;  %v1687_v58 = vpop.eup %1686  ;;  %v1151_v50 = vsub.f32 %v2534_v54, %v1098_v26  ;;  %v1152_v52 = vsub.f32 %v2910_v17, %v1098_v26  ;;  %v1153_v63 = vsub.f32 %v2540_v7, %v1098_v26 }
 0x2d9   : > { %v1154_v57 = vsub.f32 %v2911_v53, %v1098_v26  ;;  %v1100_v56 = vmul.f32 0.6931472, %v1687_v58  ;;  %v1074_v2 = vpop.xlane.xlu1 %1073 }
 0x2da   : > { %1215 = vst [vmem:[%s2618_s20 + $0x160] sm:$0xff] %v1151_v50  ;;  %1216 = vst [vmem:[%s2618_s20 + $0x168] sm:$0xff] %v1152_v52  ;;  %1692 = vlog2.f32 %v1074_v2 }
 0x2db   : > { %1217 = vst [vmem:[%s2618_s20 + $0x170] sm:$0xff] %v1153_v63  ;;  %1218 = vst [vmem:[%s2618_s20 + $0x178] sm:$0xff] %v1154_v57  ;;  %v1155_v54 = vsub.f32 %v2912_v28, %v1100_v56  ;;  %v1156_v15 = vsub.f32 %v2913_v21, %v1100_v56  ;;  %v1157_v7 = vsub.f32 %v2914_v46, %v1100_v56 }
 0x2dc   : > { %v1158_v38 = vsub.f32 %v2915_v45, %v1100_v56  ;;  %v1689_v19 = vpop.eup %1688 }
 0x2dd   : > { %1219 = vst [vmem:[%s2618_s20 + $0x180] sm:$0xff] %v1155_v54  ;;  %1220 = vst [vmem:[%s2618_s20 + $0x188] sm:$0xff] %v1156_v15  ;;  %v1102_v42 = vmul.f32 0.6931472, %v1689_v19 }
 0x2de   : > { %1221 = vst [vmem:[%s2618_s20 + $0x190] sm:$0xff] %v1157_v7  ;;  %1222 = vst [vmem:[%s2618_s20 + $0x198] sm:$0xff] %v1158_v38 }
 0x2df   : > { %v1159_v55 = vsub.f32 %v2566_v61, %v1102_v42  ;;  %v1160_v13 = vsub.f32 %v2569_v40, %v1102_v42  ;;  %v1161_v24 = vsub.f32 %v2572_v37, %v1102_v42  ;;  %v1162_v14 = vsub.f32 %v2575_v41, %v1102_v42 }
 0x2e0   : > { %v1691_v25 = vpop.eup %1690 }
 0x2e1   : > { %1223 = vst [vmem:[%s2618_s20 + $0x1a0] sm:$0xff] %v1159_v55  ;;  %1224 = vst [vmem:[%s2618_s20 + $0x1a8] sm:$0xff] %v1160_v13  ;;  %v1104_v16 = vmul.f32 0.6931472, %v1691_v25 }
 0x2e2   : > { %1225 = vst [vmem:[%s2618_s20 + $0x1b0] sm:$0xff] %v1161_v24  ;;  %1226 = vst [vmem:[%s2618_s20 + $0x1b8] sm:$0xff] %v1162_v14 }
 0x2e3   : > { %v1163_v6 = vsub.f32 %v2582_v44, %v1104_v16  ;;  %v1164_v61 = vsub.f32 %v2585_v35, %v1104_v16  ;;  %v1165_v40 = vsub.f32 %v2588_v51, %v1104_v16  ;;  %v1166_v37 = vsub.f32 %v2591_v30, %v1104_v16  ;;  %v2916_v51 = vld [vmem:[#allocation22_spill] sm:$0xff] }
 0x2e4   : > { %v1693_v41 = vpop.eup %1692 }
 0x2e5   : > { %1227 = vst [vmem:[%s2618_s20 + $0x1c0] sm:$0xff] %v1163_v6  ;;  %1228 = vst [vmem:[%s2618_s20 + $0x1c8] sm:$0xff] %v1164_v61  ;;  %v1106_v44 = vmul.f32 0.6931472, %v1693_v41 }
 0x2e6   : > { %1229 = vst [vmem:[%s2618_s20 + $0x1d0] sm:$0xff] %v1165_v40  ;;  %1230 = vst [vmem:[%s2618_s20 + $0x1d8] sm:$0xff] %v1166_v37 }
 0x2e7   : > { %v1167_v35 = vsub.f32 %v2598_v5, %v1106_v44  ;;  %v1168_v30 = vsub.f32 %v2916_v51, %v1106_v44  ;;  %v1169_v23 = vsub.f32 %v2604_v27, %v1106_v44  ;;  %v1170_v49 = vsub.f32 %v2607_v60, %v1106_v44 }
 0x2e9   : > { %1231 = vst [vmem:[%s2618_s20 + $0x1e0] sm:$0xff] %v1167_v35  ;;  %1232 = vst [vmem:[%s2618_s20 + $0x1e8] sm:$0xff] %v1168_v30 }
 0x2ea   : > { %1233 = vst [vmem:[%s2618_s20 + $0x1f0] sm:$0xff] %v1169_v23  ;;  %1234 = vst [vmem:[%s2618_s20 + $0x1f8] sm:$0xff] %v1170_v49 }
 0x2eb   : > { %1793 = shalt.err (!%p1790_p2)
}
 0x2ec   : > { %s1794_s10 = scalar_lea.hbm %s2741_s23, 8192  ;;  %s1798_s22 = scalar_lea.hbm %s2798_s3, 16384 }
 0x2ed   : > { %p1795_p13 = scmp.ne.s32.totalorder %s2741_s23, %s1794_s10  ;;  %p1799_p4 = scmp.lt.u32.totalorder %s2741_s23, %s2798_s3 }
 0x2ee   : > { %p1800_p5 = scmp.lt.u32.totalorder %s1798_s22, %s1794_s10  ;;  %p1802_p11 = scmp.lt.u32.totalorder %s1794_s10, %s2741_s23 }
 0x2ef   : > { %p1796_p6 = pnand %p1795_p13, %p2917_p0 }
 0x2f0   : > { %p1801_p8 = por %p1800_p5, %p1799_p4 }
 0x2f1   : > { %p1797_p10 = pneg %p1796_p6 }
 0x2f2   : > { %p1803_p1 = por %p1802_p11, %p1801_p8 }
 0x2f4   : > { %p1804_p3 = pnand %p1803_p1, %p1797_p10 }
 0x2f6   : > { %1807 = shalt.err (!%p1804_p3)
}
 0x2f7   : > { %s1861_s18 = smov 512   ;;  %s1862_s20 = smov 32  }
 0x2f8   : > { %1414 = dma.vmem_to_hbm [thread:$0]  (%p2917_p0), %s2743_s24, 8192, %s2741_s23, %s1236_s16, %s1861_s18, %s1861_s18, %s1862_s20  }
 0x2f9 PF: > { %s1265_s17 = sand.u32 1, %s1838_s12   ;;  %p2918_p7 = scmp.ne.s32.totalorder %s2838_s19, 0 }
 0x2fa   : > { %p2919_p9 = scmp.ge.s32.totalorder %s1850_s15, 2  ;;  %s1266_s26 = scalar_lea.sflag [#allocation4], %s1265_s17 }
 0x2fc   : > { %p1428_p12 = pnand %p2919_p9, %p2918_p7 }
 0x2fe   : > { %1833 = dma.done.wait (!%p1428_p12), %s1266_s26, 8192  }
 0x2ff   : > { %1835 = vsyncadd (!%p1428_p12), %s1266_s26, 4294959104  ;;  %p17_p2 = scmp.ge.s32.totalorder %s1993_s4, 4   ;;  %s2920_s12 = smov %s1842_s13 }
 0x300   : > { %s2921_s13 = smov %s1846_s14  ;;  %s2922_s14 = smov %s2009_s7 }
 0x301   : > { %s2923_s15 = smov %s1993_s4  ;;  %19 = sbr.rel (!%p17_p2) target bundleno = 6 (0x6), region = 85 }
 0x308   :  { %1271 = vsyncpa [#allocation3], 1 }
 0x309   :  { %1273 = vsyncpa [#allocation3 + $0x1], 1 }
 0x30a   :  { %1274 = vsyncpa [#allocation6], 1 }
 0x30b   :  { %1275 = vsyncpa [#allocation4], 1 }
 0x30c   :  { %1277 = vsyncpa [#allocation4 + $0x1], 1 }

// kernel: lm_forward.4
= control target key start
LH: loop header
LB: loop body
LE: loop exit
PB: predicated region body
PF: predicated region fallthrough
CT: control target
= control target key end

     0   :  { %7 = vsyncpa [#allocation5], 0  ;;  %s7141_s0 = inlined_call_operand.hbm [shape: f32[32,8,512], index: 0, kind: input, shape index: {}]   ;;  %s7142_s1 = inlined_call_operand.hbm [shape: bf16[128,512], index: 1, kind: input, shape index: {}]   ;;  %s7143_s2 = inlined_call_operand.hbm [shape: bf16[8,32,128], index: 2, kind: output, shape index: {}]  }
   0x1   :  { %9 = vsyncpa [#allocation5 + $0x1], 0 }
   0x2   :  { %10 = vsyncpa [#allocation8], 0 }
   0x3   :  { %11 = vsyncpa [#allocation6], 0 }
   0x4   :  { %13 = vsyncpa [#allocation6 + $0x1], 0  ;;  %s5286_s9 = smov 0   ;;  %s5288_s10 = smov 0  }
   0x5   :  { %s5290_s11 = smov 0   ;;  %s5292_s12 = smov 0  }
   0x6 LB: > { %s5307_s13 = sadd.s32 4294967295, %s5252_s12   ;;  %s4449_s14 = sadd.s32 4294967294, %s5252_s12   ;;  %s5252_s12 = sphi %s5292_s12, %s7187_s12   ;;  %s5248_s11 = sphi %s5290_s11, %s7186_s11   ;;  %s5244_s10 = sphi %s5288_s10, %s7185_s10   ;;  %s5240_s9 = sphi %s5286_s9, %s7184_s9  }
   0x7   : > { %p39_p0 = scmp.ne.s32.totalorder %s5244_s10, %s5240_s9  ;;  %p7144_p1 = scmp.eq.s32.totalorder %s5307_s13, 0 }
   0x8   : > { %p90_p3 = scmp.eq.s32.totalorder %s4449_s14, 1  ;;  %p4450_p5 = scmp.ge.s32.totalorder %s5252_s12, 1 }
   0x9   : > { %p5316_p4 = por %p7144_p1, %p39_p0  ;;  %p97_p7 = scmp.lt.s32.totalorder %s5252_s12, 3 }
   0xa   : > { %p5321_p6 = por %p90_p3, %p39_p0  ;;  %s5254_s18 = smov [#allocation7]  }
   0xb   : > { %s7151_s15 = scalar_select %p5316_p4, 1, 0 }
   0xc   : > { %s7152_s16 = scalar_select %p5321_p6, 1, 0 }
   0xd   : > { %p5327_p9 = pnand %p4450_p5, %p97_p7  ;;  %s109_s19 = sshll.u32 %s5254_s18, 4  ;;  %s5331_s19 = int_to_ptr.vmem [resolvable:$true] %s109_s19 }
   0xe   : > { %s5343_s21 = sadd.s32 1, %s5252_s12   ;;  %s26_s22 = sadd.s32 1, %s5248_s11 }
   0xf   : > { %s7153_s17 = scalar_select %p5327_p9, 1, 0 }
  0x10   : > { %p4688_p10 = pneg %p5327_p9  ;;  %s23_s23 = ssub.s32 %s5252_s12, %s5343_s21 }
  0x11   : > { %s5152_s26 = scalar_lea.hbm %s7142_s1, 4096 }
  0x12   : > { %p5338_p12 = pnand %p4688_p10, %p7144_p1  ;;  %p5153_p13 = scmp.ne.s32.totalorder %s7142_s1, %s5152_s26 }
  0x13   : > { %p5159_p7 = scmp.lt.u32.totalorder %s5152_s26, %s7142_s1 }
  0x14   : > { %p5154_p0 = pneg %p5338_p12 }
  0x16   : > { %p5155_p3 = pnand %p5154_p0, %p5153_p13 }
  0x18   : > { %p5156_p5 = pneg %p5155_p3 }
  0x1a   : > { %p5161_p10 = pnand %p5159_p7, %p5156_p5 }
  0x1c   : > { %5164 = shalt.err (!%p5161_p10)
}
  0x1d   : > { %s5165_s3 = scalar_lea.vmem %s5331_s19, 4096  ;;  %p5173_p2 = scmp.lt.s32.totalorder %s5331_s19, %s5331_s19 }
  0x1e   : > { %p5166_p11 = scmp.ne.s32.totalorder %s5331_s19, %s5165_s3  ;;  %p5174_p6 = scmp.lt.s32.totalorder %s5165_s3, %s5165_s3 }
  0x20   : > { %p5168_p8 = pnand %p5166_p11, %p5154_p0  ;;  %p5175_p4 = por %p5174_p6, %p5173_p2 }
  0x22   : > { %p5169_p1 = pneg %p5168_p8 }
  0x24   : > { %p5176_p9 = pnand %p5175_p4, %p5169_p1 }
  0x26   : > { %5179 = shalt.err (!%p5176_p9)
}
  0x27   : > { %s5255_s4 = smov 256   ;;  %s5256_s5 = smov 16  }
  0x28   : > { %4691 = dma.hbm_to_vmem [thread:$0]  (!%p5338_p12), %s7142_s1, 4096, %s5331_s19, [#allocation8], %s5255_s4, %s5255_s4, %s5256_s5  }
  0x29   : > { %p24_p2 = scmp.eq.s32.totalorder %s23_s23, 0  ;;  %p33_p1 = scmp.ne.s32.totalorder %s5248_s11, %s5244_s10 }
  0x2a   : > { %p34_p4 = scmp.eq.s32.totalorder %s5252_s12, 0  ;;  %p4701_p6 = scmp.lt.s32.totalorder %s5252_s12, 2 }
  0x2b   : > { %s5374_s8 = scalar_select %p24_p2, %s5248_s11, %s26_s22  }
  0x2c   : > { %p35_p8 = por %p34_p4, %p33_p1  ;;  %p7155_p9 = scmp.eq.s32.totalorder %s5307_s13, 1 }
  0x2d   : > { %s123_s18 = sand.u32 1, %s5248_s11   ;;  %s4672_s24 = sshll.u32 %s5252_s12, 13 }
  0x2e   : > { %p5378_p11 = por %p7155_p9, %p33_p1  ;;  %s4453_s25 = sshll.u32 %s123_s18, 9 }
  0x2f   : > { %s5387_s27 = scalar_lea.hbm %s7141_s0, %s4672_s24  ;;  %s127_s19 = scalar_lea.vmem [#allocation4], %s4453_s25 }
  0x30   : > { %s135_s22 = sshll.u32 %s127_s19, 4  ;;  %p5389_p12 = pnand %p4701_p6, %p35_p8  ;;  %s5393_s22 = int_to_ptr.vmem [resolvable:$true] %s135_s22 }
  0x31   : > { %s5395_s28 = scalar_lea.sflag [#allocation5], %s123_s18  ;;  %s5180_s29 = scalar_lea.hbm %s5387_s27, 8192 }
  0x32   : > { %p5181_p13 = scmp.ne.s32.totalorder %s5387_s27, %s5180_s29  ;;  %p5182_p0 = pneg %p5389_p12 }
  0x33   : > { %s5185_s4 = scalar_lea.hbm %s7141_s0, 16384  ;;  %p5186_p7 = scmp.lt.u32.totalorder %s5387_s27, %s7141_s0 }
  0x34   : > { %p5183_p3 = pnand %p5182_p0, %p5181_p13  ;;  %p5187_p10 = scmp.lt.u32.totalorder %s5185_s4, %s5180_s29 }
  0x35   : > { %p5189_p1 = scmp.lt.u32.totalorder %s5180_s29, %s5387_s27 }
  0x36   : > { %p5184_p5 = pneg %p5183_p3  ;;  %p5188_p2 = por %p5187_p10, %p5186_p7 }
  0x38   : > { %p5190_p4 = por %p5189_p1, %p5188_p2 }
  0x3a   : > { %p5191_p6 = pnand %p5190_p4, %p5184_p5 }
  0x3c   : > { %5194 = shalt.err (!%p5191_p6)
}
  0x3d   : > { %s5195_s7 = scalar_lea.vmem %s5393_s22, 8192  ;;  %s5257_s18 = smov [#allocation4]  }
  0x3e   : > { %p5196_p8 = scmp.ne.s32.totalorder %s5393_s22, %s5195_s7  ;;  %s5200_s24 = sshll.u32 %s5257_s18, 4  ;;  %s5201_s24 = int_to_ptr.vmem [resolvable:$false] %s5200_s24 }
  0x3f   : > { %s5202_s25 = scalar_lea.vmem %s5201_s24, 16384  ;;  %p5203_p3 = scmp.lt.s32.totalorder %s5393_s22, %s5201_s24 }
  0x40   : > { %p5198_p9 = pnand %p5196_p8, %p5182_p0  ;;  %p5204_p7 = scmp.lt.s32.totalorder %s5202_s25, %s5195_s7 }
  0x42   : > { %p5199_p13 = pneg %p5198_p9  ;;  %p5205_p10 = por %p5204_p7, %p5203_p3 }
  0x44   : > { %p5206_p2 = pnand %p5205_p10, %p5199_p13 }
  0x46   : > { %5209 = shalt.err (!%p5206_p2)
}
  0x47   : > { %s5258_s20 = smov 512   ;;  %s5259_s26 = smov 32  }
  0x48   : > { %4695 = dma.hbm_to_vmem [thread:$0]  (!%p5389_p12), %s5387_s27, 8192, %s5393_s22, %s5395_s28, %s5258_s20, %s5258_s20, %s5259_s26  }
  0x49   : > { %p7158_p0 = scmp.ne.s32.totalorder %s7153_s17, 0 }
  0x4b   : > { %147 = sbr.rel (%p7158_p0) target bundleno = 4317 (0x10dd), region = 28 }
  0x52   : > { %s5426_s19 = sand.u32 1, %s5244_s10   ;;  %p7159_p5 = scmp.ne.s32.totalorder %s7151_s15, 0 }
  0x53   : > { %s4458_s29 = sshll.u32 %s5426_s19, 9  ;;  %s150_s30 = scalar_lea.sflag [#allocation5], %s5426_s19 }
  0x54   : > { %s5430_s3 = scalar_lea.vmem [#allocation4], %s4458_s29 }
  0x55   : > { %5227 = dma.done.wait (%p7159_p5), %s150_s30, 8192  }
  0x56   : > { %5229 = vsyncadd (%p7159_p5), %s150_s30, 4294959104  ;;  %p7160_p12 = scmp.eq.s32.totalorder %s5307_s13, 0 }
  0x58   : > { %5231 = dma.done.wait (%p7160_p12), [#allocation8], 4096   ;;  %p7161_p1 = pmov %p7160_p12 }
  0x59   : > { %s4460_s17 = sshll.u32 %s5426_s19, 6  ;;  %p7162_p4 = scmp.ne.s32.totalorder %s5307_s13, 0 }
  0x5a   : > { %5233 = vsyncadd (%p7161_p1), [#allocation8], 4294963200  ;;  %s5441_s27 = scalar_lea.vmem [#allocation9], %s4460_s17  ;;  %v5260_v0 = vmov (!%p7162_p4), 0.0  }
  0x5b   : > { %184 = sbr.rel (%p7162_p4) target bundleno = 98 (0x62), region = 40  ;;  %185 = vst [vmem:[#allocation2] sm:$0xff] (!%p7162_p4), %v5260_v0  ;;  %186 = vst [vmem:[#allocation3] sm:$0xff] (!%p7162_p4), %v5260_v0 }
  0x62 PF: > { %v5445_v1 = vld [vmem:[#allocation7 + $0x4] ss:$16 sps:$4 sm:$0xff]   ;;  %v5447_v2 = vld [vmem:[#allocation7] ss:$16 sps:$4 sm:$0xff]   ;;  %v7147_v3 = vmov 0   ;;  %v222_v37 = vld [vmem:[%s5430_s3 + $0x8] sm:$0xff] }
  0x63   : > { %418 = vmatprep.mubr.bf16.mxu0 %v7147_v3  ;;  %459 = vmatprep.mubr.bf16.mxu1 %v7147_v3  ;;  %v5452_v4 = vld [vmem:[#allocation7 + $0x24] ss:$16 sps:$4 sm:$0xff]   ;;  %v5455_v5 = vld [vmem:[#allocation7 + $0x20] ss:$16 sps:$4 sm:$0xff]   ;;  %v5460_v7 = vld [vmem:[#allocation7 + $0xc] ss:$16 sps:$4 sm:$0xff]  }
  0x64   : > { %386 = vmatprep.subr.bf16.mxu0 %v5445_v1  ;;  %v5458_v6 = vld [vmem:[#allocation7 + $0x44] ss:$16 sps:$4 sm:$0xff]   ;;  %v5462_v8 = vld [vmem:[#allocation7 + $0x8] ss:$16 sps:$4 sm:$0xff]   ;;  %v5465_v9 = vld [vmem:[#allocation7 + $0x40] ss:$16 sps:$4 sm:$0xff]   ;;  %427 = vmatprep.subr.bf16.mxu1 %v5460_v7 }
  0x65   : > { %387 = vmatpush1.bf16.msra.mxu0 %v5447_v2  ;;  %v5469_v10 = vld [vmem:[#allocation7 + $0x64] ss:$16 sps:$4 sm:$0xff]   ;;  %428 = vmatpush1.bf16.msra.mxu1 %v5462_v8  ;;  %v5472_v11 = vld [vmem:[#allocation7 + $0x2c] ss:$16 sps:$4 sm:$0xff]   ;;  %v5474_v12 = vld [vmem:[#allocation7 + $0x28] ss:$16 sps:$4 sm:$0xff]  }
  0x66   : > { %388 = vmatprep.subr.bf16.mxu0 %v5452_v4  ;;  %429 = vmatprep.subr.bf16.mxu1 %v5472_v11  ;;  %v5478_v13 = vld [vmem:[#allocation7 + $0x60] ss:$16 sps:$4 sm:$0xff]   ;;  %v5480_v14 = vld [vmem:[#allocation7 + $0x84] ss:$16 sps:$4 sm:$0xff]   ;;  %v5482_v15 = vld [vmem:[#allocation7 + $0x4c] ss:$16 sps:$4 sm:$0xff]  }
  0x67   : > { %v5486_v16 = vld [vmem:[#allocation7 + $0x48] ss:$16 sps:$4 sm:$0xff]   ;;  %v5489_v17 = vld [vmem:[#allocation7 + $0x6c] ss:$16 sps:$4 sm:$0xff]   ;;  %v5492_v18 = vld [vmem:[#allocation7 + $0x80] ss:$16 sps:$4 sm:$0xff]  }
  0x68   : > { %v5495_v19 = vld [vmem:[#allocation7 + $0xa4] ss:$16 sps:$4 sm:$0xff]   ;;  %v5498_v20 = vld [vmem:[#allocation7 + $0x68] ss:$16 sps:$4 sm:$0xff]   ;;  %v5501_v21 = vld [vmem:[#allocation7 + $0x8c] ss:$16 sps:$4 sm:$0xff]  }
  0x69   : > { %389 = vmatpush1.bf16.msra.mxu0 %v5455_v5  ;;  %430 = vmatpush1.bf16.msra.mxu1 %v5474_v12  ;;  %v5503_v22 = vld [vmem:[#allocation7 + $0xa0] ss:$16 sps:$4 sm:$0xff]   ;;  %v5506_v23 = vld [vmem:[#allocation7 + $0xc4] ss:$16 sps:$4 sm:$0xff]   ;;  %v5510_v24 = vld [vmem:[#allocation7 + $0x88] ss:$16 sps:$4 sm:$0xff]  }
  0x6a   : > { %390 = vmatprep.subr.bf16.mxu0 %v5458_v6  ;;  %431 = vmatprep.subr.bf16.mxu1 %v5482_v15  ;;  %v5513_v25 = vld [vmem:[#allocation7 + $0xac] ss:$16 sps:$4 sm:$0xff]   ;;  %v5516_v26 = vld [vmem:[#allocation7 + $0xc0] ss:$16 sps:$4 sm:$0xff]   ;;  %v5519_v27 = vld [vmem:[#allocation7 + $0xe4] ss:$16 sps:$4 sm:$0xff]  }
  0x6b   : > { %v5522_v28 = vld [vmem:[#allocation7 + $0xa8] ss:$16 sps:$4 sm:$0xff]   ;;  %v5525_v29 = vld [vmem:[#allocation7 + $0xcc] ss:$16 sps:$4 sm:$0xff]   ;;  %v5528_v30 = vld [vmem:[#allocation7 + $0xe0] ss:$16 sps:$4 sm:$0xff]  }
  0x6c   : > { %v187_v31 = vld [vmem:[#allocation2] sm:$0xff]  ;;  %v5532_v32 = vld [vmem:[#allocation7 + $0xc8] ss:$16 sps:$4 sm:$0xff]   ;;  %v5535_v33 = vld [vmem:[#allocation7 + $0xec] ss:$16 sps:$4 sm:$0xff]   ;;  %vm602_vm0 = vcmask 1040384  }
  0x6d   : > { %391 = vmatpush1.bf16.msra.mxu0 %v5465_v9  ;;  %432 = vmatpush1.bf16.msra.mxu1 %v5486_v16  ;;  %v225_v34 = vpack.c.bf16 %v187_v31, %v187_v31  ;;  %v5539_v35 = vld [vmem:[#allocation7 + $0xe8] ss:$16 sps:$4 sm:$0xff]   ;;  %v221_v36 = vld [vmem:[%s5430_s3] sm:$0xff]  ;;  %v223_v52 = vld [vmem:[%s5430_s3 + $0x10] sm:$0xff]  ;;  %vm603_vm1 = vsmask.f32 256 }
  0x6e   : > { %392 = vmatprep.subr.bf16.mxu0 %v5469_v10  ;;  %433 = vmatprep.subr.bf16.mxu1 %v5489_v17  ;;  %v224_v46 = vld [vmem:[%s5430_s3 + $0x18] sm:$0xff]  ;;  %vm5602_vm2 = vmand %vm602_vm0, %vm603_vm1  ;;  %vm850_vm3 = vsmask.f32 7938  ;;  %vm1097_vm5 = vcmask 1041409   ;;  %vm1098_vm6 = vsmask.f32 1280 }
  0x6f   : > { %v188_v61 = vld [vmem:[#allocation3] sm:$0xff]  ;;  %vm5692_vm4 = vmand %vm602_vm0, %vm850_vm3  ;;  %vm1345_vm8 = vsmask.f32 7942  ;;  %vm1592_vm10 = vcmask 1042434   ;;  %vm1593_vm11 = vsmask.f32 2304 }
  0x70   : > { %vm5782_vm7 = vmand %vm1097_vm5, %vm1098_vm6  ;;  %vm1840_vm13 = vsmask.f32 7946  ;;  %vm2087_vm15 = vcmask 1043459   ;;  %vm2088_vm0 = vsmask.f32 3328  ;;  %s4324_s15 = scalar_lea.sflag [#allocation6], %s5426_s19 }
  0x71   : > { %393 = vmatpush1.bf16.msra.mxu0 %v5478_v13  ;;  %434 = vmatpush1.bf16.msra.mxu1 %v5498_v20  ;;  %vm5889_vm9 = vmand %vm1097_vm5, %vm1345_vm8  ;;  %vm2335_vm3 = vsmask.f32 7950 }
  0x72   : > { %394 = vmatprep.subr.bf16.mxu0 %v5480_v14  ;;  %435 = vmatprep.subr.bf16.mxu1 %v5501_v21  ;;  %vm6027_vm12 = vmand %vm1592_vm10, %vm1593_vm11 }
  0x73   : > { %vm6117_vm14 = vmand %vm1592_vm10, %vm1840_vm13 }
  0x74   : > { %vm6207_vm1 = vmand %vm2087_vm15, %vm2088_vm0 }
  0x75   : > { %395 = vmatpush1.bf16.msra.mxu0 %v5492_v18  ;;  %436 = vmatpush1.bf16.msra.mxu1 %v5510_v24  ;;  %vm6314_vm5 = vmand %vm2087_vm15, %vm2335_vm3 }
  0x76   : > { %396 = vmatprep.subr.bf16.mxu0 %v5495_v19  ;;  %437 = vmatprep.subr.bf16.mxu1 %v5513_v25 }
  0x79   : > { %397 = vmatpush1.bf16.msra.mxu0 %v5503_v22  ;;  %438 = vmatpush1.bf16.msra.mxu1 %v5522_v28 }
  0x7a   : > { %398 = vmatprep.subr.bf16.mxu0 %v5506_v23  ;;  %439 = vmatprep.subr.bf16.mxu1 %v5525_v29 }
  0x7d   : > { %399 = vmatpush1.bf16.msra.mxu0 %v5516_v26  ;;  %440 = vmatpush1.bf16.msra.mxu1 %v5532_v32 }
  0x7e   : > { %400 = vmatprep.subr.bf16.mxu0 %v5519_v27  ;;  %441 = vmatprep.subr.bf16.mxu1 %v5535_v33 }
  0x81   : > { %401 = vmatpush1.bf16.msra.mxu0 %v5528_v30  ;;  %442 = vmatpush1.bf16.msra.mxu1 %v5539_v35 }
  0x82   : > { %634 = vmatprep.subr.bf16.mxu0 %v5445_v1  ;;  %675 = vmatprep.subr.bf16.mxu1 %v5460_v7 }
  0x84   : > { %419 = vmatmul.mubr.bf16.vlgmr.msra.gmra.mrb[0].mxu0 %v225_v34  ;;  %460 = vmatmul.mubr.bf16.vlgmr.msra.gmra.mrb[0].mxu1 %v225_v34 }
  0x85   : > { %635 = vmatpush1.bf16.msra.mxu0 %v5447_v2  ;;  %666 = vmatprep.mubr.bf16.mxu0 %v7147_v3 }
  0x86   : > { %636 = vmatprep.subr.bf16.mxu0 %v5452_v4  ;;  %676 = vmatpush1.bf16.msra.mxu1 %v5462_v8 }
  0x87   : > { %677 = vmatprep.subr.bf16.mxu1 %v5472_v11  ;;  %707 = vmatprep.mubr.bf16.mxu1 %v7147_v3 }
  0x89   : > { %637 = vmatpush1.bf16.msra.mxu0 %v5455_v5 }
  0x8a   : > { %638 = vmatprep.subr.bf16.mxu0 %v5458_v6  ;;  %678 = vmatpush1.bf16.msra.mxu1 %v5474_v12 }
  0x8b   : > { %679 = vmatprep.subr.bf16.mxu1 %v5482_v15 }
  0x8d   : > { %639 = vmatpush1.bf16.msra.mxu0 %v5465_v9 }
  0x8e   : > { %640 = vmatprep.subr.bf16.mxu0 %v5469_v10  ;;  %680 = vmatpush1.bf16.msra.mxu1 %v5486_v16 }
  0x8f   : > { %681 = vmatprep.subr.bf16.mxu1 %v5489_v17 }
  0x91   : > { %641 = vmatpush1.bf16.msra.mxu0 %v5478_v13 }
  0x92   : > { %642 = vmatprep.subr.bf16.mxu0 %v5480_v14  ;;  %682 = vmatpush1.bf16.msra.mxu1 %v5498_v20 }
  0x93   : > { %683 = vmatprep.subr.bf16.mxu1 %v5501_v21 }
  0x95   : > { %643 = vmatpush1.bf16.msra.mxu0 %v5492_v18 }
  0x96   : > { %644 = vmatprep.subr.bf16.mxu0 %v5495_v19  ;;  %684 = vmatpush1.bf16.msra.mxu1 %v5510_v24 }
  0x97   : > { %685 = vmatprep.subr.bf16.mxu1 %v5513_v25 }
  0x99   : > { %645 = vmatpush1.bf16.msra.mxu0 %v5503_v22 }
  0x9a   : > { %646 = vmatprep.subr.bf16.mxu0 %v5506_v23  ;;  %686 = vmatpush1.bf16.msra.mxu1 %v5522_v28 }
  0x9b   : > { %687 = vmatprep.subr.bf16.mxu1 %v5525_v29 }
  0x9d   : > { %647 = vmatpush1.bf16.msra.mxu0 %v5516_v26 }
  0x9e   : > { %648 = vmatprep.subr.bf16.mxu0 %v5519_v27  ;;  %688 = vmatpush1.bf16.msra.mxu1 %v5532_v32 }
  0x9f   : > { %689 = vmatprep.subr.bf16.mxu1 %v5535_v33 }
  0xa1   : > { %649 = vmatpush1.bf16.msra.mxu0 %v5528_v30 }
  0xa2   : > { %881 = vmatprep.subr.bf16.mxu0 %v5445_v1  ;;  %690 = vmatpush1.bf16.msra.mxu1 %v5539_v35 }
  0xa3   : > { %922 = vmatprep.subr.bf16.mxu1 %v5460_v7 }
 0x157   : > { %v420_v38 = vpop.f32.mrb[0].mxu0  ;;  %v461_v47 = vpop.f32.mrb[0].mxu1 }
 0x158   : > { %v468_v39 = vadd.f32 %v420_v38, %v221_v36  ;;  %v422_v40 = vpop.f32.mrb[1].mxu0  ;;  %v463_v48 = vpop.f32.mrb[1].mxu1  ;;  %v470_v54 = vadd.f32 %v461_v47, %v223_v52 }
 0x159   : > { %v469_v41 = vadd.f32 %v422_v40, %v222_v37  ;;  %v424_v42 = vpop.f32.mrb[2].mxu0  ;;  %v471_v49 = vadd.f32 %v463_v48, %v224_v46  ;;  %v465_v50 = vpop.f32.mrb[2].mxu1  ;;  %v5262_v37 = vmov 1966171168  }
 0x15a   : > { %v4494_v43 = vmul.f32 -1.442695, %v468_v39  ;;  %v425_v44 = vpop.f32.mrb[3].mxu0  ;;  %v466_v51 = vpop.f32.mrb[3].mxu1  ;;  %v499_v38 = vunpack.c.l.s4 %v5262_v37  ;;  %v501_v39 = vlaneseq }
 0x15b   : > { %v4495_v45 = vmul.f32 -1.442695, %v469_v41  ;;  %v4496_v53 = vmul.f32 -1.442695, %v471_v49  ;;  %v5263_v44 = vmov 286326784  }
 0x15c   : > { %4800 = vpow2.f32 %v4494_v43  ;;  %v500_v40 = vunpack.c.0.s8 %v499_v38  ;;  %v502_v41 = vshrl.u32 %v501_v39, 7 }
 0x15d   : > { %4802 = vpow2.f32 %v4495_v45  ;;  %v539_v45 = vunpack.c.l.s4 %v5263_v44 }
 0x15e   : > { %4804 = vpow2.f32 %v4496_v53  ;;  %v5586_v47 = vsub.s32 %v500_v40, %v502_v41 }
 0x15f   : > { %4806 = vtanh.f32 %v470_v54  ;;  %v540_v49 = vunpack.c.0.s8 %v539_v45 }
 0x161   : > { %v5594_v53 = vsub.s32 %v540_v49, %v502_v41  ;;  %v608_v41 = vld [vmem:[%s5441_s27 + $0x8] sm:$0x1]  ;;  %v614_v49 = vld [vmem:[%s5441_s27 + $0x18] sm:$0x1] }
 0x166   : > { %v4801_v55 = vpop.eup %4800 }
 0x167   : > { %v4803_v56 = vpop.eup %4802  ;;  %v475_v57 = vadd.f32 1.0, %v4801_v55 }
 0x168   : > { %v481_v58 = vadd.f32 1.0, %v4803_v56  ;;  %v4805_v59 = vpop.eup %4804 }
 0x169   : > { %4808 = vrcp.f32 %v475_v57  ;;  %v4807_v60 = vpop.eup %4806  ;;  %v488_v63 = vadd.f32 1.0, %v4805_v59 }
 0x16a   : > { %4810 = vrcp.f32 %v481_v58 }
 0x16b   : > { %4812 = vrcp.f32 %v488_v63  ;;  %v605_v63 = vld [vmem:[%s5441_s27] sm:$0x1] }
 0x173   : > { %v4809_v62 = vpop.eup %4808 }
 0x174   : > { %v4811_v0 = vpop.eup %4810  ;;  %v492_v31 = vmul.f32 %v4809_v62, %v4807_v60  ;;  %v4589_v62 = vld [vmem:[%s5430_s3 + $0x120] sm:$0xff] }
 0x175   : > { %v491_v34 = vmul.f32 %v4811_v0, %v188_v61  ;;  %v4813_v42 = vpop.eup %4812 }
 0x177   : > { %v5583_v36 = vadd.f32 %v492_v31, %v491_v34 }
 0x179   : > { %4814 = vtanh.f32 %v5583_v36 }
 0x183   : > { %v4815_v43 = vpop.eup %4814 }
 0x184   : > { %v495_v46 = vmul.f32 %v4815_v43, %v4813_v42  ;;  %v611_v42 = vld [vmem:[%s5441_s27 + $0x10] sm:$0x1]  ;;  %v617_v43 = vld [vmem:[%s5441_s27 + $0x20] sm:$0x1] }
 0x186   : > { %v496_v48 = vpack.c.bf16 %v495_v46, %v495_v46 }
 0x188   : > { %v504_v50 = vrot.slane %v496_v48, %v5586_v47  ;;  %667 = vmatmul.mubr.bf16.vlgmr.msra.gmra.mrb[4].mxu0 %v496_v48  ;;  %708 = vmatmul.mubr.bf16.vlgmr.msra.gmra.mrb[4].mxu1 %v496_v48 }
 0x189   : > { %882 = vmatpush1.bf16.msra.mxu0 %v5447_v2  ;;  %923 = vmatpush1.bf16.msra.mxu1 %v5462_v8 }
 0x18a   : > { %v505_v51 = vcombine.high %v504_v50, %v504_v50  ;;  %v512_v52 = vrot.slane %v504_v50, %v5586_v47  ;;  %883 = vmatprep.subr.bf16.mxu0 %v5452_v4  ;;  %924 = vmatprep.subr.bf16.mxu1 %v5472_v11  ;;  %v620_v50 = vld [vmem:[%s5441_s27 + $0x28] sm:$0x1] }
 0x18b   : > { %913 = vmatprep.mubr.bf16.mxu0 %v7147_v3  ;;  %954 = vmatprep.mubr.bf16.mxu1 %v7147_v3 }
 0x18c   : > { %v519_v54 = vrot.slane %v505_v51, %v5586_v47  ;;  %v520_v55 = vcombine.high %v512_v52, %v512_v52  ;;  %v523_v56 = vunpack.i.h.s16 %v512_v52  ;;  %v4497_v57 = vpack.i.b16 %v512_v52, %v512_v52  ;;  %v623_v51 = vld [vmem:[%s5441_s27 + $0x30] sm:$0x1] }
 0x18d   : > { %884 = vmatpush1.bf16.msra.mxu0 %v5455_v5  ;;  %925 = vmatpush1.bf16.msra.mxu1 %v5474_v12 }
 0x18e   : > { %v521_v58 = vcombine.high %v519_v54, %v519_v54  ;;  %v525_v59 = vunpack.i.h.s16 %v519_v54  ;;  %v527_v60 = vunpack.i.h.s16 %v520_v55  ;;  %v531_v61 = vpack.i.b16 %v523_v56, %v523_v56  ;;  %885 = vmatprep.subr.bf16.mxu0 %v5458_v6  ;;  %926 = vmatprep.subr.bf16.mxu1 %v5482_v15 }
 0x18f   : > { %v4498_v0 = vpack.i.b16 %v519_v54, %v519_v54  ;;  %v4499_v31 = vpack.i.b16 %v520_v55, %v520_v55  ;;  %v544_v34 = vrot.slane %v4497_v57, %v5594_v53 }
 0x190   : > { %v529_v37 = vunpack.i.h.s16 %v521_v58  ;;  %v533_v38 = vpack.i.b16 %v525_v59, %v525_v59  ;;  %v535_v39 = vpack.i.b16 %v527_v60, %v527_v60  ;;  %v4500_v40 = vpack.i.b16 %v521_v58, %v521_v58  ;;  %v626_v60 = vld [vmem:[%s5441_s27 + $0x38] sm:$0x1] }
 0x191   : > { %v551_v44 = vrot.slane %v531_v61, %v5594_v53  ;;  %v558_v45 = vrot.slane %v4498_v0, %v5594_v53  ;;  %v572_v46 = vrot.slane %v4499_v31, %v5594_v53  ;;  %v606_v48 = vsel %vm5602_vm2, %v544_v34, %v605_v63  ;;  %886 = vmatpush1.bf16.msra.mxu0 %v5465_v9 }
 0x192   : > { %v537_v52 = vpack.i.b16 %v529_v37, %v529_v37  ;;  %v565_v54 = vrot.slane %v533_v38, %v5594_v53  ;;  %v579_v55 = vrot.slane %v535_v39, %v5594_v53  ;;  %v586_v56 = vrot.slane %v4500_v40, %v5594_v53  ;;  %607 = vst [vmem:[%s5441_s27] sm:$0x1] %v606_v48  ;;  %v4501_v37 = vld [vmem:[%s5430_s3 + $0x20] sm:$0xff]  ;;  %v4502_v38 = vld [vmem:[%s5430_s3 + $0x28] sm:$0xff] }
 0x193   : > { %927 = vmatpush1.bf16.msra.mxu1 %v5486_v16  ;;  %v609_v57 = vsel %vm5602_vm2, %v551_v44, %v608_v41  ;;  %v612_v58 = vsel %vm5602_vm2, %v558_v45, %v611_v42  ;;  %v618_v59 = vsel %vm5602_vm2, %v572_v46, %v617_v43  ;;  %887 = vmatprep.subr.bf16.mxu0 %v5469_v10 }
 0x194   : > { %928 = vmatprep.subr.bf16.mxu1 %v5489_v17  ;;  %v593_v61 = vrot.slane %v537_v52, %v5594_v53  ;;  %610 = vst [vmem:[%s5441_s27 + $0x8] sm:$0x1] %v609_v57  ;;  %613 = vst [vmem:[%s5441_s27 + $0x10] sm:$0x1] %v612_v58  ;;  %v615_v63 = vsel %vm5602_vm2, %v565_v54, %v614_v49  ;;  %v621_v0 = vsel %vm5602_vm2, %v579_v55, %v620_v50  ;;  %v4504_v52 = vld [vmem:[%s5430_s3 + $0x38] sm:$0xff]  ;;  %v4503_v55 = vld [vmem:[%s5430_s3 + $0x30] sm:$0xff] }
 0x195   : > { %619 = vst [vmem:[%s5441_s27 + $0x20] sm:$0x1] %v618_v59  ;;  %v624_v31 = vsel %vm5602_vm2, %v586_v56, %v623_v51  ;;  %616 = vst [vmem:[%s5441_s27 + $0x18] sm:$0x1] %v615_v63  ;;  %888 = vmatpush1.bf16.msra.mxu0 %v5478_v13 }
 0x196   : > { %622 = vst [vmem:[%s5441_s27 + $0x28] sm:$0x1] %v621_v0  ;;  %625 = vst [vmem:[%s5441_s27 + $0x30] sm:$0x1] %v624_v31  ;;  %v627_v34 = vsel %vm5602_vm2, %v593_v61, %v626_v60  ;;  %889 = vmatprep.subr.bf16.mxu0 %v5480_v14 }
 0x197   : > { %929 = vmatpush1.bf16.msra.mxu1 %v5498_v20  ;;  %628 = vst [vmem:[%s5441_s27 + $0x38] sm:$0x1] %v627_v34 }
 0x198   : > { %930 = vmatprep.subr.bf16.mxu1 %v5501_v21 }
 0x199   : > { %890 = vmatpush1.bf16.msra.mxu0 %v5492_v18 }
 0x19a   : > { %891 = vmatprep.subr.bf16.mxu0 %v5495_v19 }
 0x19b   : > { %931 = vmatpush1.bf16.msra.mxu1 %v5510_v24 }
 0x19c   : > { %932 = vmatprep.subr.bf16.mxu1 %v5513_v25 }
 0x19d   : > { %892 = vmatpush1.bf16.msra.mxu0 %v5503_v22 }
 0x19e   : > { %893 = vmatprep.subr.bf16.mxu0 %v5506_v23 }
 0x19f   : > { %933 = vmatpush1.bf16.msra.mxu1 %v5522_v28 }
 0x1a0   : > { %934 = vmatprep.subr.bf16.mxu1 %v5525_v29 }
 0x1a1   : > { %894 = vmatpush1.bf16.msra.mxu0 %v5516_v26 }
 0x1a2   : > { %895 = vmatprep.subr.bf16.mxu0 %v5519_v27 }
 0x1a3   : > { %935 = vmatpush1.bf16.msra.mxu1 %v5532_v32 }
 0x1a4   : > { %936 = vmatprep.subr.bf16.mxu1 %v5535_v33 }
 0x1a5   : > { %896 = vmatpush1.bf16.msra.mxu0 %v5528_v30 }
 0x1a6   : > { %1129 = vmatprep.subr.bf16.mxu0 %v5445_v1 }
 0x1a7   : > { %937 = vmatpush1.bf16.msra.mxu1 %v5539_v35 }
 0x1a8   : > { %1170 = vmatprep.subr.bf16.mxu1 %v5460_v7 }
 0x25b   : > { %v668_v39 = vpop.f32.mrb[4].mxu0  ;;  %v709_v40 = vpop.f32.mrb[4].mxu1 }
 0x25c   : > { %v716_v41 = vadd.f32 %v4501_v37, %v668_v39  ;;  %v670_v42 = vpop.f32.mrb[5].mxu0  ;;  %v711_v43 = vpop.f32.mrb[5].mxu1  ;;  %v718_v57 = vadd.f32 %v4503_v55, %v709_v40 }
 0x25d   : > { %v717_v44 = vadd.f32 %v4502_v38, %v670_v42  ;;  %v672_v45 = vpop.f32.mrb[6].mxu0  ;;  %v713_v46 = vpop.f32.mrb[6].mxu1  ;;  %v719_v54 = vadd.f32 %v4504_v52, %v711_v43 }
 0x25e   : > { %v4505_v48 = vmul.f32 -1.442695, %v716_v41  ;;  %v673_v49 = vpop.f32.mrb[7].mxu0  ;;  %v714_v50 = vpop.f32.mrb[7].mxu1 }
 0x25f   : > { %v4506_v51 = vmul.f32 -1.442695, %v717_v44  ;;  %v4507_v56 = vmul.f32 -1.442695, %v719_v54 }
 0x260   : > { %4816 = vpow2.f32 %v4505_v48 }
 0x261   : > { %4818 = vpow2.f32 %v4506_v51 }
 0x262   : > { %4820 = vpow2.f32 %v4507_v56 }
 0x263   : > { %4822 = vtanh.f32 %v718_v57  ;;  %v4600_v57 = vld [vmem:[%s5430_s3 + $0x140] sm:$0xff] }
 0x26a   : > { %v4817_v58 = vpop.eup %4816 }
 0x26b   : > { %v4819_v59 = vpop.eup %4818  ;;  %v723_v60 = vadd.f32 1.0, %v4817_v58 }
 0x26c   : > { %v729_v61 = vadd.f32 1.0, %v4819_v59  ;;  %v4821_v63 = vpop.eup %4820 }
 0x26d   : > { %4824 = vrcp.f32 %v723_v60  ;;  %v4823_v0 = vpop.eup %4822  ;;  %v736_v38 = vadd.f32 1.0, %v4821_v63 }
 0x26e   : > { %4826 = vrcp.f32 %v729_v61 }
 0x26f   : > { %4828 = vrcp.f32 %v736_v38 }
 0x277   : > { %v4825_v31 = vpop.eup %4824 }
 0x278   : > { %v4827_v34 = vpop.eup %4826  ;;  %v740_v37 = vmul.f32 %v4825_v31, %v4823_v0 }
 0x279   : > { %v739_v39 = vmul.f32 %v4827_v34, %v5583_v36  ;;  %v4829_v40 = vpop.eup %4828  ;;  %v852_v34 = vld [vmem:[%s5441_s27] sm:$0x1] }
 0x27b   : > { %v5677_v41 = vadd.f32 %v740_v37, %v739_v39 }
 0x27d   : > { %4830 = vtanh.f32 %v5677_v41 }
 0x287   : > { %v4831_v42 = vpop.eup %4830 }
 0x288   : > { %v743_v43 = vmul.f32 %v4831_v42, %v4829_v40 }
 0x28a   : > { %v744_v44 = vpack.c.bf16 %v743_v43, %v743_v43 }
 0x28c   : > { %v752_v45 = vrot.slane %v744_v44, %v5586_v47  ;;  %914 = vmatmul.mubr.bf16.vlgmr.msra.gmra.mrb[8].mxu0 %v744_v44  ;;  %955 = vmatmul.mubr.bf16.vlgmr.msra.gmra.mrb[8].mxu1 %v744_v44 }
 0x28d   : > { %1130 = vmatpush1.bf16.msra.mxu0 %v5447_v2  ;;  %1171 = vmatpush1.bf16.msra.mxu1 %v5462_v8 }
 0x28e   : > { %v753_v46 = vcombine.high %v752_v45, %v752_v45  ;;  %v760_v36 = vrot.slane %v752_v45, %v5586_v47  ;;  %1131 = vmatprep.subr.bf16.mxu0 %v5452_v4  ;;  %1172 = vmatprep.subr.bf16.mxu1 %v5472_v11 }
 0x28f   : > { %1161 = vmatprep.mubr.bf16.mxu0 %v7147_v3  ;;  %1202 = vmatprep.mubr.bf16.mxu1 %v7147_v3 }
 0x290   : > { %v767_v48 = vrot.slane %v753_v46, %v5586_v47  ;;  %v768_v49 = vcombine.high %v760_v36, %v760_v36  ;;  %v771_v50 = vunpack.i.h.s16 %v760_v36  ;;  %v4508_v51 = vpack.i.b16 %v760_v36, %v760_v36  ;;  %v855_v46 = vld [vmem:[%s5441_s27 + $0x8] sm:$0x1]  ;;  %v858_v36 = vld [vmem:[%s5441_s27 + $0x10] sm:$0x1] }
 0x291   : > { %1132 = vmatpush1.bf16.msra.mxu0 %v5455_v5  ;;  %1173 = vmatpush1.bf16.msra.mxu1 %v5474_v12 }
 0x292   : > { %v769_v52 = vcombine.high %v767_v48, %v767_v48  ;;  %v773_v54 = vunpack.i.h.s16 %v767_v48  ;;  %v775_v55 = vunpack.i.h.s16 %v768_v49  ;;  %v779_v56 = vpack.i.b16 %v771_v50, %v771_v50  ;;  %1133 = vmatprep.subr.bf16.mxu0 %v5458_v6  ;;  %1174 = vmatprep.subr.bf16.mxu1 %v5482_v15 }
 0x293   : > { %v4509_v58 = vpack.i.b16 %v767_v48, %v767_v48  ;;  %v4510_v59 = vpack.i.b16 %v768_v49, %v768_v49  ;;  %v792_v60 = vrot.slane %v4508_v51, %v5594_v53  ;;  %v864_v48 = vld [vmem:[%s5441_s27 + $0x20] sm:$0x1]  ;;  %v861_v51 = vld [vmem:[%s5441_s27 + $0x18] sm:$0x1] }
 0x294   : > { %v777_v61 = vunpack.i.h.s16 %v769_v52  ;;  %v781_v63 = vpack.i.b16 %v773_v54, %v773_v54  ;;  %v783_v0 = vpack.i.b16 %v775_v55, %v775_v55  ;;  %v4511_v31 = vpack.i.b16 %v769_v52, %v769_v52  ;;  %v867_v54 = vld [vmem:[%s5441_s27 + $0x28] sm:$0x1]  ;;  %v870_v55 = vld [vmem:[%s5441_s27 + $0x30] sm:$0x1] }
 0x295   : > { %v799_v37 = vrot.slane %v779_v56, %v5594_v53  ;;  %v806_v38 = vrot.slane %v4509_v58, %v5594_v53  ;;  %v820_v39 = vrot.slane %v4510_v59, %v5594_v53  ;;  %v853_v40 = vsel %vm5692_vm4, %v792_v60, %v852_v34  ;;  %1134 = vmatpush1.bf16.msra.mxu0 %v5465_v9 }
 0x296   : > { %v785_v42 = vpack.i.b16 %v777_v61, %v777_v61  ;;  %v813_v43 = vrot.slane %v781_v63, %v5594_v53  ;;  %v827_v44 = vrot.slane %v783_v0, %v5594_v53  ;;  %v834_v45 = vrot.slane %v4511_v31, %v5594_v53  ;;  %854 = vst [vmem:[%s5441_s27] sm:$0x1] %v853_v40  ;;  %v873_v61 = vld [vmem:[%s5441_s27 + $0x38] sm:$0x1]  ;;  %v4512_v0 = vld [vmem:[%s5430_s3 + $0x40] sm:$0xff]  ;;  %v4513_v31 = vld [vmem:[%s5430_s3 + $0x48] sm:$0xff] }
 0x297   : > { %1175 = vmatpush1.bf16.msra.mxu1 %v5486_v16  ;;  %v856_v49 = vsel %vm5692_vm4, %v799_v37, %v855_v46  ;;  %v859_v50 = vsel %vm5692_vm4, %v806_v38, %v858_v36  ;;  %v865_v52 = vsel %vm5692_vm4, %v820_v39, %v864_v48  ;;  %1135 = vmatprep.subr.bf16.mxu0 %v5469_v10 }
 0x298   : > { %1176 = vmatprep.subr.bf16.mxu1 %v5489_v17  ;;  %v841_v56 = vrot.slane %v785_v42, %v5594_v53  ;;  %857 = vst [vmem:[%s5441_s27 + $0x8] sm:$0x1] %v856_v49  ;;  %860 = vst [vmem:[%s5441_s27 + $0x10] sm:$0x1] %v859_v50  ;;  %v862_v58 = vsel %vm5692_vm4, %v813_v43, %v861_v51  ;;  %v868_v59 = vsel %vm5692_vm4, %v827_v44, %v867_v54  ;;  %v4514_v49 = vld [vmem:[%s5430_s3 + $0x50] sm:$0xff] }
 0x299   : > { %866 = vst [vmem:[%s5441_s27 + $0x20] sm:$0x1] %v865_v52  ;;  %v871_v60 = vsel %vm5692_vm4, %v834_v45, %v870_v55  ;;  %863 = vst [vmem:[%s5441_s27 + $0x18] sm:$0x1] %v862_v58  ;;  %1136 = vmatpush1.bf16.msra.mxu0 %v5478_v13 }
 0x29a   : > { %869 = vst [vmem:[%s5441_s27 + $0x28] sm:$0x1] %v868_v59  ;;  %872 = vst [vmem:[%s5441_s27 + $0x30] sm:$0x1] %v871_v60  ;;  %v874_v63 = vsel %vm5692_vm4, %v841_v56, %v873_v61  ;;  %1137 = vmatprep.subr.bf16.mxu0 %v5480_v14 }
 0x29b   : > { %1177 = vmatpush1.bf16.msra.mxu1 %v5498_v20  ;;  %875 = vst [vmem:[%s5441_s27 + $0x38] sm:$0x1] %v874_v63 }
 0x29c   : > { %1178 = vmatprep.subr.bf16.mxu1 %v5501_v21 }
 0x29d   : > { %1138 = vmatpush1.bf16.msra.mxu0 %v5492_v18 }
 0x29e   : > { %1139 = vmatprep.subr.bf16.mxu0 %v5495_v19 }
 0x29f   : > { %1179 = vmatpush1.bf16.msra.mxu1 %v5510_v24 }
 0x2a0   : > { %1180 = vmatprep.subr.bf16.mxu1 %v5513_v25 }
 0x2a1   : > { %1140 = vmatpush1.bf16.msra.mxu0 %v5503_v22 }
 0x2a2   : > { %1141 = vmatprep.subr.bf16.mxu0 %v5506_v23 }
 0x2a3   : > { %1181 = vmatpush1.bf16.msra.mxu1 %v5522_v28 }
 0x2a4   : > { %1182 = vmatprep.subr.bf16.mxu1 %v5525_v29 }
 0x2a5   : > { %1142 = vmatpush1.bf16.msra.mxu0 %v5516_v26 }
 0x2a6   : > { %1143 = vmatprep.subr.bf16.mxu0 %v5519_v27 }
 0x2a7   : > { %1183 = vmatpush1.bf16.msra.mxu1 %v5532_v32 }
 0x2a8   : > { %1184 = vmatprep.subr.bf16.mxu1 %v5535_v33 }
 0x2a9   : > { %1144 = vmatpush1.bf16.msra.mxu0 %v5528_v30 }
 0x2aa   : > { %1376 = vmatprep.subr.bf16.mxu0 %v5445_v1  ;;  %v4515_v1 = vld [vmem:[%s5430_s3 + $0x58] sm:$0xff] }
 0x2ab   : > { %1185 = vmatpush1.bf16.msra.mxu1 %v5539_v35 }
 0x2ac   : > { %1417 = vmatprep.subr.bf16.mxu1 %v5460_v7 }
 0x35f   : > { %v915_v34 = vpop.f32.mrb[8].mxu0  ;;  %v956_v37 = vpop.f32.mrb[8].mxu1 }
 0x360   : > { %v963_v38 = vadd.f32 %v4512_v0, %v915_v34  ;;  %v917_v39 = vpop.f32.mrb[9].mxu0  ;;  %v958_v40 = vpop.f32.mrb[9].mxu1  ;;  %v965_v51 = vadd.f32 %v4514_v49, %v956_v37 }
 0x361   : > { %v964_v42 = vadd.f32 %v4513_v31, %v917_v39  ;;  %v919_v43 = vpop.f32.mrb[10].mxu0  ;;  %v960_v44 = vpop.f32.mrb[10].mxu1  ;;  %v966_v7 = vadd.f32 %v4515_v1, %v958_v40  ;;  %v1100_v1 = vld [vmem:[%s5441_s27] sm:$0x2] }
 0x362   : > { %v4516_v45 = vmul.f32 -1.442695, %v963_v38  ;;  %v920_v46 = vpop.f32.mrb[11].mxu0  ;;  %v961_v36 = vpop.f32.mrb[11].mxu1 }
 0x363   : > { %v4517_v48 = vmul.f32 -1.442695, %v964_v42  ;;  %v4518_v50 = vmul.f32 -1.442695, %v966_v7 }
 0x364   : > { %4832 = vpow2.f32 %v4516_v45 }
 0x365   : > { %4834 = vpow2.f32 %v4517_v48  ;;  %v6685_v48 = vld [vmem:[#allocation7 + $0x4] ss:$16 sps:$4 sm:$0xff]  }
 0x366   : > { %4836 = vpow2.f32 %v4518_v50 }
 0x367   : > { %4838 = vtanh.f32 %v965_v51 }
 0x36e   : > { %v4833_v52 = vpop.eup %4832 }
 0x36f   : > { %v4835_v54 = vpop.eup %4834  ;;  %v970_v55 = vadd.f32 1.0, %v4833_v52 }
 0x370   : > { %v976_v56 = vadd.f32 1.0, %v4835_v54  ;;  %v4837_v58 = vpop.eup %4836  ;;  %v1103_v54 = vld [vmem:[%s5441_s27 + $0x8] sm:$0x2] }
 0x371   : > { %4840 = vrcp.f32 %v970_v55  ;;  %v4839_v59 = vpop.eup %4838  ;;  %v983_v0 = vadd.f32 1.0, %v4837_v58  ;;  %v1106_v55 = vld [vmem:[%s5441_s27 + $0x10] sm:$0x2] }
 0x372   : > { %4842 = vrcp.f32 %v976_v56  ;;  %v1112_v56 = vld [vmem:[%s5441_s27 + $0x20] sm:$0x2] }
 0x373   : > { %4844 = vrcp.f32 %v983_v0 }
 0x37b   : > { %v4841_v60 = vpop.eup %4840 }
 0x37c   : > { %v4843_v61 = vpop.eup %4842  ;;  %v987_v63 = vmul.f32 %v4841_v60, %v4839_v59  ;;  %v1109_v60 = vld [vmem:[%s5441_s27 + $0x18] sm:$0x2] }
 0x37d   : > { %v986_v31 = vmul.f32 %v4843_v61, %v5677_v41  ;;  %v4845_v37 = vpop.eup %4844  ;;  %v1115_v61 = vld [vmem:[%s5441_s27 + $0x28] sm:$0x2] }
 0x37f   : > { %v5767_v34 = vadd.f32 %v987_v63, %v986_v31  ;;  %v1118_v63 = vld [vmem:[%s5441_s27 + $0x30] sm:$0x2] }
 0x381   : > { %4846 = vtanh.f32 %v5767_v34 }
 0x38b   : > { %v4847_v38 = vpop.eup %4846 }
 0x38c   : > { %v990_v39 = vmul.f32 %v4847_v38, %v4845_v37 }
 0x38e   : > { %v991_v40 = vpack.c.bf16 %v990_v39, %v990_v39 }
 0x390   : > { %v999_v42 = vrot.slane %v991_v40, %v5586_v47  ;;  %1162 = vmatmul.mubr.bf16.vlgmr.msra.gmra.mrb[12].mxu0 %v991_v40  ;;  %1203 = vmatmul.mubr.bf16.vlgmr.msra.gmra.mrb[12].mxu1 %v991_v40 }
 0x391   : > { %1377 = vmatpush1.bf16.msra.mxu0 %v5447_v2  ;;  %1418 = vmatpush1.bf16.msra.mxu1 %v5462_v8 }
 0x392   : > { %v1000_v43 = vcombine.high %v999_v42, %v999_v42  ;;  %v1007_v41 = vrot.slane %v999_v42, %v5586_v47  ;;  %1378 = vmatprep.subr.bf16.mxu0 %v5452_v4  ;;  %1419 = vmatprep.subr.bf16.mxu1 %v5472_v11  ;;  %v1121_v42 = vld [vmem:[%s5441_s27 + $0x38] sm:$0x2] }
 0x393   : > { %1408 = vmatprep.mubr.bf16.mxu0 %v7147_v3  ;;  %1449 = vmatprep.mubr.bf16.mxu1 %v7147_v3 }
 0x394   : > { %v1014_v44 = vrot.slane %v1000_v43, %v5586_v47  ;;  %v1015_v45 = vcombine.high %v1007_v41, %v1007_v41  ;;  %v1018_v2 = vunpack.i.h.s16 %v1007_v41  ;;  %v4519_v46 = vpack.i.b16 %v1007_v41, %v1007_v41 }
 0x395   : > { %1379 = vmatpush1.bf16.msra.mxu0 %v5455_v5  ;;  %1420 = vmatpush1.bf16.msra.mxu1 %v5474_v12 }
 0x396   : > { %v1016_v4 = vcombine.high %v1014_v44, %v1014_v44  ;;  %v1020_v8 = vunpack.i.h.s16 %v1014_v44  ;;  %v1022_v11 = vunpack.i.h.s16 %v1015_v45  ;;  %v1026_v36 = vpack.i.b16 %v1018_v2, %v1018_v2  ;;  %1380 = vmatprep.subr.bf16.mxu0 %v5458_v6  ;;  %1421 = vmatprep.subr.bf16.mxu1 %v5482_v15 }
 0x397   : > { %v4520_v5 = vpack.i.b16 %v1014_v44, %v1014_v44  ;;  %v4521_v12 = vpack.i.b16 %v1015_v45, %v1015_v45  ;;  %v1039_v7 = vrot.slane %v4519_v46, %v5594_v53 }
 0x398   : > { %v1024_v49 = vunpack.i.h.s16 %v1016_v4  ;;  %v1028_v50 = vpack.i.b16 %v1020_v8, %v1020_v8  ;;  %v1030_v51 = vpack.i.b16 %v1022_v11, %v1022_v11  ;;  %v4522_v52 = vpack.i.b16 %v1016_v4, %v1016_v4 }
 0x399   : > { %v1046_v58 = vrot.slane %v1026_v36, %v5594_v53  ;;  %v1053_v6 = vrot.slane %v4520_v5, %v5594_v53  ;;  %v1067_v15 = vrot.slane %v4521_v12, %v5594_v53  ;;  %v1101_v59 = vsel %vm5782_vm7, %v1039_v7, %v1100_v1  ;;  %1381 = vmatpush1.bf16.msra.mxu0 %v5465_v9 }
 0x39a   : > { %v1032_v0 = vpack.i.b16 %v1024_v49, %v1024_v49  ;;  %v1060_v31 = vrot.slane %v1028_v50, %v5594_v53  ;;  %v1074_v37 = vrot.slane %v1030_v51, %v5594_v53  ;;  %v1081_v38 = vrot.slane %v4522_v52, %v5594_v53  ;;  %1102 = vst [vmem:[%s5441_s27] sm:$0x2] %v1101_v59 }
 0x39b   : > { %1422 = vmatpush1.bf16.msra.mxu1 %v5486_v16  ;;  %v1104_v39 = vsel %vm5782_vm7, %v1046_v58, %v1103_v54  ;;  %v1107_v9 = vsel %vm5782_vm7, %v1053_v6, %v1106_v55  ;;  %v1113_v40 = vsel %vm5782_vm7, %v1067_v15, %v1112_v56  ;;  %1382 = vmatprep.subr.bf16.mxu0 %v5469_v10  ;;  %v5865_v6 = vld [vmem:[#allocation7] ss:$16 sps:$4 sm:$0xff]   ;;  %v5868_v15 = vld [vmem:[#allocation7 + $0x8] ss:$16 sps:$4 sm:$0xff]  }
 0x39c   : > { %1423 = vmatprep.subr.bf16.mxu1 %v5489_v17  ;;  %v1088_v43 = vrot.slane %v1032_v0, %v5594_v53  ;;  %1105 = vst [vmem:[%s5441_s27 + $0x8] sm:$0x2] %v1104_v39  ;;  %1108 = vst [vmem:[%s5441_s27 + $0x10] sm:$0x2] %v1107_v9  ;;  %v1110_v16 = vsel %vm5782_vm7, %v1060_v31, %v1109_v60  ;;  %v1116_v41 = vsel %vm5782_vm7, %v1074_v37, %v1115_v61  ;;  %v4523_v17 = vld [vmem:[%s5430_s3 + $0x60] sm:$0xff] }
 0x39d   : > { %1114 = vst [vmem:[%s5441_s27 + $0x20] sm:$0x2] %v1113_v40  ;;  %v1119_v44 = vsel %vm5782_vm7, %v1081_v38, %v1118_v63  ;;  %1111 = vst [vmem:[%s5441_s27 + $0x18] sm:$0x2] %v1110_v16  ;;  %1383 = vmatpush1.bf16.msra.mxu0 %v5478_v13  ;;  %v5850_v13 = vld [vmem:[#allocation7 + $0x4] ss:$16 sps:$4 sm:$0xff]  }
 0x39e   : > { %1117 = vst [vmem:[%s5441_s27 + $0x28] sm:$0x2] %v1116_v41  ;;  %1120 = vst [vmem:[%s5441_s27 + $0x30] sm:$0x2] %v1119_v44  ;;  %v1122_v10 = vsel %vm5782_vm7, %v1088_v43, %v1121_v42  ;;  %1384 = vmatprep.subr.bf16.mxu0 %v5480_v14  ;;  %v5853_v14 = vld [vmem:[#allocation7 + $0xc] ss:$16 sps:$4 sm:$0xff]  }
 0x39f   : > { %1424 = vmatpush1.bf16.msra.mxu1 %v5498_v20  ;;  %1123 = vst [vmem:[%s5441_s27 + $0x38] sm:$0x2] %v1122_v10  ;;  %v5872_v60 = vld [vmem:[#allocation7 + $0x24] ss:$16 sps:$4 sm:$0xff]   ;;  %v5875_v61 = vld [vmem:[#allocation7 + $0x2c] ss:$16 sps:$4 sm:$0xff]  }
 0x3a0   : > { %1425 = vmatprep.subr.bf16.mxu1 %v5501_v21  ;;  %v5881_v38 = vld [vmem:[#allocation7 + $0x20] ss:$16 sps:$4 sm:$0xff]   ;;  %v5884_v39 = vld [vmem:[#allocation7 + $0x28] ss:$16 sps:$4 sm:$0xff]   ;;  %v5893_v41 = vld [vmem:[#allocation7 + $0x44] ss:$16 sps:$4 sm:$0xff]  }
 0x3a1   : > { %1385 = vmatpush1.bf16.msra.mxu0 %v5492_v18  ;;  %v4524_v18 = vld [vmem:[%s5430_s3 + $0x68] sm:$0xff]  ;;  %v6798_v16 = vld [vmem:[#allocation7 + $0xa4] ss:$16 sps:$4 sm:$0xff]  }
 0x3a2   : > { %1386 = vmatprep.subr.bf16.mxu0 %v5495_v19  ;;  %v5896_v44 = vld [vmem:[#allocation7 + $0x4c] ss:$16 sps:$4 sm:$0xff]  }
 0x3a3   : > { %1426 = vmatpush1.bf16.msra.mxu1 %v5510_v24 }
 0x3a4   : > { %1427 = vmatprep.subr.bf16.mxu1 %v5513_v25 }
 0x3a5   : > { %1387 = vmatpush1.bf16.msra.mxu0 %v5503_v22 }
 0x3a6   : > { %1388 = vmatprep.subr.bf16.mxu0 %v5506_v23 }
 0x3a7   : > { %1428 = vmatpush1.bf16.msra.mxu1 %v5522_v28 }
 0x3a8   : > { %1429 = vmatprep.subr.bf16.mxu1 %v5525_v29 }
 0x3a9   : > { %1389 = vmatpush1.bf16.msra.mxu0 %v5516_v26 }
 0x3aa   : > { %1390 = vmatprep.subr.bf16.mxu0 %v5519_v27 }
 0x3ab   : > { %1430 = vmatpush1.bf16.msra.mxu1 %v5532_v32  ;;  %v4526_v32 = vld [vmem:[%s5430_s3 + $0x78] sm:$0xff] }
 0x3ac   : > { %1431 = vmatprep.subr.bf16.mxu1 %v5535_v33 }
 0x3ad   : > { %1391 = vmatpush1.bf16.msra.mxu0 %v5528_v30 }
 0x3ae   : > { %1624 = vmatprep.subr.bf16.mxu0 %v5850_v13 }
 0x3af   : > { %1432 = vmatpush1.bf16.msra.mxu1 %v5539_v35  ;;  %v4525_v35 = vld [vmem:[%s5430_s3 + $0x70] sm:$0xff] }
 0x3b0   : > { %1665 = vmatprep.subr.bf16.mxu1 %v5853_v14 }
 0x463   : > { %v1163_v19 = vpop.f32.mrb[12].mxu0  ;;  %v1204_v20 = vpop.f32.mrb[12].mxu1 }
 0x464   : > { %v1211_v21 = vadd.f32 %v4523_v17, %v1163_v19  ;;  %v1165_v22 = vpop.f32.mrb[13].mxu0  ;;  %v1206_v23 = vpop.f32.mrb[13].mxu1  ;;  %v1213_v2 = vadd.f32 %v4525_v35, %v1204_v20  ;;  %v1350_v35 = vld [vmem:[%s5441_s27 + $0x8] sm:$0x2] }
 0x465   : > { %v1212_v24 = vadd.f32 %v4524_v18, %v1165_v22  ;;  %v1167_v25 = vpop.f32.mrb[14].mxu0  ;;  %v1208_v26 = vpop.f32.mrb[14].mxu1  ;;  %v1214_v33 = vadd.f32 %v4526_v32, %v1206_v23  ;;  %v1347_v23 = vld [vmem:[%s5441_s27] sm:$0x2] }
 0x466   : > { %v4527_v27 = vmul.f32 -1.442695, %v1211_v21  ;;  %v1168_v28 = vpop.f32.mrb[15].mxu0  ;;  %v1209_v29 = vpop.f32.mrb[15].mxu1 }
 0x467   : > { %v4528_v30 = vmul.f32 -1.442695, %v1212_v24  ;;  %v4529_v45 = vmul.f32 -1.442695, %v1214_v33  ;;  %v5906_v28 = vld [vmem:[#allocation7 + $0x40] ss:$16 sps:$4 sm:$0xff]  }
 0x468   : > { %4848 = vpow2.f32 %v4527_v27 }
 0x469   : > { %4850 = vpow2.f32 %v4528_v30 }
 0x46a   : > { %4852 = vpow2.f32 %v4529_v45  ;;  %v1353_v45 = vld [vmem:[%s5441_s27 + $0x10] sm:$0x2] }
 0x46b   : > { %4854 = vtanh.f32 %v1213_v2  ;;  %v1359_v2 = vld [vmem:[%s5441_s27 + $0x20] sm:$0x2] }
 0x472   : > { %v4849_v46 = vpop.eup %4848 }
 0x473   : > { %v4851_v4 = vpop.eup %4850  ;;  %v1218_v8 = vadd.f32 1.0, %v4849_v46  ;;  %v5916_v46 = vld [vmem:[#allocation7 + $0x48] ss:$16 sps:$4 sm:$0xff]  }
 0x474   : > { %v1224_v11 = vadd.f32 1.0, %v4851_v4  ;;  %v4853_v36 = vpop.eup %4852 }
 0x475   : > { %4856 = vrcp.f32 %v1218_v8  ;;  %v4855_v1 = vpop.eup %4854  ;;  %v1231_v49 = vadd.f32 1.0, %v4853_v36 }
 0x476   : > { %4858 = vrcp.f32 %v1224_v11  ;;  %v1356_v11 = vld [vmem:[%s5441_s27 + $0x18] sm:$0x2] }
 0x477   : > { %4860 = vrcp.f32 %v1231_v49 }
 0x47f   : > { %v4857_v5 = vpop.eup %4856 }
 0x480   : > { %v4859_v12 = vpop.eup %4858  ;;  %v1235_v7 = vmul.f32 %v4857_v5, %v4855_v1  ;;  %v1362_v1 = vld [vmem:[%s5441_s27 + $0x28] sm:$0x2]  ;;  %v1365_v5 = vld [vmem:[%s5441_s27 + $0x30] sm:$0x2] }
 0x481   : > { %v1234_v50 = vmul.f32 %v4859_v12, %v5767_v34  ;;  %v4861_v52 = vpop.eup %4860  ;;  %v5928_v12 = vld [vmem:[#allocation7 + $0x64] ss:$16 sps:$4 sm:$0xff]  }
 0x483   : > { %v5861_v51 = vadd.f32 %v1235_v7, %v1234_v50  ;;  %v5931_v7 = vld [vmem:[#allocation7 + $0x6c] ss:$16 sps:$4 sm:$0xff]  }
 0x485   : > { %4862 = vtanh.f32 %v5861_v51 }
 0x48f   : > { %v4863_v54 = vpop.eup %4862 }
 0x490   : > { %v1238_v55 = vmul.f32 %v4863_v54, %v4861_v52 }
 0x492   : > { %v1239_v56 = vpack.c.bf16 %v1238_v55, %v1238_v55  ;;  %v1368_v55 = vld [vmem:[%s5441_s27 + $0x38] sm:$0x2] }
 0x494   : > { %v1247_v58 = vrot.slane %v1239_v56, %v5586_v47  ;;  %1409 = vmatmul.mubr.bf16.vlgmr.msra.gmra.mrb[16].mxu0 %v1239_v56  ;;  %1450 = vmatmul.mubr.bf16.vlgmr.msra.gmra.mrb[16].mxu1 %v1239_v56  ;;  %v5948_v56 = vld [vmem:[#allocation7 + $0x60] ss:$16 sps:$4 sm:$0xff]  }
 0x495   : > { %1625 = vmatpush1.bf16.msra.mxu0 %v5865_v6  ;;  %1666 = vmatpush1.bf16.msra.mxu1 %v5868_v15 }
 0x496   : > { %v1248_v34 = vcombine.high %v1247_v58, %v1247_v58  ;;  %v1255_v59 = vrot.slane %v1247_v58, %v5586_v47  ;;  %1626 = vmatprep.subr.bf16.mxu0 %v5872_v60  ;;  %1667 = vmatprep.subr.bf16.mxu1 %v5875_v61 }
 0x497   : > { %1656 = vmatprep.mubr.bf16.mxu0 %v7147_v3  ;;  %1697 = vmatprep.mubr.bf16.mxu1 %v7147_v3 }
 0x498   : > { %v1262_v63 = vrot.slane %v1248_v34, %v5586_v47  ;;  %v1263_v0 = vcombine.high %v1255_v59, %v1255_v59  ;;  %v1266_v31 = vunpack.i.h.s16 %v1255_v59  ;;  %v4530_v37 = vpack.i.b16 %v1255_v59, %v1255_v59  ;;  %v5953_v34 = vld [vmem:[#allocation7 + $0x68] ss:$16 sps:$4 sm:$0xff]   ;;  %v5956_v59 = vld [vmem:[#allocation7 + $0x84] ss:$16 sps:$4 sm:$0xff]  }
 0x499   : > { %1627 = vmatpush1.bf16.msra.mxu0 %v5881_v38  ;;  %1668 = vmatpush1.bf16.msra.mxu1 %v5884_v39 }
 0x49a   : > { %v1264_v9 = vcombine.high %v1262_v63, %v1262_v63  ;;  %v1268_v40 = vunpack.i.h.s16 %v1262_v63  ;;  %v1270_v42 = vunpack.i.h.s16 %v1263_v0  ;;  %v1274_v43 = vpack.i.b16 %v1266_v31, %v1266_v31  ;;  %1628 = vmatprep.subr.bf16.mxu0 %v5893_v41  ;;  %1669 = vmatprep.subr.bf16.mxu1 %v5896_v44  ;;  %v5966_v31 = vld [vmem:[#allocation7 + $0x88] ss:$16 sps:$4 sm:$0xff]  }
 0x49b   : > { %v4531_v10 = vpack.i.b16 %v1262_v63, %v1262_v63  ;;  %v4532_v17 = vpack.i.b16 %v1263_v0, %v1263_v0  ;;  %v1287_v18 = vrot.slane %v4530_v37, %v5594_v53  ;;  %v5960_v63 = vld [vmem:[#allocation7 + $0x8c] ss:$16 sps:$4 sm:$0xff]   ;;  %v5963_v0 = vld [vmem:[#allocation7 + $0x80] ss:$16 sps:$4 sm:$0xff]   ;;  %v5969_v37 = vld [vmem:[#allocation7 + $0xa4] ss:$16 sps:$4 sm:$0xff]  }
 0x49c   : > { %v1272_v19 = vunpack.i.h.s16 %v1264_v9  ;;  %v1276_v20 = vpack.i.b16 %v1268_v40, %v1268_v40  ;;  %v1278_v21 = vpack.i.b16 %v1270_v42, %v1270_v42  ;;  %v4533_v22 = vpack.i.b16 %v1264_v9, %v1264_v9  ;;  %v5972_v9 = vld [vmem:[#allocation7 + $0xac] ss:$16 sps:$4 sm:$0xff]   ;;  %v5975_v40 = vld [vmem:[#allocation7 + $0xa0] ss:$16 sps:$4 sm:$0xff]   ;;  %v5978_v42 = vld [vmem:[#allocation7 + $0xa8] ss:$16 sps:$4 sm:$0xff]  }
 0x49d   : > { %v1294_v24 = vrot.slane %v1274_v43, %v5594_v53  ;;  %v1301_v25 = vrot.slane %v4531_v10, %v5594_v53  ;;  %v1315_v26 = vrot.slane %v4532_v17, %v5594_v53  ;;  %v1348_v27 = vsel %vm5889_vm9, %v1287_v18, %v1347_v23  ;;  %1629 = vmatpush1.bf16.msra.mxu0 %v5906_v28  ;;  %v5981_v43 = vld [vmem:[#allocation7 + $0xc4] ss:$16 sps:$4 sm:$0xff]   ;;  %v5984_v10 = vld [vmem:[#allocation7 + $0xcc] ss:$16 sps:$4 sm:$0xff]   ;;  %v5987_v17 = vld [vmem:[#allocation7 + $0xc0] ss:$16 sps:$4 sm:$0xff]  }
 0x49e   : > { %v1280_v29 = vpack.i.b16 %v1272_v19, %v1272_v19  ;;  %v1308_v30 = vrot.slane %v1276_v20, %v5594_v53  ;;  %v1322_v32 = vrot.slane %v1278_v21, %v5594_v53  ;;  %v1329_v33 = vrot.slane %v4533_v22, %v5594_v53  ;;  %1349 = vst [vmem:[%s5441_s27] sm:$0x2] %v1348_v27  ;;  %v5990_v18 = vld [vmem:[#allocation7 + $0xc8] ss:$16 sps:$4 sm:$0xff]   ;;  %v5993_v19 = vld [vmem:[#allocation7 + $0xe4] ss:$16 sps:$4 sm:$0xff]  }
 0x49f   : > { %1670 = vmatpush1.bf16.msra.mxu1 %v5916_v46  ;;  %v1351_v4 = vsel %vm5889_vm9, %v1294_v24, %v1350_v35  ;;  %v1354_v8 = vsel %vm5889_vm9, %v1301_v25, %v1353_v45  ;;  %v1360_v36 = vsel %vm5889_vm9, %v1315_v26, %v1359_v2  ;;  %1630 = vmatprep.subr.bf16.mxu0 %v5928_v12  ;;  %v5996_v20 = vld [vmem:[#allocation7 + $0xec] ss:$16 sps:$4 sm:$0xff]   ;;  %v5999_v21 = vld [vmem:[#allocation7 + $0xe0] ss:$16 sps:$4 sm:$0xff]   ;;  %v6002_v22 = vld [vmem:[#allocation7 + $0xe8] ss:$16 sps:$4 sm:$0xff]  }
 0x4a0   : > { %1671 = vmatprep.subr.bf16.mxu1 %v5931_v7  ;;  %v1336_v49 = vrot.slane %v1280_v29, %v5594_v53  ;;  %1352 = vst [vmem:[%s5441_s27 + $0x8] sm:$0x2] %v1351_v4  ;;  %1355 = vst [vmem:[%s5441_s27 + $0x10] sm:$0x2] %v1354_v8  ;;  %v1357_v50 = vsel %vm5889_vm9, %v1308_v30, %v1356_v11  ;;  %v1363_v52 = vsel %vm5889_vm9, %v1322_v32, %v1362_v1  ;;  %v4534_v23 = vld [vmem:[%s5430_s3 + $0x80] sm:$0xff]  ;;  %v4535_v24 = vld [vmem:[%s5430_s3 + $0x88] sm:$0xff] }
 0x4a1   : > { %1361 = vst [vmem:[%s5441_s27 + $0x20] sm:$0x2] %v1360_v36  ;;  %v1366_v54 = vsel %vm5889_vm9, %v1329_v33, %v1365_v5  ;;  %1358 = vst [vmem:[%s5441_s27 + $0x18] sm:$0x2] %v1357_v50  ;;  %1631 = vmatpush1.bf16.msra.mxu0 %v5948_v56  ;;  %v4537_v11 = vld [vmem:[%s5430_s3 + $0x98] sm:$0xff]  ;;  %v4536_v1 = vld [vmem:[%s5430_s3 + $0x90] sm:$0xff] }
 0x4a2   : > { %1364 = vst [vmem:[%s5441_s27 + $0x28] sm:$0x2] %v1363_v52  ;;  %1367 = vst [vmem:[%s5441_s27 + $0x30] sm:$0x2] %v1366_v54  ;;  %v1369_v58 = vsel %vm5889_vm9, %v1336_v49, %v1368_v55  ;;  %1632 = vmatprep.subr.bf16.mxu0 %v5956_v59 }
 0x4a3   : > { %1672 = vmatpush1.bf16.msra.mxu1 %v5953_v34  ;;  %1370 = vst [vmem:[%s5441_s27 + $0x38] sm:$0x2] %v1369_v58 }
 0x4a4   : > { %1673 = vmatprep.subr.bf16.mxu1 %v5960_v63 }
 0x4a5   : > { %1633 = vmatpush1.bf16.msra.mxu0 %v5963_v0 }
 0x4a6   : > { %1634 = vmatprep.subr.bf16.mxu0 %v5969_v37 }
 0x4a7   : > { %1674 = vmatpush1.bf16.msra.mxu1 %v5966_v31 }
 0x4a8   : > { %1675 = vmatprep.subr.bf16.mxu1 %v5972_v9 }
 0x4a9   : > { %1635 = vmatpush1.bf16.msra.mxu0 %v5975_v40 }
 0x4aa   : > { %1636 = vmatprep.subr.bf16.mxu0 %v5981_v43 }
 0x4ab   : > { %1676 = vmatpush1.bf16.msra.mxu1 %v5978_v42 }
 0x4ac   : > { %1677 = vmatprep.subr.bf16.mxu1 %v5984_v10 }
 0x4ad   : > { %1637 = vmatpush1.bf16.msra.mxu0 %v5987_v17 }
 0x4ae   : > { %1638 = vmatprep.subr.bf16.mxu0 %v5993_v19 }
 0x4af   : > { %1678 = vmatpush1.bf16.msra.mxu1 %v5990_v18 }
 0x4b0   : > { %1679 = vmatprep.subr.bf16.mxu1 %v5996_v20 }
 0x4b1   : > { %1639 = vmatpush1.bf16.msra.mxu0 %v5999_v21 }
 0x4b2   : > { %1871 = vmatprep.subr.bf16.mxu0 %v5850_v13 }
 0x4b3   : > { %1680 = vmatpush1.bf16.msra.mxu1 %v6002_v22 }
 0x4b4   : > { %1912 = vmatprep.subr.bf16.mxu1 %v5853_v14 }
 0x567   : > { %v1410_v25 = vpop.f32.mrb[16].mxu0  ;;  %v1451_v26 = vpop.f32.mrb[16].mxu1 }
 0x568   : > { %v1458_v27 = vadd.f32 %v4534_v23, %v1410_v25  ;;  %v1412_v29 = vpop.f32.mrb[17].mxu0  ;;  %v1453_v30 = vpop.f32.mrb[17].mxu1  ;;  %v1460_v49 = vadd.f32 %v4536_v1, %v1451_v26 }
 0x569   : > { %v1459_v32 = vadd.f32 %v4535_v24, %v1412_v29  ;;  %v1414_v33 = vpop.f32.mrb[18].mxu0  ;;  %v1455_v35 = vpop.f32.mrb[18].mxu1  ;;  %v1461_v36 = vadd.f32 %v4537_v11, %v1453_v30 }
 0x56a   : > { %v4538_v45 = vmul.f32 -1.442695, %v1458_v27  ;;  %v1415_v2 = vpop.f32.mrb[19].mxu0  ;;  %v1456_v4 = vpop.f32.mrb[19].mxu1 }
 0x56b   : > { %v4539_v8 = vmul.f32 -1.442695, %v1459_v32  ;;  %v4540_v5 = vmul.f32 -1.442695, %v1461_v36 }
 0x56c   : > { %4864 = vpow2.f32 %v4538_v45 }
 0x56d   : > { %4866 = vpow2.f32 %v4539_v8 }
 0x56e   : > { %4868 = vpow2.f32 %v4540_v5 }
 0x56f   : > { %4870 = vtanh.f32 %v1460_v49 }
 0x576   : > { %v4865_v50 = vpop.eup %4864 }
 0x577   : > { %v4867_v52 = vpop.eup %4866  ;;  %v1465_v54 = vadd.f32 1.0, %v4865_v50 }
 0x578   : > { %v1471_v55 = vadd.f32 1.0, %v4867_v52  ;;  %v4869_v58 = vpop.eup %4868 }
 0x579   : > { %4872 = vrcp.f32 %v1465_v54  ;;  %v4871_v23 = vpop.eup %4870  ;;  %v1478_v29 = vadd.f32 1.0, %v4869_v58  ;;  %v4633_v54 = vld [vmem:[%s5430_s3 + $0x1a0] sm:$0xff] }
 0x57a   : > { %4874 = vrcp.f32 %v1471_v55  ;;  %v1595_v55 = vld [vmem:[%s5441_s27] sm:$0x4] }
 0x57b   : > { %4876 = vrcp.f32 %v1478_v29 }
 0x583   : > { %v4873_v24 = vpop.eup %4872 }
 0x584   : > { %v4875_v25 = vpop.eup %4874  ;;  %v1482_v27 = vmul.f32 %v4873_v24, %v4871_v23 }
 0x585   : > { %v1481_v32 = vmul.f32 %v4875_v25, %v5861_v51  ;;  %v4877_v26 = vpop.eup %4876 }
 0x587   : > { %v6012_v30 = vadd.f32 %v1482_v27, %v1481_v32 }
 0x589   : > { %4878 = vtanh.f32 %v6012_v30 }
 0x593   : > { %v4879_v33 = vpop.eup %4878 }
 0x594   : > { %v1485_v35 = vmul.f32 %v4879_v33, %v4877_v26  ;;  %v1598_v26 = vld [vmem:[%s5441_s27 + $0x8] sm:$0x4]  ;;  %v1601_v33 = vld [vmem:[%s5441_s27 + $0x10] sm:$0x4] }
 0x596   : > { %v1486_v45 = vpack.c.bf16 %v1485_v35, %v1485_v35  ;;  %v1607_v35 = vld [vmem:[%s5441_s27 + $0x20] sm:$0x4] }
 0x598   : > { %v1494_v2 = vrot.slane %v1486_v45, %v5586_v47  ;;  %1657 = vmatmul.mubr.bf16.vlgmr.msra.gmra.mrb[20].mxu0 %v1486_v45  ;;  %1698 = vmatmul.mubr.bf16.vlgmr.msra.gmra.mrb[20].mxu1 %v1486_v45 }
 0x599   : > { %1872 = vmatpush1.bf16.msra.mxu0 %v5865_v6  ;;  %1913 = vmatpush1.bf16.msra.mxu1 %v5868_v15 }
 0x59a   : > { %v1495_v4 = vcombine.high %v1494_v2, %v1494_v2  ;;  %v1502_v51 = vrot.slane %v1494_v2, %v5586_v47  ;;  %1873 = vmatprep.subr.bf16.mxu0 %v5872_v60  ;;  %1914 = vmatprep.subr.bf16.mxu1 %v5875_v61 }
 0x59b   : > { %1903 = vmatprep.mubr.bf16.mxu0 %v7147_v3  ;;  %1944 = vmatprep.mubr.bf16.mxu1 %v7147_v3 }
 0x59c   : > { %v1509_v8 = vrot.slane %v1495_v4, %v5586_v47  ;;  %v1510_v11 = vcombine.high %v1502_v51, %v1502_v51  ;;  %v1513_v36 = vunpack.i.h.s16 %v1502_v51  ;;  %v4541_v1 = vpack.i.b16 %v1502_v51, %v1502_v51 }
 0x59d   : > { %1874 = vmatpush1.bf16.msra.mxu0 %v5881_v38  ;;  %1915 = vmatpush1.bf16.msra.mxu1 %v5884_v39 }
 0x59e   : > { %v1511_v5 = vcombine.high %v1509_v8, %v1509_v8  ;;  %v1515_v49 = vunpack.i.h.s16 %v1509_v8  ;;  %v1517_v50 = vunpack.i.h.s16 %v1510_v11  ;;  %v1521_v52 = vpack.i.b16 %v1513_v36, %v1513_v36  ;;  %1875 = vmatprep.subr.bf16.mxu0 %v5893_v41  ;;  %1916 = vmatprep.subr.bf16.mxu1 %v5896_v44  ;;  %v1613_v36 = vld [vmem:[%s5441_s27 + $0x30] sm:$0x4] }
 0x59f   : > { %v4542_v58 = vpack.i.b16 %v1509_v8, %v1509_v8  ;;  %v4543_v23 = vpack.i.b16 %v1510_v11, %v1510_v11  ;;  %v1534_v24 = vrot.slane %v4541_v1, %v5594_v53  ;;  %v1604_v8 = vld [vmem:[%s5441_s27 + $0x18] sm:$0x4]  ;;  %v1610_v11 = vld [vmem:[%s5441_s27 + $0x28] sm:$0x4] }
 0x5a0   : > { %v1519_v25 = vunpack.i.h.s16 %v1511_v5  ;;  %v1523_v27 = vpack.i.b16 %v1515_v49, %v1515_v49  ;;  %v1525_v29 = vpack.i.b16 %v1517_v50, %v1517_v50  ;;  %v4544_v32 = vpack.i.b16 %v1511_v5, %v1511_v5 }
 0x5a1   : > { %v1541_v45 = vrot.slane %v1521_v52, %v5594_v53  ;;  %v1548_v2 = vrot.slane %v4542_v58, %v5594_v53  ;;  %v1562_v4 = vrot.slane %v4543_v23, %v5594_v53  ;;  %v1596_v51 = vsel %vm6027_vm12, %v1534_v24, %v1595_v55  ;;  %1876 = vmatpush1.bf16.msra.mxu0 %v5906_v28  ;;  %v1616_v23 = vld [vmem:[%s5441_s27 + $0x38] sm:$0x4] }
 0x5a2   : > { %v1527_v1 = vpack.i.b16 %v1519_v25, %v1519_v25  ;;  %v1555_v5 = vrot.slane %v1523_v27, %v5594_v53  ;;  %v1569_v49 = vrot.slane %v1525_v29, %v5594_v53  ;;  %v1576_v50 = vrot.slane %v4544_v32, %v5594_v53  ;;  %1597 = vst [vmem:[%s5441_s27] sm:$0x4] %v1596_v51 }
 0x5a3   : > { %1917 = vmatpush1.bf16.msra.mxu1 %v5916_v46  ;;  %v1599_v52 = vsel %vm6027_vm12, %v1541_v45, %v1598_v26  ;;  %v1602_v55 = vsel %vm6027_vm12, %v1548_v2, %v1601_v33  ;;  %v1608_v58 = vsel %vm6027_vm12, %v1562_v4, %v1607_v35  ;;  %1877 = vmatprep.subr.bf16.mxu0 %v5928_v12  ;;  %v4545_v26 = vld [vmem:[%s5430_s3 + $0xa0] sm:$0xff]  ;;  %v4546_v33 = vld [vmem:[%s5430_s3 + $0xa8] sm:$0xff] }
 0x5a4   : > { %1918 = vmatprep.subr.bf16.mxu1 %v5931_v7  ;;  %v1583_v24 = vrot.slane %v1527_v1, %v5594_v53  ;;  %1600 = vst [vmem:[%s5441_s27 + $0x8] sm:$0x4] %v1599_v52  ;;  %1603 = vst [vmem:[%s5441_s27 + $0x10] sm:$0x4] %v1602_v55  ;;  %v1605_v25 = vsel %vm6027_vm12, %v1555_v5, %v1604_v8  ;;  %v1611_v27 = vsel %vm6027_vm12, %v1569_v49, %v1610_v11  ;;  %v4548_v52 = vld [vmem:[%s5430_s3 + $0xb8] sm:$0xff] }
 0x5a5   : > { %1609 = vst [vmem:[%s5441_s27 + $0x20] sm:$0x4] %v1608_v58  ;;  %v1614_v29 = vsel %vm6027_vm12, %v1576_v50, %v1613_v36  ;;  %1606 = vst [vmem:[%s5441_s27 + $0x18] sm:$0x4] %v1605_v25  ;;  %1878 = vmatpush1.bf16.msra.mxu0 %v5948_v56  ;;  %v4547_v58 = vld [vmem:[%s5430_s3 + $0xb0] sm:$0xff] }
 0x5a6   : > { %1612 = vst [vmem:[%s5441_s27 + $0x28] sm:$0x4] %v1611_v27  ;;  %1615 = vst [vmem:[%s5441_s27 + $0x30] sm:$0x4] %v1614_v29  ;;  %v1617_v32 = vsel %vm6027_vm12, %v1583_v24, %v1616_v23  ;;  %1879 = vmatprep.subr.bf16.mxu0 %v5956_v59 }
 0x5a7   : > { %1919 = vmatpush1.bf16.msra.mxu1 %v5953_v34  ;;  %1618 = vst [vmem:[%s5441_s27 + $0x38] sm:$0x4] %v1617_v32 }
 0x5a8   : > { %1920 = vmatprep.subr.bf16.mxu1 %v5960_v63 }
 0x5a9   : > { %1880 = vmatpush1.bf16.msra.mxu0 %v5963_v0 }
 0x5aa   : > { %1881 = vmatprep.subr.bf16.mxu0 %v5969_v37 }
 0x5ab   : > { %1921 = vmatpush1.bf16.msra.mxu1 %v5966_v31 }
 0x5ac   : > { %1922 = vmatprep.subr.bf16.mxu1 %v5972_v9 }
 0x5ad   : > { %1882 = vmatpush1.bf16.msra.mxu0 %v5975_v40 }
 0x5ae   : > { %1883 = vmatprep.subr.bf16.mxu0 %v5981_v43 }
 0x5af   : > { %1923 = vmatpush1.bf16.msra.mxu1 %v5978_v42 }
 0x5b0   : > { %1924 = vmatprep.subr.bf16.mxu1 %v5984_v10 }
 0x5b1   : > { %1884 = vmatpush1.bf16.msra.mxu0 %v5987_v17 }
 0x5b2   : > { %1885 = vmatprep.subr.bf16.mxu0 %v5993_v19 }
 0x5b3   : > { %1925 = vmatpush1.bf16.msra.mxu1 %v5990_v18 }
 0x5b4   : > { %1926 = vmatprep.subr.bf16.mxu1 %v5996_v20 }
 0x5b5   : > { %1886 = vmatpush1.bf16.msra.mxu0 %v5999_v21 }
 0x5b6   : > { %2119 = vmatprep.subr.bf16.mxu0 %v5850_v13 }
 0x5b7   : > { %1927 = vmatpush1.bf16.msra.mxu1 %v6002_v22 }
 0x5b8   : > { %2160 = vmatprep.subr.bf16.mxu1 %v5853_v14 }
 0x66b   : > { %v1658_v35 = vpop.f32.mrb[20].mxu0  ;;  %v1699_v45 = vpop.f32.mrb[20].mxu1 }
 0x66c   : > { %v1706_v2 = vadd.f32 %v4545_v26, %v1658_v35  ;;  %v1660_v4 = vpop.f32.mrb[21].mxu0  ;;  %v1701_v51 = vpop.f32.mrb[21].mxu1  ;;  %v1708_v24 = vadd.f32 %v4547_v58, %v1699_v45 }
 0x66d   : > { %v1707_v8 = vadd.f32 %v4546_v33, %v1660_v4  ;;  %v1662_v11 = vpop.f32.mrb[22].mxu0  ;;  %v1703_v36 = vpop.f32.mrb[22].mxu1  ;;  %v1709_v55 = vadd.f32 %v4548_v52, %v1701_v51 }
 0x66e   : > { %v4549_v1 = vmul.f32 -1.442695, %v1706_v2  ;;  %v1663_v5 = vpop.f32.mrb[23].mxu0  ;;  %v1704_v49 = vpop.f32.mrb[23].mxu1 }
 0x66f   : > { %v4550_v50 = vmul.f32 -1.442695, %v1707_v8  ;;  %v4551_v23 = vmul.f32 -1.442695, %v1709_v55 }
 0x670   : > { %4880 = vpow2.f32 %v4549_v1 }
 0x671   : > { %4882 = vpow2.f32 %v4550_v50 }
 0x672   : > { %4884 = vpow2.f32 %v4551_v23 }
 0x673   : > { %4886 = vtanh.f32 %v1708_v24 }
 0x67a   : > { %v4881_v25 = vpop.eup %4880 }
 0x67b   : > { %v4883_v27 = vpop.eup %4882  ;;  %v1713_v29 = vadd.f32 1.0, %v4881_v25 }
 0x67c   : > { %v1719_v32 = vadd.f32 1.0, %v4883_v27  ;;  %v4885_v26 = vpop.eup %4884 }
 0x67d   : > { %4888 = vrcp.f32 %v1713_v29  ;;  %v4887_v33 = vpop.eup %4886  ;;  %v1726_v8 = vadd.f32 1.0, %v4885_v26 }
 0x67e   : > { %4890 = vrcp.f32 %v1719_v32  ;;  %v4644_v32 = vld [vmem:[%s5430_s3 + $0x1c0] sm:$0xff] }
 0x67f   : > { %4892 = vrcp.f32 %v1726_v8 }
 0x687   : > { %v4889_v35 = vpop.eup %4888 }
 0x688   : > { %v4891_v2 = vpop.eup %4890  ;;  %v1730_v4 = vmul.f32 %v4889_v35, %v4887_v33 }
 0x689   : > { %v1729_v11 = vmul.f32 %v4891_v2, %v6012_v30  ;;  %v4893_v45 = vpop.eup %4892 }
 0x68b   : > { %v6102_v51 = vadd.f32 %v1730_v4, %v1729_v11 }
 0x68d   : > { %4894 = vtanh.f32 %v6102_v51 }
 0x697   : > { %v4895_v36 = vpop.eup %4894 }
 0x698   : > { %v1733_v1 = vmul.f32 %v4895_v36, %v4893_v45  ;;  %v1842_v45 = vld [vmem:[%s5441_s27] sm:$0x4] }
 0x69a   : > { %v1734_v5 = vpack.c.bf16 %v1733_v1, %v1733_v1 }
 0x69c   : > { %v1742_v49 = vrot.slane %v1734_v5, %v5586_v47  ;;  %1904 = vmatmul.mubr.bf16.vlgmr.msra.gmra.mrb[24].mxu0 %v1734_v5  ;;  %1945 = vmatmul.mubr.bf16.vlgmr.msra.gmra.mrb[24].mxu1 %v1734_v5 }
 0x69d   : > { %2120 = vmatpush1.bf16.msra.mxu0 %v5865_v6  ;;  %2161 = vmatpush1.bf16.msra.mxu1 %v5868_v15 }
 0x69e   : > { %v1743_v50 = vcombine.high %v1742_v49, %v1742_v49  ;;  %v1750_v30 = vrot.slane %v1742_v49, %v5586_v47  ;;  %2121 = vmatprep.subr.bf16.mxu0 %v5872_v60  ;;  %2162 = vmatprep.subr.bf16.mxu1 %v5875_v61 }
 0x69f   : > { %2151 = vmatprep.mubr.bf16.mxu0 %v7147_v3  ;;  %2192 = vmatprep.mubr.bf16.mxu1 %v7147_v3 }
 0x6a0   : > { %v1757_v52 = vrot.slane %v1743_v50, %v5586_v47  ;;  %v1758_v55 = vcombine.high %v1750_v30, %v1750_v30  ;;  %v1761_v58 = vunpack.i.h.s16 %v1750_v30  ;;  %v4552_v23 = vpack.i.b16 %v1750_v30, %v1750_v30 }
 0x6a1   : > { %2122 = vmatpush1.bf16.msra.mxu0 %v5881_v38  ;;  %2163 = vmatpush1.bf16.msra.mxu1 %v5884_v39 }
 0x6a2   : > { %v1759_v24 = vcombine.high %v1757_v52, %v1757_v52  ;;  %v1763_v25 = vunpack.i.h.s16 %v1757_v52  ;;  %v1765_v27 = vunpack.i.h.s16 %v1758_v55  ;;  %v1769_v29 = vpack.i.b16 %v1761_v58, %v1761_v58  ;;  %2123 = vmatprep.subr.bf16.mxu0 %v5893_v41  ;;  %2164 = vmatprep.subr.bf16.mxu1 %v5896_v44  ;;  %v1845_v58 = vld [vmem:[%s5441_s27 + $0x8] sm:$0x4] }
 0x6a3   : > { %v4553_v26 = vpack.i.b16 %v1757_v52, %v1757_v52  ;;  %v4554_v33 = vpack.i.b16 %v1758_v55, %v1758_v55  ;;  %v1782_v35 = vrot.slane %v4552_v23, %v5594_v53  ;;  %v1848_v23 = vld [vmem:[%s5441_s27 + $0x10] sm:$0x4] }
 0x6a4   : > { %v1767_v2 = vunpack.i.h.s16 %v1759_v24  ;;  %v1771_v4 = vpack.i.b16 %v1763_v25, %v1763_v25  ;;  %v1773_v8 = vpack.i.b16 %v1765_v27, %v1765_v27  ;;  %v4555_v11 = vpack.i.b16 %v1759_v24, %v1759_v24  ;;  %v1854_v24 = vld [vmem:[%s5441_s27 + $0x20] sm:$0x4] }
 0x6a5   : > { %v1789_v36 = vrot.slane %v1769_v29, %v5594_v53  ;;  %v1796_v1 = vrot.slane %v4553_v26, %v5594_v53  ;;  %v1810_v5 = vrot.slane %v4554_v33, %v5594_v53  ;;  %v1843_v49 = vsel %vm6117_vm14, %v1782_v35, %v1842_v45  ;;  %2124 = vmatpush1.bf16.msra.mxu0 %v5906_v28  ;;  %v1851_v29 = vld [vmem:[%s5441_s27 + $0x18] sm:$0x4]  ;;  %v1857_v33 = vld [vmem:[%s5441_s27 + $0x28] sm:$0x4]  ;;  %v1860_v35 = vld [vmem:[%s5441_s27 + $0x30] sm:$0x4] }
 0x6a6   : > { %v1775_v50 = vpack.i.b16 %v1767_v2, %v1767_v2  ;;  %v1803_v30 = vrot.slane %v1771_v4, %v5594_v53  ;;  %v1817_v52 = vrot.slane %v1773_v8, %v5594_v53  ;;  %v1824_v55 = vrot.slane %v4555_v11, %v5594_v53  ;;  %1844 = vst [vmem:[%s5441_s27] sm:$0x4] %v1843_v49  ;;  %v1863_v45 = vld [vmem:[%s5441_s27 + $0x38] sm:$0x4] }
 0x6a7   : > { %2165 = vmatpush1.bf16.msra.mxu1 %v5916_v46  ;;  %v1846_v25 = vsel %vm6117_vm14, %v1789_v36, %v1845_v58  ;;  %v1849_v27 = vsel %vm6117_vm14, %v1796_v1, %v1848_v23  ;;  %v1855_v26 = vsel %vm6117_vm14, %v1810_v5, %v1854_v24  ;;  %2125 = vmatprep.subr.bf16.mxu0 %v5928_v12  ;;  %v4556_v1 = vld [vmem:[%s5430_s3 + $0xc0] sm:$0xff]  ;;  %v4557_v5 = vld [vmem:[%s5430_s3 + $0xc8] sm:$0xff] }
 0x6a8   : > { %2166 = vmatprep.subr.bf16.mxu1 %v5931_v7  ;;  %v1831_v2 = vrot.slane %v1775_v50, %v5594_v53  ;;  %1847 = vst [vmem:[%s5441_s27 + $0x8] sm:$0x4] %v1846_v25  ;;  %1850 = vst [vmem:[%s5441_s27 + $0x10] sm:$0x4] %v1849_v27  ;;  %v1852_v4 = vsel %vm6117_vm14, %v1803_v30, %v1851_v29  ;;  %v1858_v8 = vsel %vm6117_vm14, %v1817_v52, %v1857_v33  ;;  %v4558_v33 = vld [vmem:[%s5430_s3 + $0xd0] sm:$0xff] }
 0x6a9   : > { %1856 = vst [vmem:[%s5441_s27 + $0x20] sm:$0x4] %v1855_v26  ;;  %v1861_v11 = vsel %vm6117_vm14, %v1824_v55, %v1860_v35  ;;  %1853 = vst [vmem:[%s5441_s27 + $0x18] sm:$0x4] %v1852_v4  ;;  %2126 = vmatpush1.bf16.msra.mxu0 %v5948_v56 }
 0x6aa   : > { %1859 = vst [vmem:[%s5441_s27 + $0x28] sm:$0x4] %v1858_v8  ;;  %1862 = vst [vmem:[%s5441_s27 + $0x30] sm:$0x4] %v1861_v11  ;;  %v1864_v36 = vsel %vm6117_vm14, %v1831_v2, %v1863_v45  ;;  %2127 = vmatprep.subr.bf16.mxu0 %v5956_v59 }
 0x6ab   : > { %2167 = vmatpush1.bf16.msra.mxu1 %v5953_v34  ;;  %1865 = vst [vmem:[%s5441_s27 + $0x38] sm:$0x4] %v1864_v36 }
 0x6ac   : > { %2168 = vmatprep.subr.bf16.mxu1 %v5960_v63 }
 0x6ad   : > { %2128 = vmatpush1.bf16.msra.mxu0 %v5963_v0 }
 0x6ae   : > { %2129 = vmatprep.subr.bf16.mxu0 %v5969_v37 }
 0x6af   : > { %2169 = vmatpush1.bf16.msra.mxu1 %v5966_v31 }
 0x6b0   : > { %2170 = vmatprep.subr.bf16.mxu1 %v5972_v9 }
 0x6b1   : > { %2130 = vmatpush1.bf16.msra.mxu0 %v5975_v40 }
 0x6b2   : > { %2131 = vmatprep.subr.bf16.mxu0 %v5981_v43 }
 0x6b3   : > { %2171 = vmatpush1.bf16.msra.mxu1 %v5978_v42 }
 0x6b4   : > { %2172 = vmatprep.subr.bf16.mxu1 %v5984_v10 }
 0x6b5   : > { %2132 = vmatpush1.bf16.msra.mxu0 %v5987_v17 }
 0x6b6   : > { %2133 = vmatprep.subr.bf16.mxu0 %v5993_v19 }
 0x6b7   : > { %2173 = vmatpush1.bf16.msra.mxu1 %v5990_v18 }
 0x6b8   : > { %2174 = vmatprep.subr.bf16.mxu1 %v5996_v20 }
 0x6b9   : > { %2134 = vmatpush1.bf16.msra.mxu0 %v5999_v21 }
 0x6ba   : > { %2366 = vmatprep.subr.bf16.mxu0 %v5850_v13  ;;  %v4559_v13 = vld [vmem:[%s5430_s3 + $0xd8] sm:$0xff] }
 0x6bb   : > { %2175 = vmatpush1.bf16.msra.mxu1 %v6002_v22 }
 0x6bc   : > { %2407 = vmatprep.subr.bf16.mxu1 %v5853_v14 }
 0x76f   : > { %v1905_v49 = vpop.f32.mrb[24].mxu0  ;;  %v1946_v50 = vpop.f32.mrb[24].mxu1 }
 0x770   : > { %v1953_v30 = vadd.f32 %v4556_v1, %v1905_v49  ;;  %v1907_v52 = vpop.f32.mrb[25].mxu0  ;;  %v1948_v55 = vpop.f32.mrb[25].mxu1  ;;  %v1955_v2 = vadd.f32 %v4558_v33, %v1946_v50 }
 0x771   : > { %v1954_v58 = vadd.f32 %v4557_v5, %v1907_v52  ;;  %v1909_v23 = vpop.f32.mrb[26].mxu0  ;;  %v1950_v24 = vpop.f32.mrb[26].mxu1  ;;  %v1956_v14 = vadd.f32 %v4559_v13, %v1948_v55 }
 0x772   : > { %v4560_v25 = vmul.f32 -1.442695, %v1953_v30  ;;  %v1910_v27 = vpop.f32.mrb[27].mxu0  ;;  %v1951_v29 = vpop.f32.mrb[27].mxu1 }
 0x773   : > { %v4561_v26 = vmul.f32 -1.442695, %v1954_v58  ;;  %v4562_v35 = vmul.f32 -1.442695, %v1956_v14 }
 0x774   : > { %4896 = vpow2.f32 %v4560_v25 }
 0x775   : > { %4898 = vpow2.f32 %v4561_v26 }
 0x776   : > { %4900 = vpow2.f32 %v4562_v35  ;;  %v4658_v35 = vld [vmem:[%s5430_s3 + $0x1f8] sm:$0xff] }
 0x777   : > { %4902 = vtanh.f32 %v1955_v2  ;;  %v2090_v2 = vld [vmem:[%s5441_s27] sm:$0x8] }
 0x77e   : > { %v4897_v4 = vpop.eup %4896 }
 0x77f   : > { %v4899_v8 = vpop.eup %4898  ;;  %v1960_v11 = vadd.f32 1.0, %v4897_v4 }
 0x780   : > { %v1966_v45 = vadd.f32 1.0, %v4899_v8  ;;  %v4901_v36 = vpop.eup %4900 }
 0x781   : > { %4904 = vrcp.f32 %v1960_v11  ;;  %v4903_v1 = vpop.eup %4902  ;;  %v1973_v52 = vadd.f32 1.0, %v4901_v36 }
 0x782   : > { %4906 = vrcp.f32 %v1966_v45 }
 0x783   : > { %4908 = vrcp.f32 %v1973_v52 }
 0x78b   : > { %v4905_v5 = vpop.eup %4904 }
 0x78c   : > { %v4907_v49 = vpop.eup %4906  ;;  %v1977_v30 = vmul.f32 %v4905_v5, %v4903_v1  ;;  %v2093_v1 = vld [vmem:[%s5441_s27 + $0x8] sm:$0x8]  ;;  %v2096_v5 = vld [vmem:[%s5441_s27 + $0x10] sm:$0x8] }
 0x78d   : > { %v1976_v58 = vmul.f32 %v4907_v49, %v6102_v51  ;;  %v4909_v50 = vpop.eup %4908  ;;  %v2102_v49 = vld [vmem:[%s5441_s27 + $0x20] sm:$0x8] }
 0x78f   : > { %v6192_v55 = vadd.f32 %v1977_v30, %v1976_v58  ;;  %v2099_v58 = vld [vmem:[%s5441_s27 + $0x18] sm:$0x8] }
 0x791   : > { %4910 = vtanh.f32 %v6192_v55 }
 0x79b   : > { %v4911_v23 = vpop.eup %4910 }
 0x79c   : > { %v1980_v24 = vmul.f32 %v4911_v23, %v4909_v50  ;;  %v2105_v50 = vld [vmem:[%s5441_s27 + $0x28] sm:$0x8]  ;;  %v2108_v23 = vld [vmem:[%s5441_s27 + $0x30] sm:$0x8] }
 0x79e   : > { %v1981_v25 = vpack.c.bf16 %v1980_v24, %v1980_v24 }
 0x7a0   : > { %v1989_v27 = vrot.slane %v1981_v25, %v5586_v47  ;;  %2152 = vmatmul.mubr.bf16.vlgmr.msra.gmra.mrb[28].mxu0 %v1981_v25  ;;  %2193 = vmatmul.mubr.bf16.vlgmr.msra.gmra.mrb[28].mxu1 %v1981_v25 }
 0x7a1   : > { %2367 = vmatpush1.bf16.msra.mxu0 %v5865_v6  ;;  %2408 = vmatpush1.bf16.msra.mxu1 %v5868_v15 }
 0x7a2   : > { %v1990_v29 = vcombine.high %v1989_v27, %v1989_v27  ;;  %v1997_v51 = vrot.slane %v1989_v27, %v5586_v47  ;;  %2368 = vmatprep.subr.bf16.mxu0 %v5872_v60  ;;  %2409 = vmatprep.subr.bf16.mxu1 %v5875_v61 }
 0x7a3   : > { %2398 = vmatprep.mubr.bf16.mxu0 %v7147_v3  ;;  %2439 = vmatprep.mubr.bf16.mxu1 %v7147_v3 }
 0x7a4   : > { %v2004_v26 = vrot.slane %v1990_v29, %v5586_v47  ;;  %v2005_v13 = vcombine.high %v1997_v51, %v1997_v51  ;;  %v2008_v6 = vunpack.i.h.s16 %v1997_v51  ;;  %v4563_v14 = vpack.i.b16 %v1997_v51, %v1997_v51 }
 0x7a5   : > { %2369 = vmatpush1.bf16.msra.mxu0 %v5881_v38  ;;  %2410 = vmatpush1.bf16.msra.mxu1 %v5884_v39 }
 0x7a6   : > { %v2006_v15 = vcombine.high %v2004_v26, %v2004_v26  ;;  %v2010_v60 = vunpack.i.h.s16 %v2004_v26  ;;  %v2012_v61 = vunpack.i.h.s16 %v2005_v13  ;;  %v2016_v33 = vpack.i.b16 %v2008_v6, %v2008_v6  ;;  %2370 = vmatprep.subr.bf16.mxu0 %v5893_v41  ;;  %2411 = vmatprep.subr.bf16.mxu1 %v5896_v44 }
 0x7a7   : > { %v4564_v38 = vpack.i.b16 %v2004_v26, %v2004_v26  ;;  %v4565_v39 = vpack.i.b16 %v2005_v13, %v2005_v13  ;;  %v2029_v4 = vrot.slane %v4563_v14, %v5594_v53  ;;  %v2111_v13 = vld [vmem:[%s5441_s27 + $0x38] sm:$0x8] }
 0x7a8   : > { %v2014_v8 = vunpack.i.h.s16 %v2006_v15  ;;  %v2018_v11 = vpack.i.b16 %v2010_v60, %v2010_v60  ;;  %v2020_v45 = vpack.i.b16 %v2012_v61, %v2012_v61  ;;  %v4566_v36 = vpack.i.b16 %v2006_v15, %v2006_v15 }
 0x7a9   : > { %v2036_v30 = vrot.slane %v2016_v33, %v5594_v53  ;;  %v2043_v41 = vrot.slane %v4564_v38, %v5594_v53  ;;  %v2057_v44 = vrot.slane %v4565_v39, %v5594_v53  ;;  %v2091_v52 = vsel %vm6207_vm1, %v2029_v4, %v2090_v2  ;;  %2371 = vmatpush1.bf16.msra.mxu0 %v5906_v28 }
 0x7aa   : > { %v2022_v24 = vpack.i.b16 %v2014_v8, %v2014_v8  ;;  %v2050_v25 = vrot.slane %v2018_v11, %v5594_v53  ;;  %v2064_v27 = vrot.slane %v2020_v45, %v5594_v53  ;;  %v2071_v29 = vrot.slane %v4566_v36, %v5594_v53  ;;  %2092 = vst [vmem:[%s5441_s27] sm:$0x8] %v2091_v52 }
 0x7ab   : > { %2412 = vmatpush1.bf16.msra.mxu1 %v5916_v46  ;;  %v2094_v51 = vsel %vm6207_vm1, %v2036_v30, %v2093_v1  ;;  %v2097_v28 = vsel %vm6207_vm1, %v2043_v41, %v2096_v5  ;;  %v2103_v26 = vsel %vm6207_vm1, %v2057_v44, %v2102_v49  ;;  %2372 = vmatprep.subr.bf16.mxu0 %v5928_v12 }
 0x7ac   : > { %2413 = vmatprep.subr.bf16.mxu1 %v5931_v7  ;;  %v2078_v6 = vrot.slane %v2022_v24, %v5594_v53  ;;  %2095 = vst [vmem:[%s5441_s27 + $0x8] sm:$0x8] %v2094_v51  ;;  %2098 = vst [vmem:[%s5441_s27 + $0x10] sm:$0x8] %v2097_v28  ;;  %v2100_v46 = vsel %vm6207_vm1, %v2050_v25, %v2099_v58  ;;  %v2106_v14 = vsel %vm6207_vm1, %v2064_v27, %v2105_v50  ;;  %v6275_v7 = vld [vmem:[#allocation7 + $0x4] ss:$16 sps:$4 sm:$0xff]  }
 0x7ad   : > { %2104 = vst [vmem:[%s5441_s27 + $0x20] sm:$0x8] %v2103_v26  ;;  %v2109_v15 = vsel %vm6207_vm1, %v2071_v29, %v2108_v23  ;;  %2101 = vst [vmem:[%s5441_s27 + $0x18] sm:$0x8] %v2100_v46  ;;  %2373 = vmatpush1.bf16.msra.mxu0 %v5948_v56  ;;  %v6278_v56 = vld [vmem:[#allocation7 + $0xc] ss:$16 sps:$4 sm:$0xff]  }
 0x7ae   : > { %2107 = vst [vmem:[%s5441_s27 + $0x28] sm:$0x8] %v2106_v14  ;;  %2110 = vst [vmem:[%s5441_s27 + $0x30] sm:$0x8] %v2109_v15  ;;  %v2112_v12 = vsel %vm6207_vm1, %v2078_v6, %v2111_v13  ;;  %2374 = vmatprep.subr.bf16.mxu0 %v5956_v59  ;;  %v4568_v59 = vld [vmem:[%s5430_s3 + $0xe8] sm:$0xff] }
 0x7af   : > { %2414 = vmatpush1.bf16.msra.mxu1 %v5953_v34  ;;  %2113 = vst [vmem:[%s5441_s27 + $0x38] sm:$0x8] %v2112_v12  ;;  %v4567_v34 = vld [vmem:[%s5430_s3 + $0xe0] sm:$0xff]  ;;  %v6293_v23 = vld [vmem:[#allocation7 + $0x8] ss:$16 sps:$4 sm:$0xff]  }
 0x7b0   : > { %2415 = vmatprep.subr.bf16.mxu1 %v5960_v63  ;;  %v6290_v50 = vld [vmem:[#allocation7] ss:$16 sps:$4 sm:$0xff]   ;;  %v6297_v25 = vld [vmem:[#allocation7 + $0x24] ss:$16 sps:$4 sm:$0xff]   ;;  %v6300_v27 = vld [vmem:[#allocation7 + $0x2c] ss:$16 sps:$4 sm:$0xff]  }
 0x7b1   : > { %2375 = vmatpush1.bf16.msra.mxu0 %v5963_v0  ;;  %v6306_v13 = vld [vmem:[#allocation7 + $0x20] ss:$16 sps:$4 sm:$0xff]   ;;  %v6309_v6 = vld [vmem:[#allocation7 + $0x28] ss:$16 sps:$4 sm:$0xff]  }
 0x7b2   : > { %2376 = vmatprep.subr.bf16.mxu0 %v5969_v37 }
 0x7b3   : > { %2416 = vmatpush1.bf16.msra.mxu1 %v5966_v31 }
 0x7b4   : > { %2417 = vmatprep.subr.bf16.mxu1 %v5972_v9 }
 0x7b5   : > { %2377 = vmatpush1.bf16.msra.mxu0 %v5975_v40 }
 0x7b6   : > { %2378 = vmatprep.subr.bf16.mxu0 %v5981_v43 }
 0x7b7   : > { %2418 = vmatpush1.bf16.msra.mxu1 %v5978_v42 }
 0x7b8   : > { %2419 = vmatprep.subr.bf16.mxu1 %v5984_v10 }
 0x7b9   : > { %2379 = vmatpush1.bf16.msra.mxu0 %v5987_v17 }
 0x7ba   : > { %2380 = vmatprep.subr.bf16.mxu0 %v5993_v19 }
 0x7bb   : > { %2420 = vmatpush1.bf16.msra.mxu1 %v5990_v18 }
 0x7bc   : > { %2421 = vmatprep.subr.bf16.mxu1 %v5996_v20  ;;  %v4570_v20 = vld [vmem:[%s5430_s3 + $0xf8] sm:$0xff] }
 0x7bd   : > { %2381 = vmatpush1.bf16.msra.mxu0 %v5999_v21 }
 0x7be   : > { %2611 = vmatprep.subr.bf16.mxu0 %v6275_v7 }
 0x7bf   : > { %2422 = vmatpush1.bf16.msra.mxu1 %v6002_v22  ;;  %v4569_v22 = vld [vmem:[%s5430_s3 + $0xf0] sm:$0xff] }
 0x7c0   : > { %2652 = vmatprep.subr.bf16.mxu1 %v6278_v56 }
 0x873   : > { %v2153_v63 = vpop.f32.mrb[28].mxu0  ;;  %v2194_v0 = vpop.f32.mrb[28].mxu1 }
 0x874   : > { %v2201_v31 = vadd.f32 %v4567_v34, %v2153_v63  ;;  %v2155_v37 = vpop.f32.mrb[29].mxu0  ;;  %v2196_v9 = vpop.f32.mrb[29].mxu1  ;;  %v2203_v61 = vadd.f32 %v4569_v22, %v2194_v0  ;;  %v7177_v34 = vmov 0  ;;  %v6321_v63 = vld [vmem:[#allocation7 + $0x4c] ss:$16 sps:$4 sm:$0xff]  }
 0x875   : > { %v2202_v40 = vadd.f32 %v4568_v59, %v2155_v37  ;;  %v2157_v42 = vpop.f32.mrb[30].mxu0  ;;  %v2198_v43 = vpop.f32.mrb[30].mxu1  ;;  %v2204_v21 = vadd.f32 %v4570_v20, %v2196_v9  ;;  %v7178_v34 = vsel %vm6314_vm5, 4294967295, %v7177_v34  ;;  %v6318_v59 = vld [vmem:[#allocation7 + $0x44] ss:$16 sps:$4 sm:$0xff]  }
 0x876   : > { %v4571_v10 = vmul.f32 -1.442695, %v2201_v31  ;;  %v2158_v17 = vpop.f32.mrb[31].mxu0  ;;  %v2199_v18 = vpop.f32.mrb[31].mxu1  ;;  %7179 = vst [vmem:[#allocation15_spill] sm:$0xff] %v7178_v34 }
 0x877   : > { %v4572_v19 = vmul.f32 -1.442695, %v2202_v40  ;;  %v4573_v60 = vmul.f32 -1.442695, %v2204_v21  ;;  %v6331_v21 = vld [vmem:[#allocation7 + $0x40] ss:$16 sps:$4 sm:$0xff]  }
 0x878   : > { %4912 = vpow2.f32 %v4571_v10  ;;  %v2337_v10 = vld [vmem:[%s5441_s27] sm:$0x8] }
 0x879   : > { %4914 = vpow2.f32 %v4572_v19 }
 0x87a   : > { %4916 = vpow2.f32 %v4573_v60 }
 0x87b   : > { %4918 = vtanh.f32 %v2203_v61 }
 0x882   : > { %v4913_v33 = vpop.eup %4912 }
 0x883   : > { %v4915_v2 = vpop.eup %4914  ;;  %v2208_v38 = vadd.f32 1.0, %v4913_v33 }
 0x884   : > { %v2214_v39 = vadd.f32 1.0, %v4915_v2  ;;  %v4917_v4 = vpop.eup %4916  ;;  %v2340_v2 = vld [vmem:[%s5441_s27 + $0x8] sm:$0x8] }
 0x885   : > { %4920 = vrcp.f32 %v2208_v38  ;;  %v4919_v8 = vpop.eup %4918  ;;  %v2221_v1 = vadd.f32 1.0, %v4917_v4  ;;  %v2343_v38 = vld [vmem:[%s5441_s27 + $0x10] sm:$0x8]  ;;  %v6341_v4 = vld [vmem:[#allocation7 + $0x48] ss:$16 sps:$4 sm:$0xff]  }
 0x886   : > { %4922 = vrcp.f32 %v2214_v39  ;;  %v2349_v39 = vld [vmem:[%s5441_s27 + $0x20] sm:$0x8] }
 0x887   : > { %4924 = vrcp.f32 %v2221_v1  ;;  %v2352_v1 = vld [vmem:[%s5441_s27 + $0x28] sm:$0x8] }
 0x88f   : > { %v4921_v11 = vpop.eup %4920 }
 0x890   : > { %v4923_v45 = vpop.eup %4922  ;;  %v2225_v36 = vmul.f32 %v4921_v11, %v4919_v8 }
 0x891   : > { %v2224_v5 = vmul.f32 %v4923_v45, %v6192_v55  ;;  %v4925_v30 = vpop.eup %4924  ;;  %v2346_v45 = vld [vmem:[%s5441_s27 + $0x18] sm:$0x8] }
 0x893   : > { %v6286_v49 = vadd.f32 %v2225_v36, %v2224_v5  ;;  %v2355_v5 = vld [vmem:[%s5441_s27 + $0x30] sm:$0x8] }
 0x895   : > { %4926 = vtanh.f32 %v6286_v49 }
 0x89f   : > { %v4927_v41 = vpop.eup %4926 }
 0x8a0   : > { %v2228_v44 = vmul.f32 %v4927_v41, %v4925_v30  ;;  %v6353_v30 = vld [vmem:[#allocation7 + $0x64] ss:$16 sps:$4 sm:$0xff]   ;;  %v6356_v41 = vld [vmem:[#allocation7 + $0x6c] ss:$16 sps:$4 sm:$0xff]  }
 0x8a2   : > { %v2229_v52 = vpack.c.bf16 %v2228_v44, %v2228_v44 }
 0x8a4   : > { %v2237_v58 = vrot.slane %v2229_v52, %v5586_v47  ;;  %2399 = vmatmul.mubr.bf16.vlgmr.msra.gmra.mrb[32].mxu0 %v2229_v52  ;;  %2440 = vmatmul.mubr.bf16.vlgmr.msra.gmra.mrb[32].mxu1 %v2229_v52 }
 0x8a5   : > { %2612 = vmatpush1.bf16.msra.mxu0 %v6290_v50  ;;  %2653 = vmatpush1.bf16.msra.mxu1 %v6293_v23 }
 0x8a6   : > { %v2238_v55 = vcombine.high %v2237_v58, %v2237_v58  ;;  %v2245_v24 = vrot.slane %v2237_v58, %v5586_v47  ;;  %2613 = vmatprep.subr.bf16.mxu0 %v6297_v25  ;;  %2654 = vmatprep.subr.bf16.mxu1 %v6300_v27 }
 0x8a7   : > { %2643 = vmatprep.mubr.bf16.mxu0 %v7147_v3  ;;  %2684 = vmatprep.mubr.bf16.mxu1 %v7147_v3 }
 0x8a8   : > { %v2252_v29 = vrot.slane %v2238_v55, %v5586_v47  ;;  %v2253_v51 = vcombine.high %v2245_v24, %v2245_v24  ;;  %v2256_v28 = vunpack.i.h.s16 %v2245_v24  ;;  %v4574_v26 = vpack.i.b16 %v2245_v24, %v2245_v24  ;;  %v2358_v24 = vld [vmem:[%s5441_s27 + $0x38] sm:$0x8] }
 0x8a9   : > { %2614 = vmatpush1.bf16.msra.mxu0 %v6306_v13  ;;  %2655 = vmatpush1.bf16.msra.mxu1 %v6309_v6 }
 0x8aa   : > { %v2254_v46 = vcombine.high %v2252_v29, %v2252_v29  ;;  %v2258_v14 = vunpack.i.h.s16 %v2252_v29  ;;  %v2260_v15 = vunpack.i.h.s16 %v2253_v51  ;;  %v2264_v12 = vpack.i.b16 %v2256_v28, %v2256_v28  ;;  %2615 = vmatprep.subr.bf16.mxu0 %v6318_v59  ;;  %2656 = vmatprep.subr.bf16.mxu1 %v6321_v63  ;;  %v6378_v28 = vld [vmem:[#allocation7 + $0x68] ss:$16 sps:$4 sm:$0xff]  }
 0x8ab   : > { %v4575_v0 = vpack.i.b16 %v2252_v29, %v2252_v29  ;;  %v4576_v31 = vpack.i.b16 %v2253_v51, %v2253_v51  ;;  %v2277_v37 = vrot.slane %v4574_v26, %v5594_v53  ;;  %v6373_v29 = vld [vmem:[#allocation7 + $0x60] ss:$16 sps:$4 sm:$0xff]   ;;  %v6381_v26 = vld [vmem:[#allocation7 + $0x84] ss:$16 sps:$4 sm:$0xff]  }
 0x8ac   : > { %v2262_v9 = vunpack.i.h.s16 %v2254_v46  ;;  %v2266_v40 = vpack.i.b16 %v2258_v14, %v2258_v14  ;;  %v2268_v42 = vpack.i.b16 %v2260_v15, %v2260_v15  ;;  %v4577_v43 = vpack.i.b16 %v2254_v46, %v2254_v46  ;;  %v6385_v46 = vld [vmem:[#allocation7 + $0x8c] ss:$16 sps:$4 sm:$0xff]   ;;  %v6388_v14 = vld [vmem:[#allocation7 + $0x80] ss:$16 sps:$4 sm:$0xff]   ;;  %v6391_v15 = vld [vmem:[#allocation7 + $0x88] ss:$16 sps:$4 sm:$0xff]  }
 0x8ad   : > { %v2284_v17 = vrot.slane %v2264_v12, %v5594_v53  ;;  %v2291_v18 = vrot.slane %v4575_v0, %v5594_v53  ;;  %v2305_v19 = vrot.slane %v4576_v31, %v5594_v53  ;;  %v2338_v20 = vsel %vm6314_vm5, %v2277_v37, %v2337_v10  ;;  %2616 = vmatpush1.bf16.msra.mxu0 %v6331_v21  ;;  %v6394_v12 = vld [vmem:[#allocation7 + $0xa4] ss:$16 sps:$4 sm:$0xff]   ;;  %v6397_v0 = vld [vmem:[#allocation7 + $0xac] ss:$16 sps:$4 sm:$0xff]   ;;  %v6400_v31 = vld [vmem:[#allocation7 + $0xa0] ss:$16 sps:$4 sm:$0xff]  }
 0x8ae   : > { %v2270_v22 = vpack.i.b16 %v2262_v9, %v2262_v9  ;;  %v2298_v60 = vrot.slane %v2266_v40, %v5594_v53  ;;  %v2312_v61 = vrot.slane %v2268_v42, %v5594_v53  ;;  %v2319_v33 = vrot.slane %v4577_v43, %v5594_v53  ;;  %2339 = vst [vmem:[%s5441_s27] sm:$0x8] %v2338_v20  ;;  %v6403_v37 = vld [vmem:[#allocation7 + $0xa8] ss:$16 sps:$4 sm:$0xff]   ;;  %v6406_v9 = vld [vmem:[#allocation7 + $0xc4] ss:$16 sps:$4 sm:$0xff]  }
 0x8af   : > { %2657 = vmatpush1.bf16.msra.mxu1 %v6341_v4  ;;  %v2341_v8 = vsel %vm6314_vm5, %v2284_v17, %v2340_v2  ;;  %v2344_v11 = vsel %vm6314_vm5, %v2291_v18, %v2343_v38  ;;  %v2350_v36 = vsel %vm6314_vm5, %v2305_v19, %v2349_v39  ;;  %2617 = vmatprep.subr.bf16.mxu0 %v6353_v30  ;;  %v6409_v40 = vld [vmem:[#allocation7 + $0xcc] ss:$16 sps:$4 sm:$0xff]   ;;  %v6412_v42 = vld [vmem:[#allocation7 + $0xc0] ss:$16 sps:$4 sm:$0xff]   ;;  %v6415_v43 = vld [vmem:[#allocation7 + $0xc8] ss:$16 sps:$4 sm:$0xff]  }
 0x8b0   : > { %2658 = vmatprep.subr.bf16.mxu1 %v6356_v41  ;;  %v2326_v44 = vrot.slane %v2270_v22, %v5594_v53  ;;  %2342 = vst [vmem:[%s5441_s27 + $0x8] sm:$0x8] %v2341_v8  ;;  %2345 = vst [vmem:[%s5441_s27 + $0x10] sm:$0x8] %v2344_v11  ;;  %v2347_v52 = vsel %vm6314_vm5, %v2298_v60, %v2346_v45  ;;  %v2353_v58 = vsel %vm6314_vm5, %v2312_v61, %v2352_v1  ;;  %v6418_v10 = vld [vmem:[#allocation7 + $0xe4] ss:$16 sps:$4 sm:$0xff]  }
 0x8b1   : > { %2351 = vst [vmem:[%s5441_s27 + $0x20] sm:$0x8] %v2350_v36  ;;  %v2356_v55 = vsel %vm6314_vm5, %v2319_v33, %v2355_v5  ;;  %2348 = vst [vmem:[%s5441_s27 + $0x18] sm:$0x8] %v2347_v52  ;;  %2618 = vmatpush1.bf16.msra.mxu0 %v6373_v29  ;;  %v6421_v17 = vld [vmem:[#allocation7 + $0xec] ss:$16 sps:$4 sm:$0xff]  }
 0x8b2   : > { %2354 = vst [vmem:[%s5441_s27 + $0x28] sm:$0x8] %v2353_v58  ;;  %2357 = vst [vmem:[%s5441_s27 + $0x30] sm:$0x8] %v2356_v55  ;;  %v2359_v51 = vsel %vm6314_vm5, %v2326_v44, %v2358_v24  ;;  %2619 = vmatprep.subr.bf16.mxu0 %v6381_v26  ;;  %v6424_v18 = vld [vmem:[#allocation7 + $0xe0] ss:$16 sps:$4 sm:$0xff]  }
 0x8b3   : > { %2659 = vmatpush1.bf16.msra.mxu1 %v6378_v28  ;;  %2360 = vst [vmem:[%s5441_s27 + $0x38] sm:$0x8] %v2359_v51  ;;  %v6427_v19 = vld [vmem:[#allocation7 + $0xe8] ss:$16 sps:$4 sm:$0xff]   ;;  %v4578_v20 = vld [vmem:[%s5430_s3 + $0x100] sm:$0xff]  ;;  %v4580_v58 = vld [vmem:[%s5430_s3 + $0x110] sm:$0xff] }
 0x8b4   : > { %2660 = vmatprep.subr.bf16.mxu1 %v6385_v46  ;;  %v4579_v22 = vld [vmem:[%s5430_s3 + $0x108] sm:$0xff]  ;;  %v4581_v44 = vld [vmem:[%s5430_s3 + $0x118] sm:$0xff] }
 0x8b5   : > { %2620 = vmatpush1.bf16.msra.mxu0 %v6388_v14 }
 0x8b6   : > { %2621 = vmatprep.subr.bf16.mxu0 %v6394_v12 }
 0x8b7   : > { %2661 = vmatpush1.bf16.msra.mxu1 %v6391_v15 }
 0x8b8   : > { %2662 = vmatprep.subr.bf16.mxu1 %v6397_v0 }
 0x8b9   : > { %2622 = vmatpush1.bf16.msra.mxu0 %v6400_v31 }
 0x8ba   : > { %2623 = vmatprep.subr.bf16.mxu0 %v6406_v9 }
 0x8bb   : > { %2663 = vmatpush1.bf16.msra.mxu1 %v6403_v37 }
 0x8bc   : > { %2664 = vmatprep.subr.bf16.mxu1 %v6409_v40 }
 0x8bd   : > { %2624 = vmatpush1.bf16.msra.mxu0 %v6412_v42 }
 0x8be   : > { %2625 = vmatprep.subr.bf16.mxu0 %v6418_v10 }
 0x8bf   : > { %2665 = vmatpush1.bf16.msra.mxu1 %v6415_v43 }
 0x8c0   : > { %2666 = vmatprep.subr.bf16.mxu1 %v6421_v17 }
 0x8c1   : > { %2626 = vmatpush1.bf16.msra.mxu0 %v6424_v18 }
 0x8c2   : > { %2856 = vmatprep.subr.bf16.mxu0 %v6275_v7 }
 0x8c3   : > { %2667 = vmatpush1.bf16.msra.mxu1 %v6427_v19 }
 0x8c4   : > { %2897 = vmatprep.subr.bf16.mxu1 %v6278_v56 }
 0x977   : > { %v2400_v60 = vpop.f32.mrb[32].mxu0  ;;  %v2441_v61 = vpop.f32.mrb[32].mxu1 }
 0x978   : > { %v2448_v33 = vadd.f32 %v4578_v20, %v2400_v60  ;;  %v2402_v2 = vpop.f32.mrb[33].mxu0  ;;  %v2443_v38 = vpop.f32.mrb[33].mxu1  ;;  %v2450_v24 = vadd.f32 %v4580_v58, %v2441_v61 }
 0x979   : > { %v2449_v39 = vadd.f32 %v4579_v22, %v2402_v2  ;;  %v2404_v8 = vpop.f32.mrb[34].mxu0  ;;  %v2445_v11 = vpop.f32.mrb[34].mxu1  ;;  %v2451_v52 = vadd.f32 %v4581_v44, %v2443_v38 }
 0x97a   : > { %v4582_v45 = vmul.f32 -1.442695, %v2448_v33  ;;  %v2405_v36 = vpop.f32.mrb[35].mxu0  ;;  %v2446_v1 = vpop.f32.mrb[35].mxu1 }
 0x97b   : > { %v4583_v5 = vmul.f32 -1.442695, %v2449_v39  ;;  %v4584_v55 = vmul.f32 -1.442695, %v2451_v52 }
 0x97c   : > { %4928 = vpow2.f32 %v4582_v45 }
 0x97d   : > { %4930 = vpow2.f32 %v4583_v5  ;;  %v7180_v5 = vmov 0  }
 0x97e   : > { %4932 = vpow2.f32 %v4584_v55 }
 0x97f   : > { %4934 = vtanh.f32 %v2450_v24 }
 0x986   : > { %v4929_v51 = vpop.eup %4928 }
 0x987   : > { %v4931_v3 = vpop.eup %4930  ;;  %v2455_v34 = vadd.f32 1.0, %v4929_v51 }
 0x988   : > { %v2461_v20 = vadd.f32 1.0, %v4931_v3  ;;  %v4933_v22 = vpop.eup %4932 }
 0x989   : > { %4936 = vrcp.f32 %v2455_v34  ;;  %v4935_v60 = vpop.eup %4934  ;;  %v2468_v8 = vadd.f32 1.0, %v4933_v22 }
 0x98a   : > { %4938 = vrcp.f32 %v2461_v20 }
 0x98b   : > { %4940 = vrcp.f32 %v2468_v8 }
 0x993   : > { %v4937_v33 = vpop.eup %4936 }
 0x994   : > { %v4939_v2 = vpop.eup %4938  ;;  %v2472_v39 = vmul.f32 %v4937_v33, %v4935_v60  ;;  %v2582_v60 = vld [vmem:[%s5441_s27 + $0x4] sm:$0x1] }
 0x995   : > { %v2471_v11 = vmul.f32 %v4939_v2, %v6286_v49  ;;  %v4941_v61 = vpop.eup %4940 }
 0x997   : > { %v6437_v38 = vadd.f32 %v2472_v39, %v2471_v11 }
 0x999   : > { %4942 = vtanh.f32 %v6437_v38 }
 0x9a3   : > { %v4943_v45 = vpop.eup %4942 }
 0x9a4   : > { %v2475_v36 = vmul.f32 %v4943_v45, %v4941_v61 }
 0x9a6   : > { %v2476_v1 = vpack.c.bf16 %v2475_v36, %v2475_v36  ;;  %v2585_v36 = vld [vmem:[%s5441_s27 + $0xc] sm:$0x1] }
 0x9a8   : > { %v2484_v3 = vrot.slane %v2476_v1, %v5586_v47  ;;  %2644 = vmatmul.mubr.bf16.vlgmr.msra.gmra.mrb[36].mxu0 %v2476_v1  ;;  %2685 = vmatmul.mubr.bf16.vlgmr.msra.gmra.mrb[36].mxu1 %v2476_v1  ;;  %v2588_v1 = vld [vmem:[%s5441_s27 + $0x14] sm:$0x1] }
 0x9a9   : > { %2857 = vmatpush1.bf16.msra.mxu0 %v6290_v50  ;;  %2898 = vmatpush1.bf16.msra.mxu1 %v6293_v23 }
 0x9aa   : > { %v2485_v34 = vcombine.high %v2484_v3, %v2484_v3  ;;  %v2492_v49 = vrot.slane %v2484_v3, %v5586_v47  ;;  %2858 = vmatprep.subr.bf16.mxu0 %v6297_v25  ;;  %2899 = vmatprep.subr.bf16.mxu1 %v6300_v27  ;;  %v2594_v3 = vld [vmem:[%s5441_s27 + $0x24] sm:$0x1] }
 0x9ab   : > { %2888 = vmatprep.mubr.bf16.mxu0 %v7180_v5  ;;  %2929 = vmatprep.mubr.bf16.mxu1 %v7180_v5 }
 0x9ac   : > { %v2499_v44 = vrot.slane %v2485_v34, %v5586_v47  ;;  %v2500_v52 = vcombine.high %v2492_v49, %v2492_v49  ;;  %v2503_v58 = vunpack.i.h.s16 %v2492_v49  ;;  %v4585_v55 = vpack.i.b16 %v2492_v49, %v2492_v49 }
 0x9ad   : > { %2859 = vmatpush1.bf16.msra.mxu0 %v6306_v13  ;;  %2900 = vmatpush1.bf16.msra.mxu1 %v6309_v6 }
 0x9ae   : > { %v2501_v24 = vcombine.high %v2499_v44, %v2499_v44  ;;  %v2505_v51 = vunpack.i.h.s16 %v2499_v44  ;;  %v2507_v20 = vunpack.i.h.s16 %v2500_v52  ;;  %v2511_v22 = vpack.i.b16 %v2503_v58, %v2503_v58  ;;  %2860 = vmatprep.subr.bf16.mxu0 %v6318_v59  ;;  %2901 = vmatprep.subr.bf16.mxu1 %v6321_v63 }
 0x9af   : > { %v4586_v33 = vpack.i.b16 %v2499_v44, %v2499_v44  ;;  %v4587_v2 = vpack.i.b16 %v2500_v52, %v2500_v52  ;;  %v2524_v39 = vrot.slane %v4585_v55, %v5594_v53  ;;  %v2591_v52 = vld [vmem:[%s5441_s27 + $0x1c] sm:$0x1]  ;;  %v2597_v55 = vld [vmem:[%s5441_s27 + $0x2c] sm:$0x1] }
 0x9b0   : > { %v2509_v8 = vunpack.i.h.s16 %v2501_v24  ;;  %v2513_v11 = vpack.i.b16 %v2505_v51, %v2505_v51  ;;  %v2515_v61 = vpack.i.b16 %v2507_v20, %v2507_v20  ;;  %v4588_v45 = vpack.i.b16 %v2501_v24, %v2501_v24  ;;  %v2600_v51 = vld [vmem:[%s5441_s27 + $0x34] sm:$0x1] }
 0x9b1   : > { %v2531_v34 = vrot.slane %v2511_v22, %v5594_v53  ;;  %v2538_v49 = vrot.slane %v4586_v33, %v5594_v53  ;;  %v2552_v58 = vrot.slane %v4587_v2, %v5594_v53  ;;  %v2583_v44 = vsel %vm5602_vm2, %v2524_v39, %v2582_v60  ;;  %2861 = vmatpush1.bf16.msra.mxu0 %v6331_v21 }
 0x9b2   : > { %v2517_v24 = vpack.i.b16 %v2509_v8, %v2509_v8  ;;  %v2545_v20 = vrot.slane %v2513_v11, %v5594_v53  ;;  %v2559_v22 = vrot.slane %v2515_v61, %v5594_v53  ;;  %v2566_v33 = vrot.slane %v4588_v45, %v5594_v53  ;;  %2584 = vst [vmem:[%s5441_s27 + $0x4] sm:$0x1] %v2583_v44  ;;  %v2603_v8 = vld [vmem:[%s5441_s27 + $0x3c] sm:$0x1] }
 0x9b3   : > { %2902 = vmatpush1.bf16.msra.mxu1 %v6341_v4  ;;  %v2586_v60 = vsel %vm5602_vm2, %v2531_v34, %v2585_v36  ;;  %v2589_v2 = vsel %vm5602_vm2, %v2538_v49, %v2588_v1  ;;  %v2595_v39 = vsel %vm5602_vm2, %v2552_v58, %v2594_v3  ;;  %2862 = vmatprep.subr.bf16.mxu0 %v6353_v30  ;;  %v4590_v3 = vld [vmem:[%s5430_s3 + $0x128] sm:$0xff] }
 0x9b4   : > { %2903 = vmatprep.subr.bf16.mxu1 %v6356_v41  ;;  %v2573_v11 = vrot.slane %v2517_v24, %v5594_v53  ;;  %2587 = vst [vmem:[%s5441_s27 + $0xc] sm:$0x1] %v2586_v60  ;;  %2590 = vst [vmem:[%s5441_s27 + $0x14] sm:$0x1] %v2589_v2  ;;  %v2592_v61 = vsel %vm5602_vm2, %v2545_v20, %v2591_v52  ;;  %v2598_v45 = vsel %vm5602_vm2, %v2559_v22, %v2597_v55  ;;  %v4592_v2 = vld [vmem:[%s5430_s3 + $0x138] sm:$0xff] }
 0x9b5   : > { %2596 = vst [vmem:[%s5441_s27 + $0x24] sm:$0x1] %v2595_v39  ;;  %v2601_v36 = vsel %vm5602_vm2, %v2566_v33, %v2600_v51  ;;  %2593 = vst [vmem:[%s5441_s27 + $0x1c] sm:$0x1] %v2592_v61  ;;  %2863 = vmatpush1.bf16.msra.mxu0 %v6373_v29 }
 0x9b6   : > { %2599 = vst [vmem:[%s5441_s27 + $0x2c] sm:$0x1] %v2598_v45  ;;  %2602 = vst [vmem:[%s5441_s27 + $0x34] sm:$0x1] %v2601_v36  ;;  %v2604_v1 = vsel %vm5602_vm2, %v2573_v11, %v2603_v8  ;;  %2864 = vmatprep.subr.bf16.mxu0 %v6381_v26  ;;  %v4591_v8 = vld [vmem:[%s5430_s3 + $0x130] sm:$0xff] }
 0x9b7   : > { %2904 = vmatpush1.bf16.msra.mxu1 %v6378_v28  ;;  %2605 = vst [vmem:[%s5441_s27 + $0x3c] sm:$0x1] %v2604_v1 }
 0x9b8   : > { %2905 = vmatprep.subr.bf16.mxu1 %v6385_v46 }
 0x9b9   : > { %2865 = vmatpush1.bf16.msra.mxu0 %v6388_v14 }
 0x9ba   : > { %2866 = vmatprep.subr.bf16.mxu0 %v6394_v12 }
 0x9bb   : > { %2906 = vmatpush1.bf16.msra.mxu1 %v6391_v15 }
 0x9bc   : > { %2907 = vmatprep.subr.bf16.mxu1 %v6397_v0 }
 0x9bd   : > { %2867 = vmatpush1.bf16.msra.mxu0 %v6400_v31 }
 0x9be   : > { %2868 = vmatprep.subr.bf16.mxu0 %v6406_v9 }
 0x9bf   : > { %2908 = vmatpush1.bf16.msra.mxu1 %v6403_v37 }
 0x9c0   : > { %2909 = vmatprep.subr.bf16.mxu1 %v6409_v40 }
 0x9c1   : > { %2869 = vmatpush1.bf16.msra.mxu0 %v6412_v42 }
 0x9c2   : > { %2870 = vmatprep.subr.bf16.mxu0 %v6418_v10 }
 0x9c3   : > { %2910 = vmatpush1.bf16.msra.mxu1 %v6415_v43 }
 0x9c4   : > { %2911 = vmatprep.subr.bf16.mxu1 %v6421_v17 }
 0x9c5   : > { %2871 = vmatpush1.bf16.msra.mxu0 %v6424_v18 }
 0x9c6   : > { %3101 = vmatprep.subr.bf16.mxu0 %v6275_v7 }
 0x9c7   : > { %2912 = vmatpush1.bf16.msra.mxu1 %v6427_v19 }
 0x9c8   : > { %3142 = vmatprep.subr.bf16.mxu1 %v6278_v56 }
 0xa7b   : > { %v2645_v34 = vpop.f32.mrb[36].mxu0  ;;  %v2686_v49 = vpop.f32.mrb[36].mxu1 }
 0xa7c   : > { %v2693_v58 = vadd.f32 %v4589_v62, %v2645_v34  ;;  %v2647_v44 = vpop.f32.mrb[37].mxu0  ;;  %v2688_v52 = vpop.f32.mrb[37].mxu1  ;;  %v2695_v61 = vadd.f32 %v4591_v8, %v2686_v49 }
 0xa7d   : > { %v2694_v55 = vadd.f32 %v4590_v3, %v2647_v44  ;;  %v2649_v51 = vpop.f32.mrb[38].mxu0  ;;  %v2690_v24 = vpop.f32.mrb[38].mxu1  ;;  %v2696_v39 = vadd.f32 %v4592_v2, %v2688_v52 }
 0xa7e   : > { %v4593_v20 = vmul.f32 -1.442695, %v2693_v58  ;;  %v2650_v22 = vpop.f32.mrb[39].mxu0  ;;  %v2691_v33 = vpop.f32.mrb[39].mxu1 }
 0xa7f   : > { %v4594_v60 = vmul.f32 -1.442695, %v2694_v55  ;;  %v4595_v11 = vmul.f32 -1.442695, %v2696_v39 }
 0xa80   : > { %4944 = vpow2.f32 %v4593_v20 }
 0xa81   : > { %4946 = vpow2.f32 %v4594_v60 }
 0xa82   : > { %4948 = vpow2.f32 %v4595_v11 }
 0xa83   : > { %4950 = vtanh.f32 %v2695_v61 }
 0xa8a   : > { %v4945_v45 = vpop.eup %4944 }
 0xa8b   : > { %v4947_v36 = vpop.eup %4946  ;;  %v2700_v1 = vadd.f32 1.0, %v4945_v45 }
 0xa8c   : > { %v2706_v62 = vadd.f32 1.0, %v4947_v36  ;;  %v4949_v3 = vpop.eup %4948 }
 0xa8d   : > { %4952 = vrcp.f32 %v2700_v1  ;;  %v4951_v34 = vpop.eup %4950  ;;  %v2713_v51 = vadd.f32 1.0, %v4949_v3 }
 0xa8e   : > { %4954 = vrcp.f32 %v2706_v62 }
 0xa8f   : > { %4956 = vrcp.f32 %v2713_v51 }
 0xa97   : > { %v4953_v58 = vpop.eup %4952 }
 0xa98   : > { %v4955_v44 = vpop.eup %4954  ;;  %v2717_v55 = vmul.f32 %v4953_v58, %v4951_v34 }
 0xa99   : > { %v2716_v24 = vmul.f32 %v4955_v44, %v6437_v38  ;;  %v4957_v49 = vpop.eup %4956 }
 0xa9b   : > { %v6522_v52 = vadd.f32 %v2717_v55, %v2716_v24 }
 0xa9d   : > { %4958 = vtanh.f32 %v6522_v52 }
 0xaa7   : > { %v4959_v20 = vpop.eup %4958 }
 0xaa8   : > { %v2720_v22 = vmul.f32 %v4959_v20, %v4957_v49  ;;  %v2827_v49 = vld [vmem:[%s5441_s27 + $0x4] sm:$0x1] }
 0xaaa   : > { %v2721_v33 = vpack.c.bf16 %v2720_v22, %v2720_v22 }
 0xaac   : > { %v2729_v60 = vrot.slane %v2721_v33, %v5586_v47  ;;  %2889 = vmatmul.mubr.bf16.vlgmr.msra.gmra.mrb[40].mxu0 %v2721_v33  ;;  %2930 = vmatmul.mubr.bf16.vlgmr.msra.gmra.mrb[40].mxu1 %v2721_v33 }
 0xaad   : > { %3102 = vmatpush1.bf16.msra.mxu0 %v6290_v50  ;;  %3143 = vmatpush1.bf16.msra.mxu1 %v6293_v23 }
 0xaae   : > { %v2730_v2 = vcombine.high %v2729_v60, %v2729_v60  ;;  %v2737_v38 = vrot.slane %v2729_v60, %v5586_v47  ;;  %3103 = vmatprep.subr.bf16.mxu0 %v6297_v25  ;;  %3144 = vmatprep.subr.bf16.mxu1 %v6300_v27 }
 0xaaf   : > { %3133 = vmatprep.mubr.bf16.mxu0 %v7180_v5  ;;  %3174 = vmatprep.mubr.bf16.mxu1 %v7180_v5 }
 0xab0   : > { %v2744_v39 = vrot.slane %v2730_v2, %v5586_v47  ;;  %v2745_v8 = vcombine.high %v2737_v38, %v2737_v38  ;;  %v2748_v11 = vunpack.i.h.s16 %v2737_v38  ;;  %v4596_v61 = vpack.i.b16 %v2737_v38, %v2737_v38 }
 0xab1   : > { %3104 = vmatpush1.bf16.msra.mxu0 %v6306_v13  ;;  %3145 = vmatpush1.bf16.msra.mxu1 %v6309_v6 }
 0xab2   : > { %v2746_v45 = vcombine.high %v2744_v39, %v2744_v39  ;;  %v2750_v36 = vunpack.i.h.s16 %v2744_v39  ;;  %v2752_v1 = vunpack.i.h.s16 %v2745_v8  ;;  %v2756_v62 = vpack.i.b16 %v2748_v11, %v2748_v11  ;;  %3105 = vmatprep.subr.bf16.mxu0 %v6318_v59  ;;  %3146 = vmatprep.subr.bf16.mxu1 %v6321_v63  ;;  %v2830_v11 = vld [vmem:[%s5441_s27 + $0xc] sm:$0x1] }
 0xab3   : > { %v4597_v3 = vpack.i.b16 %v2744_v39, %v2744_v39  ;;  %v4598_v34 = vpack.i.b16 %v2745_v8, %v2745_v8  ;;  %v2769_v58 = vrot.slane %v4596_v61, %v5594_v53  ;;  %v2833_v61 = vld [vmem:[%s5441_s27 + $0x14] sm:$0x1] }
 0xab4   : > { %v2754_v44 = vunpack.i.h.s16 %v2746_v45  ;;  %v2758_v55 = vpack.i.b16 %v2750_v36, %v2750_v36  ;;  %v2760_v51 = vpack.i.b16 %v2752_v1, %v2752_v1  ;;  %v4599_v24 = vpack.i.b16 %v2746_v45, %v2746_v45  ;;  %v2839_v45 = vld [vmem:[%s5441_s27 + $0x24] sm:$0x1] }
 0xab5   : > { %v2776_v20 = vrot.slane %v2756_v62, %v5594_v53  ;;  %v2783_v22 = vrot.slane %v4597_v3, %v5594_v53  ;;  %v2797_v33 = vrot.slane %v4598_v34, %v5594_v53  ;;  %v2828_v60 = vsel %vm5692_vm4, %v2769_v58, %v2827_v49  ;;  %3106 = vmatpush1.bf16.msra.mxu0 %v6331_v21  ;;  %v2836_v62 = vld [vmem:[%s5441_s27 + $0x1c] sm:$0x1]  ;;  %v2842_v34 = vld [vmem:[%s5441_s27 + $0x2c] sm:$0x1]  ;;  %v2845_v58 = vld [vmem:[%s5441_s27 + $0x34] sm:$0x1] }
 0xab6   : > { %v2762_v2 = vpack.i.b16 %v2754_v44, %v2754_v44  ;;  %v2790_v38 = vrot.slane %v2758_v55, %v5594_v53  ;;  %v2804_v39 = vrot.slane %v2760_v51, %v5594_v53  ;;  %v2811_v8 = vrot.slane %v4599_v24, %v5594_v53  ;;  %2829 = vst [vmem:[%s5441_s27 + $0x4] sm:$0x1] %v2828_v60  ;;  %v2848_v49 = vld [vmem:[%s5441_s27 + $0x3c] sm:$0x1] }
 0xab7   : > { %3147 = vmatpush1.bf16.msra.mxu1 %v6341_v4  ;;  %v2831_v36 = vsel %vm5692_vm4, %v2776_v20, %v2830_v11  ;;  %v2834_v1 = vsel %vm5692_vm4, %v2783_v22, %v2833_v61  ;;  %v2840_v3 = vsel %vm5692_vm4, %v2797_v33, %v2839_v45  ;;  %3107 = vmatprep.subr.bf16.mxu0 %v6353_v30  ;;  %v4601_v22 = vld [vmem:[%s5430_s3 + $0x148] sm:$0xff] }
 0xab8   : > { %3148 = vmatprep.subr.bf16.mxu1 %v6356_v41  ;;  %v2818_v44 = vrot.slane %v2762_v2, %v5594_v53  ;;  %2832 = vst [vmem:[%s5441_s27 + $0xc] sm:$0x1] %v2831_v36  ;;  %2835 = vst [vmem:[%s5441_s27 + $0x14] sm:$0x1] %v2834_v1  ;;  %v2837_v55 = vsel %vm5692_vm4, %v2790_v38, %v2836_v62  ;;  %v2843_v51 = vsel %vm5692_vm4, %v2804_v39, %v2842_v34 }
 0xab9   : > { %2841 = vst [vmem:[%s5441_s27 + $0x24] sm:$0x1] %v2840_v3  ;;  %v2846_v24 = vsel %vm5692_vm4, %v2811_v8, %v2845_v58  ;;  %2838 = vst [vmem:[%s5441_s27 + $0x1c] sm:$0x1] %v2837_v55  ;;  %3108 = vmatpush1.bf16.msra.mxu0 %v6373_v29  ;;  %v4602_v3 = vld [vmem:[%s5430_s3 + $0x150] sm:$0xff] }
 0xaba   : > { %2844 = vst [vmem:[%s5441_s27 + $0x2c] sm:$0x1] %v2843_v51  ;;  %2847 = vst [vmem:[%s5441_s27 + $0x34] sm:$0x1] %v2846_v24  ;;  %v2849_v20 = vsel %vm5692_vm4, %v2818_v44, %v2848_v49  ;;  %3109 = vmatprep.subr.bf16.mxu0 %v6381_v26 }
 0xabb   : > { %3149 = vmatpush1.bf16.msra.mxu1 %v6378_v28  ;;  %2850 = vst [vmem:[%s5441_s27 + $0x3c] sm:$0x1] %v2849_v20 }
 0xabc   : > { %3150 = vmatprep.subr.bf16.mxu1 %v6385_v46 }
 0xabd   : > { %3110 = vmatpush1.bf16.msra.mxu0 %v6388_v14 }
 0xabe   : > { %3111 = vmatprep.subr.bf16.mxu0 %v6394_v12 }
 0xabf   : > { %3151 = vmatpush1.bf16.msra.mxu1 %v6391_v15 }
 0xac0   : > { %3152 = vmatprep.subr.bf16.mxu1 %v6397_v0 }
 0xac1   : > { %3112 = vmatpush1.bf16.msra.mxu0 %v6400_v31 }
 0xac2   : > { %3113 = vmatprep.subr.bf16.mxu0 %v6406_v9 }
 0xac3   : > { %3153 = vmatpush1.bf16.msra.mxu1 %v6403_v37 }
 0xac4   : > { %3154 = vmatprep.subr.bf16.mxu1 %v6409_v40 }
 0xac5   : > { %3114 = vmatpush1.bf16.msra.mxu0 %v6412_v42 }
 0xac6   : > { %3115 = vmatprep.subr.bf16.mxu0 %v6418_v10 }
 0xac7   : > { %3155 = vmatpush1.bf16.msra.mxu1 %v6415_v43 }
 0xac8   : > { %3156 = vmatprep.subr.bf16.mxu1 %v6421_v17 }
 0xac9   : > { %3116 = vmatpush1.bf16.msra.mxu0 %v6424_v18 }
 0xaca   : > { %3346 = vmatprep.subr.bf16.mxu0 %v6275_v7  ;;  %v4603_v7 = vld [vmem:[%s5430_s3 + $0x158] sm:$0xff] }
 0xacb   : > { %3157 = vmatpush1.bf16.msra.mxu1 %v6427_v19 }
 0xacc   : > { %3387 = vmatprep.subr.bf16.mxu1 %v6278_v56 }
 0xb7f   : > { %v2890_v33 = vpop.f32.mrb[40].mxu0  ;;  %v2931_v60 = vpop.f32.mrb[40].mxu1 }
 0xb80   : > { %v2938_v2 = vadd.f32 %v4600_v57, %v2890_v33  ;;  %v2892_v38 = vpop.f32.mrb[41].mxu0  ;;  %v2933_v39 = vpop.f32.mrb[41].mxu1  ;;  %v2940_v58 = vadd.f32 %v4602_v3, %v2931_v60  ;;  %v3072_v3 = vld [vmem:[%s5441_s27 + $0x4] sm:$0x2] }
 0xb81   : > { %v2939_v8 = vadd.f32 %v4601_v22, %v2892_v38  ;;  %v2894_v11 = vpop.f32.mrb[42].mxu0  ;;  %v2935_v61 = vpop.f32.mrb[42].mxu1  ;;  %v2941_v56 = vadd.f32 %v4603_v7, %v2933_v39 }
 0xb82   : > { %v4604_v45 = vmul.f32 -1.442695, %v2938_v2  ;;  %v2895_v36 = vpop.f32.mrb[43].mxu0  ;;  %v2936_v1 = vpop.f32.mrb[43].mxu1 }
 0xb83   : > { %v4605_v62 = vmul.f32 -1.442695, %v2939_v8  ;;  %v4606_v34 = vmul.f32 -1.442695, %v2941_v56 }
 0xb84   : > { %4960 = vpow2.f32 %v4604_v45 }
 0xb85   : > { %4962 = vpow2.f32 %v4605_v62 }
 0xb86   : > { %4964 = vpow2.f32 %v4606_v34 }
 0xb87   : > { %4966 = vtanh.f32 %v2940_v58 }
 0xb8e   : > { %v4961_v44 = vpop.eup %4960 }
 0xb8f   : > { %v4963_v55 = vpop.eup %4962  ;;  %v2945_v51 = vadd.f32 1.0, %v4961_v44 }
 0xb90   : > { %v2951_v24 = vadd.f32 1.0, %v4963_v55  ;;  %v4965_v49 = vpop.eup %4964 }
 0xb91   : > { %4968 = vrcp.f32 %v2945_v51  ;;  %v4967_v20 = vpop.eup %4966  ;;  %v2958_v2 = vadd.f32 1.0, %v4965_v49  ;;  %v3078_v49 = vld [vmem:[%s5441_s27 + $0x14] sm:$0x2] }
 0xb92   : > { %4970 = vrcp.f32 %v2951_v24  ;;  %v3075_v24 = vld [vmem:[%s5441_s27 + $0xc] sm:$0x2] }
 0xb93   : > { %4972 = vrcp.f32 %v2958_v2  ;;  %v3087_v2 = vld [vmem:[%s5441_s27 + $0x2c] sm:$0x2] }
 0xb9b   : > { %v4969_v57 = vpop.eup %4968 }
 0xb9c   : > { %v4971_v22 = vpop.eup %4970  ;;  %v2962_v33 = vmul.f32 %v4969_v57, %v4967_v20  ;;  %v3084_v20 = vld [vmem:[%s5441_s27 + $0x24] sm:$0x2] }
 0xb9d   : > { %v2961_v38 = vmul.f32 %v4971_v22, %v6522_v52  ;;  %v4973_v60 = vpop.eup %4972 }
 0xb9f   : > { %v6607_v39 = vadd.f32 %v2962_v33, %v2961_v38  ;;  %v3081_v33 = vld [vmem:[%s5441_s27 + $0x1c] sm:$0x2]  ;;  %v3090_v38 = vld [vmem:[%s5441_s27 + $0x34] sm:$0x2] }
 0xba1   : > { %4974 = vtanh.f32 %v6607_v39 }
 0xbab   : > { %v4975_v8 = vpop.eup %4974 }
 0xbac   : > { %v2965_v11 = vmul.f32 %v4975_v8, %v4973_v60 }
 0xbae   : > { %v2966_v61 = vpack.c.bf16 %v2965_v11, %v2965_v11 }
 0xbb0   : > { %v2974_v45 = vrot.slane %v2966_v61, %v5586_v47  ;;  %3134 = vmatmul.mubr.bf16.vlgmr.msra.gmra.mrb[44].mxu0 %v2966_v61  ;;  %3175 = vmatmul.mubr.bf16.vlgmr.msra.gmra.mrb[44].mxu1 %v2966_v61 }
 0xbb1   : > { %3347 = vmatpush1.bf16.msra.mxu0 %v6290_v50  ;;  %3388 = vmatpush1.bf16.msra.mxu1 %v6293_v23 }
 0xbb2   : > { %v2975_v36 = vcombine.high %v2974_v45, %v2974_v45  ;;  %v2982_v52 = vrot.slane %v2974_v45, %v5586_v47  ;;  %3348 = vmatprep.subr.bf16.mxu0 %v6297_v25  ;;  %3389 = vmatprep.subr.bf16.mxu1 %v6300_v27 }
 0xbb3   : > { %3378 = vmatprep.mubr.bf16.mxu0 %v7180_v5  ;;  %3419 = vmatprep.mubr.bf16.mxu1 %v7180_v5 }
 0xbb4   : > { %v2989_v1 = vrot.slane %v2975_v36, %v5586_v47  ;;  %v2990_v62 = vcombine.high %v2982_v52, %v2982_v52  ;;  %v2993_v7 = vunpack.i.h.s16 %v2982_v52  ;;  %v4607_v56 = vpack.i.b16 %v2982_v52, %v2982_v52  ;;  %v3093_v52 = vld [vmem:[%s5441_s27 + $0x3c] sm:$0x2] }
 0xbb5   : > { %3349 = vmatpush1.bf16.msra.mxu0 %v6306_v13  ;;  %3390 = vmatpush1.bf16.msra.mxu1 %v6309_v6 }
 0xbb6   : > { %v2991_v50 = vcombine.high %v2989_v1, %v2989_v1  ;;  %v2995_v23 = vunpack.i.h.s16 %v2989_v1  ;;  %v2997_v25 = vunpack.i.h.s16 %v2990_v62  ;;  %v3001_v27 = vpack.i.b16 %v2993_v7, %v2993_v7  ;;  %3350 = vmatprep.subr.bf16.mxu0 %v6318_v59  ;;  %3391 = vmatprep.subr.bf16.mxu1 %v6321_v63 }
 0xbb7   : > { %v4608_v34 = vpack.i.b16 %v2989_v1, %v2989_v1  ;;  %v4609_v58 = vpack.i.b16 %v2990_v62, %v2990_v62  ;;  %v3014_v13 = vrot.slane %v4607_v56, %v5594_v53 }
 0xbb8   : > { %v2999_v44 = vunpack.i.h.s16 %v2991_v50  ;;  %v3003_v6 = vpack.i.b16 %v2995_v23, %v2995_v23  ;;  %v3005_v55 = vpack.i.b16 %v2997_v25, %v2997_v25  ;;  %v4610_v51 = vpack.i.b16 %v2991_v50, %v2991_v50 }
 0xbb9   : > { %v3021_v57 = vrot.slane %v3001_v27, %v5594_v53  ;;  %v3028_v59 = vrot.slane %v4608_v34, %v5594_v53  ;;  %v3042_v63 = vrot.slane %v4609_v58, %v5594_v53  ;;  %v3073_v22 = vsel %vm5782_vm7, %v3014_v13, %v3072_v3  ;;  %3351 = vmatpush1.bf16.msra.mxu0 %v6331_v21 }
 0xbba   : > { %v3007_v60 = vpack.i.b16 %v2999_v44, %v2999_v44  ;;  %v3035_v8 = vrot.slane %v3003_v6, %v5594_v53  ;;  %v3049_v11 = vrot.slane %v3005_v55, %v5594_v53  ;;  %v3056_v61 = vrot.slane %v4610_v51, %v5594_v53  ;;  %3074 = vst [vmem:[%s5441_s27 + $0x4] sm:$0x2] %v3073_v22  ;;  %v6703_v22 = vld [vmem:[#allocation7 + $0x8] ss:$16 sps:$4 sm:$0xff]  }
 0xbbb   : > { %3392 = vmatpush1.bf16.msra.mxu1 %v6341_v4  ;;  %v3076_v45 = vsel %vm5782_vm7, %v3021_v57, %v3075_v24  ;;  %v3079_v21 = vsel %vm5782_vm7, %v3028_v59, %v3078_v49  ;;  %v3085_v36 = vsel %vm5782_vm7, %v3042_v63, %v3084_v20  ;;  %3352 = vmatprep.subr.bf16.mxu0 %v6353_v30  ;;  %v6700_v63 = vld [vmem:[#allocation7] ss:$16 sps:$4 sm:$0xff]  }
 0xbbc   : > { %3393 = vmatprep.subr.bf16.mxu1 %v6356_v41  ;;  %v3063_v1 = vrot.slane %v3007_v60, %v5594_v53  ;;  %3077 = vst [vmem:[%s5441_s27 + $0xc] sm:$0x2] %v3076_v45  ;;  %3080 = vst [vmem:[%s5441_s27 + $0x14] sm:$0x2] %v3079_v21  ;;  %v3082_v4 = vsel %vm5782_vm7, %v3035_v8, %v3081_v33  ;;  %v3088_v62 = vsel %vm5782_vm7, %v3049_v11, %v3087_v2  ;;  %v6688_v41 = vld [vmem:[#allocation7 + $0xc] ss:$16 sps:$4 sm:$0xff]  }
 0xbbd   : > { %3086 = vst [vmem:[%s5441_s27 + $0x24] sm:$0x2] %v3085_v36  ;;  %v3091_v7 = vsel %vm5782_vm7, %v3056_v61, %v3090_v38  ;;  %3083 = vst [vmem:[%s5441_s27 + $0x1c] sm:$0x2] %v3082_v4  ;;  %3353 = vmatpush1.bf16.msra.mxu0 %v6373_v29  ;;  %v4611_v29 = vld [vmem:[%s5430_s3 + $0x160] sm:$0xff] }
 0xbbe   : > { %3089 = vst [vmem:[%s5441_s27 + $0x2c] sm:$0x2] %v3088_v62  ;;  %3092 = vst [vmem:[%s5441_s27 + $0x34] sm:$0x2] %v3091_v7  ;;  %v3094_v30 = vsel %vm5782_vm7, %v3063_v1, %v3093_v52  ;;  %3354 = vmatprep.subr.bf16.mxu0 %v6381_v26  ;;  %v6707_v2 = vld [vmem:[#allocation7 + $0x24] ss:$16 sps:$4 sm:$0xff]  }
 0xbbf   : > { %3394 = vmatpush1.bf16.msra.mxu1 %v6378_v28  ;;  %3095 = vst [vmem:[%s5441_s27 + $0x3c] sm:$0x2] %v3094_v30  ;;  %v4612_v28 = vld [vmem:[%s5430_s3 + $0x168] sm:$0xff]  ;;  %v6716_v45 = vld [vmem:[#allocation7 + $0x20] ss:$16 sps:$4 sm:$0xff]  }
 0xbc0   : > { %3395 = vmatprep.subr.bf16.mxu1 %v6385_v46  ;;  %v6710_v38 = vld [vmem:[#allocation7 + $0x2c] ss:$16 sps:$4 sm:$0xff]   ;;  %v6719_v21 = vld [vmem:[#allocation7 + $0x28] ss:$16 sps:$4 sm:$0xff]   ;;  %v6722_v62 = vld [vmem:[#allocation7 + $0x44] ss:$16 sps:$4 sm:$0xff]  }
 0xbc1   : > { %3355 = vmatpush1.bf16.msra.mxu0 %v6388_v14  ;;  %v6725_v7 = vld [vmem:[#allocation7 + $0x4c] ss:$16 sps:$4 sm:$0xff]  }
 0xbc2   : > { %3356 = vmatprep.subr.bf16.mxu0 %v6394_v12 }
 0xbc3   : > { %3396 = vmatpush1.bf16.msra.mxu1 %v6391_v15 }
 0xbc4   : > { %3397 = vmatprep.subr.bf16.mxu1 %v6397_v0 }
 0xbc5   : > { %3357 = vmatpush1.bf16.msra.mxu0 %v6400_v31 }
 0xbc6   : > { %3358 = vmatprep.subr.bf16.mxu0 %v6406_v9 }
 0xbc7   : > { %3398 = vmatpush1.bf16.msra.mxu1 %v6403_v37 }
 0xbc8   : > { %3399 = vmatprep.subr.bf16.mxu1 %v6409_v40 }
 0xbc9   : > { %3359 = vmatpush1.bf16.msra.mxu0 %v6412_v42 }
 0xbca   : > { %3360 = vmatprep.subr.bf16.mxu0 %v6418_v10  ;;  %v4614_v10 = vld [vmem:[%s5430_s3 + $0x178] sm:$0xff] }
 0xbcb   : > { %3400 = vmatpush1.bf16.msra.mxu1 %v6415_v43 }
 0xbcc   : > { %3401 = vmatprep.subr.bf16.mxu1 %v6421_v17 }
 0xbcd   : > { %3361 = vmatpush1.bf16.msra.mxu0 %v6424_v18  ;;  %v4613_v18 = vld [vmem:[%s5430_s3 + $0x170] sm:$0xff] }
 0xbce   : > { %3591 = vmatprep.subr.bf16.mxu0 %v6685_v48 }
 0xbcf   : > { %3402 = vmatpush1.bf16.msra.mxu1 %v6427_v19 }
 0xbd0   : > { %3632 = vmatprep.subr.bf16.mxu1 %v6688_v41 }
 0xc83   : > { %v3135_v26 = vpop.f32.mrb[44].mxu0  ;;  %v3176_v46 = vpop.f32.mrb[44].mxu1 }
 0xc84   : > { %v3183_v14 = vadd.f32 %v4611_v29, %v3135_v26  ;;  %v3137_v15 = vpop.f32.mrb[45].mxu0  ;;  %v3178_v12 = vpop.f32.mrb[45].mxu1  ;;  %v3185_v56 = vadd.f32 %v4613_v18, %v3176_v46  ;;  %v3320_v18 = vld [vmem:[%s5441_s27 + $0xc] sm:$0x2] }
 0xc85   : > { %v3184_v0 = vadd.f32 %v4612_v28, %v3137_v15  ;;  %v3139_v31 = vpop.f32.mrb[46].mxu0  ;;  %v3180_v37 = vpop.f32.mrb[46].mxu1  ;;  %v3186_v17 = vadd.f32 %v4614_v10, %v3178_v12  ;;  %v3317_v12 = vld [vmem:[%s5441_s27 + $0x4] sm:$0x2] }
 0xc86   : > { %v4615_v9 = vmul.f32 -1.442695, %v3183_v14  ;;  %v3140_v40 = vpop.f32.mrb[47].mxu0  ;;  %v3181_v42 = vpop.f32.mrb[47].mxu1 }
 0xc87   : > { %v4616_v43 = vmul.f32 -1.442695, %v3184_v0  ;;  %v4617_v19 = vmul.f32 -1.442695, %v3186_v17  ;;  %v6735_v40 = vld [vmem:[#allocation7 + $0x40] ss:$16 sps:$4 sm:$0xff]  }
 0xc88   : > { %4976 = vpow2.f32 %v4615_v9 }
 0xc89   : > { %4978 = vpow2.f32 %v4616_v43 }
 0xc8a   : > { %4980 = vpow2.f32 %v4617_v19  ;;  %v3323_v19 = vld [vmem:[%s5441_s27 + $0x14] sm:$0x2] }
 0xc8b   : > { %4982 = vtanh.f32 %v3185_v56  ;;  %v3329_v56 = vld [vmem:[%s5441_s27 + $0x24] sm:$0x2] }
 0xc92   : > { %v4977_v50 = vpop.eup %4976 }
 0xc93   : > { %v4979_v23 = vpop.eup %4978  ;;  %v3190_v25 = vadd.f32 1.0, %v4977_v50  ;;  %v6745_v50 = vld [vmem:[#allocation7 + $0x48] ss:$16 sps:$4 sm:$0xff]  }
 0xc94   : > { %v3196_v27 = vadd.f32 1.0, %v4979_v23  ;;  %v4981_v3 = vpop.eup %4980 }
 0xc95   : > { %4984 = vrcp.f32 %v3190_v25  ;;  %v4983_v34 = vpop.eup %4982  ;;  %v3203_v6 = vadd.f32 1.0, %v4981_v3 }
 0xc96   : > { %4986 = vrcp.f32 %v3196_v27  ;;  %v3326_v27 = vld [vmem:[%s5441_s27 + $0x1c] sm:$0x2] }
 0xc97   : > { %4988 = vrcp.f32 %v3203_v6 }
 0xc9f   : > { %v4985_v58 = vpop.eup %4984 }
 0xca0   : > { %v4987_v13 = vpop.eup %4986  ;;  %v3207_v44 = vmul.f32 %v4985_v58, %v4983_v34  ;;  %v3332_v34 = vld [vmem:[%s5441_s27 + $0x2c] sm:$0x2]  ;;  %v3335_v58 = vld [vmem:[%s5441_s27 + $0x34] sm:$0x2] }
 0xca1   : > { %v3206_v55 = vmul.f32 %v4987_v13, %v6607_v39  ;;  %v4989_v24 = vpop.eup %4988  ;;  %v6757_v13 = vld [vmem:[#allocation7 + $0x64] ss:$16 sps:$4 sm:$0xff]  }
 0xca3   : > { %v6696_v51 = vadd.f32 %v3207_v44, %v3206_v55  ;;  %v6760_v44 = vld [vmem:[#allocation7 + $0x6c] ss:$16 sps:$4 sm:$0xff]  }
 0xca5   : > { %4990 = vtanh.f32 %v6696_v51 }
 0xcaf   : > { %v4991_v49 = vpop.eup %4990 }
 0xcb0   : > { %v3210_v20 = vmul.f32 %v4991_v49, %v4989_v24 }
 0xcb2   : > { %v3211_v57 = vpack.c.bf16 %v3210_v20, %v3210_v20  ;;  %v3338_v20 = vld [vmem:[%s5441_s27 + $0x3c] sm:$0x2] }
 0xcb4   : > { %v3219_v59 = vrot.slane %v3211_v57, %v5586_v47  ;;  %3379 = vmatmul.mubr.bf16.vlgmr.msra.gmra.mrb[48].mxu0 %v3211_v57  ;;  %3420 = vmatmul.mubr.bf16.vlgmr.msra.gmra.mrb[48].mxu1 %v3211_v57  ;;  %v6777_v57 = vld [vmem:[#allocation7 + $0x60] ss:$16 sps:$4 sm:$0xff]  }
 0xcb5   : > { %3592 = vmatpush1.bf16.msra.mxu0 %v6700_v63  ;;  %3633 = vmatpush1.bf16.msra.mxu1 %v6703_v22 }
 0xcb6   : > { %v3220_v39 = vcombine.high %v3219_v59, %v3219_v59  ;;  %v3227_v33 = vrot.slane %v3219_v59, %v5586_v47  ;;  %3593 = vmatprep.subr.bf16.mxu0 %v6707_v2  ;;  %3634 = vmatprep.subr.bf16.mxu1 %v6710_v38 }
 0xcb7   : > { %3623 = vmatprep.mubr.bf16.mxu0 %v7180_v5  ;;  %3664 = vmatprep.mubr.bf16.mxu1 %v7180_v5 }
 0xcb8   : > { %v3234_v60 = vrot.slane %v3220_v39, %v5586_v47  ;;  %v3235_v8 = vcombine.high %v3227_v33, %v3227_v33  ;;  %v3238_v11 = vunpack.i.h.s16 %v3227_v33  ;;  %v4618_v61 = vpack.i.b16 %v3227_v33, %v3227_v33  ;;  %v6782_v39 = vld [vmem:[#allocation7 + $0x68] ss:$16 sps:$4 sm:$0xff]   ;;  %v6785_v33 = vld [vmem:[#allocation7 + $0x84] ss:$16 sps:$4 sm:$0xff]  }
 0xcb9   : > { %3594 = vmatpush1.bf16.msra.mxu0 %v6716_v45  ;;  %3635 = vmatpush1.bf16.msra.mxu1 %v6719_v21 }
 0xcba   : > { %v3236_v36 = vcombine.high %v3234_v60, %v3234_v60  ;;  %v3240_v52 = vunpack.i.h.s16 %v3234_v60  ;;  %v3242_v1 = vunpack.i.h.s16 %v3235_v8  ;;  %v3246_v4 = vpack.i.b16 %v3238_v11, %v3238_v11  ;;  %3595 = vmatprep.subr.bf16.mxu0 %v6722_v62  ;;  %3636 = vmatprep.subr.bf16.mxu1 %v6725_v7  ;;  %v6795_v11 = vld [vmem:[#allocation7 + $0x88] ss:$16 sps:$4 sm:$0xff]  }
 0xcbb   : > { %v4619_v30 = vpack.i.b16 %v3234_v60, %v3234_v60  ;;  %v4620_v29 = vpack.i.b16 %v3235_v8, %v3235_v8  ;;  %v3259_v28 = vrot.slane %v4618_v61, %v5594_v53  ;;  %v6789_v60 = vld [vmem:[#allocation7 + $0x8c] ss:$16 sps:$4 sm:$0xff]   ;;  %v6792_v8 = vld [vmem:[#allocation7 + $0x80] ss:$16 sps:$4 sm:$0xff]  }
 0xcbc   : > { %v3244_v26 = vunpack.i.h.s16 %v3236_v36  ;;  %v3248_v46 = vpack.i.b16 %v3240_v52, %v3240_v52  ;;  %v3250_v14 = vpack.i.b16 %v3242_v1, %v3242_v1  ;;  %v4621_v15 = vpack.i.b16 %v3236_v36, %v3236_v36  ;;  %v6801_v61 = vld [vmem:[#allocation7 + $0xac] ss:$16 sps:$4 sm:$0xff]   ;;  %v6804_v36 = vld [vmem:[#allocation7 + $0xa0] ss:$16 sps:$4 sm:$0xff]   ;;  %v6807_v52 = vld [vmem:[#allocation7 + $0xa8] ss:$16 sps:$4 sm:$0xff]  }
 0xcbd   : > { %v3266_v0 = vrot.slane %v3246_v4, %v5594_v53  ;;  %v3273_v31 = vrot.slane %v4619_v30, %v5594_v53  ;;  %v3287_v37 = vrot.slane %v4620_v29, %v5594_v53  ;;  %v3318_v9 = vsel %vm5889_vm9, %v3259_v28, %v3317_v12  ;;  %3596 = vmatpush1.bf16.msra.mxu0 %v6735_v40  ;;  %v6810_v1 = vld [vmem:[#allocation7 + $0xc4] ss:$16 sps:$4 sm:$0xff]   ;;  %v6813_v4 = vld [vmem:[#allocation7 + $0xcc] ss:$16 sps:$4 sm:$0xff]   ;;  %v6816_v30 = vld [vmem:[#allocation7 + $0xc0] ss:$16 sps:$4 sm:$0xff]  }
 0xcbe   : > { %v3252_v42 = vpack.i.b16 %v3244_v26, %v3244_v26  ;;  %v3280_v43 = vrot.slane %v3248_v46, %v5594_v53  ;;  %v3294_v10 = vrot.slane %v3250_v14, %v5594_v53  ;;  %v3301_v17 = vrot.slane %v4621_v15, %v5594_v53  ;;  %3319 = vst [vmem:[%s5441_s27 + $0x4] sm:$0x2] %v3318_v9  ;;  %v6819_v29 = vld [vmem:[#allocation7 + $0xc8] ss:$16 sps:$4 sm:$0xff]   ;;  %v6822_v28 = vld [vmem:[#allocation7 + $0xe4] ss:$16 sps:$4 sm:$0xff]  }
 0xcbf   : > { %3637 = vmatpush1.bf16.msra.mxu1 %v6745_v50  ;;  %v3321_v23 = vsel %vm5889_vm9, %v3266_v0, %v3320_v18  ;;  %v3324_v25 = vsel %vm5889_vm9, %v3273_v31, %v3323_v19  ;;  %v3330_v3 = vsel %vm5889_vm9, %v3287_v37, %v3329_v56  ;;  %3597 = vmatprep.subr.bf16.mxu0 %v6757_v13  ;;  %v6825_v26 = vld [vmem:[#allocation7 + $0xec] ss:$16 sps:$4 sm:$0xff]   ;;  %v6828_v46 = vld [vmem:[#allocation7 + $0xe0] ss:$16 sps:$4 sm:$0xff]   ;;  %v6831_v14 = vld [vmem:[#allocation7 + $0xe8] ss:$16 sps:$4 sm:$0xff]  }
 0xcc0   : > { %3638 = vmatprep.subr.bf16.mxu1 %v6760_v44  ;;  %v3308_v6 = vrot.slane %v3252_v42, %v5594_v53  ;;  %3322 = vst [vmem:[%s5441_s27 + $0xc] sm:$0x2] %v3321_v23  ;;  %3325 = vst [vmem:[%s5441_s27 + $0x14] sm:$0x2] %v3324_v25  ;;  %v3327_v55 = vsel %vm5889_vm9, %v3280_v43, %v3326_v27  ;;  %v3333_v24 = vsel %vm5889_vm9, %v3294_v10, %v3332_v34  ;;  %v4622_v15 = vld [vmem:[%s5430_s3 + $0x180] sm:$0xff]  ;;  %v4623_v12 = vld [vmem:[%s5430_s3 + $0x188] sm:$0xff] }
 0xcc1   : > { %3331 = vst [vmem:[%s5441_s27 + $0x24] sm:$0x2] %v3330_v3  ;;  %v3336_v49 = vsel %vm5889_vm9, %v3301_v17, %v3335_v58  ;;  %3328 = vst [vmem:[%s5441_s27 + $0x1c] sm:$0x2] %v3327_v55  ;;  %3598 = vmatpush1.bf16.msra.mxu0 %v6777_v57  ;;  %v4625_v25 = vld [vmem:[%s5430_s3 + $0x198] sm:$0xff]  ;;  %v4624_v3 = vld [vmem:[%s5430_s3 + $0x190] sm:$0xff] }
 0xcc2   : > { %3334 = vst [vmem:[%s5441_s27 + $0x2c] sm:$0x2] %v3333_v24  ;;  %3337 = vst [vmem:[%s5441_s27 + $0x34] sm:$0x2] %v3336_v49  ;;  %v3339_v59 = vsel %vm5889_vm9, %v3308_v6, %v3338_v20  ;;  %3599 = vmatprep.subr.bf16.mxu0 %v6785_v33 }
 0xcc3   : > { %3639 = vmatpush1.bf16.msra.mxu1 %v6782_v39  ;;  %3340 = vst [vmem:[%s5441_s27 + $0x3c] sm:$0x2] %v3339_v59 }
 0xcc4   : > { %3640 = vmatprep.subr.bf16.mxu1 %v6789_v60 }
 0xcc5   : > { %3600 = vmatpush1.bf16.msra.mxu0 %v6792_v8 }
 0xcc6   : > { %3601 = vmatprep.subr.bf16.mxu0 %v6798_v16 }
 0xcc7   : > { %3641 = vmatpush1.bf16.msra.mxu1 %v6795_v11 }
 0xcc8   : > { %3642 = vmatprep.subr.bf16.mxu1 %v6801_v61 }
 0xcc9   : > { %3602 = vmatpush1.bf16.msra.mxu0 %v6804_v36 }
 0xcca   : > { %3603 = vmatprep.subr.bf16.mxu0 %v6810_v1 }
 0xccb   : > { %3643 = vmatpush1.bf16.msra.mxu1 %v6807_v52 }
 0xccc   : > { %3644 = vmatprep.subr.bf16.mxu1 %v6813_v4 }
 0xccd   : > { %3604 = vmatpush1.bf16.msra.mxu0 %v6816_v30 }
 0xcce   : > { %3605 = vmatprep.subr.bf16.mxu0 %v6822_v28 }
 0xccf   : > { %3645 = vmatpush1.bf16.msra.mxu1 %v6819_v29 }
 0xcd0   : > { %3646 = vmatprep.subr.bf16.mxu1 %v6825_v26 }
 0xcd1   : > { %3606 = vmatpush1.bf16.msra.mxu0 %v6828_v46 }
 0xcd2   : > { %3836 = vmatprep.subr.bf16.mxu0 %v6685_v48 }
 0xcd3   : > { %3647 = vmatpush1.bf16.msra.mxu1 %v6831_v14 }
 0xcd4   : > { %3877 = vmatprep.subr.bf16.mxu1 %v6688_v41 }
 0xd87   : > { %v3380_v0 = vpop.f32.mrb[48].mxu0  ;;  %v3421_v31 = vpop.f32.mrb[48].mxu1 }
 0xd88   : > { %v3428_v37 = vadd.f32 %v4622_v15, %v3380_v0  ;;  %v3382_v9 = vpop.f32.mrb[49].mxu0  ;;  %v3423_v42 = vpop.f32.mrb[49].mxu1  ;;  %v3430_v58 = vadd.f32 %v4624_v3, %v3421_v31 }
 0xd89   : > { %v3429_v43 = vadd.f32 %v4623_v12, %v3382_v9  ;;  %v3384_v10 = vpop.f32.mrb[50].mxu0  ;;  %v3425_v17 = vpop.f32.mrb[50].mxu1  ;;  %v3431_v27 = vadd.f32 %v4625_v25, %v3423_v42 }
 0xd8a   : > { %v4626_v18 = vmul.f32 -1.442695, %v3428_v37  ;;  %v3385_v19 = vpop.f32.mrb[51].mxu0  ;;  %v3426_v56 = vpop.f32.mrb[51].mxu1 }
 0xd8b   : > { %v4627_v23 = vmul.f32 -1.442695, %v3429_v43  ;;  %v4628_v34 = vmul.f32 -1.442695, %v3431_v27 }
 0xd8c   : > { %4992 = vpow2.f32 %v4626_v18 }
 0xd8d   : > { %4994 = vpow2.f32 %v4627_v23 }
 0xd8e   : > { %4996 = vpow2.f32 %v4628_v34 }
 0xd8f   : > { %4998 = vtanh.f32 %v3430_v58 }
 0xd96   : > { %v4993_v6 = vpop.eup %4992 }
 0xd97   : > { %v4995_v55 = vpop.eup %4994  ;;  %v3435_v24 = vadd.f32 1.0, %v4993_v6 }
 0xd98   : > { %v3441_v49 = vadd.f32 1.0, %v4995_v55  ;;  %v4997_v20 = vpop.eup %4996  ;;  %v3562_v55 = vld [vmem:[%s5441_s27 + $0x4] sm:$0x4] }
 0xd99   : > { %5000 = vrcp.f32 %v3435_v24  ;;  %v4999_v59 = vpop.eup %4998  ;;  %v3448_v37 = vadd.f32 1.0, %v4997_v20 }
 0xd9a   : > { %5002 = vrcp.f32 %v3441_v49 }
 0xd9b   : > { %5004 = vrcp.f32 %v3448_v37  ;;  %v3565_v37 = vld [vmem:[%s5441_s27 + $0xc] sm:$0x4] }
 0xda3   : > { %v5001_v15 = vpop.eup %5000 }
 0xda4   : > { %v5003_v12 = vpop.eup %5002  ;;  %v3452_v0 = vmul.f32 %v5001_v15, %v4999_v59 }
 0xda5   : > { %v3451_v9 = vmul.f32 %v5003_v12, %v6696_v51  ;;  %v5005_v31 = vpop.eup %5004 }
 0xda7   : > { %v6841_v42 = vadd.f32 %v3452_v0, %v3451_v9  ;;  %v3568_v9 = vld [vmem:[%s5441_s27 + $0x14] sm:$0x4] }
 0xda9   : > { %5006 = vtanh.f32 %v6841_v42 }
 0xdb3   : > { %v5007_v43 = vpop.eup %5006 }
 0xdb4   : > { %v3455_v10 = vmul.f32 %v5007_v43, %v5005_v31  ;;  %v3574_v31 = vld [vmem:[%s5441_s27 + $0x24] sm:$0x4] }
 0xdb6   : > { %v3456_v17 = vpack.c.bf16 %v3455_v10, %v3455_v10 }
 0xdb8   : > { %v3464_v18 = vrot.slane %v3456_v17, %v5586_v47  ;;  %3624 = vmatmul.mubr.bf16.vlgmr.msra.gmra.mrb[52].mxu0 %v3456_v17  ;;  %3665 = vmatmul.mubr.bf16.vlgmr.msra.gmra.mrb[52].mxu1 %v3456_v17 }
 0xdb9   : > { %3837 = vmatpush1.bf16.msra.mxu0 %v6700_v63  ;;  %3878 = vmatpush1.bf16.msra.mxu1 %v6703_v22 }
 0xdba   : > { %v3465_v19 = vcombine.high %v3464_v18, %v3464_v18  ;;  %v3472_v51 = vrot.slane %v3464_v18, %v5586_v47  ;;  %3838 = vmatprep.subr.bf16.mxu0 %v6707_v2  ;;  %3879 = vmatprep.subr.bf16.mxu1 %v6710_v38 }
 0xdbb   : > { %3868 = vmatprep.mubr.bf16.mxu0 %v7180_v5  ;;  %3909 = vmatprep.mubr.bf16.mxu1 %v7180_v5 }
 0xdbc   : > { %v3479_v56 = vrot.slane %v3465_v19, %v5586_v47  ;;  %v3480_v23 = vcombine.high %v3472_v51, %v3472_v51  ;;  %v3483_v25 = vunpack.i.h.s16 %v3472_v51  ;;  %v4629_v27 = vpack.i.b16 %v3472_v51, %v3472_v51  ;;  %v3571_v19 = vld [vmem:[%s5441_s27 + $0x1c] sm:$0x4]  ;;  %v3577_v51 = vld [vmem:[%s5441_s27 + $0x2c] sm:$0x4] }
 0xdbd   : > { %3839 = vmatpush1.bf16.msra.mxu0 %v6716_v45  ;;  %3880 = vmatpush1.bf16.msra.mxu1 %v6719_v21 }
 0xdbe   : > { %v3481_v3 = vcombine.high %v3479_v56, %v3479_v56  ;;  %v3485_v34 = vunpack.i.h.s16 %v3479_v56  ;;  %v3487_v58 = vunpack.i.h.s16 %v3480_v23  ;;  %v3491_v6 = vpack.i.b16 %v3483_v25, %v3483_v25  ;;  %3840 = vmatprep.subr.bf16.mxu0 %v6722_v62  ;;  %3881 = vmatprep.subr.bf16.mxu1 %v6725_v7 }
 0xdbf   : > { %v4630_v24 = vpack.i.b16 %v3479_v56, %v3479_v56  ;;  %v4631_v49 = vpack.i.b16 %v3480_v23, %v3480_v23  ;;  %v3504_v20 = vrot.slane %v4629_v27, %v5594_v53  ;;  %v3580_v56 = vld [vmem:[%s5441_s27 + $0x34] sm:$0x4] }
 0xdc0   : > { %v3489_v59 = vunpack.i.h.s16 %v3481_v3  ;;  %v3493_v15 = vpack.i.b16 %v3485_v34, %v3485_v34  ;;  %v3495_v12 = vpack.i.b16 %v3487_v58, %v3487_v58  ;;  %v4632_v0 = vpack.i.b16 %v3481_v3, %v3481_v3 }
 0xdc1   : > { %v3511_v43 = vrot.slane %v3491_v6, %v5594_v53  ;;  %v3518_v10 = vrot.slane %v4630_v24, %v5594_v53  ;;  %v3532_v17 = vrot.slane %v4631_v49, %v5594_v53  ;;  %v3563_v18 = vsel %vm6027_vm12, %v3504_v20, %v3562_v55  ;;  %3841 = vmatpush1.bf16.msra.mxu0 %v6735_v40  ;;  %v3583_v55 = vld [vmem:[%s5441_s27 + $0x3c] sm:$0x4] }
 0xdc2   : > { %v3497_v23 = vpack.i.b16 %v3489_v59, %v3489_v59  ;;  %v3525_v25 = vrot.slane %v3493_v15, %v5594_v53  ;;  %v3539_v27 = vrot.slane %v3495_v12, %v5594_v53  ;;  %v3546_v3 = vrot.slane %v4632_v0, %v5594_v53  ;;  %3564 = vst [vmem:[%s5441_s27 + $0x4] sm:$0x4] %v3563_v18  ;;  %v4634_v12 = vld [vmem:[%s5430_s3 + $0x1a8] sm:$0xff] }
 0xdc3   : > { %3882 = vmatpush1.bf16.msra.mxu1 %v6745_v50  ;;  %v3566_v34 = vsel %vm6027_vm12, %v3511_v43, %v3565_v37  ;;  %v3569_v58 = vsel %vm6027_vm12, %v3518_v10, %v3568_v9  ;;  %v3575_v6 = vsel %vm6027_vm12, %v3532_v17, %v3574_v31  ;;  %3842 = vmatprep.subr.bf16.mxu0 %v6757_v13 }
 0xdc4   : > { %3883 = vmatprep.subr.bf16.mxu1 %v6760_v44  ;;  %v3553_v24 = vrot.slane %v3497_v23, %v5594_v53  ;;  %3567 = vst [vmem:[%s5441_s27 + $0xc] sm:$0x4] %v3566_v34  ;;  %3570 = vst [vmem:[%s5441_s27 + $0x14] sm:$0x4] %v3569_v58  ;;  %v3572_v49 = vsel %vm6027_vm12, %v3525_v25, %v3571_v19  ;;  %v3578_v20 = vsel %vm6027_vm12, %v3539_v27, %v3577_v51  ;;  %v4635_v25 = vld [vmem:[%s5430_s3 + $0x1b0] sm:$0xff] }
 0xdc5   : > { %3576 = vst [vmem:[%s5441_s27 + $0x24] sm:$0x4] %v3575_v6  ;;  %v3581_v59 = vsel %vm6027_vm12, %v3546_v3, %v3580_v56  ;;  %3573 = vst [vmem:[%s5441_s27 + $0x1c] sm:$0x4] %v3572_v49  ;;  %3843 = vmatpush1.bf16.msra.mxu0 %v6777_v57 }
 0xdc6   : > { %3579 = vst [vmem:[%s5441_s27 + $0x2c] sm:$0x4] %v3578_v20  ;;  %3582 = vst [vmem:[%s5441_s27 + $0x34] sm:$0x4] %v3581_v59  ;;  %v3584_v15 = vsel %vm6027_vm12, %v3553_v24, %v3583_v55  ;;  %3844 = vmatprep.subr.bf16.mxu0 %v6785_v33 }
 0xdc7   : > { %3884 = vmatpush1.bf16.msra.mxu1 %v6782_v39  ;;  %3585 = vst [vmem:[%s5441_s27 + $0x3c] sm:$0x4] %v3584_v15 }
 0xdc8   : > { %3885 = vmatprep.subr.bf16.mxu1 %v6789_v60 }
 0xdc9   : > { %3845 = vmatpush1.bf16.msra.mxu0 %v6792_v8 }
 0xdca   : > { %3846 = vmatprep.subr.bf16.mxu0 %v6798_v16 }
 0xdcb   : > { %3886 = vmatpush1.bf16.msra.mxu1 %v6795_v11 }
 0xdcc   : > { %3887 = vmatprep.subr.bf16.mxu1 %v6801_v61 }
 0xdcd   : > { %3847 = vmatpush1.bf16.msra.mxu0 %v6804_v36 }
 0xdce   : > { %3848 = vmatprep.subr.bf16.mxu0 %v6810_v1 }
 0xdcf   : > { %3888 = vmatpush1.bf16.msra.mxu1 %v6807_v52 }
 0xdd0   : > { %3889 = vmatprep.subr.bf16.mxu1 %v6813_v4 }
 0xdd1   : > { %3849 = vmatpush1.bf16.msra.mxu0 %v6816_v30 }
 0xdd2   : > { %3850 = vmatprep.subr.bf16.mxu0 %v6822_v28 }
 0xdd3   : > { %3890 = vmatpush1.bf16.msra.mxu1 %v6819_v29 }
 0xdd4   : > { %3891 = vmatprep.subr.bf16.mxu1 %v6825_v26 }
 0xdd5   : > { %3851 = vmatpush1.bf16.msra.mxu0 %v6828_v46 }
 0xdd6   : > { %4081 = vmatprep.subr.bf16.mxu0 %v6685_v48  ;;  %v4636_v48 = vld [vmem:[%s5430_s3 + $0x1b8] sm:$0xff] }
 0xdd7   : > { %3892 = vmatpush1.bf16.msra.mxu1 %v6831_v14 }
 0xdd8   : > { %4122 = vmatprep.subr.bf16.mxu1 %v6688_v41 }
 0xe8b   : > { %v3625_v0 = vpop.f32.mrb[52].mxu0  ;;  %v3666_v37 = vpop.f32.mrb[52].mxu1 }
 0xe8c   : > { %v3673_v9 = vadd.f32 %v4633_v54, %v3625_v0  ;;  %v3627_v31 = vpop.f32.mrb[53].mxu0  ;;  %v3668_v43 = vpop.f32.mrb[53].mxu1  ;;  %v3675_v3 = vadd.f32 %v4635_v25, %v3666_v37 }
 0xe8d   : > { %v3674_v10 = vadd.f32 %v4634_v12, %v3627_v31  ;;  %v3629_v17 = vpop.f32.mrb[54].mxu0  ;;  %v3670_v18 = vpop.f32.mrb[54].mxu1  ;;  %v3676_v41 = vadd.f32 %v4636_v48, %v3668_v43 }
 0xe8e   : > { %v4637_v19 = vmul.f32 -1.442695, %v3673_v9  ;;  %v3630_v51 = vpop.f32.mrb[55].mxu0  ;;  %v3671_v56 = vpop.f32.mrb[55].mxu1 }
 0xe8f   : > { %v4638_v23 = vmul.f32 -1.442695, %v3674_v10  ;;  %v4639_v27 = vmul.f32 -1.442695, %v3676_v41 }
 0xe90   : > { %5008 = vpow2.f32 %v4637_v19 }
 0xe91   : > { %5010 = vpow2.f32 %v4638_v23 }
 0xe92   : > { %5012 = vpow2.f32 %v4639_v27  ;;  %v3807_v27 = vld [vmem:[%s5441_s27 + $0x4] sm:$0x4] }
 0xe93   : > { %5014 = vtanh.f32 %v3675_v3 }
 0xe9a   : > { %v5009_v34 = vpop.eup %5008 }
 0xe9b   : > { %v5011_v58 = vpop.eup %5010  ;;  %v3680_v6 = vadd.f32 1.0, %v5009_v34 }
 0xe9c   : > { %v3686_v55 = vadd.f32 1.0, %v5011_v58  ;;  %v5013_v24 = vpop.eup %5012 }
 0xe9d   : > { %5016 = vrcp.f32 %v3680_v6  ;;  %v5015_v49 = vpop.eup %5014  ;;  %v3693_v54 = vadd.f32 1.0, %v5013_v24 }
 0xe9e   : > { %5018 = vrcp.f32 %v3686_v55 }
 0xe9f   : > { %5020 = vrcp.f32 %v3693_v54  ;;  %v3816_v54 = vld [vmem:[%s5441_s27 + $0x1c] sm:$0x4] }
 0xea7   : > { %v5017_v20 = vpop.eup %5016 }
 0xea8   : > { %v5019_v59 = vpop.eup %5018  ;;  %v3697_v15 = vmul.f32 %v5017_v20, %v5015_v49  ;;  %v3810_v49 = vld [vmem:[%s5441_s27 + $0xc] sm:$0x4]  ;;  %v3813_v20 = vld [vmem:[%s5441_s27 + $0x14] sm:$0x4] }
 0xea9   : > { %v3696_v12 = vmul.f32 %v5019_v59, %v6841_v42  ;;  %v5021_v37 = vpop.eup %5020  ;;  %v3819_v59 = vld [vmem:[%s5441_s27 + $0x24] sm:$0x4] }
 0xeab   : > { %v6926_v0 = vadd.f32 %v3697_v15, %v3696_v12 }
 0xead   : > { %5022 = vtanh.f32 %v6926_v0 }
 0xeb7   : > { %v5023_v9 = vpop.eup %5022 }
 0xeb8   : > { %v3700_v31 = vmul.f32 %v5023_v9, %v5021_v37  ;;  %v3822_v37 = vld [vmem:[%s5441_s27 + $0x2c] sm:$0x4]  ;;  %v3825_v9 = vld [vmem:[%s5441_s27 + $0x34] sm:$0x4] }
 0xeba   : > { %v3701_v43 = vpack.c.bf16 %v3700_v31, %v3700_v31 }
 0xebc   : > { %v3709_v10 = vrot.slane %v3701_v43, %v5586_v47  ;;  %3869 = vmatmul.mubr.bf16.vlgmr.msra.gmra.mrb[56].mxu0 %v3701_v43  ;;  %3910 = vmatmul.mubr.bf16.vlgmr.msra.gmra.mrb[56].mxu1 %v3701_v43 }
 0xebd   : > { %4082 = vmatpush1.bf16.msra.mxu0 %v6700_v63  ;;  %4123 = vmatpush1.bf16.msra.mxu1 %v6703_v22 }
 0xebe   : > { %v3710_v17 = vcombine.high %v3709_v10, %v3709_v10  ;;  %v3717_v42 = vrot.slane %v3709_v10, %v5586_v47  ;;  %4083 = vmatprep.subr.bf16.mxu0 %v6707_v2  ;;  %4124 = vmatprep.subr.bf16.mxu1 %v6710_v38 }
 0xebf   : > { %4113 = vmatprep.mubr.bf16.mxu0 %v7180_v5  ;;  %4154 = vmatprep.mubr.bf16.mxu1 %v7180_v5 }
 0xec0   : > { %v3724_v18 = vrot.slane %v3710_v17, %v5586_v47  ;;  %v3725_v19 = vcombine.high %v3717_v42, %v3717_v42  ;;  %v3728_v51 = vunpack.i.h.s16 %v3717_v42  ;;  %v4640_v56 = vpack.i.b16 %v3717_v42, %v3717_v42 }
 0xec1   : > { %4084 = vmatpush1.bf16.msra.mxu0 %v6716_v45  ;;  %4125 = vmatpush1.bf16.msra.mxu1 %v6719_v21 }
 0xec2   : > { %v3726_v63 = vcombine.high %v3724_v18, %v3724_v18  ;;  %v3730_v22 = vunpack.i.h.s16 %v3724_v18  ;;  %v3732_v23 = vunpack.i.h.s16 %v3725_v19  ;;  %v3736_v2 = vpack.i.b16 %v3728_v51, %v3728_v51  ;;  %4085 = vmatprep.subr.bf16.mxu0 %v6722_v62  ;;  %4126 = vmatprep.subr.bf16.mxu1 %v6725_v7 }
 0xec3   : > { %v4641_v38 = vpack.i.b16 %v3724_v18, %v3724_v18  ;;  %v4642_v5 = vpack.i.b16 %v3725_v19, %v3725_v19  ;;  %v3749_v48 = vrot.slane %v4640_v56, %v5594_v53 }
 0xec4   : > { %v3734_v41 = vunpack.i.h.s16 %v3726_v63  ;;  %v3738_v25 = vpack.i.b16 %v3730_v22, %v3730_v22  ;;  %v3740_v45 = vpack.i.b16 %v3732_v23, %v3732_v23  ;;  %v4643_v21 = vpack.i.b16 %v3726_v63, %v3726_v63 }
 0xec5   : > { %v3756_v3 = vrot.slane %v3736_v2, %v5594_v53  ;;  %v3763_v62 = vrot.slane %v4641_v38, %v5594_v53  ;;  %v3777_v7 = vrot.slane %v4642_v5, %v5594_v53  ;;  %v3808_v34 = vsel %vm6117_vm14, %v3749_v48, %v3807_v27  ;;  %4086 = vmatpush1.bf16.msra.mxu0 %v6735_v40 }
 0xec6   : > { %v3742_v58 = vpack.i.b16 %v3734_v41, %v3734_v41  ;;  %v3770_v6 = vrot.slane %v3738_v25, %v5594_v53  ;;  %v3784_v55 = vrot.slane %v3740_v45, %v5594_v53  ;;  %v3791_v24 = vrot.slane %v4643_v21, %v5594_v53  ;;  %3809 = vst [vmem:[%s5441_s27 + $0x4] sm:$0x4] %v3808_v34 }
 0xec7   : > { %4127 = vmatpush1.bf16.msra.mxu1 %v6745_v50  ;;  %v3811_v40 = vsel %vm6117_vm14, %v3756_v3, %v3810_v49  ;;  %v3814_v15 = vsel %vm6117_vm14, %v3763_v62, %v3813_v20  ;;  %v3820_v12 = vsel %vm6117_vm14, %v3777_v7, %v3819_v59  ;;  %4087 = vmatprep.subr.bf16.mxu0 %v6757_v13  ;;  %v3828_v13 = vld [vmem:[%s5441_s27 + $0x3c] sm:$0x4]  ;;  %v4052_v49 = vld [vmem:[%s5441_s27 + $0x4] sm:$0x8] }
 0xec8   : > { %4128 = vmatprep.subr.bf16.mxu1 %v6760_v44  ;;  %v3798_v50 = vrot.slane %v3742_v58, %v5594_v53  ;;  %3812 = vst [vmem:[%s5441_s27 + $0xc] sm:$0x4] %v3811_v40  ;;  %3815 = vst [vmem:[%s5441_s27 + $0x14] sm:$0x4] %v3814_v15  ;;  %v3817_v31 = vsel %vm6117_vm14, %v3770_v6, %v3816_v54  ;;  %v3823_v43 = vsel %vm6117_vm14, %v3784_v55, %v3822_v37 }
 0xec9   : > { %3821 = vst [vmem:[%s5441_s27 + $0x24] sm:$0x4] %v3820_v12  ;;  %v3826_v10 = vsel %vm6117_vm14, %v3791_v24, %v3825_v9  ;;  %3818 = vst [vmem:[%s5441_s27 + $0x1c] sm:$0x4] %v3817_v31  ;;  %4088 = vmatpush1.bf16.msra.mxu0 %v6777_v57  ;;  %v4645_v57 = vld [vmem:[%s5430_s3 + $0x1c8] sm:$0xff] }
 0xeca   : > { %3824 = vst [vmem:[%s5441_s27 + $0x2c] sm:$0x4] %v3823_v43  ;;  %3827 = vst [vmem:[%s5441_s27 + $0x34] sm:$0x4] %v3826_v10  ;;  %v3829_v44 = vsel %vm6117_vm14, %v3798_v50, %v3828_v13  ;;  %4089 = vmatprep.subr.bf16.mxu0 %v6785_v33  ;;  %v4055_v9 = vld [vmem:[%s5441_s27 + $0xc] sm:$0x8] }
 0xecb   : > { %4129 = vmatpush1.bf16.msra.mxu1 %v6782_v39  ;;  %3830 = vst [vmem:[%s5441_s27 + $0x3c] sm:$0x4] %v3829_v44  ;;  %v4058_v50 = vld [vmem:[%s5441_s27 + $0x14] sm:$0x8]  ;;  %v4064_v31 = vld [vmem:[%s5441_s27 + $0x24] sm:$0x8] }
 0xecc   : > { %4130 = vmatprep.subr.bf16.mxu1 %v6789_v60 }
 0xecd   : > { %4090 = vmatpush1.bf16.msra.mxu0 %v6792_v8 }
 0xece   : > { %4091 = vmatprep.subr.bf16.mxu0 %v6798_v16 }
 0xecf   : > { %4131 = vmatpush1.bf16.msra.mxu1 %v6795_v11 }
 0xed0   : > { %4132 = vmatprep.subr.bf16.mxu1 %v6801_v61 }
 0xed1   : > { %4092 = vmatpush1.bf16.msra.mxu0 %v6804_v36 }
 0xed2   : > { %4093 = vmatprep.subr.bf16.mxu0 %v6810_v1 }
 0xed3   : > { %4133 = vmatpush1.bf16.msra.mxu1 %v6807_v52 }
 0xed4   : > { %4134 = vmatprep.subr.bf16.mxu1 %v6813_v4 }
 0xed5   : > { %4094 = vmatpush1.bf16.msra.mxu0 %v6816_v30 }
 0xed6   : > { %4095 = vmatprep.subr.bf16.mxu0 %v6822_v28 }
 0xed7   : > { %4135 = vmatpush1.bf16.msra.mxu1 %v6819_v29  ;;  %v4647_v29 = vld [vmem:[%s5430_s3 + $0x1d8] sm:$0xff] }
 0xed8   : > { %4136 = vmatprep.subr.bf16.mxu1 %v6825_v26  ;;  %v4646_v26 = vld [vmem:[%s5430_s3 + $0x1d0] sm:$0xff] }
 0xed9   : > { %4096 = vmatpush1.bf16.msra.mxu0 %v6828_v46 }
 0xedb   : > { %4137 = vmatpush1.bf16.msra.mxu1 %v6831_v14 }
 0xf8f   : > { %v3870_v39 = vpop.f32.mrb[56].mxu0  ;;  %v3911_v33 = vpop.f32.mrb[56].mxu1 }
 0xf90   : > { %v3918_v60 = vadd.f32 %v4644_v32, %v3870_v39  ;;  %v3872_v8 = vpop.f32.mrb[57].mxu0  ;;  %v3913_v11 = vpop.f32.mrb[57].mxu1  ;;  %v3920_v14 = vadd.f32 %v4646_v26, %v3911_v33  ;;  %v4061_v32 = vld [vmem:[%s5441_s27 + $0x1c] sm:$0x8]  ;;  %v4070_v39 = vld [vmem:[%s5441_s27 + $0x34] sm:$0x8] }
 0xf91   : > { %v3919_v16 = vadd.f32 %v4645_v57, %v3872_v8  ;;  %v3874_v61 = vpop.f32.mrb[58].mxu0  ;;  %v3915_v36 = vpop.f32.mrb[58].mxu1  ;;  %v3921_v28 = vadd.f32 %v4647_v29, %v3913_v11  ;;  %v4067_v57 = vld [vmem:[%s5441_s27 + $0x2c] sm:$0x8]  ;;  %v4655_v26 = vld [vmem:[%s5430_s3 + $0x1e0] sm:$0xff] }
 0xf92   : > { %v4648_v52 = vmul.f32 -1.442695, %v3918_v60  ;;  %v3875_v1 = vpop.f32.mrb[59].mxu0  ;;  %v3916_v4 = vpop.f32.mrb[59].mxu1 }
 0xf93   : > { %v4649_v30 = vmul.f32 -1.442695, %v3919_v16  ;;  %v4650_v46 = vmul.f32 -1.442695, %v3921_v28 }
 0xf94   : > { %5024 = vpow2.f32 %v4648_v52  ;;  %v4073_v52 = vld [vmem:[%s5441_s27 + $0x3c] sm:$0x8] }
 0xf95   : > { %5026 = vpow2.f32 %v4649_v30 }
 0xf96   : > { %5028 = vpow2.f32 %v4650_v46  ;;  %v4656_v46 = vld [vmem:[%s5430_s3 + $0x1e8] sm:$0xff] }
 0xf97   : > { %5030 = vtanh.f32 %v3920_v14 }
 0xf9e   : > { %v5025_v17 = vpop.eup %5024 }
 0xf9f   : > { %v5027_v42 = vpop.eup %5026  ;;  %v3925_v18 = vadd.f32 1.0, %v5025_v17 }
 0xfa0   : > { %v3931_v19 = vadd.f32 1.0, %v5027_v42  ;;  %v5029_v51 = vpop.eup %5028 }
 0xfa1   : > { %5032 = vrcp.f32 %v3925_v18  ;;  %v5031_v56 = vpop.eup %5030  ;;  %v3938_v2 = vadd.f32 1.0, %v5029_v51 }
 0xfa2   : > { %5034 = vrcp.f32 %v3931_v19 }
 0xfa3   : > { %5036 = vrcp.f32 %v3938_v2 }
 0xfab   : > { %v5033_v63 = vpop.eup %5032 }
 0xfac   : > { %v5035_v22 = vpop.eup %5034  ;;  %v3942_v23 = vmul.f32 %v5033_v63, %v5031_v56 }
 0xfad   : > { %v3941_v38 = vmul.f32 %v5035_v22, %v6926_v0  ;;  %v5037_v48 = vpop.eup %5036 }
 0xfaf   : > { %v7009_v5 = vadd.f32 %v3942_v23, %v3941_v38 }
 0xfb1   : > { %5038 = vtanh.f32 %v7009_v5 }
 0xfbb   : > { %v5039_v41 = vpop.eup %5038 }
 0xfbc   : > { %v3945_v25 = vmul.f32 %v5039_v41, %v5037_v48  ;;  %v4657_v41 = vld [vmem:[%s5430_s3 + $0x1f0] sm:$0xff] }
 0xfbe   : > { %v3946_v45 = vpack.c.bf16 %v3945_v25, %v3945_v25 }
 0xfc0   : > { %v3954_v21 = vrot.slane %v3946_v45, %v5586_v47  ;;  %4114 = vmatmul.mubr.bf16.vlgmr.msra.gmra.mrb[60].mxu0 %v3946_v45  ;;  %4155 = vmatmul.mubr.bf16.vlgmr.msra.gmra.mrb[60].mxu1 %v3946_v45 }
 0xfc2   : > { %v3955_v27 = vcombine.high %v3954_v21, %v3954_v21  ;;  %v3962_v3 = vrot.slane %v3954_v21, %v5586_v47 }
 0xfc4   : > { %v3969_v62 = vrot.slane %v3955_v27, %v5586_v47  ;;  %v3970_v0 = vcombine.high %v3962_v3, %v3962_v3  ;;  %v3973_v7 = vunpack.i.h.s16 %v3962_v3  ;;  %v4651_v34 = vpack.i.b16 %v3962_v3, %v3962_v3 }
 0xfc6   : > { %v3971_v58 = vcombine.high %v3969_v62, %v3969_v62  ;;  %v3975_v6 = vunpack.i.h.s16 %v3969_v62  ;;  %v3977_v55 = vunpack.i.h.s16 %v3970_v0  ;;  %v3981_v24 = vpack.i.b16 %v3973_v7, %v3973_v7 }
 0xfc7   : > { %v4652_v20 = vpack.i.b16 %v3969_v62, %v3969_v62  ;;  %v4653_v59 = vpack.i.b16 %v3970_v0, %v3970_v0  ;;  %v3994_v40 = vrot.slane %v4651_v34, %v5594_v53 }
 0xfc8   : > { %v3979_v15 = vunpack.i.h.s16 %v3971_v58  ;;  %v3983_v54 = vpack.i.b16 %v3975_v6, %v3975_v6  ;;  %v3985_v12 = vpack.i.b16 %v3977_v55, %v3977_v55  ;;  %v4654_v37 = vpack.i.b16 %v3971_v58, %v3971_v58 }
 0xfc9   : > { %v4001_v43 = vrot.slane %v3981_v24, %v5594_v53  ;;  %v4008_v10 = vrot.slane %v4652_v20, %v5594_v53  ;;  %v4022_v13 = vrot.slane %v4653_v59, %v5594_v53  ;;  %v4053_v44 = vsel %vm6207_vm1, %v3994_v40, %v4052_v49 }
 0xfca   : > { %v3987_v33 = vpack.i.b16 %v3979_v15, %v3979_v15  ;;  %v4015_v60 = vrot.slane %v3983_v54, %v5594_v53  ;;  %v4029_v8 = vrot.slane %v3985_v12, %v5594_v53  ;;  %v4036_v11 = vrot.slane %v4654_v37, %v5594_v53  ;;  %4054 = vst [vmem:[%s5441_s27 + $0x4] sm:$0x8] %v4053_v44 }
 0xfcb   : > { %v4056_v16 = vsel %vm6207_vm1, %v4001_v43, %v4055_v9  ;;  %v4059_v61 = vsel %vm6207_vm1, %v4008_v10, %v4058_v50  ;;  %v4065_v36 = vsel %vm6207_vm1, %v4022_v13, %v4064_v31 }
 0xfcc   : > { %v4043_v1 = vrot.slane %v3987_v33, %v5594_v53  ;;  %4057 = vst [vmem:[%s5441_s27 + $0xc] sm:$0x8] %v4056_v16  ;;  %4060 = vst [vmem:[%s5441_s27 + $0x14] sm:$0x8] %v4059_v61  ;;  %v4062_v4 = vsel %vm6207_vm1, %v4015_v60, %v4061_v32  ;;  %v4068_v30 = vsel %vm6207_vm1, %v4029_v8, %v4067_v57 }
 0xfcd   : > { %4066 = vst [vmem:[%s5441_s27 + $0x24] sm:$0x8] %v4065_v36  ;;  %v4071_v29 = vsel %vm6207_vm1, %v4036_v11, %v4070_v39  ;;  %4063 = vst [vmem:[%s5441_s27 + $0x1c] sm:$0x8] %v4062_v4 }
 0xfce   : > { %4069 = vst [vmem:[%s5441_s27 + $0x2c] sm:$0x8] %v4068_v30  ;;  %4072 = vst [vmem:[%s5441_s27 + $0x34] sm:$0x8] %v4071_v29  ;;  %v4074_v28 = vsel %vm6207_vm1, %v4043_v1, %v4073_v52 }
 0xfcf   : > { %4075 = vst [vmem:[%s5441_s27 + $0x3c] sm:$0x8] %v4074_v28 }
0x1093   : > { %v4115_v14 = vpop.f32.mrb[60].mxu0  ;;  %v4156_v17 = vpop.f32.mrb[60].mxu1 }
0x1094   : > { %v4163_v42 = vadd.f32 %v4655_v26, %v4115_v14  ;;  %v4117_v18 = vpop.f32.mrb[61].mxu0  ;;  %v4158_v19 = vpop.f32.mrb[61].mxu1  ;;  %v4165_v45 = vadd.f32 %v4657_v41, %v4156_v17  ;;  %v4300_v26 = vld [vmem:[%s5441_s27 + $0xc] sm:$0x8]  ;;  %v4309_v14 = vld [vmem:[%s5441_s27 + $0x24] sm:$0x8] }
0x1095   : > { %v4164_v51 = vadd.f32 %v4656_v46, %v4117_v18  ;;  %v4119_v56 = vpop.f32.mrb[62].mxu0  ;;  %v4160_v63 = vpop.f32.mrb[62].mxu1  ;;  %v4166_v48 = vadd.f32 %v4658_v35, %v4158_v19  ;;  %v4303_v46 = vld [vmem:[%s5441_s27 + $0x14] sm:$0x8]  ;;  %v4306_v18 = vld [vmem:[%s5441_s27 + $0x1c] sm:$0x8] }
0x1096   : > { %v4659_v22 = vmul.f32 -1.442695, %v4163_v42  ;;  %v4120_v23 = vpop.f32.mrb[63].mxu0  ;;  %v4161_v2 = vpop.f32.mrb[63].mxu1  ;;  %v4315_v56 = vld [vmem:[%s5441_s27 + $0x34] sm:$0x8] }
0x1097   : > { %v4660_v38 = vmul.f32 -1.442695, %v4164_v51  ;;  %v4661_v25 = vmul.f32 -1.442695, %v4166_v48  ;;  %v4312_v51 = vld [vmem:[%s5441_s27 + $0x2c] sm:$0x8] }
0x1098   : > { %5040 = vpow2.f32 %v4659_v22 }
0x1099   : > { %5042 = vpow2.f32 %v4660_v38  ;;  %v4318_v38 = vld [vmem:[%s5441_s27 + $0x3c] sm:$0x8] }
0x109a   : > { %5044 = vpow2.f32 %v4661_v25 }
0x109b   : > { %5046 = vtanh.f32 %v4165_v45 }
0x10a2   : > { %v5041_v21 = vpop.eup %5040 }
0x10a3   : > { %v5043_v27 = vpop.eup %5042  ;;  %v4170_v3 = vadd.f32 1.0, %v5041_v21 }
0x10a4   : > { %v4176_v62 = vadd.f32 1.0, %v5043_v27  ;;  %v5045_v0 = vpop.eup %5044 }
0x10a5   : > { %5048 = vrcp.f32 %v4170_v3  ;;  %v5047_v7 = vpop.eup %5046  ;;  %v4183_v55 = vadd.f32 1.0, %v5045_v0 }
0x10a6   : > { %5050 = vrcp.f32 %v4176_v62 }
0x10a7   : > { %5052 = vrcp.f32 %v4183_v55 }
0x10af   : > { %v5049_v34 = vpop.eup %5048 }
0x10b0   : > { %v5051_v58 = vpop.eup %5050  ;;  %v4187_v6 = vmul.f32 %v5049_v34, %v5047_v7 }
0x10b1   : > { %v4186_v24 = vmul.f32 %v5051_v58, %v7009_v5  ;;  %v5053_v20 = vpop.eup %5052 }
0x10b3   : > { %v4188_v49 = vadd.f32 %v4187_v6, %v4186_v24 }
0x10b5   : > { %5054 = vtanh.f32 %v4188_v49  ;;  %4322 = vst [vmem:[#allocation3] sm:$0xff] %v4188_v49 }
0x10bf   : > { %v5055_v59 = vpop.eup %5054 }
0x10c0   : > { %v4190_v40 = vmul.f32 %v5055_v59, %v5053_v20 }
0x10c2   : > { %v4191_v15 = vpack.c.bf16 %v4190_v40, %v4190_v40  ;;  %4321 = vst [vmem:[#allocation2] sm:$0xff] %v4190_v40 }
0x10c4   : > { %v4199_v54 = vrot.slane %v4191_v15, %v5586_v47 }
0x10c6   : > { %v4200_v12 = vcombine.high %v4199_v54, %v4199_v54  ;;  %v4207_v37 = vrot.slane %v4199_v54, %v5586_v47 }
0x10c8   : > { %v4214_v9 = vrot.slane %v4200_v12, %v5586_v47  ;;  %v4215_v50 = vcombine.high %v4207_v37, %v4207_v37  ;;  %v4218_v31 = vunpack.i.h.s16 %v4207_v37  ;;  %v4662_v5 = vpack.i.b16 %v4207_v37, %v4207_v37  ;;  %v4297_v47 = vld [vmem:[%s5441_s27 + $0x4] sm:$0x8] }
0x10ca   : > { %v4216_v43 = vcombine.high %v4214_v9, %v4214_v9  ;;  %v4220_v10 = vunpack.i.h.s16 %v4214_v9  ;;  %v4222_v13 = vunpack.i.h.s16 %v4215_v50  ;;  %v4226_v44 = vpack.i.b16 %v4218_v31, %v4218_v31 }
0x10cb   : > { %v4663_v32 = vpack.i.b16 %v4214_v9, %v4214_v9  ;;  %v4664_v57 = vpack.i.b16 %v4215_v50, %v4215_v50  ;;  %v4239_v39 = vrot.slane %v4662_v5, %v5594_v53 }
0x10cc   : > { %v4224_v33 = vunpack.i.h.s16 %v4216_v43  ;;  %v4228_v60 = vpack.i.b16 %v4220_v10, %v4220_v10  ;;  %v4230_v8 = vpack.i.b16 %v4222_v13, %v4222_v13  ;;  %v4665_v11 = vpack.i.b16 %v4216_v43, %v4216_v43 }
0x10cd   : > { %v4246_v16 = vrot.slane %v4226_v44, %v5594_v53  ;;  %v4253_v61 = vrot.slane %v4663_v32, %v5594_v53  ;;  %v4267_v36 = vrot.slane %v4664_v57, %v5594_v53  ;;  %v4298_v1 = vsel %vm6314_vm5, %v4239_v39, %v4297_v47 }
0x10ce   : > { %v4232_v4 = vpack.i.b16 %v4224_v33, %v4224_v33  ;;  %v4260_v30 = vrot.slane %v4228_v60, %v5594_v53  ;;  %v4274_v29 = vrot.slane %v4230_v8, %v5594_v53  ;;  %v4281_v28 = vrot.slane %v4665_v11, %v5594_v53  ;;  %4299 = vst [vmem:[%s5441_s27 + $0x4] sm:$0x8] %v4298_v1 }
0x10cf   : > { %v4301_v17 = vsel %vm6314_vm5, %v4246_v16, %v4300_v26  ;;  %v4304_v42 = vsel %vm6314_vm5, %v4253_v61, %v4303_v46  ;;  %v4310_v19 = vsel %vm6314_vm5, %v4267_v36, %v4309_v14 }
0x10d0   : > { %v4288_v63 = vrot.slane %v4232_v4, %v5594_v53  ;;  %4302 = vst [vmem:[%s5441_s27 + $0xc] sm:$0x8] %v4301_v17  ;;  %4305 = vst [vmem:[%s5441_s27 + $0x14] sm:$0x8] %v4304_v42  ;;  %v4307_v22 = vsel %vm6314_vm5, %v4260_v30, %v4306_v18  ;;  %v4313_v23 = vsel %vm6314_vm5, %v4274_v29, %v4312_v51 }
0x10d1   : > { %4311 = vst [vmem:[%s5441_s27 + $0x24] sm:$0x8] %v4310_v19  ;;  %v4316_v2 = vsel %vm6314_vm5, %v4281_v28, %v4315_v56  ;;  %4308 = vst [vmem:[%s5441_s27 + $0x1c] sm:$0x8] %v4307_v22 }
0x10d2   : > { %4314 = vst [vmem:[%s5441_s27 + $0x2c] sm:$0x8] %v4313_v23  ;;  %4317 = vst [vmem:[%s5441_s27 + $0x34] sm:$0x8] %v4316_v2  ;;  %v4319_v35 = vsel %vm6314_vm5, %v4288_v63, %v4318_v38 }
0x10d3   : > { %4320 = vst [vmem:[%s5441_s27 + $0x3c] sm:$0x8] %v4319_v35 }
0x10d4   : > { %s4673_s22 = sshll.u32 %s5307_s13, 7  ;;  %s4353_s23 = sshll.u32 %s5441_s27, 4  ;;  %s4354_s23 = int_to_ptr.vmem [resolvable:$true] %s4353_s23 }
0x10d5   : > { %s4336_s5 = scalar_lea.hbm %s7143_s2, %s4673_s22  ;;  %s5264_s6 = smov 128  }
0x10d6   : > { %4680 = sst [smem:[#allocation11]] (%p5378_p11), %s5264_s6  ;;  %s5265_s7 = smov 256  }
0x10d7   : > { %4681 = sst [smem:[#allocation11 + $0x1]] (%p5378_p11), %s5265_s7  ;;  %s5266_s18 = smov 2  }
0x10d8   : > { %4682 = sst [smem:[#allocation11 + $0x2]] (%p5378_p11), %s5266_s18  ;;  %s5267_s24 = smov 64  }
0x10d9   : > { %4683 = sst [smem:[#allocation11 + $0x3]] (%p5378_p11), %s5267_s24  ;;  %s5268_s13 = smov 4  }
0x10da   : > { %4684 = sst [smem:[#allocation11 + $0x4]] (%p5378_p11), %s5267_s24  ;;  %s5269_s25 = smov [#allocation10]  }
0x10db   : > { %4685 = sst [smem:[#allocation11 + $0x5]] (%p5378_p11), %s5268_s13  ;;  %s5270_s20 = smov 0  }
0x10dc   : > { %4686 = dma.general (%p5378_p11), %s4354_s23, 1024, %s4336_s5, %s4324_s15, %s5269_s25, [#allocation11], %s5270_s20, 0  }
0x10dd PF: > { %s4381_s26 = sand.u32 1, %s5240_s9   ;;  %p7182_p6 = scmp.ne.s32.totalorder %s7152_s16, 0 }
0x10de   : > { %p7183_p8 = scmp.ge.s32.totalorder %s5252_s12, 2  ;;  %s4382_s19 = scalar_lea.sflag [#allocation6], %s4381_s26 }
0x10e0   : > { %p4697_p9 = pnand %p7183_p8, %p7182_p6 }
0x10e2   : > { %5235 = dma.done.wait (!%p4697_p9), %s4382_s19, 1024  }
0x10e3   : > { %5237 = vsyncadd (!%p4697_p9), %s4382_s19, 4294966272  ;;  %p16_p13 = scmp.ge.s32.totalorder %s5343_s21, 4   ;;  %s7184_s9 = smov %s5244_s10 }
0x10e4   : > { %s7185_s10 = smov %s5248_s11  ;;  %s7186_s11 = smov %s5374_s8 }
0x10e5   : > { %s7187_s12 = smov %s5343_s21  ;;  %18 = sbr.rel (!%p16_p13) target bundleno = 6 (0x6), region = 101 }
0x10ec   :  { %4387 = vsyncpa [#allocation5], 1 }
0x10ed   :  { %4389 = vsyncpa [#allocation5 + $0x1], 1 }
0x10ee   :  { %4390 = vsyncpa [#allocation8], 1 }
0x10ef   :  { %4391 = vsyncpa [#allocation6], 1 }
0x10f0   :  { %4393 = vsyncpa [#allocation6 + $0x1], 1 }

</bundles_post_ra>
